<compile_context>
chip_gen: v7x
topology: tpu7x:2x2x1
jax: 0.10.0
libtpu: 0.0.40
codegen_flags: <defaults>
</compile_context>

<pallas_src>
import jax
import jax.numpy as jnp
from jax.experimental import pallas as pl
from jax.experimental.pallas import tpu as pltpu


# ------------------------------ Pallas kernels ------------------------------

def _matmul_bias_relu_kernel(p_ref, w_ref, b_ref, o_ref):
    """One MXU matmul over the full K*Cin contraction, then bias + ReLU.
    (BN scale is folded into w in the wrapper; b is the folded BN bias.)"""
    acc = jnp.dot(p_ref[...], w_ref[...], preferred_element_type=jnp.float32)
    o_ref[...] = jnp.maximum(acc + b_ref[...], 0.0).astype(o_ref.dtype)


def _make_pool_conv_kernel(k_taps, cin):
    """Fused Reduction_A head: branch_a (MaxPool 3x3/2) + branch_b
    (ConvWithBN 3x3/2) share one (M, K*Cin) stride-2 im2col slab and write a
    single lane-dense (tm, cin + cout) block (= first channels of the concat)."""
    def kernel(p_ref, w_ref, b_ref, o_ref):
        p = p_ref[...]                                    # (tm, K*Cin) bf16
        # branch_a: 3x3 stride-2 max pool == max over the K tap chunks
        # (stride-2 decimation is already baked into the im2col gather).
        pooled = p[:, 0:cin]
        for k in range(1, k_taps):
            pooled = jnp.maximum(pooled, p[:, k * cin:(k + 1) * cin])
        o_ref[:, 0:cin] = pooled.astype(o_ref.dtype)
        # branch_b: single MXU matmul with a K*Cin-deep contraction.
        acc = jnp.dot(p, w_ref[...], preferred_element_type=jnp.float32)
        o_ref[:, cin:] = jnp.maximum(acc + b_ref[...], 0.0).astype(o_ref.dtype)
    return kernel


# ------------------------------ wrapper glue ------------------------------

def _round_up(x, m):
    return (x + m - 1) // m * m


def _im2col(x, kh, kw, stride):
    """(N,H,W,C) -> (M=N*Ho*Wo, K*C); (tap, channel) ordering matches
    w.reshape(kh*kw*cin, cout)."""
    n, h, w, c = x.shape
    ho = (h - kh) // stride + 1
    wo = (w - kw) // stride + 1
    cols = []
    for ih in range(kh):
        for iw in range(kw):
            cols.append(x[:, ih: ih + stride * (ho - 1) + 1: stride,
                             iw: iw + stride * (wo - 1) + 1: stride, :])
    patches = jnp.stack(cols, axis=3)                     # (N, Ho, Wo, K, C)
    return patches.reshape(n * ho * wo, kh * kw * c), ho, wo


def _tile_m(m):
    """M tile: multiple of 8; split large M so the grid axis can be sharded
    across TensorCores (v7x) and blocks stay small on v7x's 64 MiB VMEM."""
    tm = 256 if m > 256 else _round_up(m, 8)
    return tm, _round_up(m, tm)


def conv_bn_relu(x, w, scale, bias, *, stride=1, padding=(0, 0)):
    """x: NHWC f32 (possibly zero-padded channels), w: HWIO, scale/bias: (Cout,).
    Returns NHWC with Cout padded to a multiple of 128 (padded channels == 0)."""
    kh, kw, cin, cout = w.shape
    cin_in = x.shape[-1]
    if cin_in > cin:                       # input carries zero-padded channels
        w = jnp.pad(w, ((0, 0), (0, 0), (0, cin_in - cin), (0, 0)))
        cin = cin_in
    if padding != (0, 0):
        x = jnp.pad(x, ((0, 0), (padding[0], padding[0]),
                        (padding[1], padding[1]), (0, 0)))
    n = x.shape[0]
    if kh == 1 and kw == 1 and stride == 1:
        ho, wo = x.shape[1], x.shape[2]
        patches = x.reshape(n * ho * wo, cin)             # no im2col for 1x1
    else:
        patches, ho, wo = _im2col(x, kh, kw, stride)
    m, kc = patches.shape

    cout_p = _round_up(cout, 128)                         # lane-dense output
    wmat = (w * scale).reshape(kc, cout)                  # fold BN scale into w
    wmat = jnp.pad(wmat, ((0, 0), (0, cout_p - cout))).astype(jnp.bfloat16)
    b = jnp.pad(bias, (0, cout_p - cout)).reshape(1, cout_p).astype(jnp.float32)

    tm, m_p = _tile_m(m)
    patches = jnp.pad(patches, ((0, m_p - m), (0, 0))).astype(jnp.bfloat16)

    out = pl.pallas_call(
        _matmul_bias_relu_kernel,
        out_shape=jax.ShapeDtypeStruct((m_p, cout_p), jnp.float32),
        grid=(m_p // tm,),
        in_specs=[
            pl.BlockSpec((tm, kc), lambda i: (i, 0)),
            pl.BlockSpec((kc, cout_p), lambda i: (0, 0)),
            pl.BlockSpec((1, cout_p), lambda i: (0, 0)),
        ],
        out_specs=pl.BlockSpec((tm, cout_p), lambda i: (i, 0)),
        compiler_params=pltpu.CompilerParams(dimension_semantics=("parallel",)),
    )(patches, wmat, b)
    return out[:m].reshape(n, ho, wo, cout_p)


def pool_conv_head(x, w, scale, bias):
    """Fused branch_a (MaxPool2d(3, stride=2)) + branch_b (ConvWithBN 3x3/2)."""
    n = x.shape[0]
    c = x.shape[-1]
    kh, kw, _, cout = w.shape
    patches, ho, wo = _im2col(x, kh, kw, 2)
    m, kc = patches.shape
    wmat = (w * scale).reshape(kc, cout).astype(jnp.bfloat16)
    b = bias.reshape(1, cout).astype(jnp.float32)

    tm, m_p = _tile_m(m)
    patches = jnp.pad(patches, ((0, m_p - m), (0, 0))).astype(jnp.bfloat16)

    out = pl.pallas_call(
        _make_pool_conv_kernel(kh * kw, c),
        out_shape=jax.ShapeDtypeStruct((m_p, c + cout), jnp.float32),
        grid=(m_p // tm,),
        in_specs=[
            pl.BlockSpec((tm, kc), lambda i: (i, 0)),
            pl.BlockSpec((kc, cout), lambda i: (0, 0)),
            pl.BlockSpec((1, cout), lambda i: (0, 0)),
        ],
        out_specs=pl.BlockSpec((tm, c + cout), lambda i: (i, 0)),
        compiler_params=pltpu.CompilerParams(dimension_semantics=("parallel",)),
    )(patches, wmat, b)
    return out[:m].reshape(n, ho, wo, c + cout)


# ------------------------------ Reduction_A forward ------------------------------

_CONV_DEFS = {
    "b":  (3, 3, 384, 384),   # branch_b: 3x3 stride 2
    "c1": (1, 1, 384, 192),   # branch_c[0]: 1x1
    "c2": (3, 3, 192, 224),   # branch_c[1]: 3x3 stride 1, pad 1
    "c3": (3, 3, 224, 256),   # branch_c[2]: 3x3 stride 2
}


def init_params(key):
    params = {}
    keys = jax.random.split(key, len(_CONV_DEFS))
    for k, (name, (kh, kw, cin, cout)) in zip(keys, _CONV_DEFS.items()):
        k1, k2, k3 = jax.random.split(k, 3)
        fan_in = float(kh * kw * cin)
        w = jax.random.normal(k1, (kh, kw, cin, cout), jnp.float32) * fan_in ** -0.5
        scale = 1.0 + 0.1 * jax.random.normal(k2, (cout,), jnp.float32)
        bias = 0.1 * jax.random.normal(k3, (cout,), jnp.float32)
        params[name] = (w, scale, bias)
    return params


def reduction_a_forward(x_nchw, params):
    x = jnp.transpose(x_nchw, (0, 2, 3, 1)).astype(jnp.float32)   # NCHW -> NHWC
    head = pool_conv_head(x, *params["b"])              # [branch_a | branch_b], 768 ch
    c = conv_bn_relu(x, *params["c1"])                  # 1x1, 192 (padded to 256, zeros)
    c = conv_bn_relu(c, *params["c2"], padding=(1, 1))  # 3x3 pad 1, 224 (padded to 256)
    c = conv_bn_relu(c, *params["c3"], stride=2)        # 3x3 stride 2, 256 (exact)
    out = jnp.concatenate([head, c], axis=-1)           # == torch.cat([a, b, c], 1)
    return jnp.transpose(out, (0, 3, 1, 2))             # NHWC -> NCHW


# ------------------------------ pure-JAX reference ------------------------------

def _conv_ref(x, w, scale, bias, stride=1, padding=(0, 0)):
    y = jax.lax.conv_general_dilated(
        x, w, window_strides=(stride, stride),
        padding=((padding[0], padding[0]), (padding[1], padding[1])),
        dimension_numbers=("NHWC", "HWIO", "NHWC"),
        precision=jax.lax.Precision.HIGHEST)
    return jnp.maximum(y * scale + bias, 0.0)


def _pool_ref(x):
    return jax.lax.reduce_window(x, -jnp.inf, jax.lax.max,
                                 (1, 3, 3, 1), (1, 2, 2, 1), "VALID")


def reduction_a_reference(x_nchw, params):
    x = jnp.transpose(x_nchw, (0, 2, 3, 1)).astype(jnp.float32)
    a = _pool_ref(x)
    b = _conv_ref(x, *params["b"], stride=2)
    c = _conv_ref(x, *params["c1"])
    c = _conv_ref(c, *params["c2"], padding=(1, 1))
    c = _conv_ref(c, *params["c3"], stride=2)
    out = jnp.concatenate([a, b, c], axis=-1)
    return jnp.transpose(out, (0, 3, 1, 2))


# ------------------------------ main ------------------------------

if __name__ == "__main__":
    key = jax.random.PRNGKey(0)
    kx, kp = jax.random.split(key)
    # 384 input channels are fixed by the module; small spatial 15x15, batch 2.
    x = jax.random.normal(kx, (2, 384, 15, 15), jnp.float32)      # NCHW
    params = init_params(kp)

    out = jax.block_until_ready(jax.jit(reduction_a_forward)(x, params))
    assert out.shape == (2, 384 + 384 + 256, 7, 7), out.shape

    ref = reduction_a_reference(x, params)
    # bf16 MXU operands (f32 accumulate) vs. f32 HIGHEST-precision reference.
    max_err = float(jnp.max(jnp.abs(out - ref)))
    assert jnp.allclose(out, ref, rtol=5e-2, atol=5e-2), max_err

    print("KERNEL_OK")
</pallas_src>

<mosaic_0001>
module attributes {stable_mosaic.version = 11 : i64} {
  func.func @_matmul_bias_relu_kernel(%arg0: i32, %arg1: memref<256x384xbf16, #tpu.memory_space<vmem>>, %arg2: memref<384x256xbf16, #tpu.memory_space<vmem>>, %arg3: memref<1x256xf32, #tpu.memory_space<vmem>>, %arg4: memref<256x256xf32, #tpu.memory_space<vmem>>) attributes {dimension_semantics = [#tpu.dimension_semantics<parallel>], iteration_bounds = array<i64: 2>, scalar_prefetch = 0 : i64, scratch_operands = 0 : i64, tpu.core_type = #tpu.core_type<tc>, window_params = [{transform_indices = @transform_0, window_bounds = array<i64: 256, 384>}, {pipeline_mode = #tpu.pipeline_mode<synchronous>, transform_indices = @transform_1, window_bounds = array<i64: 384, 256>}, {pipeline_mode = #tpu.pipeline_mode<synchronous>, transform_indices = @transform_2, window_bounds = array<i64: 1, 256>}, {transform_indices = @transform_3, window_bounds = array<i64: 256, 256>}]} {
    %c0 = arith.constant 0 : index
    %c0_0 = arith.constant 0 : index
    %0 = vector.load %arg1[%c0, %c0_0] : memref<256x384xbf16, #tpu.memory_space<vmem>>, vector<256x384xbf16>
    %c0_1 = arith.constant 0 : index
    %c0_2 = arith.constant 0 : index
    %1 = vector.load %arg2[%c0_1, %c0_2] : memref<384x256xbf16, #tpu.memory_space<vmem>>, vector<384x256xbf16>
    %cst = arith.constant dense<0.000000e+00> : vector<256x256xf32>
    %2 = tpu.matmul %0, %1, %cst {dimension_numbers = #tpu.dot_dimension_numbers<[1], [0], [0], [1], [0, 0, 1, 1], [], []>} : vector<256x384xbf16>, vector<384x256xbf16>, vector<256x256xf32> -> vector<256x256xf32>
    %c0_3 = arith.constant 0 : index
    %c0_4 = arith.constant 0 : index
    %3 = vector.load %arg3[%c0_3, %c0_4] : memref<1x256xf32, #tpu.memory_space<vmem>>, vector<1x256xf32>
    %4 = vector.broadcast %3 : vector<1x256xf32> to vector<256x256xf32>
    %5 = arith.addf %2, %4 : vector<256x256xf32>
    %cst_5 = arith.constant 0.000000e+00 : f32
    %6 = vector.broadcast %cst_5 : f32 to vector<256x256xf32>
    %7 = arith.maximumf %5, %6 : vector<256x256xf32>
    %c0_6 = arith.constant 0 : index
    %c0_7 = arith.constant 0 : index
    %8 = vector.load %arg4[%c0_6, %c0_7] : memref<256x256xf32, #tpu.memory_space<vmem>>, vector<256x256xf32>
    tpu.vector_store %arg4[%c0_6, %c0_7], %7 {strides = array<i32>} : memref<256x256xf32, #tpu.memory_space<vmem>>, vector<256x256xf32>,
    return
  }
  func.func @transform_0(%arg0: i32) -> (i32, i32) {
    %c0_i32 = arith.constant 0 : i32
    %c0_i32_0 = arith.constant 0 : i32
    return %arg0, %c0_i32 : i32, i32
  }
  func.func @transform_1(%arg0: i32) -> (i32, i32) {
    %c0_i32 = arith.constant 0 : i32
    %c0_i32_0 = arith.constant 0 : i32
    %c0_i32_1 = arith.constant 0 : i32
    return %c0_i32, %c0_i32_0 : i32, i32
  }
  func.func @transform_2(%arg0: i32) -> (i32, i32) {
    %c0_i32 = arith.constant 0 : i32
    %c0_i32_0 = arith.constant 0 : i32
    %c0_i32_1 = arith.constant 0 : i32
    return %c0_i32, %c0_i32_0 : i32, i32
  }
  func.func @transform_3(%arg0: i32) -> (i32, i32) {
    %c0_i32 = arith.constant 0 : i32
    %c0_i32_0 = arith.constant 0 : i32
    return %arg0, %c0_i32 : i32, i32
  }
}

module attributes {stable_mosaic.version = 11 : i64} {
  func.func @_matmul_bias_relu_kernel(%arg0: i32, %arg1: memref<256x2304xbf16, #tpu.memory_space<vmem>>, %arg2: memref<2304x256xbf16, #tpu.memory_space<vmem>>, %arg3: memref<1x256xf32, #tpu.memory_space<vmem>>, %arg4: memref<256x256xf32, #tpu.memory_space<vmem>>) attributes {dimension_semantics = [#tpu.dimension_semantics<parallel>], iteration_bounds = array<i64: 2>, scalar_prefetch = 0 : i64, scratch_operands = 0 : i64, tpu.core_type = #tpu.core_type<tc>, window_params = [{transform_indices = @transform_0, window_bounds = array<i64: 256, 2304>}, {pipeline_mode = #tpu.pipeline_mode<synchronous>, transform_indices = @transform_1, window_bounds = array<i64: 2304, 256>}, {pipeline_mode = #tpu.pipeline_mode<synchronous>, transform_indices = @transform_2, window_bounds = array<i64: 1, 256>}, {transform_indices = @transform_3, window_bounds = array<i64: 256, 256>}]} {
    %c0 = arith.constant 0 : index
    %c0_0 = arith.constant 0 : index
    %0 = vector.load %arg1[%c0, %c0_0] : memref<256x2304xbf16, #tpu.memory_space<vmem>>, vector<256x2304xbf16>
    %c0_1 = arith.constant 0 : index
    %c0_2 = arith.constant 0 : index
    %1 = vector.load %arg2[%c0_1, %c0_2] : memref<2304x256xbf16, #tpu.memory_space<vmem>>, vector<2304x256xbf16>
    %cst = arith.constant dense<0.000000e+00> : vector<256x256xf32>
    %2 = tpu.matmul %0, %1, %cst {dimension_numbers = #tpu.dot_dimension_numbers<[1], [0], [0], [1], [0, 0, 1, 1], [], []>} : vector<256x2304xbf16>, vector<2304x256xbf16>, vector<256x256xf32> -> vector<256x256xf32>
    %c0_3 = arith.constant 0 : index
    %c0_4 = arith.constant 0 : index
    %3 = vector.load %arg3[%c0_3, %c0_4] : memref<1x256xf32, #tpu.memory_space<vmem>>, vector<1x256xf32>
    %4 = vector.broadcast %3 : vector<1x256xf32> to vector<256x256xf32>
    %5 = arith.addf %2, %4 : vector<256x256xf32>
    %cst_5 = arith.constant 0.000000e+00 : f32
    %6 = vector.broadcast %cst_5 : f32 to vector<256x256xf32>
    %7 = arith.maximumf %5, %6 : vector<256x256xf32>
    %c0_6 = arith.constant 0 : index
    %c0_7 = arith.constant 0 : index
    %8 = vector.load %arg4[%c0_6, %c0_7] : memref<256x256xf32, #tpu.memory_space<vmem>>, vector<256x256xf32>
    tpu.vector_store %arg4[%c0_6, %c0_7], %7 {strides = array<i32>} : memref<256x256xf32, #tpu.memory_space<vmem>>, vector<256x256xf32>,
    return
  }
  func.func @transform_0(%arg0: i32) -> (i32, i32) {
    %c0_i32 = arith.constant 0 : i32
    %c0_i32_0 = arith.constant 0 : i32
    return %arg0, %c0_i32 : i32, i32
  }
  func.func @transform_1(%arg0: i32) -> (i32, i32) {
    %c0_i32 = arith.constant 0 : i32
    %c0_i32_0 = arith.constant 0 : i32
    %c0_i32_1 = arith.constant 0 : i32
    return %c0_i32, %c0_i32_0 : i32, i32
  }
  func.func @transform_2(%arg0: i32) -> (i32, i32) {
    %c0_i32 = arith.constant 0 : i32
    %c0_i32_0 = arith.constant 0 : i32
    %c0_i32_1 = arith.constant 0 : i32
    return %c0_i32, %c0_i32_0 : i32, i32
  }
  func.func @transform_3(%arg0: i32) -> (i32, i32) {
    %c0_i32 = arith.constant 0 : i32
    %c0_i32_0 = arith.constant 0 : i32
    return %arg0, %c0_i32 : i32, i32
  }
}

module attributes {stable_mosaic.version = 11 : i64} {
  func.func @_matmul_bias_relu_kernel(%arg0: i32, %arg1: memref<104x2304xbf16, #tpu.memory_space<vmem>>, %arg2: memref<2304x256xbf16, #tpu.memory_space<vmem>>, %arg3: memref<1x256xf32, #tpu.memory_space<vmem>>, %arg4: memref<104x256xf32, #tpu.memory_space<vmem>>) attributes {dimension_semantics = [#tpu.dimension_semantics<parallel>], iteration_bounds = array<i64: 1>, scalar_prefetch = 0 : i64, scratch_operands = 0 : i64, tpu.core_type = #tpu.core_type<tc>, window_params = [{transform_indices = @transform_0, window_bounds = array<i64: 104, 2304>}, {pipeline_mode = #tpu.pipeline_mode<synchronous>, transform_indices = @transform_1, window_bounds = array<i64: 2304, 256>}, {pipeline_mode = #tpu.pipeline_mode<synchronous>, transform_indices = @transform_2, window_bounds = array<i64: 1, 256>}, {transform_indices = @transform_3, window_bounds = array<i64: 104, 256>}]} {
    %c0 = arith.constant 0 : index
    %c0_0 = arith.constant 0 : index
    %0 = vector.load %arg1[%c0, %c0_0] : memref<104x2304xbf16, #tpu.memory_space<vmem>>, vector<104x2304xbf16>
    %c0_1 = arith.constant 0 : index
    %c0_2 = arith.constant 0 : index
    %1 = vector.load %arg2[%c0_1, %c0_2] : memref<2304x256xbf16, #tpu.memory_space<vmem>>, vector<2304x256xbf16>
    %cst = arith.constant dense<0.000000e+00> : vector<104x256xf32>
    %2 = tpu.matmul %0, %1, %cst {dimension_numbers = #tpu.dot_dimension_numbers<[1], [0], [0], [1], [0, 0, 1, 1], [], []>} : vector<104x2304xbf16>, vector<2304x256xbf16>, vector<104x256xf32> -> vector<104x256xf32>
    %c0_3 = arith.constant 0 : index
    %c0_4 = arith.constant 0 : index
    %3 = vector.load %arg3[%c0_3, %c0_4] : memref<1x256xf32, #tpu.memory_space<vmem>>, vector<1x256xf32>
    %4 = vector.broadcast %3 : vector<1x256xf32> to vector<104x256xf32>
    %5 = arith.addf %2, %4 : vector<104x256xf32>
    %cst_5 = arith.constant 0.000000e+00 : f32
    %6 = vector.broadcast %cst_5 : f32 to vector<104x256xf32>
    %7 = arith.maximumf %5, %6 : vector<104x256xf32>
    %c0_6 = arith.constant 0 : index
    %c0_7 = arith.constant 0 : index
    %8 = vector.load %arg4[%c0_6, %c0_7] : memref<104x256xf32, #tpu.memory_space<vmem>>, vector<104x256xf32>
    tpu.vector_store %arg4[%c0_6, %c0_7], %7 {strides = array<i32>} : memref<104x256xf32, #tpu.memory_space<vmem>>, vector<104x256xf32>,
    return
  }
  func.func @transform_0(%arg0: i32) -> (i32, i32) {
    %c0_i32 = arith.constant 0 : i32
    %c0_i32_0 = arith.constant 0 : i32
    return %arg0, %c0_i32 : i32, i32
  }
  func.func @transform_1(%arg0: i32) -> (i32, i32) {
    %c0_i32 = arith.constant 0 : i32
    %c0_i32_0 = arith.constant 0 : i32
    %c0_i32_1 = arith.constant 0 : i32
    return %c0_i32, %c0_i32_0 : i32, i32
  }
  func.func @transform_2(%arg0: i32) -> (i32, i32) {
    %c0_i32 = arith.constant 0 : i32
    %c0_i32_0 = arith.constant 0 : i32
    %c0_i32_1 = arith.constant 0 : i32
    return %c0_i32, %c0_i32_0 : i32, i32
  }
  func.func @transform_3(%arg0: i32) -> (i32, i32) {
    %c0_i32 = arith.constant 0 : i32
    %c0_i32_0 = arith.constant 0 : i32
    return %arg0, %c0_i32 : i32, i32
  }
}

module attributes {stable_mosaic.version = 11 : i64} {
  func.func @kernel(%arg0: i32, %arg1: memref<104x3456xbf16, #tpu.memory_space<vmem>>, %arg2: memref<3456x384xbf16, #tpu.memory_space<vmem>>, %arg3: memref<1x384xf32, #tpu.memory_space<vmem>>, %arg4: memref<104x768xf32, #tpu.memory_space<vmem>>) attributes {dimension_semantics = [#tpu.dimension_semantics<parallel>], iteration_bounds = array<i64: 1>, scalar_prefetch = 0 : i64, scratch_operands = 0 : i64, tpu.core_type = #tpu.core_type<tc>, window_params = [{transform_indices = @transform_0, window_bounds = array<i64: 104, 3456>}, {pipeline_mode = #tpu.pipeline_mode<synchronous>, transform_indices = @transform_1, window_bounds = array<i64: 3456, 384>}, {pipeline_mode = #tpu.pipeline_mode<synchronous>, transform_indices = @transform_2, window_bounds = array<i64: 1, 384>}, {transform_indices = @transform_3, window_bounds = array<i64: 104, 768>}]} {
    %c0 = arith.constant 0 : index
    %c0_0 = arith.constant 0 : index
    %0 = vector.load %arg1[%c0, %c0_0] : memref<104x3456xbf16, #tpu.memory_space<vmem>>, vector<104x3456xbf16>
    %1 = vector.extract_strided_slice %0 {offsets = [0, 0], sizes = [104, 384], strides = [1, 1]} : vector<104x3456xbf16> to vector<104x384xbf16>
    %2 = vector.extract_strided_slice %0 {offsets = [0, 384], sizes = [104, 384], strides = [1, 1]} : vector<104x3456xbf16> to vector<104x384xbf16>
    %3 = arith.maximumf %1, %2 : vector<104x384xbf16>
    %4 = vector.extract_strided_slice %0 {offsets = [0, 768], sizes = [104, 384], strides = [1, 1]} : vector<104x3456xbf16> to vector<104x384xbf16>
    %5 = arith.maximumf %3, %4 : vector<104x384xbf16>
    %6 = vector.extract_strided_slice %0 {offsets = [0, 1152], sizes = [104, 384], strides = [1, 1]} : vector<104x3456xbf16> to vector<104x384xbf16>
    %7 = arith.maximumf %5, %6 : vector<104x384xbf16>
    %8 = vector.extract_strided_slice %0 {offsets = [0, 1536], sizes = [104, 384], strides = [1, 1]} : vector<104x3456xbf16> to vector<104x384xbf16>
    %9 = arith.maximumf %7, %8 : vector<104x384xbf16>
    %10 = vector.extract_strided_slice %0 {offsets = [0, 1920], sizes = [104, 384], strides = [1, 1]} : vector<104x3456xbf16> to vector<104x384xbf16>
    %11 = arith.maximumf %9, %10 : vector<104x384xbf16>
    %12 = vector.extract_strided_slice %0 {offsets = [0, 2304], sizes = [104, 384], strides = [1, 1]} : vector<104x3456xbf16> to vector<104x384xbf16>
    %13 = arith.maximumf %11, %12 : vector<104x384xbf16>
    %14 = vector.extract_strided_slice %0 {offsets = [0, 2688], sizes = [104, 384], strides = [1, 1]} : vector<104x3456xbf16> to vector<104x384xbf16>
    %15 = arith.maximumf %13, %14 : vector<104x384xbf16>
    %16 = vector.extract_strided_slice %0 {offsets = [0, 3072], sizes = [104, 384], strides = [1, 1]} : vector<104x3456xbf16> to vector<104x384xbf16>
    %17 = arith.maximumf %15, %16 : vector<104x384xbf16>
    %18 = arith.extf %17 : vector<104x384xbf16> to vector<104x384xf32>
    %c0_1 = arith.constant 0 : index
    %c0_2 = arith.constant 0 : index
    %19 = vector.load %arg4[%c0_1, %c0_2] : memref<104x768xf32, #tpu.memory_space<vmem>>, vector<104x384xf32>
    tpu.vector_store %arg4[%c0_1, %c0_2], %18 {strides = array<i32>} : memref<104x768xf32, #tpu.memory_space<vmem>>, vector<104x384xf32>,
    %c0_3 = arith.constant 0 : index
    %c0_4 = arith.constant 0 : index
    %20 = vector.load %arg2[%c0_3, %c0_4] : memref<3456x384xbf16, #tpu.memory_space<vmem>>, vector<3456x384xbf16>
    %cst = arith.constant dense<0.000000e+00> : vector<104x384xf32>
    %21 = tpu.matmul %0, %20, %cst {dimension_numbers = #tpu.dot_dimension_numbers<[1], [0], [0], [1], [0, 0, 1, 1], [], []>} : vector<104x3456xbf16>, vector<3456x384xbf16>, vector<104x384xf32> -> vector<104x384xf32>
    %c0_5 = arith.constant 0 : index
    %c0_6 = arith.constant 0 : index
    %22 = vector.load %arg3[%c0_5, %c0_6] : memref<1x384xf32, #tpu.memory_space<vmem>>, vector<1x384xf32>
    %23 = vector.broadcast %22 : vector<1x384xf32> to vector<104x384xf32>
    %24 = arith.addf %21, %23 : vector<104x384xf32>
    %cst_7 = arith.constant 0.000000e+00 : f32
    %25 = vector.broadcast %cst_7 : f32 to vector<104x384xf32>
    %26 = arith.maximumf %24, %25 : vector<104x384xf32>
    %c0_8 = arith.constant 0 : index
    %c384 = arith.constant 384 : index
    %27 = vector.load %arg4[%c0_8, %c384] : memref<104x768xf32, #tpu.memory_space<vmem>>, vector<104x384xf32>
    tpu.vector_store %arg4[%c0_8, %c384], %26 {strides = array<i32>} : memref<104x768xf32, #tpu.memory_space<vmem>>, vector<104x384xf32>,
    return
  }
  func.func @transform_0(%arg0: i32) -> (i32, i32) {
    %c0_i32 = arith.constant 0 : i32
    %c0_i32_0 = arith.constant 0 : i32
    return %arg0, %c0_i32 : i32, i32
  }
  func.func @transform_1(%arg0: i32) -> (i32, i32) {
    %c0_i32 = arith.constant 0 : i32
    %c0_i32_0 = arith.constant 0 : i32
    %c0_i32_1 = arith.constant 0 : i32
    return %c0_i32, %c0_i32_0 : i32, i32
  }
  func.func @transform_2(%arg0: i32) -> (i32, i32) {
    %c0_i32 = arith.constant 0 : i32
    %c0_i32_0 = arith.constant 0 : i32
    %c0_i32_1 = arith.constant 0 : i32
    return %c0_i32, %c0_i32_0 : i32, i32
  }
  func.func @transform_3(%arg0: i32) -> (i32, i32) {
    %c0_i32 = arith.constant 0 : i32
    %c0_i32_0 = arith.constant 0 : i32
    return %arg0, %c0_i32 : i32, i32
  }
}

</mosaic_0001>

<bundles_post_ra>
// kernel: reduction_a_forward.5
= control target key start
LH: loop header
LB: loop body
LE: loop exit
PB: predicated region body
PF: predicated region fallthrough
CT: control target
= control target key end

     0   :  { %s1784_s12 = smov 0   ;;  %s2305_s0 = inlined_call_operand.vmem [shape: bf16[512,384], index: 0, kind: input, shape index: {}]   ;;  %s2306_s1 = inlined_call_operand.vmem [shape: bf16[384,256], index: 1, kind: input, shape index: {}]   ;;  %s2307_s2 = inlined_call_operand.vmem [shape: f32[1,256], index: 2, kind: input, shape index: {}]   ;;  %s2308_s3 = inlined_call_operand.vmem [shape: f32[512,256], index: 3, kind: output, shape index: {}]  }
   0x1 LB: > { %s1372_s13 = sadd.s32 4294967295, %s1761_s12   ;;  %p1376_p0 = scmp.ge.s32.totalorder %s1761_s12, 1  ;;  %s1761_s12 = sphi %s1784_s12, %s13_s12  }
   0x2   : > { %p139_p1 = scmp.lt.s32.totalorder %s1761_s12, 3 }
   0x4   : > { %p140_p2 = pnand %p1376_p0, %p139_p1 }
   0x5   : > { %v1619_v0 = vld [vmem:[%s2306_s1 + $0x4] ss:$8 sps:$4 sm:$0xff] (!%p140_p2)   ;;  %v1621_v1 = vld [vmem:[%s2306_s1] ss:$8 sps:$4 sm:$0xff] (!%p140_p2)   ;;  %v1763_v2 = vmov (!%p140_p2), 0   ;;  %s1377_s11 = sshll.u32 (!%p140_p2), %s1372_s13, 5 }
   0x6   : > { %143 = sbr.rel (%p140_p2) target bundleno = 412 (0x19c), region = 32  ;;  %1025 = vmatprep.mubr.bf16.mxu0 (!%p140_p2), %v1763_v2  ;;  %800 = vmatprep.subr.bf16.mxu1 (!%p140_p2), %v1619_v0  ;;  %v1622_v3 = vld [vmem:[%s2306_s1 + $0x14] ss:$8 sps:$4 sm:$0xff] (!%p140_p2)   ;;  %v1624_v4 = vld [vmem:[%s2306_s1 + $0x10] ss:$8 sps:$4 sm:$0xff] (!%p140_p2)   ;;  %p166_p3 = scmp.lt.s32.totalorder (!%p140_p2), %s1377_s11, 63 }
   0x7   : > { %801 = vmatpush1.bf16.msra.mxu1 (!%p140_p2), %v1621_v1  ;;  %v1625_v5 = vld [vmem:[%s2306_s1 + $0x24] ss:$8 sps:$4 sm:$0xff] (!%p140_p2)   ;;  %v1627_v6 = vld [vmem:[%s2306_s1 + $0x20] ss:$8 sps:$4 sm:$0xff] (!%p140_p2)   ;;  %v1628_v7 = vld [vmem:[%s2306_s1 + $0x34] ss:$8 sps:$4 sm:$0xff] (!%p140_p2)  }
   0x8   : > { %802 = vmatprep.subr.bf16.mxu1 (!%p140_p2), %v1622_v3  ;;  %v1630_v8 = vld [vmem:[%s2306_s1 + $0x30] ss:$8 sps:$4 sm:$0xff] (!%p140_p2)   ;;  %v1643_v9 = vld [vmem:[%s2306_s1 + $0x104] ss:$8 sps:$4 sm:$0xff] (!%p140_p2)   ;;  %v1647_v11 = vld [vmem:[%s2306_s1 + $0x100] ss:$8 sps:$4 sm:$0xff] (!%p140_p2)  }
   0x9   : > { %v1631_v10 = vld [vmem:[%s2306_s1 + $0x44] ss:$8 sps:$4 sm:$0xff] (!%p140_p2)   ;;  %993 = vmatprep.subr.bf16.mxu0 (!%p140_p2), %v1643_v9  ;;  %v1649_v12 = vld [vmem:[%s2306_s1 + $0x114] ss:$8 sps:$4 sm:$0xff] (!%p140_p2)   ;;  %v1633_v13 = vld [vmem:[%s2306_s1 + $0x40] ss:$8 sps:$4 sm:$0xff] (!%p140_p2)  }
   0xa   : > { %994 = vmatpush1.bf16.msra.mxu0 (!%p140_p2), %v1647_v11  ;;  %v1634_v14 = vld [vmem:[%s2306_s1 + $0x54] ss:$8 sps:$4 sm:$0xff] (!%p140_p2)   ;;  %v1653_v15 = vld [vmem:[%s2306_s1 + $0x110] ss:$8 sps:$4 sm:$0xff] (!%p140_p2)   ;;  %v1655_v16 = vld [vmem:[%s2306_s1 + $0x124] ss:$8 sps:$4 sm:$0xff] (!%p140_p2)  }
   0xb   : > { %803 = vmatpush1.bf16.msra.mxu1 (!%p140_p2), %v1624_v4  ;;  %995 = vmatprep.subr.bf16.mxu0 (!%p140_p2), %v1649_v12  ;;  %v1636_v17 = vld [vmem:[%s2306_s1 + $0x50] ss:$8 sps:$4 sm:$0xff] (!%p140_p2)   ;;  %v1659_v18 = vld [vmem:[%s2306_s1 + $0x120] ss:$8 sps:$4 sm:$0xff] (!%p140_p2)   ;;  %v1661_v19 = vld [vmem:[%s2306_s1 + $0x134] ss:$8 sps:$4 sm:$0xff] (!%p140_p2)  }
   0xc   : > { %804 = vmatprep.subr.bf16.mxu1 (!%p140_p2), %v1625_v5  ;;  %v1637_v20 = vld [vmem:[%s2306_s1 + $0x64] ss:$8 sps:$4 sm:$0xff] (!%p140_p2)   ;;  %v1665_v21 = vld [vmem:[%s2306_s1 + $0x130] ss:$8 sps:$4 sm:$0xff] (!%p140_p2)   ;;  %v1639_v22 = vld [vmem:[%s2306_s1 + $0x60] ss:$8 sps:$4 sm:$0xff] (!%p140_p2)  }
   0xd   : > { %s2310_s11 = smov (!%p166_p3, %s1377_s11), 63  ;;  %v1667_v23 = vld [vmem:[%s2306_s1 + $0x144] ss:$8 sps:$4 sm:$0xff]   ;;  %v1640_v24 = vld [vmem:[%s2306_s1 + $0x74] ss:$8 sps:$4 sm:$0xff]  }
   0xe   : > { %996 = vmatpush1.bf16.msra.mxu0 %v1653_v15  ;;  %v1642_v25 = vld [vmem:[%s2306_s1 + $0x70] ss:$8 sps:$4 sm:$0xff]   ;;  %v1671_v26 = vld [vmem:[%s2306_s1 + $0x140] ss:$8 sps:$4 sm:$0xff]   ;;  %s1609_s17 = smul.u32 12, %s2310_s11 }
   0xf   : > { %805 = vmatpush1.bf16.msra.mxu1 %v1627_v6  ;;  %997 = vmatprep.subr.bf16.mxu0 %v1655_v16  ;;  %v1673_v27 = vld [vmem:[%s2306_s1 + $0x154] ss:$8 sps:$4 sm:$0xff]   ;;  %v1645_v28 = vld [vmem:[%s2306_s1 + $0x84] ss:$8 sps:$4 sm:$0xff]   ;;  %v1677_v29 = vld [vmem:[%s2306_s1 + $0x150] ss:$8 sps:$4 sm:$0xff]  }
  0x10   : > { %806 = vmatprep.subr.bf16.mxu1 %v1628_v7  ;;  %s1886_s25 = scalar_lea.vmem %s2305_s0, %s1609_s17  ;;  %v1648_v30 = vld [vmem:[%s2306_s1 + $0x80] ss:$8 sps:$4 sm:$0xff]   ;;  %v1679_v31 = vld [vmem:[%s2306_s1 + $0x164] ss:$8 sps:$4 sm:$0xff]   ;;  %v1651_v32 = vld [vmem:[%s2306_s1 + $0x94] ss:$8 sps:$4 sm:$0xff]  }
  0x11   : > { %v1654_v33 = vld [vmem:[%s2306_s1 + $0x90] ss:$8 sps:$4 sm:$0xff]   ;;  %v1683_v35 = vld [vmem:[%s2306_s1 + $0x160] ss:$8 sps:$4 sm:$0xff]   ;;  %v1685_v36 = vld [vmem:[%s2306_s1 + $0x174] ss:$8 sps:$4 sm:$0xff]  }
  0x12   : > { %998 = vmatpush1.bf16.msra.mxu0 %v1659_v18  ;;  %v1693_v34 = vld [vmem:[%s1886_s25 + $0x4] ss:$12 sps:$4 sm:$0xff]   ;;  %v1660_v39 = vld [vmem:[%s2306_s1 + $0xa0] ss:$8 sps:$4 sm:$0xff]   ;;  %v1663_v40 = vld [vmem:[%s2306_s1 + $0xb4] ss:$8 sps:$4 sm:$0xff]  }
  0x13   : > { %807 = vmatpush1.bf16.msra.mxu1 %v1630_v8  ;;  %999 = vmatprep.subr.bf16.mxu0 %v1661_v19  ;;  %v1657_v37 = vld [vmem:[%s2306_s1 + $0xa4] ss:$8 sps:$4 sm:$0xff]   ;;  %v1689_v38 = vld [vmem:[%s2306_s1 + $0x170] ss:$8 sps:$4 sm:$0xff]   ;;  %v1694_v41 = vld [vmem:[%s1886_s25 + $0x8] ss:$12 sps:$4 sm:$0xff]  }
  0x14   : > { %808 = vmatprep.subr.bf16.mxu1 %v1631_v10  ;;  %832 = vmatprep.mubr.bf16.mxu1 %v1693_v34  ;;  %v1666_v42 = vld [vmem:[%s2306_s1 + $0xb0] ss:$8 sps:$4 sm:$0xff]   ;;  %v1669_v43 = vld [vmem:[%s2306_s1 + $0xc4] ss:$8 sps:$4 sm:$0xff]   ;;  %v1672_v44 = vld [vmem:[%s2306_s1 + $0xc0] ss:$8 sps:$4 sm:$0xff]  }
  0x15   : > { %v1675_v45 = vld [vmem:[%s2306_s1 + $0xd4] ss:$8 sps:$4 sm:$0xff]   ;;  %v1697_v46 = vld [vmem:[%s1886_s25 + $0x20] ss:$12 sps:$4 sm:$0xff]   ;;  %v1678_v47 = vld [vmem:[%s2306_s1 + $0xd0] ss:$8 sps:$4 sm:$0xff]  }
  0x16   : > { %1000 = vmatpush1.bf16.msra.mxu0 %v1665_v21  ;;  %v1681_v48 = vld [vmem:[%s2306_s1 + $0xe4] ss:$8 sps:$4 sm:$0xff]   ;;  %v1684_v49 = vld [vmem:[%s2306_s1 + $0xe0] ss:$8 sps:$4 sm:$0xff]   ;;  %v1687_v50 = vld [vmem:[%s2306_s1 + $0xf4] ss:$8 sps:$4 sm:$0xff]  }
  0x17   : > { %809 = vmatpush1.bf16.msra.mxu1 %v1633_v13  ;;  %1001 = vmatprep.subr.bf16.mxu0 %v1667_v23  ;;  %v1701_v51 = vld [vmem:[%s1886_s25 + $0x38] ss:$12 sps:$4 sm:$0xff]   ;;  %v1691_v53 = vld [vmem:[%s1886_s25] ss:$12 sps:$4 sm:$0xff]   ;;  %v1695_v54 = vld [vmem:[%s1886_s25 + $0x1c] ss:$12 sps:$4 sm:$0xff]  }
  0x18   : > { %810 = vmatprep.subr.bf16.mxu1 %v1634_v14  ;;  %v1690_v52 = vld [vmem:[%s2306_s1 + $0xf0] ss:$8 sps:$4 sm:$0xff]   ;;  %v1699_v57 = vld [vmem:[%s1886_s25 + $0x34] ss:$12 sps:$4 sm:$0xff]   ;;  %v1711_v3 = vld [vmem:[%s1886_s25 + $0x7c] ss:$12 sps:$4 sm:$0xff]  }
  0x19   : > { %v1705_v55 = vld [vmem:[%s1886_s25 + $0x50] ss:$12 sps:$4 sm:$0xff]   ;;  %v1698_v56 = vld [vmem:[%s1886_s25 + $0x18] ss:$12 sps:$4 sm:$0xff]   ;;  %v1709_v58 = vld [vmem:[%s1886_s25 + $0x68] ss:$12 sps:$4 sm:$0xff]  }
  0x1a   : > { %1002 = vmatpush1.bf16.msra.mxu0 %v1671_v26  ;;  %v1702_v59 = vld [vmem:[%s1886_s25 + $0x30] ss:$12 sps:$4 sm:$0xff]   ;;  %v1703_v60 = vld [vmem:[%s1886_s25 + $0x4c] ss:$12 sps:$4 sm:$0xff]   ;;  %v1706_v62 = vld [vmem:[%s1886_s25 + $0x48] ss:$12 sps:$4 sm:$0xff]  }
  0x1b   : > { %811 = vmatpush1.bf16.msra.mxu1 %v1636_v17  ;;  %1003 = vmatprep.subr.bf16.mxu0 %v1673_v27  ;;  %v1713_v61 = vld [vmem:[%s1886_s25 + $0x80] ss:$12 sps:$4 sm:$0xff]   ;;  %v1707_v63 = vld [vmem:[%s1886_s25 + $0x64] ss:$12 sps:$4 sm:$0xff]   ;;  %v1725_v7 = vld [vmem:[%s1886_s25 + $0xc8] ss:$12 sps:$4 sm:$0xff]  }
  0x1c   : > { %812 = vmatprep.subr.bf16.mxu1 %v1637_v20  ;;  %v1717_v0 = vld [vmem:[%s1886_s25 + $0x98] ss:$12 sps:$4 sm:$0xff]   ;;  %v1710_v1 = vld [vmem:[%s1886_s25 + $0x60] ss:$12 sps:$4 sm:$0xff]   ;;  %v1721_v4 = vld [vmem:[%s1886_s25 + $0xb0] ss:$12 sps:$4 sm:$0xff]  }
  0x1d   : > { %v1714_v5 = vld [vmem:[%s1886_s25 + $0x78] ss:$12 sps:$4 sm:$0xff]   ;;  %v1715_v6 = vld [vmem:[%s1886_s25 + $0x94] ss:$12 sps:$4 sm:$0xff]   ;;  %v1718_v8 = vld [vmem:[%s1886_s25 + $0x90] ss:$12 sps:$4 sm:$0xff]  }
  0x1e   : > { %1004 = vmatpush1.bf16.msra.mxu0 %v1677_v29  ;;  %v1719_v9 = vld [vmem:[%s1886_s25 + $0xac] ss:$12 sps:$4 sm:$0xff]   ;;  %v1722_v11 = vld [vmem:[%s1886_s25 + $0xa8] ss:$12 sps:$4 sm:$0xff]   ;;  %v1723_v12 = vld [vmem:[%s1886_s25 + $0xc4] ss:$12 sps:$4 sm:$0xff]  }
  0x1f   : > { %813 = vmatpush1.bf16.msra.mxu1 %v1639_v22  ;;  %1005 = vmatprep.subr.bf16.mxu0 %v1679_v31  ;;  %v1729_v10 = vld [vmem:[%s1886_s25 + $0xe0] ss:$12 sps:$4 sm:$0xff]   ;;  %v1733_v13 = vld [vmem:[%s1886_s25 + $0xf8] ss:$12 sps:$4 sm:$0xff]   ;;  %v1727_v15 = vld [vmem:[%s1886_s25 + $0xdc] ss:$12 sps:$4 sm:$0xff]  }
  0x20   : > { %814 = vmatprep.subr.bf16.mxu1 %v1640_v24  ;;  %v1726_v14 = vld [vmem:[%s1886_s25 + $0xc0] ss:$12 sps:$4 sm:$0xff]   ;;  %v1737_v16 = vld [vmem:[%s1886_s25 + $0x110] ss:$12 sps:$4 sm:$0xff]   ;;  %v1730_v17 = vld [vmem:[%s1886_s25 + $0xd8] ss:$12 sps:$4 sm:$0xff]  }
  0x21   : > { %v1731_v18 = vld [vmem:[%s1886_s25 + $0xf4] ss:$12 sps:$4 sm:$0xff]   ;;  %v1734_v20 = vld [vmem:[%s1886_s25 + $0xf0] ss:$12 sps:$4 sm:$0xff]   ;;  %v1735_v21 = vld [vmem:[%s1886_s25 + $0x10c] ss:$12 sps:$4 sm:$0xff]  }
  0x22   : > { %1006 = vmatpush1.bf16.msra.mxu0 %v1683_v35  ;;  %v1741_v19 = vld [vmem:[%s1886_s25 + $0x128] ss:$12 sps:$4 sm:$0xff]   ;;  %v1745_v22 = vld [vmem:[%s1886_s25 + $0x140] ss:$12 sps:$4 sm:$0xff]   ;;  %v1739_v24 = vld [vmem:[%s1886_s25 + $0x124] ss:$12 sps:$4 sm:$0xff]  }
  0x23   : > { %815 = vmatpush1.bf16.msra.mxu1 %v1642_v25  ;;  %1007 = vmatprep.subr.bf16.mxu0 %v1685_v36  ;;  %v1738_v23 = vld [vmem:[%s1886_s25 + $0x108] ss:$12 sps:$4 sm:$0xff]   ;;  %v1749_v25 = vld [vmem:[%s1886_s25 + $0x158] ss:$12 sps:$4 sm:$0xff]   ;;  %v1742_v26 = vld [vmem:[%s1886_s25 + $0x120] ss:$12 sps:$4 sm:$0xff]  }
  0x24   : > { %816 = vmatprep.subr.bf16.mxu1 %v1645_v28  ;;  %v1743_v27 = vld [vmem:[%s1886_s25 + $0x13c] ss:$12 sps:$4 sm:$0xff]   ;;  %v1746_v29 = vld [vmem:[%s1886_s25 + $0x138] ss:$12 sps:$4 sm:$0xff]  }
  0x25   : > { %v1753_v28 = vld [vmem:[%s1886_s25 + $0x170] ss:$12 sps:$4 sm:$0xff]  }
  0x26   : > { %1008 = vmatpush1.bf16.msra.mxu0 %v1689_v38  ;;  %v1750_v31 = vld [vmem:[%s1886_s25 + $0x150] ss:$12 sps:$4 sm:$0xff]  }
  0x27   : > { %817 = vmatpush1.bf16.msra.mxu1 %v1648_v30  ;;  %v1747_v30 = vld [vmem:[%s1886_s25 + $0x154] ss:$12 sps:$4 sm:$0xff]  }
  0x28   : > { %818 = vmatprep.subr.bf16.mxu1 %v1651_v32  ;;  %v1751_v32 = vld [vmem:[%s1886_s25 + $0x16c] ss:$12 sps:$4 sm:$0xff]  }
  0x29   : > { %1026 = vmatmul.mubr.bf16.vlgmr.msra.gmra.mrb[0].mxu0 %v1694_v41 }
  0x2a   : > { %1035 = vmatprep.mubr.bf16.mxu0 %v1763_v2 }
  0x2b   : > { %819 = vmatpush1.bf16.msra.mxu1 %v1654_v33  ;;  %v1754_v33 = vld [vmem:[%s1886_s25 + $0x168] ss:$12 sps:$4 sm:$0xff]   ;;  %s1480_s25 = sshll.u32 %s2310_s11, 4 }
  0x2c   : > { %820 = vmatprep.subr.bf16.mxu1 %v1657_v37  ;;  %s2030_s20 = scalar_lea.vmem %s2308_s3, %s1480_s25 }
  0x2f   : > { %821 = vmatpush1.bf16.msra.mxu1 %v1660_v39 }
  0x30   : > { %822 = vmatprep.subr.bf16.mxu1 %v1663_v40 }
  0x31   : > { %1036 = vmatmul.mubr.bf16.gmra.mrb[4].mxu0 %v1697_v46 }
  0x32   : > { %1045 = vmatprep.mubr.bf16.mxu0 %v1763_v2 }
  0x33   : > { %823 = vmatpush1.bf16.msra.mxu1 %v1666_v42 }
  0x34   : > { %824 = vmatprep.subr.bf16.mxu1 %v1669_v43 }
  0x37   : > { %825 = vmatpush1.bf16.msra.mxu1 %v1672_v44  ;;  %v292_v44 = vld [vmem:[%s2307_s2] sm:$0x3] }
  0x38   : > { %826 = vmatprep.subr.bf16.mxu1 %v1675_v45 }
  0x39   : > { %1046 = vmatmul.mubr.bf16.gmra.mrb[8].mxu0 %v1701_v51 }
  0x3a   : > { %1055 = vmatprep.mubr.bf16.mxu0 %v1763_v2 }
  0x3b   : > { %827 = vmatpush1.bf16.msra.mxu1 %v1678_v47 }
  0x3c   : > { %828 = vmatprep.subr.bf16.mxu1 %v1681_v48 }
  0x3f   : > { %829 = vmatpush1.bf16.msra.mxu1 %v1684_v49 }
  0x40   : > { %830 = vmatprep.subr.bf16.mxu1 %v1687_v50 }
  0x41   : > { %1056 = vmatmul.mubr.bf16.gmra.mrb[12].mxu0 %v1705_v55 }
  0x42   : > { %1065 = vmatprep.mubr.bf16.mxu0 %v1763_v2 }
  0x43   : > { %831 = vmatpush1.bf16.msra.mxu1 %v1690_v52 }
  0x46   : > { %833 = vmatmul.mubr.bf16.vlgmr.msra.gmra.mrb[0].mxu1 %v1691_v53 }
  0x47   : > { %842 = vmatprep.mubr.bf16.mxu1 %v1695_v54 }
  0x49   : > { %1066 = vmatmul.mubr.bf16.gmra.mrb[16].mxu0 %v1709_v58 }
  0x4a   : > { %1075 = vmatprep.mubr.bf16.mxu0 %v1763_v2 }
  0x4e   : > { %843 = vmatmul.mubr.bf16.gmra.mrb[4].mxu1 %v1698_v56 }
  0x4f   : > { %852 = vmatprep.mubr.bf16.mxu1 %v1699_v57 }
  0x51   : > { %1076 = vmatmul.mubr.bf16.gmra.mrb[20].mxu0 %v1713_v61 }
  0x52   : > { %1085 = vmatprep.mubr.bf16.mxu0 %v1763_v2 }
  0x56   : > { %853 = vmatmul.mubr.bf16.gmra.mrb[8].mxu1 %v1702_v59 }
  0x57   : > { %862 = vmatprep.mubr.bf16.mxu1 %v1703_v60 }
  0x59   : > { %1086 = vmatmul.mubr.bf16.gmra.mrb[24].mxu0 %v1717_v0 }
  0x5a   : > { %1095 = vmatprep.mubr.bf16.mxu0 %v1763_v2 }
  0x5e   : > { %863 = vmatmul.mubr.bf16.gmra.mrb[12].mxu1 %v1706_v62 }
  0x5f   : > { %872 = vmatprep.mubr.bf16.mxu1 %v1707_v63 }
  0x61   : > { %1096 = vmatmul.mubr.bf16.gmra.mrb[28].mxu0 %v1721_v4 }
  0x62   : > { %1105 = vmatprep.mubr.bf16.mxu0 %v1763_v2 }
  0x66   : > { %873 = vmatmul.mubr.bf16.gmra.mrb[16].mxu1 %v1710_v1 }
  0x67   : > { %882 = vmatprep.mubr.bf16.mxu1 %v1711_v3 }
  0x69   : > { %1106 = vmatmul.mubr.bf16.gmra.mrb[32].mxu0 %v1725_v7 }
  0x6a   : > { %1115 = vmatprep.mubr.bf16.mxu0 %v1763_v2 }
  0x6e   : > { %883 = vmatmul.mubr.bf16.gmra.mrb[20].mxu1 %v1714_v5 }
  0x6f   : > { %892 = vmatprep.mubr.bf16.mxu1 %v1715_v6 }
  0x71   : > { %1116 = vmatmul.mubr.bf16.gmra.mrb[36].mxu0 %v1729_v10 }
  0x72   : > { %1125 = vmatprep.mubr.bf16.mxu0 %v1763_v2 }
  0x76   : > { %893 = vmatmul.mubr.bf16.gmra.mrb[24].mxu1 %v1718_v8 }
  0x77   : > { %902 = vmatprep.mubr.bf16.mxu1 %v1719_v9 }
  0x79   : > { %1126 = vmatmul.mubr.bf16.gmra.mrb[40].mxu0 %v1733_v13 }
  0x7a   : > { %1135 = vmatprep.mubr.bf16.mxu0 %v1763_v2 }
  0x7e   : > { %903 = vmatmul.mubr.bf16.gmra.mrb[28].mxu1 %v1722_v11 }
  0x7f   : > { %912 = vmatprep.mubr.bf16.mxu1 %v1723_v12 }
  0x81   : > { %1136 = vmatmul.mubr.bf16.gmra.mrb[44].mxu0 %v1737_v16 }
  0x82   : > { %1145 = vmatprep.mubr.bf16.mxu0 %v1763_v2 }
  0x86   : > { %913 = vmatmul.mubr.bf16.gmra.mrb[32].mxu1 %v1726_v14 }
  0x87   : > { %922 = vmatprep.mubr.bf16.mxu1 %v1727_v15 }
  0x89   : > { %1146 = vmatmul.mubr.bf16.gmra.mrb[48].mxu0 %v1741_v19 }
  0x8a   : > { %1155 = vmatprep.mubr.bf16.mxu0 %v1763_v2 }
  0x8e   : > { %923 = vmatmul.mubr.bf16.gmra.mrb[36].mxu1 %v1730_v17 }
  0x8f   : > { %932 = vmatprep.mubr.bf16.mxu1 %v1731_v18 }
  0x91   : > { %1156 = vmatmul.mubr.bf16.gmra.mrb[52].mxu0 %v1745_v22 }
  0x92   : > { %1165 = vmatprep.mubr.bf16.mxu0 %v1763_v2 }
  0x96   : > { %933 = vmatmul.mubr.bf16.gmra.mrb[40].mxu1 %v1734_v20 }
  0x97   : > { %942 = vmatprep.mubr.bf16.mxu1 %v1735_v21 }
  0x99   : > { %1166 = vmatmul.mubr.bf16.gmra.mrb[56].mxu0 %v1749_v25 }
  0x9a   : > { %1175 = vmatprep.mubr.bf16.mxu0 %v1763_v2  ;;  %v294_v2 = vlaneseq }
  0x9c   : > { %v295_v40 = vshrl.u32 %v294_v2, 7 }
  0x9e   : > { %943 = vmatmul.mubr.bf16.gmra.mrb[44].mxu1 %v1738_v23  ;;  %v296_v43 = vsub.s32 0, %v295_v40  ;;  %v300_v45 = vsub.s32 1, %v295_v40 }
  0x9f   : > { %952 = vmatprep.mubr.bf16.mxu1 %v1739_v24 }
  0xa0   : > { %v2013_v48 = vrot.slane %v292_v44, %v296_v43  ;;  %v2017_v50 = vrot.slane %v292_v44, %v300_v45 }
  0xa1   : > { %1176 = vmatmul.mubr.bf16.gmra.mrb[60].mxu0 %v1753_v28 }
  0xa6   : > { %953 = vmatmul.mubr.bf16.gmra.mrb[48].mxu1 %v1742_v26 }
  0xa7   : > { %962 = vmatprep.mubr.bf16.mxu1 %v1743_v27 }
  0xae   : > { %963 = vmatmul.mubr.bf16.gmra.mrb[52].mxu1 %v1746_v29 }
  0xaf   : > { %972 = vmatprep.mubr.bf16.mxu1 %v1747_v30 }
  0xb6   : > { %973 = vmatmul.mubr.bf16.gmra.mrb[56].mxu1 %v1750_v31 }
  0xb7   : > { %982 = vmatprep.mubr.bf16.mxu1 %v1751_v32 }
  0xbe   : > { %983 = vmatmul.mubr.bf16.gmra.mrb[60].mxu1 %v1754_v33 }
  0xfc   : > { %v1027_v34 = vpop.f32.mrb[0].mxu0 }
  0xfd   : > { %v1029_v35 = vpop.f32.mrb[1].mxu0 }
  0xfe   : > { %v1031_v36 = vpop.f32.mrb[2].mxu0 }
  0xff   : > { %v1033_v37 = vpop.f32.mrb[3].mxu0 }
 0x104   : > { %v1037_v38 = vpop.f32.mrb[4].mxu0 }
 0x105   : > { %v1039_v39 = vpop.f32.mrb[5].mxu0 }
 0x106   : > { %v1041_v41 = vpop.f32.mrb[6].mxu0 }
 0x107   : > { %v1043_v42 = vpop.f32.mrb[7].mxu0 }
 0x10c   : > { %v1047_v46 = vpop.f32.mrb[8].mxu0 }
 0x10d   : > { %v2011_v47 = vpop.f32.mrb[9].mxu0 }
 0x10e   : > { %v2015_v49 = vpop.f32.mrb[10].mxu0 }
 0x10f   : > { %v2019_v51 = vpop.f32.mrb[11].mxu0 }
 0x114   : > { %v2025_v60 = vpop.f32.mrb[12].mxu0 }
 0x115   : > { %v2033_v63 = vpop.f32.mrb[13].mxu0 }
 0x116   : > { %v2035_v3 = vpop.f32.mrb[14].mxu0 }
 0x117   : > { %v2037_v6 = vpop.f32.mrb[15].mxu0 }
 0x119   : > { %v834_v52 = vpop.f32.mrb[0].mxu1 }
 0x11a   : > { %v835_v53 = vadd.f32 %v834_v52, %v2013_v48  ;;  %v836_v54 = vpop.f32.mrb[1].mxu1 }
 0x11b   : > { %v837_v55 = vadd.f32 %v836_v54, %v2017_v50  ;;  %v838_v56 = vpop.f32.mrb[2].mxu1 }
 0x11c   : > { %v1028_v57 = vadd.f32 %v1027_v34, %v835_v53  ;;  %v839_v58 = vadd.f32 %v838_v56, %v2013_v48  ;;  %v840_v59 = vpop.f32.mrb[3].mxu1  ;;  %v2046_v17 = vpop.f32.mrb[16].mxu0 }
 0x11d   : > { %v1030_v61 = vadd.f32 %v1029_v35, %v837_v55  ;;  %v841_v62 = vadd.f32 %v840_v59, %v2017_v50  ;;  %v2049_v20 = vpop.f32.mrb[17].mxu0 }
 0x11e   : > { %v1186_v0 = vmax.f32 %v1028_v57, 0.0  ;;  %v1032_v1 = vadd.f32 %v1031_v36, %v839_v58  ;;  %v2051_v23 = vpop.f32.mrb[18].mxu0 }
 0x11f   : > { %v1187_v4 = vmax.f32 %v1030_v61, 0.0  ;;  %v1034_v5 = vadd.f32 %v1033_v37, %v841_v62  ;;  %v2053_v26 = vpop.f32.mrb[19].mxu0 }
 0x120   : > { %1250 = vst [vmem:[%s2030_s20] sm:$0xff] %v1186_v0  ;;  %v1188_v7 = vmax.f32 %v1032_v1, 0.0 }
 0x121   : > { %1251 = vst [vmem:[%s2030_s20 + $0x8] sm:$0xff] %v1187_v4  ;;  %v1189_v8 = vmax.f32 %v1034_v5, 0.0  ;;  %v844_v9 = vpop.f32.mrb[4].mxu1 }
 0x122   : > { %1252 = vst [vmem:[%s2030_s20 + $0x10] sm:$0xff] %v1188_v7  ;;  %v845_v10 = vadd.f32 %v844_v9, %v2013_v48  ;;  %v846_v11 = vpop.f32.mrb[5].mxu1 }
 0x123   : > { %1253 = vst [vmem:[%s2030_s20 + $0x18] sm:$0xff] %v1189_v8  ;;  %v847_v12 = vadd.f32 %v846_v11, %v2017_v50  ;;  %v848_v13 = vpop.f32.mrb[6].mxu1 }
 0x124   : > { %v1038_v14 = vadd.f32 %v1037_v38, %v845_v10  ;;  %v849_v15 = vadd.f32 %v848_v13, %v2013_v48  ;;  %v850_v16 = vpop.f32.mrb[7].mxu1  ;;  %v2062_v37 = vpop.f32.mrb[20].mxu0 }
 0x125   : > { %v1040_v18 = vadd.f32 %v1039_v39, %v847_v12  ;;  %v851_v19 = vadd.f32 %v850_v16, %v2017_v50  ;;  %v2066_v39 = vpop.f32.mrb[21].mxu0 }
 0x126   : > { %v1190_v21 = vmax.f32 %v1038_v14, 0.0  ;;  %v1042_v22 = vadd.f32 %v1041_v41, %v849_v15 }
 0x127   : > { %v1191_v24 = vmax.f32 %v1040_v18, 0.0  ;;  %v1044_v25 = vadd.f32 %v1043_v42, %v851_v19  ;;  %v2069_v42 = vpop.f32.mrb[22].mxu0 }
 0x128   : > { %1254 = vst [vmem:[%s2030_s20 + $0x20] sm:$0xff] %v1190_v21  ;;  %v1192_v27 = vmax.f32 %v1042_v22, 0.0  ;;  %v2072_v45 = vpop.f32.mrb[23].mxu0 }
 0x129   : > { %1255 = vst [vmem:[%s2030_s20 + $0x28] sm:$0xff] %v1191_v24  ;;  %v1193_v28 = vmax.f32 %v1044_v25, 0.0  ;;  %v854_v29 = vpop.f32.mrb[8].mxu1 }
 0x12a   : > { %1256 = vst [vmem:[%s2030_s20 + $0x30] sm:$0xff] %v1192_v27  ;;  %v855_v30 = vadd.f32 %v854_v29, %v2013_v48  ;;  %v856_v31 = vpop.f32.mrb[9].mxu1 }
 0x12b   : > { %1257 = vst [vmem:[%s2030_s20 + $0x38] sm:$0xff] %v1193_v28  ;;  %v857_v32 = vadd.f32 %v856_v31, %v2017_v50  ;;  %v858_v33 = vpop.f32.mrb[10].mxu1 }
 0x12c   : > { %v1048_v34 = vadd.f32 %v1047_v46, %v855_v30  ;;  %v859_v35 = vadd.f32 %v858_v33, %v2013_v48  ;;  %v860_v36 = vpop.f32.mrb[11].mxu1  ;;  %v2082_v58 = vpop.f32.mrb[24].mxu0 }
 0x12d   : > { %v1050_v2 = vadd.f32 %v2011_v47, %v857_v32  ;;  %v861_v38 = vadd.f32 %v860_v36, %v2017_v50  ;;  %v2086_v62 = vpop.f32.mrb[25].mxu0 }
 0x12e   : > { %v1194_v40 = vmax.f32 %v1048_v34, 0.0  ;;  %v1052_v41 = vadd.f32 %v2015_v49, %v859_v35  ;;  %v2089_v4 = vpop.f32.mrb[26].mxu0 }
 0x12f   : > { %v1195_v43 = vmax.f32 %v1050_v2, 0.0  ;;  %v1054_v44 = vadd.f32 %v2019_v51, %v861_v38  ;;  %v2092_v7 = vpop.f32.mrb[27].mxu0 }
 0x130   : > { %1258 = vst [vmem:[%s2030_s20 + $0x40] sm:$0xff] %v1194_v40  ;;  %v1196_v46 = vmax.f32 %v1052_v41, 0.0 }
 0x131   : > { %1259 = vst [vmem:[%s2030_s20 + $0x48] sm:$0xff] %v1195_v43  ;;  %v1197_v52 = vmax.f32 %v1054_v44, 0.0  ;;  %v864_v47 = vpop.f32.mrb[12].mxu1 }
 0x132   : > { %1260 = vst [vmem:[%s2030_s20 + $0x50] sm:$0xff] %v1196_v46  ;;  %v865_v53 = vadd.f32 %v864_v47, %v2013_v48  ;;  %v866_v54 = vpop.f32.mrb[13].mxu1 }
 0x133   : > { %1261 = vst [vmem:[%s2030_s20 + $0x58] sm:$0xff] %v1197_v52  ;;  %v867_v49 = vadd.f32 %v866_v54, %v2017_v50  ;;  %v868_v55 = vpop.f32.mrb[14].mxu1 }
 0x134   : > { %v1058_v56 = vadd.f32 %v2025_v60, %v865_v53  ;;  %v869_v51 = vadd.f32 %v868_v55, %v2013_v48  ;;  %v870_v57 = vpop.f32.mrb[15].mxu1  ;;  %v2102_v15 = vpop.f32.mrb[28].mxu0 }
 0x135   : > { %v1060_v59 = vadd.f32 %v2033_v63, %v867_v49  ;;  %v871_v61 = vadd.f32 %v870_v57, %v2017_v50  ;;  %v2106_v19 = vpop.f32.mrb[29].mxu0 }
 0x136   : > { %v1198_v0 = vmax.f32 %v1058_v56, 0.0  ;;  %v1062_v1 = vadd.f32 %v2035_v3, %v869_v51  ;;  %v2109_v24 = vpop.f32.mrb[30].mxu0 }
 0x137   : > { %v1199_v5 = vmax.f32 %v1060_v59, 0.0  ;;  %v1064_v60 = vadd.f32 %v2037_v6, %v871_v61  ;;  %v2112_v27 = vpop.f32.mrb[31].mxu0 }
 0x138   : > { %1262 = vst [vmem:[%s2030_s20 + $0x60] sm:$0xff] %v1198_v0  ;;  %v1200_v8 = vmax.f32 %v1062_v1, 0.0 }
 0x139   : > { %1263 = vst [vmem:[%s2030_s20 + $0x68] sm:$0xff] %v1199_v5  ;;  %v1201_v9 = vmax.f32 %v1064_v60, 0.0  ;;  %v874_v63 = vpop.f32.mrb[16].mxu1 }
 0x13a   : > { %1264 = vst [vmem:[%s2030_s20 + $0x70] sm:$0xff] %v1200_v8  ;;  %v875_v10 = vadd.f32 %v874_v63, %v2013_v48  ;;  %v876_v11 = vpop.f32.mrb[17].mxu1 }
 0x13b   : > { %1265 = vst [vmem:[%s2030_s20 + $0x78] sm:$0xff] %v1201_v9  ;;  %v877_v3 = vadd.f32 %v876_v11, %v2017_v50  ;;  %v878_v12 = vpop.f32.mrb[18].mxu1 }
 0x13c   : > { %v1068_v13 = vadd.f32 %v2046_v17, %v875_v10  ;;  %v879_v6 = vadd.f32 %v878_v12, %v2013_v48  ;;  %v880_v14 = vpop.f32.mrb[19].mxu1  ;;  %v2122_v35 = vpop.f32.mrb[32].mxu0 }
 0x13d   : > { %v1070_v16 = vadd.f32 %v2049_v20, %v877_v3  ;;  %v881_v18 = vadd.f32 %v880_v14, %v2017_v50  ;;  %v2126_v38 = vpop.f32.mrb[33].mxu0 }
 0x13e   : > { %v1202_v21 = vmax.f32 %v1068_v13, 0.0  ;;  %v1072_v22 = vadd.f32 %v2051_v23, %v879_v6  ;;  %v2129_v43 = vpop.f32.mrb[34].mxu0 }
 0x13f   : > { %v1203_v25 = vmax.f32 %v1070_v16, 0.0  ;;  %v1074_v17 = vadd.f32 %v2053_v26, %v881_v18  ;;  %v2132_v46 = vpop.f32.mrb[35].mxu0 }
 0x140   : > { %1266 = vst [vmem:[%s2030_s20 + $0x80] sm:$0xff] %v1202_v21  ;;  %v1204_v28 = vmax.f32 %v1072_v22, 0.0 }
 0x141   : > { %1267 = vst [vmem:[%s2030_s20 + $0x88] sm:$0xff] %v1203_v25  ;;  %v1205_v29 = vmax.f32 %v1074_v17, 0.0  ;;  %v884_v20 = vpop.f32.mrb[20].mxu1 }
 0x142   : > { %1268 = vst [vmem:[%s2030_s20 + $0x90] sm:$0xff] %v1204_v28  ;;  %v885_v30 = vadd.f32 %v884_v20, %v2013_v48  ;;  %v886_v31 = vpop.f32.mrb[21].mxu1 }
 0x143   : > { %1269 = vst [vmem:[%s2030_s20 + $0x98] sm:$0xff] %v1205_v29  ;;  %v887_v23 = vadd.f32 %v886_v31, %v2017_v50  ;;  %v888_v32 = vpop.f32.mrb[22].mxu1 }
 0x144   : > { %v1078_v33 = vadd.f32 %v2062_v37, %v885_v30  ;;  %v889_v26 = vadd.f32 %v888_v32, %v2013_v48  ;;  %v890_v34 = vpop.f32.mrb[23].mxu1  ;;  %v2142_v51 = vpop.f32.mrb[36].mxu0 }
 0x145   : > { %v1080_v36 = vadd.f32 %v2066_v39, %v887_v23  ;;  %v891_v2 = vadd.f32 %v890_v34, %v2017_v50  ;;  %v2146_v61 = vpop.f32.mrb[37].mxu0 }
 0x146   : > { %v1206_v40 = vmax.f32 %v1078_v33, 0.0  ;;  %v1082_v41 = vadd.f32 %v2069_v42, %v889_v26  ;;  %v2149_v5 = vpop.f32.mrb[38].mxu0 }
 0x147   : > { %v1207_v44 = vmax.f32 %v1080_v36, 0.0  ;;  %v1084_v37 = vadd.f32 %v2072_v45, %v891_v2  ;;  %v2152_v8 = vpop.f32.mrb[39].mxu0 }
 0x148   : > { %1270 = vst [vmem:[%s2030_s20 + $0xa0] sm:$0xff] %v1206_v40  ;;  %v1208_v52 = vmax.f32 %v1082_v41, 0.0 }
 0x149   : > { %1271 = vst [vmem:[%s2030_s20 + $0xa8] sm:$0xff] %v1207_v44  ;;  %v1209_v47 = vmax.f32 %v1084_v37, 0.0  ;;  %v894_v39 = vpop.f32.mrb[24].mxu1 }
 0x14a   : > { %1272 = vst [vmem:[%s2030_s20 + $0xb0] sm:$0xff] %v1208_v52  ;;  %v895_v53 = vadd.f32 %v894_v39, %v2013_v48  ;;  %v896_v54 = vpop.f32.mrb[25].mxu1 }
 0x14b   : > { %1273 = vst [vmem:[%s2030_s20 + $0xb8] sm:$0xff] %v1209_v47  ;;  %v897_v42 = vadd.f32 %v896_v54, %v2017_v50  ;;  %v898_v49 = vpop.f32.mrb[26].mxu1 }
 0x14c   : > { %v1088_v55 = vadd.f32 %v2082_v58, %v895_v53  ;;  %v899_v45 = vadd.f32 %v898_v49, %v2013_v48  ;;  %v900_v56 = vpop.f32.mrb[27].mxu1  ;;  %v2162_v6 = vpop.f32.mrb[40].mxu0 }
 0x14d   : > { %v1090_v57 = vadd.f32 %v2086_v62, %v897_v42  ;;  %v901_v59 = vadd.f32 %v900_v56, %v2017_v50  ;;  %v2166_v18 = vpop.f32.mrb[41].mxu0 }
 0x14e   : > { %v1210_v0 = vmax.f32 %v1088_v55, 0.0  ;;  %v1092_v1 = vadd.f32 %v2089_v4, %v899_v45  ;;  %v2169_v25 = vpop.f32.mrb[42].mxu0 }
 0x14f   : > { %v1211_v60 = vmax.f32 %v1090_v57, 0.0  ;;  %v1094_v58 = vadd.f32 %v2092_v7, %v901_v59  ;;  %v2172_v28 = vpop.f32.mrb[43].mxu0 }
 0x150   : > { %1274 = vst [vmem:[%s2030_s20 + $0xc0] sm:$0xff] %v1210_v0  ;;  %v1212_v9 = vmax.f32 %v1092_v1, 0.0 }
 0x151   : > { %1275 = vst [vmem:[%s2030_s20 + $0xc8] sm:$0xff] %v1211_v60  ;;  %v1213_v63 = vmax.f32 %v1094_v58, 0.0  ;;  %v904_v62 = vpop.f32.mrb[28].mxu1 }
 0x152   : > { %1276 = vst [vmem:[%s2030_s20 + $0xd0] sm:$0xff] %v1212_v9  ;;  %v905_v10 = vadd.f32 %v904_v62, %v2013_v48  ;;  %v906_v11 = vpop.f32.mrb[29].mxu1 }
 0x153   : > { %1277 = vst [vmem:[%s2030_s20 + $0xd8] sm:$0xff] %v1213_v63  ;;  %v907_v4 = vadd.f32 %v906_v11, %v2017_v50  ;;  %v908_v3 = vpop.f32.mrb[30].mxu1 }
 0x154   : > { %v1098_v12 = vadd.f32 %v2102_v15, %v905_v10  ;;  %v909_v7 = vadd.f32 %v908_v3, %v2013_v48  ;;  %v910_v13 = vpop.f32.mrb[31].mxu1  ;;  %v2182_v26 = vpop.f32.mrb[44].mxu0 }
 0x155   : > { %v1100_v14 = vadd.f32 %v2106_v19, %v907_v4  ;;  %v911_v16 = vadd.f32 %v910_v13, %v2017_v50  ;;  %v2186_v2 = vpop.f32.mrb[45].mxu0 }
 0x156   : > { %v1214_v21 = vmax.f32 %v1098_v12, 0.0  ;;  %v1102_v22 = vadd.f32 %v2109_v24, %v909_v7  ;;  %v2189_v44 = vpop.f32.mrb[46].mxu0 }
 0x157   : > { %v1215_v17 = vmax.f32 %v1100_v14, 0.0  ;;  %v1104_v15 = vadd.f32 %v2112_v27, %v911_v16  ;;  %v2192_v52 = vpop.f32.mrb[47].mxu0 }
 0x158   : > { %1278 = vst [vmem:[%s2030_s20 + $0xe0] sm:$0xff] %v1214_v21  ;;  %v1216_v29 = vmax.f32 %v1102_v22, 0.0 }
 0x159   : > { %1279 = vst [vmem:[%s2030_s20 + $0xe8] sm:$0xff] %v1215_v17  ;;  %v1217_v20 = vmax.f32 %v1104_v15, 0.0  ;;  %v914_v19 = vpop.f32.mrb[32].mxu1 }
 0x15a   : > { %1280 = vst [vmem:[%s2030_s20 + $0xf0] sm:$0xff] %v1216_v29  ;;  %v915_v30 = vadd.f32 %v914_v19, %v2013_v48  ;;  %v916_v31 = vpop.f32.mrb[33].mxu1 }
 0x15b   : > { %1281 = vst [vmem:[%s2030_s20 + $0xf8] sm:$0xff] %v1217_v20  ;;  %v917_v24 = vadd.f32 %v916_v31, %v2017_v50  ;;  %v918_v23 = vpop.f32.mrb[34].mxu1 }
 0x15c   : > { %v1108_v32 = vadd.f32 %v2122_v35, %v915_v30  ;;  %v919_v27 = vadd.f32 %v918_v23, %v2013_v48  ;;  %v920_v33 = vpop.f32.mrb[35].mxu1  ;;  %v2202_v45 = vpop.f32.mrb[48].mxu0 }
 0x15d   : > { %v1110_v34 = vadd.f32 %v2126_v38, %v917_v24  ;;  %v921_v36 = vadd.f32 %v920_v33, %v2017_v50  ;;  %v2206_v59 = vpop.f32.mrb[49].mxu0 }
 0x15e   : > { %v1218_v40 = vmax.f32 %v1108_v32, 0.0  ;;  %v1112_v41 = vadd.f32 %v2129_v43, %v919_v27  ;;  %v2209_v60 = vpop.f32.mrb[50].mxu0 }
 0x15f   : > { %v1219_v37 = vmax.f32 %v1110_v34, 0.0  ;;  %v1114_v35 = vadd.f32 %v2132_v46, %v921_v36  ;;  %v2212_v9 = vpop.f32.mrb[51].mxu0 }
 0x160   : > { %1282 = vst [vmem:[%s2030_s20 + $0x100] sm:$0xff] %v1218_v40  ;;  %v1220_v47 = vmax.f32 %v1112_v41, 0.0 }
 0x161   : > { %1283 = vst [vmem:[%s2030_s20 + $0x108] sm:$0xff] %v1219_v37  ;;  %v1221_v39 = vmax.f32 %v1114_v35, 0.0  ;;  %v924_v38 = vpop.f32.mrb[36].mxu1 }
 0x162   : > { %1284 = vst [vmem:[%s2030_s20 + $0x110] sm:$0xff] %v1220_v47  ;;  %v925_v53 = vadd.f32 %v924_v38, %v2013_v48  ;;  %v926_v54 = vpop.f32.mrb[37].mxu1 }
 0x163   : > { %1285 = vst [vmem:[%s2030_s20 + $0x118] sm:$0xff] %v1221_v39  ;;  %v927_v43 = vadd.f32 %v926_v54, %v2017_v50  ;;  %v928_v42 = vpop.f32.mrb[38].mxu1 }
 0x164   : > { %v1118_v49 = vadd.f32 %v2142_v51, %v925_v53  ;;  %v929_v46 = vadd.f32 %v928_v42, %v2013_v48  ;;  %v930_v55 = vpop.f32.mrb[39].mxu1  ;;  %v2222_v7 = vpop.f32.mrb[52].mxu0 }
 0x165   : > { %v1120_v56 = vadd.f32 %v2146_v61, %v927_v43  ;;  %v931_v57 = vadd.f32 %v930_v55, %v2017_v50  ;;  %v2226_v16 = vpop.f32.mrb[53].mxu0 }
 0x166   : > { %v1222_v0 = vmax.f32 %v1118_v49, 0.0  ;;  %v1122_v1 = vadd.f32 %v2149_v5, %v929_v46  ;;  %v2229_v17 = vpop.f32.mrb[54].mxu0 }
 0x167   : > { %v1223_v58 = vmax.f32 %v1120_v56, 0.0  ;;  %v1124_v51 = vadd.f32 %v2152_v8, %v931_v57  ;;  %v2232_v29 = vpop.f32.mrb[55].mxu0 }
 0x168   : > { %1286 = vst [vmem:[%s2030_s20 + $0x120] sm:$0xff] %v1222_v0  ;;  %v1224_v63 = vmax.f32 %v1122_v1, 0.0 }
 0x169   : > { %1287 = vst [vmem:[%s2030_s20 + $0x128] sm:$0xff] %v1223_v58  ;;  %v1225_v62 = vmax.f32 %v1124_v51, 0.0  ;;  %v934_v61 = vpop.f32.mrb[40].mxu1 }
 0x16a   : > { %1288 = vst [vmem:[%s2030_s20 + $0x130] sm:$0xff] %v1224_v63  ;;  %v935_v10 = vadd.f32 %v934_v61, %v2013_v48  ;;  %v936_v11 = vpop.f32.mrb[41].mxu1 }
 0x16b   : > { %1289 = vst [vmem:[%s2030_s20 + $0x138] sm:$0xff] %v1225_v62  ;;  %v937_v5 = vadd.f32 %v936_v11, %v2017_v50  ;;  %v938_v4 = vpop.f32.mrb[42].mxu1 }
 0x16c   : > { %v1128_v3 = vadd.f32 %v2162_v6, %v935_v10  ;;  %v939_v8 = vadd.f32 %v938_v4, %v2013_v48  ;;  %v940_v12 = vpop.f32.mrb[43].mxu1  ;;  %v2242_v27 = vpop.f32.mrb[56].mxu0 }
 0x16d   : > { %v1130_v13 = vadd.f32 %v2166_v18, %v937_v5  ;;  %v941_v14 = vadd.f32 %v940_v12, %v2017_v50  ;;  %v2246_v36 = vpop.f32.mrb[57].mxu0 }
 0x16e   : > { %v1226_v21 = vmax.f32 %v1128_v3, 0.0  ;;  %v1132_v22 = vadd.f32 %v2169_v25, %v939_v8  ;;  %v2249_v37 = vpop.f32.mrb[58].mxu0 }
 0x16f   : > { %v1227_v15 = vmax.f32 %v1130_v13, 0.0  ;;  %v1134_v6 = vadd.f32 %v2172_v28, %v941_v14  ;;  %v2252_v47 = vpop.f32.mrb[59].mxu0 }
 0x170   : > { %1290 = vst [vmem:[%s2030_s20 + $0x140] sm:$0xff] %v1226_v21  ;;  %v1228_v20 = vmax.f32 %v1132_v22, 0.0 }
 0x171   : > { %1291 = vst [vmem:[%s2030_s20 + $0x148] sm:$0xff] %v1227_v15  ;;  %v1229_v19 = vmax.f32 %v1134_v6, 0.0  ;;  %v944_v18 = vpop.f32.mrb[44].mxu1 }
 0x172   : > { %1292 = vst [vmem:[%s2030_s20 + $0x150] sm:$0xff] %v1228_v20  ;;  %v945_v30 = vadd.f32 %v944_v18, %v2013_v48  ;;  %v946_v31 = vpop.f32.mrb[45].mxu1 }
 0x173   : > { %1293 = vst [vmem:[%s2030_s20 + $0x158] sm:$0xff] %v1229_v19  ;;  %v947_v25 = vadd.f32 %v946_v31, %v2017_v50  ;;  %v948_v24 = vpop.f32.mrb[46].mxu1 }
 0x174   : > { %v1138_v23 = vadd.f32 %v2182_v26, %v945_v30  ;;  %v949_v28 = vadd.f32 %v948_v24, %v2013_v48  ;;  %v950_v32 = vpop.f32.mrb[47].mxu1  ;;  %v1177_v46 = vpop.f32.mrb[60].mxu0 }
 0x175   : > { %v1140_v33 = vadd.f32 %v2186_v2, %v947_v25  ;;  %v951_v34 = vadd.f32 %v950_v32, %v2017_v50  ;;  %v1179_v57 = vpop.f32.mrb[61].mxu0 }
 0x176   : > { %v1230_v40 = vmax.f32 %v1138_v23, 0.0  ;;  %v1142_v41 = vadd.f32 %v2189_v44, %v949_v28  ;;  %v1181_v58 = vpop.f32.mrb[62].mxu0 }
 0x177   : > { %v1231_v35 = vmax.f32 %v1140_v33, 0.0  ;;  %v1144_v26 = vadd.f32 %v2192_v52, %v951_v34  ;;  %v1183_v62 = vpop.f32.mrb[63].mxu0 }
 0x178   : > { %1294 = vst [vmem:[%s2030_s20 + $0x160] sm:$0xff] %v1230_v40  ;;  %v1232_v39 = vmax.f32 %v1142_v41, 0.0 }
 0x179   : > { %1295 = vst [vmem:[%s2030_s20 + $0x168] sm:$0xff] %v1231_v35  ;;  %v1233_v38 = vmax.f32 %v1144_v26, 0.0  ;;  %v954_v2 = vpop.f32.mrb[48].mxu1 }
 0x17a   : > { %1296 = vst [vmem:[%s2030_s20 + $0x170] sm:$0xff] %v1232_v39  ;;  %v955_v53 = vadd.f32 %v954_v2, %v2013_v48  ;;  %v956_v54 = vpop.f32.mrb[49].mxu1 }
 0x17b   : > { %1297 = vst [vmem:[%s2030_s20 + $0x178] sm:$0xff] %v1233_v38  ;;  %v957_v44 = vadd.f32 %v956_v54, %v2017_v50  ;;  %v958_v43 = vpop.f32.mrb[50].mxu1 }
 0x17c   : > { %v1148_v42 = vadd.f32 %v2202_v45, %v955_v53  ;;  %v959_v52 = vadd.f32 %v958_v43, %v2013_v48  ;;  %v960_v49 = vpop.f32.mrb[51].mxu1 }
 0x17d   : > { %v1150_v55 = vadd.f32 %v2206_v59, %v957_v44  ;;  %v961_v56 = vadd.f32 %v960_v49, %v2017_v50 }
 0x17e   : > { %v1234_v0 = vmax.f32 %v1148_v42, 0.0  ;;  %v1152_v1 = vadd.f32 %v2209_v60, %v959_v52 }
 0x17f   : > { %v1235_v51 = vmax.f32 %v1150_v55, 0.0  ;;  %v1154_v63 = vadd.f32 %v2212_v9, %v961_v56 }
 0x180   : > { %1298 = vst [vmem:[%s2030_s20 + $0x180] sm:$0xff] %v1234_v0  ;;  %v1236_v45 = vmax.f32 %v1152_v1, 0.0 }
 0x181   : > { %1299 = vst [vmem:[%s2030_s20 + $0x188] sm:$0xff] %v1235_v51  ;;  %v1237_v61 = vmax.f32 %v1154_v63, 0.0  ;;  %v964_v10 = vpop.f32.mrb[52].mxu1 }
 0x182   : > { %1300 = vst [vmem:[%s2030_s20 + $0x190] sm:$0xff] %v1236_v45  ;;  %v965_v59 = vadd.f32 %v964_v10, %v2013_v48  ;;  %v966_v11 = vpop.f32.mrb[53].mxu1 }
 0x183   : > { %1301 = vst [vmem:[%s2030_s20 + $0x198] sm:$0xff] %v1237_v61  ;;  %v967_v5 = vadd.f32 %v966_v11, %v2017_v50  ;;  %v968_v60 = vpop.f32.mrb[54].mxu1 }
 0x184   : > { %v1158_v4 = vadd.f32 %v2222_v7, %v965_v59  ;;  %v969_v9 = vadd.f32 %v968_v60, %v2013_v48  ;;  %v970_v3 = vpop.f32.mrb[55].mxu1 }
 0x185   : > { %v1160_v8 = vadd.f32 %v2226_v16, %v967_v5  ;;  %v971_v12 = vadd.f32 %v970_v3, %v2017_v50 }
 0x186   : > { %v1238_v13 = vmax.f32 %v1158_v4, 0.0  ;;  %v1162_v14 = vadd.f32 %v2229_v17, %v969_v9 }
 0x187   : > { %v1239_v21 = vmax.f32 %v1160_v8, 0.0  ;;  %v1164_v22 = vadd.f32 %v2232_v29, %v971_v12 }
 0x188   : > { %1302 = vst [vmem:[%s2030_s20 + $0x1a0] sm:$0xff] %v1238_v13  ;;  %v1240_v15 = vmax.f32 %v1162_v14, 0.0 }
 0x189   : > { %1303 = vst [vmem:[%s2030_s20 + $0x1a8] sm:$0xff] %v1239_v21  ;;  %v1241_v6 = vmax.f32 %v1164_v22, 0.0  ;;  %v974_v20 = vpop.f32.mrb[56].mxu1 }
 0x18a   : > { %1304 = vst [vmem:[%s2030_s20 + $0x1b0] sm:$0xff] %v1240_v15  ;;  %v975_v7 = vadd.f32 %v974_v20, %v2013_v48  ;;  %v976_v19 = vpop.f32.mrb[57].mxu1 }
 0x18b   : > { %1305 = vst [vmem:[%s2030_s20 + $0x1b8] sm:$0xff] %v1241_v6  ;;  %v977_v16 = vadd.f32 %v976_v19, %v2017_v50  ;;  %v978_v18 = vpop.f32.mrb[58].mxu1 }
 0x18c   : > { %v1168_v17 = vadd.f32 %v2242_v27, %v975_v7  ;;  %v979_v29 = vadd.f32 %v978_v18, %v2013_v48  ;;  %v980_v30 = vpop.f32.mrb[59].mxu1 }
 0x18d   : > { %v1170_v31 = vadd.f32 %v2246_v36, %v977_v16  ;;  %v981_v25 = vadd.f32 %v980_v30, %v2017_v50 }
 0x18e   : > { %v1242_v24 = vmax.f32 %v1168_v17, 0.0  ;;  %v1172_v23 = vadd.f32 %v2249_v37, %v979_v29 }
 0x18f   : > { %v1243_v28 = vmax.f32 %v1170_v31, 0.0  ;;  %v1174_v32 = vadd.f32 %v2252_v47, %v981_v25 }
 0x190   : > { %1306 = vst [vmem:[%s2030_s20 + $0x1c0] sm:$0xff] %v1242_v24  ;;  %v1244_v33 = vmax.f32 %v1172_v23, 0.0 }
 0x191   : > { %1307 = vst [vmem:[%s2030_s20 + $0x1c8] sm:$0xff] %v1243_v28  ;;  %v1245_v34 = vmax.f32 %v1174_v32, 0.0  ;;  %v984_v40 = vpop.f32.mrb[60].mxu1 }
 0x192   : > { %1308 = vst [vmem:[%s2030_s20 + $0x1d0] sm:$0xff] %v1244_v33  ;;  %v985_v27 = vadd.f32 %v984_v40, %v2013_v48  ;;  %v986_v41 = vpop.f32.mrb[61].mxu1 }
 0x193   : > { %1309 = vst [vmem:[%s2030_s20 + $0x1d8] sm:$0xff] %v1245_v34  ;;  %v987_v36 = vadd.f32 %v986_v41, %v2017_v50  ;;  %v988_v37 = vpop.f32.mrb[62].mxu1 }
 0x194   : > { %v1178_v35 = vadd.f32 %v1177_v46, %v985_v27  ;;  %v989_v26 = vadd.f32 %v988_v37, %v2013_v48  ;;  %v990_v47 = vpop.f32.mrb[63].mxu1 }
 0x195   : > { %v1180_v39 = vadd.f32 %v1179_v57, %v987_v36  ;;  %v991_v38 = vadd.f32 %v990_v47, %v2017_v50 }
 0x196   : > { %v1246_v2 = vmax.f32 %v1178_v35, 0.0  ;;  %v1182_v53 = vadd.f32 %v1181_v58, %v989_v26 }
 0x197   : > { %v1247_v54 = vmax.f32 %v1180_v39, 0.0  ;;  %v1184_v44 = vadd.f32 %v1183_v62, %v991_v38 }
 0x198   : > { %1310 = vst [vmem:[%s2030_s20 + $0x1e0] sm:$0xff] %v1246_v2  ;;  %v1248_v43 = vmax.f32 %v1182_v53, 0.0 }
 0x199   : > { %1311 = vst [vmem:[%s2030_s20 + $0x1e8] sm:$0xff] %v1247_v54  ;;  %v1249_v42 = vmax.f32 %v1184_v44, 0.0 }
 0x19a   : > { %1312 = vst [vmem:[%s2030_s20 + $0x1f0] sm:$0xff] %v1248_v43 }
 0x19b   : > { %1313 = vst [vmem:[%s2030_s20 + $0x1f8] sm:$0xff] %v1249_v42 }
 0x19c PF: > { %s13_s12 = sadd.s32 1, %s1761_s12  }
 0x19d   : > { %p10_p4 = scmp.ge.s32.totalorder %s13_s12, 4  }
 0x19f   :  { %12 = sbr.rel (!%p10_p4) target bundleno = 1 (0x1), region = 62 }

// kernel: reduction_a_forward.6
= control target key start
LH: loop header
LB: loop body
LE: loop exit
PB: predicated region body
PF: predicated region fallthrough
CT: control target
= control target key end

     0   :  { %s7700_s12 = smov 0   ;;  %s9182_s0 = inlined_call_operand.vmem [shape: bf16[512,2304], index: 0, kind: input, shape index: {}]   ;;  %s9183_s1 = inlined_call_operand.vmem [shape: bf16[2304,256], index: 1, kind: input, shape index: {}]   ;;  %s9184_s2 = inlined_call_operand.vmem [shape: f32[1,256], index: 2, kind: input, shape index: {}]   ;;  %s9185_s3 = inlined_call_operand.vmem [shape: f32[512,256], index: 3, kind: output, shape index: {}]  }
   0x1 LB: > { %s5570_s13 = sadd.s32 4294967295, %s7678_s12   ;;  %p5574_p0 = scmp.ge.s32.totalorder %s7678_s12, 1  ;;  %s7678_s12 = sphi %s7700_s12, %s13_s12  }
   0x2   : > { %p139_p1 = scmp.lt.s32.totalorder %s7678_s12, 3 }
   0x4   : > { %p140_p2 = pnand %p5574_p0, %p139_p1 }
   0x5   : > { %v6776_v0 = vld [vmem:[%s9183_s1 + $0x4] ss:$8 sps:$4 sm:$0xff] (!%p140_p2)   ;;  %v6780_v2 = vld [vmem:[%s9183_s1] ss:$8 sps:$4 sm:$0xff] (!%p140_p2)   ;;  %v6782_v4 = vld [vmem:[%s9183_s1 + $0x14] ss:$8 sps:$4 sm:$0xff] (!%p140_p2)  }
   0x6   : > { %143 = sbr.rel (%p140_p2) target bundleno = 860 (0x35c), region = 32  ;;  %v6778_v1 = vld [vmem:[%s9183_s1 + $0x404] ss:$8 sps:$4 sm:$0xff] (!%p140_p2)   ;;  %3647 = vmatprep.subr.bf16.mxu1 (!%p140_p2), %v6776_v0  ;;  %v6781_v3 = vld [vmem:[%s9183_s1 + $0x400] ss:$8 sps:$4 sm:$0xff] (!%p140_p2)   ;;  %s5575_s24 = sshll.u32 (!%p140_p2), %s5570_s13, 5 }
   0x7   : > { %4419 = vmatprep.subr.bf16.mxu0 (!%p140_p2), %v6778_v1  ;;  %3648 = vmatpush1.bf16.msra.mxu1 (!%p140_p2), %v6780_v2  ;;  %v6784_v5 = vld [vmem:[%s9183_s1 + $0x414] ss:$8 sps:$4 sm:$0xff] (!%p140_p2)   ;;  %v6786_v6 = vld [vmem:[%s9183_s1 + $0x10] ss:$8 sps:$4 sm:$0xff] (!%p140_p2)   ;;  %v6788_v8 = vld [vmem:[%s9183_s1 + $0x24] ss:$8 sps:$4 sm:$0xff] (!%p140_p2)  }
   0x8   : > { %4420 = vmatpush1.bf16.msra.mxu0 (!%p140_p2), %v6781_v3  ;;  %3649 = vmatprep.subr.bf16.mxu1 (!%p140_p2), %v6782_v4  ;;  %v6787_v7 = vld [vmem:[%s9183_s1 + $0x410] ss:$8 sps:$4 sm:$0xff] (!%p140_p2)   ;;  %v6790_v9 = vld [vmem:[%s9183_s1 + $0x424] ss:$8 sps:$4 sm:$0xff] (!%p140_p2)   ;;  %v6792_v10 = vld [vmem:[%s9183_s1 + $0x20] ss:$8 sps:$4 sm:$0xff] (!%p140_p2)  }
   0x9   : > { %4421 = vmatprep.subr.bf16.mxu0 (!%p140_p2), %v6784_v5  ;;  %v6793_v11 = vld [vmem:[%s9183_s1 + $0x420] ss:$8 sps:$4 sm:$0xff] (!%p140_p2)   ;;  %v6794_v12 = vld [vmem:[%s9183_s1 + $0x34] ss:$8 sps:$4 sm:$0xff] (!%p140_p2)   ;;  %v6798_v14 = vld [vmem:[%s9183_s1 + $0x30] ss:$8 sps:$4 sm:$0xff] (!%p140_p2)  }
   0xa   : > { %v6796_v13 = vld [vmem:[%s9183_s1 + $0x434] ss:$8 sps:$4 sm:$0xff] (!%p140_p2)   ;;  %v6799_v15 = vld [vmem:[%s9183_s1 + $0x430] ss:$8 sps:$4 sm:$0xff] (!%p140_p2)   ;;  %v6800_v16 = vld [vmem:[%s9183_s1 + $0x44] ss:$8 sps:$4 sm:$0xff] (!%p140_p2)  }
   0xb   : > { %3650 = vmatpush1.bf16.msra.mxu1 (!%p140_p2), %v6786_v6  ;;  %v6802_v17 = vld [vmem:[%s9183_s1 + $0x444] ss:$8 sps:$4 sm:$0xff] (!%p140_p2)   ;;  %v6804_v18 = vld [vmem:[%s9183_s1 + $0x40] ss:$8 sps:$4 sm:$0xff] (!%p140_p2)   ;;  %v6806_v20 = vld [vmem:[%s9183_s1 + $0x54] ss:$8 sps:$4 sm:$0xff] (!%p140_p2)  }
   0xc   : > { %4422 = vmatpush1.bf16.msra.mxu0 (!%p140_p2), %v6787_v7  ;;  %3651 = vmatprep.subr.bf16.mxu1 (!%p140_p2), %v6788_v8  ;;  %v6805_v19 = vld [vmem:[%s9183_s1 + $0x440] ss:$8 sps:$4 sm:$0xff] (!%p140_p2)   ;;  %v6808_v21 = vld [vmem:[%s9183_s1 + $0x454] ss:$8 sps:$4 sm:$0xff] (!%p140_p2)   ;;  %v6810_v22 = vld [vmem:[%s9183_s1 + $0x50] ss:$8 sps:$4 sm:$0xff] (!%p140_p2)  }
   0xd   : > { %4423 = vmatprep.subr.bf16.mxu0 %v6790_v9  ;;  %v6811_v23 = vld [vmem:[%s9183_s1 + $0x450] ss:$8 sps:$4 sm:$0xff]   ;;  %v6812_v24 = vld [vmem:[%s9183_s1 + $0x64] ss:$8 sps:$4 sm:$0xff]   ;;  %v6816_v26 = vld [vmem:[%s9183_s1 + $0x60] ss:$8 sps:$4 sm:$0xff]  }
   0xe   : > { %v6814_v25 = vld [vmem:[%s9183_s1 + $0x464] ss:$8 sps:$4 sm:$0xff]   ;;  %v6817_v27 = vld [vmem:[%s9183_s1 + $0x460] ss:$8 sps:$4 sm:$0xff]   ;;  %v6818_v28 = vld [vmem:[%s9183_s1 + $0x74] ss:$8 sps:$4 sm:$0xff]  }
   0xf   : > { %3652 = vmatpush1.bf16.msra.mxu1 %v6792_v10  ;;  %v6820_v29 = vld [vmem:[%s9183_s1 + $0x474] ss:$8 sps:$4 sm:$0xff]   ;;  %v6822_v30 = vld [vmem:[%s9183_s1 + $0x70] ss:$8 sps:$4 sm:$0xff]   ;;  %v6824_v32 = vld [vmem:[%s9183_s1 + $0x84] ss:$8 sps:$4 sm:$0xff]  }
  0x10   : > { %4424 = vmatpush1.bf16.msra.mxu0 %v6793_v11  ;;  %3653 = vmatprep.subr.bf16.mxu1 %v6794_v12  ;;  %v6823_v31 = vld [vmem:[%s9183_s1 + $0x470] ss:$8 sps:$4 sm:$0xff]   ;;  %p166_p3 = scmp.lt.s32.totalorder %s5575_s24, 63  ;;  %v6826_v33 = vld [vmem:[%s9183_s1 + $0x484] ss:$8 sps:$4 sm:$0xff]  }
  0x11   : > { %4425 = vmatprep.subr.bf16.mxu0 %v6796_v13  ;;  %v6828_v34 = vld [vmem:[%s9183_s1 + $0x80] ss:$8 sps:$4 sm:$0xff]   ;;  %v6830_v36 = vld [vmem:[%s9183_s1 + $0x94] ss:$8 sps:$4 sm:$0xff]   ;;  %v6834_v38 = vld [vmem:[%s9183_s1 + $0x90] ss:$8 sps:$4 sm:$0xff]  }
  0x12   : > { %v6829_v35 = vld [vmem:[%s9183_s1 + $0x480] ss:$8 sps:$4 sm:$0xff]   ;;  %s9187_s24 = smov (!%p166_p3, %s5575_s24), 63  ;;  %v6832_v37 = vld [vmem:[%s9183_s1 + $0x494] ss:$8 sps:$4 sm:$0xff]  }
  0x13   : > { %3654 = vmatpush1.bf16.msra.mxu1 %v6798_v14  ;;  %v6835_v39 = vld [vmem:[%s9183_s1 + $0x490] ss:$8 sps:$4 sm:$0xff]   ;;  %v6836_v40 = vld [vmem:[%s9183_s1 + $0xa4] ss:$8 sps:$4 sm:$0xff]   ;;  %s6767_s21 = smul.u32 72, %s9187_s24  ;;  %s6158_s5 = sshll.u32 %s9187_s24, 4 }
  0x14   : > { %4426 = vmatpush1.bf16.msra.mxu0 %v6799_v15  ;;  %3655 = vmatprep.subr.bf16.mxu1 %v6800_v16  ;;  %v6838_v41 = vld [vmem:[%s9183_s1 + $0x4a4] ss:$8 sps:$4 sm:$0xff]   ;;  %v6840_v42 = vld [vmem:[%s9183_s1 + $0xa0] ss:$8 sps:$4 sm:$0xff]   ;;  %v6842_v44 = vld [vmem:[%s9183_s1 + $0xb4] ss:$8 sps:$4 sm:$0xff]   ;;  %s9029_s8 = scalar_lea.vmem %s9185_s3, %s6158_s5 }
  0x15   : > { %4427 = vmatprep.subr.bf16.mxu0 %v6802_v17  ;;  %v6841_v43 = vld [vmem:[%s9183_s1 + $0x4a0] ss:$8 sps:$4 sm:$0xff]   ;;  %s7851_s13 = scalar_lea.vmem %s9182_s0, %s6767_s21  ;;  %v6844_v45 = vld [vmem:[%s9183_s1 + $0x4b4] ss:$8 sps:$4 sm:$0xff]   ;;  %v6846_v46 = vld [vmem:[%s9183_s1 + $0xb0] ss:$8 sps:$4 sm:$0xff]  }
  0x16   : > { %v6847_v47 = vld [vmem:[%s9183_s1 + $0x4b0] ss:$8 sps:$4 sm:$0xff]   ;;  %v6848_v48 = vld [vmem:[%s9183_s1 + $0xc4] ss:$8 sps:$4 sm:$0xff]   ;;  %v6852_v52 = vld [vmem:[%s9183_s1 + $0xc0] ss:$8 sps:$4 sm:$0xff]  }
  0x17   : > { %3656 = vmatpush1.bf16.msra.mxu1 %v6804_v18  ;;  %v6874_v49 = vld [vmem:[%s7851_s13 + $0x4] ss:$72 sps:$4 sm:$0xff]   ;;  %v6853_v53 = vld [vmem:[%s9183_s1 + $0x4c0] ss:$8 sps:$4 sm:$0xff]   ;;  %v6854_v54 = vld [vmem:[%s9183_s1 + $0xd4] ss:$8 sps:$4 sm:$0xff]  }
  0x18   : > { %4428 = vmatpush1.bf16.msra.mxu0 %v6805_v19  ;;  %3657 = vmatprep.subr.bf16.mxu1 %v6806_v20  ;;  %v6850_v50 = vld [vmem:[%s9183_s1 + $0x4c4] ss:$8 sps:$4 sm:$0xff]   ;;  %v6856_v55 = vld [vmem:[%s9183_s1 + $0x4d4] ss:$8 sps:$4 sm:$0xff]   ;;  %v6858_v56 = vld [vmem:[%s9183_s1 + $0xd0] ss:$8 sps:$4 sm:$0xff]  }
  0x19   : > { %4429 = vmatprep.subr.bf16.mxu0 %v6808_v21  ;;  %v6877_v51 = vld [vmem:[%s7851_s13 + $0x24] ss:$72 sps:$4 sm:$0xff]   ;;  %3679 = vmatprep.mubr.bf16.mxu1 %v6874_v49  ;;  %v6859_v57 = vld [vmem:[%s9183_s1 + $0x4d0] ss:$8 sps:$4 sm:$0xff]   ;;  %v6864_v60 = vld [vmem:[%s9183_s1 + $0xe0] ss:$8 sps:$4 sm:$0xff]  }
  0x1a   : > { %4451 = vmatprep.mubr.bf16.mxu0 %v6877_v51  ;;  %v6860_v58 = vld [vmem:[%s9183_s1 + $0xe4] ss:$8 sps:$4 sm:$0xff]   ;;  %v6865_v61 = vld [vmem:[%s9183_s1 + $0x4e0] ss:$8 sps:$4 sm:$0xff]   ;;  %v6866_v62 = vld [vmem:[%s9183_s1 + $0xf4] ss:$8 sps:$4 sm:$0xff]  }
  0x1b   : > { %3658 = vmatpush1.bf16.msra.mxu1 %v6810_v22  ;;  %v6862_v59 = vld [vmem:[%s9183_s1 + $0x4e4] ss:$8 sps:$4 sm:$0xff]   ;;  %v6868_v63 = vld [vmem:[%s9183_s1 + $0x4f4] ss:$8 sps:$4 sm:$0xff]   ;;  %v6870_v0 = vld [vmem:[%s9183_s1 + $0xf0] ss:$8 sps:$4 sm:$0xff]  }
  0x1c   : > { %4430 = vmatpush1.bf16.msra.mxu0 %v6811_v23  ;;  %3659 = vmatprep.subr.bf16.mxu1 %v6812_v24  ;;  %v6871_v1 = vld [vmem:[%s9183_s1 + $0x4f0] ss:$8 sps:$4 sm:$0xff]   ;;  %v6880_v2 = vld [vmem:[%s9183_s1 + $0x104] ss:$8 sps:$4 sm:$0xff]   ;;  %v6872_v4 = vld [vmem:[%s7851_s13] ss:$72 sps:$4 sm:$0xff]  }
  0x1d   : > { %4431 = vmatprep.subr.bf16.mxu0 %v6814_v25  ;;  %v6883_v3 = vld [vmem:[%s9183_s1 + $0x504] ss:$8 sps:$4 sm:$0xff]   ;;  %v6875_v5 = vld [vmem:[%s7851_s13 + $0x20] ss:$72 sps:$4 sm:$0xff]   ;;  %v6886_v8 = vld [vmem:[%s9183_s1 + $0x514] ss:$8 sps:$4 sm:$0xff]  }
  0x1e   : > { %v6878_v6 = vld [vmem:[%s9183_s1 + $0x100] ss:$8 sps:$4 sm:$0xff]   ;;  %v6887_v9 = vld [vmem:[%s7851_s13 + $0x94] ss:$72 sps:$4 sm:$0xff]   ;;  %v6884_v12 = vld [vmem:[%s9183_s1 + $0x510] ss:$8 sps:$4 sm:$0xff]  }
  0x1f   : > { %3660 = vmatpush1.bf16.msra.mxu1 %v6816_v26  ;;  %v6881_v7 = vld [vmem:[%s9183_s1 + $0x500] ss:$8 sps:$4 sm:$0xff]   ;;  %v6889_v10 = vld [vmem:[%s7851_s13 + $0xb4] ss:$72 sps:$4 sm:$0xff]   ;;  %v6892_v13 = vld [vmem:[%s9183_s1 + $0x110] ss:$8 sps:$4 sm:$0xff]  }
  0x20   : > { %4432 = vmatpush1.bf16.msra.mxu0 %v6817_v27  ;;  %3661 = vmatprep.subr.bf16.mxu1 %v6818_v28  ;;  %v6894_v11 = vld [vmem:[%s9183_s1 + $0x114] ss:$8 sps:$4 sm:$0xff]   ;;  %v6898_v14 = vld [vmem:[%s9183_s1 + $0x524] ss:$8 sps:$4 sm:$0xff]   ;;  %v6891_v16 = vld [vmem:[%s7851_s13 + $0x90] ss:$72 sps:$4 sm:$0xff]  }
  0x21   : > { %4433 = vmatprep.subr.bf16.mxu0 %v6820_v29  ;;  %v6909_v15 = vld [vmem:[%s9183_s1 + $0x124] ss:$8 sps:$4 sm:$0xff]   ;;  %v6895_v17 = vld [vmem:[%s7851_s13 + $0xb0] ss:$72 sps:$4 sm:$0xff]   ;;  %v6896_v18 = vld [vmem:[%s9183_s1 + $0x520] ss:$8 sps:$4 sm:$0xff]  }
  0x22   : > { %v6901_v19 = vld [vmem:[%s9183_s1 + $0x534] ss:$8 sps:$4 sm:$0xff]   ;;  %v6902_v20 = vld [vmem:[%s7851_s13 + $0x124] ss:$72 sps:$4 sm:$0xff]   ;;  %v6907_v22 = vld [vmem:[%s9183_s1 + $0x120] ss:$8 sps:$4 sm:$0xff]  }
  0x23   : > { %3662 = vmatpush1.bf16.msra.mxu1 %v6822_v30  ;;  %v6904_v21 = vld [vmem:[%s7851_s13 + $0x144] ss:$72 sps:$4 sm:$0xff]   ;;  %v6924_v23 = vld [vmem:[%s9183_s1 + $0x134] ss:$8 sps:$4 sm:$0xff]   ;;  %v6899_v24 = vld [vmem:[%s9183_s1 + $0x530] ss:$8 sps:$4 sm:$0xff]  }
  0x24   : > { %4434 = vmatpush1.bf16.msra.mxu0 %v6823_v31  ;;  %3663 = vmatprep.subr.bf16.mxu1 %v6824_v32  ;;  %v6906_v25 = vld [vmem:[%s7851_s13 + $0x120] ss:$72 sps:$4 sm:$0xff]   ;;  %v6913_v26 = vld [vmem:[%s9183_s1 + $0x544] ss:$8 sps:$4 sm:$0xff]   ;;  %v6922_v27 = vld [vmem:[%s9183_s1 + $0x130] ss:$8 sps:$4 sm:$0xff]  }
  0x25   : > { %4435 = vmatprep.subr.bf16.mxu0 %v6826_v33  ;;  %v6910_v28 = vld [vmem:[%s7851_s13 + $0x140] ss:$72 sps:$4 sm:$0xff]   ;;  %v6916_v30 = vld [vmem:[%s9183_s1 + $0x554] ss:$8 sps:$4 sm:$0xff]   ;;  %v6939_v33 = vld [vmem:[%s9183_s1 + $0x144] ss:$8 sps:$4 sm:$0xff]  }
  0x26   : > { %v6911_v29 = vld [vmem:[%s9183_s1 + $0x540] ss:$8 sps:$4 sm:$0xff]   ;;  %v6917_v31 = vld [vmem:[%s7851_s13 + $0x1b4] ss:$72 sps:$4 sm:$0xff]  }
  0x27   : > { %3664 = vmatpush1.bf16.msra.mxu1 %v6828_v34  ;;  %v6919_v32 = vld [vmem:[%s7851_s13 + $0x1d4] ss:$72 sps:$4 sm:$0xff]   ;;  %v6937_v34 = vld [vmem:[%s9183_s1 + $0x140] ss:$8 sps:$4 sm:$0xff]  }
  0x28   : > { %4436 = vmatpush1.bf16.msra.mxu0 %v6829_v35  ;;  %3665 = vmatprep.subr.bf16.mxu1 %v6830_v36  ;;  %v6914_v35 = vld [vmem:[%s9183_s1 + $0x550] ss:$8 sps:$4 sm:$0xff]   ;;  %v6954_v36 = vld [vmem:[%s9183_s1 + $0x154] ss:$8 sps:$4 sm:$0xff]   ;;  %v6940_v49 = vld [vmem:[%s7851_s13 + $0x260] ss:$72 sps:$4 sm:$0xff]  }
  0x29   : > { %4437 = vmatprep.subr.bf16.mxu0 %v6832_v37  ;;  %v6928_v37 = vld [vmem:[%s9183_s1 + $0x564] ss:$8 sps:$4 sm:$0xff]   ;;  %v6941_v51 = vld [vmem:[%s9183_s1 + $0x580] ss:$8 sps:$4 sm:$0xff]  }
  0x2b   : > { %3666 = vmatpush1.bf16.msra.mxu1 %v6834_v38  ;;  %v6921_v38 = vld [vmem:[%s7851_s13 + $0x1b0] ss:$72 sps:$4 sm:$0xff]  }
  0x2c   : > { %4438 = vmatpush1.bf16.msra.mxu0 %v6835_v39  ;;  %3667 = vmatprep.subr.bf16.mxu1 %v6836_v40  ;;  %v6925_v39 = vld [vmem:[%s7851_s13 + $0x1d0] ss:$72 sps:$4 sm:$0xff]   ;;  %v6926_v40 = vld [vmem:[%s9183_s1 + $0x560] ss:$8 sps:$4 sm:$0xff]  }
  0x2d   : > { %4439 = vmatprep.subr.bf16.mxu0 %v6838_v41  ;;  %v6931_v41 = vld [vmem:[%s9183_s1 + $0x574] ss:$8 sps:$4 sm:$0xff]  }
  0x2f   : > { %3668 = vmatpush1.bf16.msra.mxu1 %v6840_v42  ;;  %v6932_v42 = vld [vmem:[%s7851_s13 + $0x244] ss:$72 sps:$4 sm:$0xff]  }
  0x30   : > { %4440 = vmatpush1.bf16.msra.mxu0 %v6841_v43  ;;  %3669 = vmatprep.subr.bf16.mxu1 %v6842_v44  ;;  %v6934_v43 = vld [vmem:[%s7851_s13 + $0x264] ss:$72 sps:$4 sm:$0xff]   ;;  %v6952_v44 = vld [vmem:[%s9183_s1 + $0x150] ss:$8 sps:$4 sm:$0xff]  }
  0x31   : > { %4441 = vmatprep.subr.bf16.mxu0 %v6844_v45  ;;  %v6969_v45 = vld [vmem:[%s9183_s1 + $0x164] ss:$8 sps:$4 sm:$0xff]  }
  0x33   : > { %3670 = vmatpush1.bf16.msra.mxu1 %v6846_v46  ;;  %v6929_v46 = vld [vmem:[%s9183_s1 + $0x570] ss:$8 sps:$4 sm:$0xff]  }
  0x34   : > { %4442 = vmatpush1.bf16.msra.mxu0 %v6847_v47  ;;  %3671 = vmatprep.subr.bf16.mxu1 %v6848_v48  ;;  %v6936_v47 = vld [vmem:[%s7851_s13 + $0x240] ss:$72 sps:$4 sm:$0xff]   ;;  %v6943_v48 = vld [vmem:[%s9183_s1 + $0x584] ss:$8 sps:$4 sm:$0xff]  }
  0x35   : > { %4443 = vmatprep.subr.bf16.mxu0 %v6850_v50  ;;  %v6967_v50 = vld [vmem:[%s9183_s1 + $0x160] ss:$8 sps:$4 sm:$0xff]  }
  0x37   : > { %3672 = vmatpush1.bf16.msra.mxu1 %v6852_v52  ;;  %v6946_v52 = vld [vmem:[%s9183_s1 + $0x594] ss:$8 sps:$4 sm:$0xff]  }
  0x38   : > { %4444 = vmatpush1.bf16.msra.mxu0 %v6853_v53  ;;  %3673 = vmatprep.subr.bf16.mxu1 %v6854_v54  ;;  %v6947_v53 = vld [vmem:[%s7851_s13 + $0x2d4] ss:$72 sps:$4 sm:$0xff]  }
  0x39   : > { %4445 = vmatprep.subr.bf16.mxu0 %v6856_v55  ;;  %v6949_v54 = vld [vmem:[%s7851_s13 + $0x2f4] ss:$72 sps:$4 sm:$0xff]  }
  0x3a   : > { %v6984_v55 = vld [vmem:[%s9183_s1 + $0x174] ss:$8 sps:$4 sm:$0xff]  }
  0x3b   : > { %3674 = vmatpush1.bf16.msra.mxu1 %v6858_v56  ;;  %v6944_v56 = vld [vmem:[%s9183_s1 + $0x590] ss:$8 sps:$4 sm:$0xff]  }
  0x3c   : > { %4446 = vmatpush1.bf16.msra.mxu0 %v6859_v57  ;;  %3675 = vmatprep.subr.bf16.mxu1 %v6860_v58  ;;  %v6982_v57 = vld [vmem:[%s9183_s1 + $0x170] ss:$8 sps:$4 sm:$0xff]   ;;  %v7000_v58 = vld [vmem:[%s9183_s1 + $0x184] ss:$8 sps:$4 sm:$0xff]  }
  0x3d   : > { %4447 = vmatprep.subr.bf16.mxu0 %v6862_v59  ;;  %v6958_v59 = vld [vmem:[%s9183_s1 + $0x5a4] ss:$8 sps:$4 sm:$0xff]  }
  0x3f   : > { %3676 = vmatpush1.bf16.msra.mxu1 %v6864_v60  ;;  %v6951_v60 = vld [vmem:[%s7851_s13 + $0x2d0] ss:$72 sps:$4 sm:$0xff]  }
  0x40   : > { %4448 = vmatpush1.bf16.msra.mxu0 %v6865_v61  ;;  %3677 = vmatprep.subr.bf16.mxu1 %v6866_v62  ;;  %v6955_v61 = vld [vmem:[%s7851_s13 + $0x2f0] ss:$72 sps:$4 sm:$0xff]   ;;  %v6956_v62 = vld [vmem:[%s9183_s1 + $0x5a0] ss:$8 sps:$4 sm:$0xff]  }
  0x41   : > { %4449 = vmatprep.subr.bf16.mxu0 %v6868_v63  ;;  %v6961_v63 = vld [vmem:[%s9183_s1 + $0x5b4] ss:$8 sps:$4 sm:$0xff]  }
  0x43   : > { %3678 = vmatpush1.bf16.msra.mxu1 %v6870_v0  ;;  %v6962_v0 = vld [vmem:[%s7851_s13 + $0x364] ss:$72 sps:$4 sm:$0xff]  }
  0x44   : > { %4450 = vmatpush1.bf16.msra.mxu0 %v6871_v1  ;;  %3840 = vmatprep.subr.bf16.mxu1 %v6880_v2  ;;  %v6964_v1 = vld [vmem:[%s7851_s13 + $0x384] ss:$72 sps:$4 sm:$0xff]   ;;  %v6998_v2 = vld [vmem:[%s9183_s1 + $0x180] ss:$8 sps:$4 sm:$0xff]  }
  0x45   : > { %4612 = vmatprep.subr.bf16.mxu0 %v6883_v3  ;;  %v7011_v3 = vld [vmem:[%s9183_s1 + $0x194] ss:$8 sps:$4 sm:$0xff]  }
  0x46   : > { %3680 = vmatmul.mubr.bf16.vlgmr.msra.gmra.mrb[0].mxu1 %v6872_v4  ;;  %v6959_v4 = vld [vmem:[%s9183_s1 + $0x5b0] ss:$8 sps:$4 sm:$0xff]  }
  0x47   : > { %4452 = vmatmul.mubr.bf16.vlgmr.msra.gmra.mrb[0].mxu0 %v6875_v5  ;;  %3841 = vmatpush1.bf16.msra.mxu1 %v6878_v6  ;;  %v6966_v5 = vld [vmem:[%s7851_s13 + $0x360] ss:$72 sps:$4 sm:$0xff]   ;;  %v6973_v6 = vld [vmem:[%s9183_s1 + $0x5c4] ss:$8 sps:$4 sm:$0xff]  }
  0x48   : > { %4613 = vmatpush1.bf16.msra.mxu0 %v6881_v7  ;;  %3689 = vmatprep.mubr.bf16.mxu1 %v6887_v9  ;;  %v6970_v7 = vld [vmem:[%s7851_s13 + $0x380] ss:$72 sps:$4 sm:$0xff]  }
  0x49   : > { %4614 = vmatprep.subr.bf16.mxu0 %v6886_v8  ;;  %4461 = vmatprep.mubr.bf16.mxu0 %v6889_v10  ;;  %v7009_v8 = vld [vmem:[%s9183_s1 + $0x190] ss:$8 sps:$4 sm:$0xff]   ;;  %v6971_v9 = vld [vmem:[%s9183_s1 + $0x5c0] ss:$8 sps:$4 sm:$0xff]   ;;  %v6976_v10 = vld [vmem:[%s9183_s1 + $0x5d4] ss:$8 sps:$4 sm:$0xff]  }
  0x4a   : > { %3842 = vmatprep.subr.bf16.mxu1 %v6894_v11  ;;  %v6977_v11 = vld [vmem:[%s7851_s13 + $0x3f4] ss:$72 sps:$4 sm:$0xff]  }
  0x4b   : > { %3843 = vmatpush1.bf16.msra.mxu1 %v6892_v13  ;;  %v7023_v13 = vld [vmem:[%s9183_s1 + $0x1a4] ss:$8 sps:$4 sm:$0xff]  }
  0x4c   : > { %4615 = vmatpush1.bf16.msra.mxu0 %v6884_v12  ;;  %3844 = vmatprep.subr.bf16.mxu1 %v6909_v15  ;;  %v6979_v12 = vld [vmem:[%s7851_s13 + $0x414] ss:$72 sps:$4 sm:$0xff]   ;;  %v7021_v15 = vld [vmem:[%s9183_s1 + $0x1a0] ss:$8 sps:$4 sm:$0xff]  }
  0x4d   : > { %4616 = vmatprep.subr.bf16.mxu0 %v6898_v14  ;;  %v6974_v14 = vld [vmem:[%s9183_s1 + $0x5d0] ss:$8 sps:$4 sm:$0xff]  }
  0x4e   : > { %3690 = vmatmul.mubr.bf16.gmra.mrb[4].mxu1 %v6891_v16  ;;  %v7035_v16 = vld [vmem:[%s9183_s1 + $0x1b4] ss:$8 sps:$4 sm:$0xff]  }
  0x4f   : > { %4462 = vmatmul.mubr.bf16.gmra.mrb[4].mxu0 %v6895_v17  ;;  %3699 = vmatprep.mubr.bf16.mxu1 %v6902_v20  ;;  %v6988_v17 = vld [vmem:[%s9183_s1 + $0x5e4] ss:$8 sps:$4 sm:$0xff]   ;;  %v6986_v20 = vld [vmem:[%s9183_s1 + $0x5e0] ss:$8 sps:$4 sm:$0xff]  }
  0x50   : > { %4617 = vmatpush1.bf16.msra.mxu0 %v6896_v18  ;;  %4471 = vmatprep.mubr.bf16.mxu0 %v6904_v21  ;;  %v6981_v18 = vld [vmem:[%s7851_s13 + $0x3f0] ss:$72 sps:$4 sm:$0xff]   ;;  %v6991_v21 = vld [vmem:[%s9183_s1 + $0x5f4] ss:$8 sps:$4 sm:$0xff]  }
  0x51   : > { %4618 = vmatprep.subr.bf16.mxu0 %v6901_v19  ;;  %3845 = vmatpush1.bf16.msra.mxu1 %v6907_v22  ;;  %v6985_v19 = vld [vmem:[%s7851_s13 + $0x410] ss:$72 sps:$4 sm:$0xff]   ;;  %v6992_v22 = vld [vmem:[%s7851_s13 + $0x484] ss:$72 sps:$4 sm:$0xff]  }
  0x52   : > { %3846 = vmatprep.subr.bf16.mxu1 %v6924_v23  ;;  %v6996_v23 = vld [vmem:[%s7851_s13 + $0x2c] ss:$72 sps:$4 sm:$0xff]  }
  0x54   : > { %4619 = vmatpush1.bf16.msra.mxu0 %v6899_v24  ;;  %v7033_v24 = vld [vmem:[%s9183_s1 + $0x1b0] ss:$8 sps:$4 sm:$0xff]  }
  0x55   : > { %4620 = vmatprep.subr.bf16.mxu0 %v6913_v26  ;;  %3847 = vmatpush1.bf16.msra.mxu1 %v6922_v27  ;;  %v6989_v26 = vld [vmem:[%s9183_s1 + $0x5f0] ss:$8 sps:$4 sm:$0xff]  }
  0x56   : > { %3700 = vmatmul.mubr.bf16.gmra.mrb[8].mxu1 %v6906_v25  ;;  %3848 = vmatprep.subr.bf16.mxu1 %v6939_v33  ;;  %v7047_v25 = vld [vmem:[%s9183_s1 + $0x1c4] ss:$8 sps:$4 sm:$0xff]   ;;  %v6994_v27 = vld [vmem:[%s7851_s13 + $0x28] ss:$72 sps:$4 sm:$0xff]  }
  0x57   : > { %4472 = vmatmul.mubr.bf16.gmra.mrb[8].mxu0 %v6910_v28  ;;  %3709 = vmatprep.mubr.bf16.mxu1 %v6917_v31  ;;  %v7003_v28 = vld [vmem:[%s9183_s1 + $0x604] ss:$8 sps:$4 sm:$0xff]   ;;  %v7001_v31 = vld [vmem:[%s9183_s1 + $0x600] ss:$8 sps:$4 sm:$0xff]  }
  0x58   : > { %4621 = vmatpush1.bf16.msra.mxu0 %v6911_v29  ;;  %4481 = vmatprep.mubr.bf16.mxu0 %v6919_v32  ;;  %v6997_v29 = vld [vmem:[%s7851_s13 + $0x480] ss:$72 sps:$4 sm:$0xff]   ;;  %v7004_v32 = vld [vmem:[%s7851_s13 + $0x514] ss:$72 sps:$4 sm:$0xff]  }
  0x59   : > { %4622 = vmatprep.subr.bf16.mxu0 %v6916_v30  ;;  %3849 = vmatpush1.bf16.msra.mxu1 %v6937_v34  ;;  %v7045_v30 = vld [vmem:[%s9183_s1 + $0x1c0] ss:$8 sps:$4 sm:$0xff]   ;;  %v7006_v33 = vld [vmem:[%s7851_s13 + $0xbc] ss:$72 sps:$4 sm:$0xff]  }
  0x5a   : > { %3850 = vmatprep.subr.bf16.mxu1 %v6954_v36  ;;  %v7015_v34 = vld [vmem:[%s9183_s1 + $0x614] ss:$8 sps:$4 sm:$0xff]   ;;  %v7013_v36 = vld [vmem:[%s9183_s1 + $0x610] ss:$8 sps:$4 sm:$0xff]  }
  0x5c   : > { %4623 = vmatpush1.bf16.msra.mxu0 %v6914_v35  ;;  %v7059_v35 = vld [vmem:[%s9183_s1 + $0x1d4] ss:$8 sps:$4 sm:$0xff]  }
  0x5d   : > { %4624 = vmatprep.subr.bf16.mxu0 %v6928_v37  ;;  %3851 = vmatpush1.bf16.msra.mxu1 %v6952_v44  ;;  %v7057_v37 = vld [vmem:[%s9183_s1 + $0x1d0] ss:$8 sps:$4 sm:$0xff]   ;;  %v7025_v44 = vld [vmem:[%s9183_s1 + $0x620] ss:$8 sps:$4 sm:$0xff]  }
  0x5e   : > { %3710 = vmatmul.mubr.bf16.gmra.mrb[12].mxu1 %v6921_v38  ;;  %3852 = vmatprep.subr.bf16.mxu1 %v6969_v45  ;;  %v7071_v38 = vld [vmem:[%s9183_s1 + $0x1e4] ss:$8 sps:$4 sm:$0xff]   ;;  %v7069_v45 = vld [vmem:[%s9183_s1 + $0x1e0] ss:$8 sps:$4 sm:$0xff]  }
  0x5f   : > { %4482 = vmatmul.mubr.bf16.gmra.mrb[12].mxu0 %v6925_v39  ;;  %3719 = vmatprep.mubr.bf16.mxu1 %v6932_v42  ;;  %v7027_v39 = vld [vmem:[%s9183_s1 + $0x624] ss:$8 sps:$4 sm:$0xff]  }
  0x60   : > { %4625 = vmatpush1.bf16.msra.mxu0 %v6926_v40  ;;  %4491 = vmatprep.mubr.bf16.mxu0 %v6934_v43  ;;  %v7008_v40 = vld [vmem:[%s7851_s13 + $0x510] ss:$72 sps:$4 sm:$0xff]   ;;  %v7016_v42 = vld [vmem:[%s7851_s13 + $0x5a4] ss:$72 sps:$4 sm:$0xff]  }
  0x61   : > { %4626 = vmatprep.subr.bf16.mxu0 %v6931_v41  ;;  %3853 = vmatpush1.bf16.msra.mxu1 %v6967_v50  ;;  %v7012_v41 = vld [vmem:[%s7851_s13 + $0xb8] ss:$72 sps:$4 sm:$0xff]   ;;  %v7018_v43 = vld [vmem:[%s7851_s13 + $0x14c] ss:$72 sps:$4 sm:$0xff]  }
  0x62   : > { %3854 = vmatprep.subr.bf16.mxu1 %v6984_v55  ;;  %v7081_v50 = vld [vmem:[%s9183_s1 + $0x1f0] ss:$8 sps:$4 sm:$0xff]   ;;  %v7030_v55 = vld [vmem:[%s7851_s13 + $0x1dc] ss:$72 sps:$4 sm:$0xff]  }
  0x64   : > { %4627 = vmatpush1.bf16.msra.mxu0 %v6929_v46  ;;  %v7039_v46 = vld [vmem:[%s9183_s1 + $0x634] ss:$8 sps:$4 sm:$0xff]  }
  0x65   : > { %4628 = vmatprep.subr.bf16.mxu0 %v6943_v48  ;;  %3855 = vmatpush1.bf16.msra.mxu1 %v6982_v57  ;;  %v7037_v48 = vld [vmem:[%s9183_s1 + $0x630] ss:$8 sps:$4 sm:$0xff]   ;;  %v7063_v57 = vld [vmem:[%s9183_s1 + $0x654] ss:$8 sps:$4 sm:$0xff]  }
  0x66   : > { %3720 = vmatmul.mubr.bf16.gmra.mrb[16].mxu1 %v6936_v47  ;;  %3856 = vmatprep.subr.bf16.mxu1 %v7000_v58  ;;  %v7083_v47 = vld [vmem:[%s9183_s1 + $0x1f4] ss:$8 sps:$4 sm:$0xff]   ;;  %v7061_v58 = vld [vmem:[%s9183_s1 + $0x650] ss:$8 sps:$4 sm:$0xff]  }
  0x67   : > { %4492 = vmatmul.mubr.bf16.gmra.mrb[16].mxu0 %v6940_v49  ;;  %3729 = vmatprep.mubr.bf16.mxu1 %v6947_v53  ;;  %v7020_v49 = vld [vmem:[%s7851_s13 + $0x5a0] ss:$72 sps:$4 sm:$0xff]  }
  0x68   : > { %4629 = vmatpush1.bf16.msra.mxu0 %v6941_v51  ;;  %4501 = vmatprep.mubr.bf16.mxu0 %v6949_v54  ;;  %v7051_v51 = vld [vmem:[%s9183_s1 + $0x644] ss:$8 sps:$4 sm:$0xff]   ;;  %v7024_v53 = vld [vmem:[%s7851_s13 + $0x148] ss:$72 sps:$4 sm:$0xff]   ;;  %v7028_v54 = vld [vmem:[%s7851_s13 + $0x634] ss:$72 sps:$4 sm:$0xff]  }
  0x69   : > { %4630 = vmatprep.subr.bf16.mxu0 %v6946_v52  ;;  %3857 = vmatpush1.bf16.msra.mxu1 %v6998_v2  ;;  %v7095_v52 = vld [vmem:[%s9183_s1 + $0x204] ss:$8 sps:$4 sm:$0xff]   ;;  %v7085_v2 = vld [vmem:[%s9183_s1 + $0x670] ss:$8 sps:$4 sm:$0xff]  }
  0x6a   : > { %3858 = vmatprep.subr.bf16.mxu1 %v7011_v3  ;;  %v7044_v3 = vld [vmem:[%s7851_s13 + $0x6c0] ss:$72 sps:$4 sm:$0xff]  }
  0x6c   : > { %4631 = vmatpush1.bf16.msra.mxu0 %v6944_v56  ;;  %v7049_v56 = vld [vmem:[%s9183_s1 + $0x640] ss:$8 sps:$4 sm:$0xff]  }
  0x6d   : > { %4632 = vmatprep.subr.bf16.mxu0 %v6958_v59  ;;  %3859 = vmatpush1.bf16.msra.mxu1 %v7009_v8  ;;  %v7075_v59 = vld [vmem:[%s9183_s1 + $0x664] ss:$8 sps:$4 sm:$0xff]   ;;  %v7097_v8 = vld [vmem:[%s9183_s1 + $0x680] ss:$8 sps:$4 sm:$0xff]  }
  0x6e   : > { %3730 = vmatmul.mubr.bf16.gmra.mrb[20].mxu1 %v6951_v60  ;;  %3860 = vmatprep.subr.bf16.mxu1 %v7023_v13  ;;  %v7032_v60 = vld [vmem:[%s7851_s13 + $0x630] ss:$72 sps:$4 sm:$0xff]  }
  0x6f   : > { %4502 = vmatmul.mubr.bf16.gmra.mrb[20].mxu0 %v6955_v61  ;;  %3739 = vmatprep.mubr.bf16.mxu1 %v6962_v0  ;;  %v7036_v61 = vld [vmem:[%s7851_s13 + $0x1d8] ss:$72 sps:$4 sm:$0xff]  }
  0x70   : > { %4633 = vmatpush1.bf16.msra.mxu0 %v6956_v62  ;;  %4511 = vmatprep.mubr.bf16.mxu0 %v6964_v1  ;;  %v7040_v62 = vld [vmem:[%s7851_s13 + $0x6c4] ss:$72 sps:$4 sm:$0xff]   ;;  %v7073_v0 = vld [vmem:[%s9183_s1 + $0x660] ss:$8 sps:$4 sm:$0xff]   ;;  %v7087_v1 = vld [vmem:[%s9183_s1 + $0x674] ss:$8 sps:$4 sm:$0xff]  }
  0x71   : > { %4634 = vmatprep.subr.bf16.mxu0 %v6961_v63  ;;  %3861 = vmatpush1.bf16.msra.mxu1 %v7021_v15  ;;  %v7042_v63 = vld [vmem:[%s7851_s13 + $0x26c] ss:$72 sps:$4 sm:$0xff]   ;;  %v7060_v13 = vld [vmem:[%s7851_s13 + $0x2f8] ss:$72 sps:$4 sm:$0xff]  }
  0x72   : > { %3862 = vmatprep.subr.bf16.mxu1 %v7035_v16  ;;  %v7066_v15 = vld [vmem:[%s7851_s13 + $0x38c] ss:$72 sps:$4 sm:$0xff]   ;;  %v7121_v16 = vld [vmem:[%s9183_s1 + $0x6a0] ss:$8 sps:$4 sm:$0xff]  }
  0x74   : > { %4635 = vmatpush1.bf16.msra.mxu0 %v6959_v4  ;;  %v7099_v4 = vld [vmem:[%s9183_s1 + $0x684] ss:$8 sps:$4 sm:$0xff]  }
  0x75   : > { %4636 = vmatprep.subr.bf16.mxu0 %v6973_v6  ;;  %3863 = vmatpush1.bf16.msra.mxu1 %v7033_v24  ;;  %v7052_v6 = vld [vmem:[%s7851_s13 + $0x754] ss:$72 sps:$4 sm:$0xff]   ;;  %v7145_v24 = vld [vmem:[%s9183_s1 + $0x6c0] ss:$8 sps:$4 sm:$0xff]  }
  0x76   : > { %3740 = vmatmul.mubr.bf16.gmra.mrb[24].mxu1 %v6966_v5  ;;  %3864 = vmatprep.subr.bf16.mxu1 %v7047_v25  ;;  %v7048_v5 = vld [vmem:[%s7851_s13 + $0x268] ss:$72 sps:$4 sm:$0xff]   ;;  %v7159_v25 = vld [vmem:[%s9183_s1 + $0x6d4] ss:$8 sps:$4 sm:$0xff]  }
  0x77   : > { %4512 = vmatmul.mubr.bf16.gmra.mrb[24].mxu0 %v6970_v7  ;;  %3749 = vmatprep.mubr.bf16.mxu1 %v6977_v11  ;;  %v7054_v7 = vld [vmem:[%s7851_s13 + $0x2fc] ss:$72 sps:$4 sm:$0xff]  }
  0x78   : > { %4637 = vmatpush1.bf16.msra.mxu0 %v6971_v9  ;;  %4521 = vmatprep.mubr.bf16.mxu0 %v6979_v12  ;;  %v7111_v9 = vld [vmem:[%s9183_s1 + $0x694] ss:$8 sps:$4 sm:$0xff]   ;;  %v7123_v11 = vld [vmem:[%s9183_s1 + $0x6a4] ss:$8 sps:$4 sm:$0xff]   ;;  %v7056_v12 = vld [vmem:[%s7851_s13 + $0x750] ss:$72 sps:$4 sm:$0xff]  }
  0x79   : > { %4638 = vmatprep.subr.bf16.mxu0 %v6976_v10  ;;  %3865 = vmatpush1.bf16.msra.mxu1 %v7045_v30  ;;  %v7109_v10 = vld [vmem:[%s9183_s1 + $0x690] ss:$8 sps:$4 sm:$0xff]   ;;  %v7090_v30 = vld [vmem:[%s7851_s13 + $0xc] ss:$72 sps:$4 sm:$0xff]  }
  0x7a   : > { %3866 = vmatprep.subr.bf16.mxu1 %v7059_v35  ;;  %v7181_v35 = vld [vmem:[%s9183_s1 + $0x6f0] ss:$8 sps:$4 sm:$0xff]  }
  0x7c   : > { %4639 = vmatpush1.bf16.msra.mxu0 %v6974_v14  ;;  %v7064_v14 = vld [vmem:[%s7851_s13 + $0x7e4] ss:$72 sps:$4 sm:$0xff]  }
  0x7d   : > { %4640 = vmatprep.subr.bf16.mxu0 %v6988_v17  ;;  %3867 = vmatpush1.bf16.msra.mxu1 %v7057_v37  ;;  %v7135_v17 = vld [vmem:[%s9183_s1 + $0x6b4] ss:$8 sps:$4 sm:$0xff]   ;;  %v7195_v37 = vld [vmem:[%s9183_s1 + $0x704] ss:$8 sps:$4 sm:$0xff]  }
  0x7e   : > { %3750 = vmatmul.mubr.bf16.gmra.mrb[28].mxu1 %v6981_v18  ;;  %3868 = vmatprep.subr.bf16.mxu1 %v7071_v38  ;;  %v7133_v18 = vld [vmem:[%s9183_s1 + $0x6b0] ss:$8 sps:$4 sm:$0xff]  }
  0x7f   : > { %4522 = vmatmul.mubr.bf16.gmra.mrb[28].mxu0 %v6985_v19  ;;  %3759 = vmatprep.mubr.bf16.mxu1 %v6992_v22  ;;  %v7068_v19 = vld [vmem:[%s7851_s13 + $0x7e0] ss:$72 sps:$4 sm:$0xff]   ;;  %v7076_v22 = vld [vmem:[%s7851_s13 + $0x874] ss:$72 sps:$4 sm:$0xff]  }
  0x80   : > { %4641 = vmatpush1.bf16.msra.mxu0 %v6986_v20  ;;  %4644 = vmatprep.mubr.bf16.mxu0 %v6996_v23  ;;  %v7147_v20 = vld [vmem:[%s9183_s1 + $0x6c4] ss:$8 sps:$4 sm:$0xff]   ;;  %v7096_v38 = vld [vmem:[%s7851_s13 + $0x4a8] ss:$72 sps:$4 sm:$0xff]  }
  0x81   : > { %4642 = vmatprep.subr.bf16.mxu0 %v6991_v21  ;;  %3869 = vmatpush1.bf16.msra.mxu1 %v7069_v45  ;;  %v7072_v21 = vld [vmem:[%s7851_s13 + $0x388] ss:$72 sps:$4 sm:$0xff]   ;;  %v7078_v23 = vld [vmem:[%s7851_s13 + $0x41c] ss:$72 sps:$4 sm:$0xff]   ;;  %v7108_v45 = vld [vmem:[%s7851_s13 + $0x538] ss:$72 sps:$4 sm:$0xff]  }
  0x82   : > { %3870 = vmatprep.subr.bf16.mxu1 %v7083_v47  ;;  %v7114_v47 = vld [vmem:[%s7851_s13 + $0x5cc] ss:$72 sps:$4 sm:$0xff]  }
  0x84   : > { %4643 = vmatpush1.bf16.msra.mxu0 %v6989_v26  ;;  %v7157_v26 = vld [vmem:[%s9183_s1 + $0x6d0] ss:$8 sps:$4 sm:$0xff]  }
  0x85   : > { %4805 = vmatprep.subr.bf16.mxu0 %v7003_v28  ;;  %3871 = vmatpush1.bf16.msra.mxu1 %v7081_v50  ;;  %v7080_v28 = vld [vmem:[%s7851_s13 + $0x870] ss:$72 sps:$4 sm:$0xff]  }
  0x86   : > { %3760 = vmatmul.mubr.bf16.gmra.mrb[32].mxu1 %v6997_v29  ;;  %4033 = vmatprep.subr.bf16.mxu1 %v7095_v52  ;;  %v7084_v29 = vld [vmem:[%s7851_s13 + $0x418] ss:$72 sps:$4 sm:$0xff]   ;;  %v7143_v52 = vld [vmem:[%s9183_s1 + $0x244] ss:$8 sps:$4 sm:$0xff]  }
  0x87   : > { %4645 = vmatmul.mubr.bf16.vlgmr.msra.gmra.mrb[0].mxu0 %v6994_v27  ;;  %3769 = vmatprep.mubr.bf16.mxu1 %v7004_v32  ;;  %v7171_v27 = vld [vmem:[%s9183_s1 + $0x6e4] ss:$8 sps:$4 sm:$0xff]   ;;  %v7169_v32 = vld [vmem:[%s9183_s1 + $0x6e0] ss:$8 sps:$4 sm:$0xff]   ;;  %v7129_v50 = vld [vmem:[%s9183_s1 + $0x230] ss:$8 sps:$4 sm:$0xff]  }
  0x88   : > { %4806 = vmatpush1.bf16.msra.mxu0 %v7001_v31  ;;  %4654 = vmatprep.mubr.bf16.mxu0 %v7006_v33  ;;  %v7091_v31 = vld [vmem:[%s7851_s13 + $0x4ac] ss:$72 sps:$4 sm:$0xff]  }
  0x89   : > { %4807 = vmatprep.subr.bf16.mxu0 %v7015_v34  ;;  %v7183_v33 = vld [vmem:[%s9183_s1 + $0x6f4] ss:$8 sps:$4 sm:$0xff]   ;;  %v7088_v34 = vld [vmem:[%s7851_s13 + $0x8] ss:$72 sps:$4 sm:$0xff]  }
  0x8c   : > { %4808 = vmatpush1.bf16.msra.mxu0 %v7013_v36  ;;  %v7093_v36 = vld [vmem:[%s9183_s1 + $0x200] ss:$8 sps:$4 sm:$0xff]  }
  0x8d   : > { %4809 = vmatprep.subr.bf16.mxu0 %v7027_v39  ;;  %v7100_v39 = vld [vmem:[%s7851_s13 + $0x9c] ss:$72 sps:$4 sm:$0xff]  }
  0x8e   : > { %3770 = vmatmul.mubr.bf16.gmra.mrb[36].mxu1 %v7008_v40  ;;  %v7102_v40 = vld [vmem:[%s7851_s13 + $0x53c] ss:$72 sps:$4 sm:$0xff]  }
  0x8f   : > { %4655 = vmatmul.mubr.bf16.gmra.mrb[4].mxu0 %v7012_v41  ;;  %3779 = vmatprep.mubr.bf16.mxu1 %v7016_v42  ;;  %v7107_v41 = vld [vmem:[%s9183_s1 + $0x214] ss:$8 sps:$4 sm:$0xff]   ;;  %v7105_v42 = vld [vmem:[%s9183_s1 + $0x210] ss:$8 sps:$4 sm:$0xff]  }
  0x90   : > { %4664 = vmatprep.mubr.bf16.mxu0 %v7018_v43  ;;  %4810 = vmatpush1.bf16.msra.mxu0 %v7025_v44  ;;  %v7119_v43 = vld [vmem:[%s9183_s1 + $0x224] ss:$8 sps:$4 sm:$0xff]   ;;  %v7104_v44 = vld [vmem:[%s7851_s13 + $0x98] ss:$72 sps:$4 sm:$0xff]  }
  0x91   : > { %4811 = vmatprep.subr.bf16.mxu0 %v7039_v46  ;;  %v7112_v46 = vld [vmem:[%s7851_s13 + $0x12c] ss:$72 sps:$4 sm:$0xff]  }
  0x94   : > { %4812 = vmatpush1.bf16.msra.mxu0 %v7037_v48  ;;  %v7117_v48 = vld [vmem:[%s9183_s1 + $0x220] ss:$8 sps:$4 sm:$0xff]  }
  0x95   : > { %4813 = vmatprep.subr.bf16.mxu0 %v7051_v51  ;;  %v7116_v51 = vld [vmem:[%s7851_s13 + $0x128] ss:$72 sps:$4 sm:$0xff]  }
  0x96   : > { %3780 = vmatmul.mubr.bf16.gmra.mrb[40].mxu1 %v7020_v49  ;;  %v7131_v49 = vld [vmem:[%s9183_s1 + $0x234] ss:$8 sps:$4 sm:$0xff]  }
  0x97   : > { %4665 = vmatmul.mubr.bf16.gmra.mrb[8].mxu0 %v7024_v53  ;;  %3789 = vmatprep.mubr.bf16.mxu1 %v7028_v54  ;;  %v7120_v53 = vld [vmem:[%s7851_s13 + $0x5c8] ss:$72 sps:$4 sm:$0xff]   ;;  %v7124_v54 = vld [vmem:[%s7851_s13 + $0x1bc] ss:$72 sps:$4 sm:$0xff]  }
  0x98   : > { %4674 = vmatprep.mubr.bf16.mxu0 %v7030_v55  ;;  %4814 = vmatpush1.bf16.msra.mxu0 %v7049_v56  ;;  %v7126_v55 = vld [vmem:[%s7851_s13 + $0x65c] ss:$72 sps:$4 sm:$0xff]   ;;  %v7141_v56 = vld [vmem:[%s9183_s1 + $0x240] ss:$8 sps:$4 sm:$0xff]  }
  0x99   : > { %4815 = vmatprep.subr.bf16.mxu0 %v7063_v57  ;;  %v7155_v57 = vld [vmem:[%s9183_s1 + $0x254] ss:$8 sps:$4 sm:$0xff]  }
  0x9c   : > { %4816 = vmatpush1.bf16.msra.mxu0 %v7061_v58  ;;  %v7153_v58 = vld [vmem:[%s9183_s1 + $0x250] ss:$8 sps:$4 sm:$0xff]  }
  0x9d   : > { %4817 = vmatprep.subr.bf16.mxu0 %v7075_v59  ;;  %v7167_v59 = vld [vmem:[%s9183_s1 + $0x264] ss:$8 sps:$4 sm:$0xff]  }
  0x9e   : > { %3790 = vmatmul.mubr.bf16.gmra.mrb[44].mxu1 %v7032_v60  ;;  %v7128_v60 = vld [vmem:[%s7851_s13 + $0x1b8] ss:$72 sps:$4 sm:$0xff]  }
  0x9f   : > { %4675 = vmatmul.mubr.bf16.gmra.mrb[12].mxu0 %v7036_v61  ;;  %3799 = vmatprep.mubr.bf16.mxu1 %v7040_v62  ;;  %v7132_v61 = vld [vmem:[%s7851_s13 + $0x658] ss:$72 sps:$4 sm:$0xff]   ;;  %v7136_v62 = vld [vmem:[%s7851_s13 + $0x24c] ss:$72 sps:$4 sm:$0xff]  }
  0xa0   : > { %4684 = vmatprep.mubr.bf16.mxu0 %v7042_v63  ;;  %4818 = vmatpush1.bf16.msra.mxu0 %v7073_v0  ;;  %v7138_v63 = vld [vmem:[%s7851_s13 + $0x6ec] ss:$72 sps:$4 sm:$0xff]   ;;  %v7165_v0 = vld [vmem:[%s9183_s1 + $0x260] ss:$8 sps:$4 sm:$0xff]  }
  0xa1   : > { %4819 = vmatprep.subr.bf16.mxu0 %v7087_v1  ;;  %v7179_v1 = vld [vmem:[%s9183_s1 + $0x274] ss:$8 sps:$4 sm:$0xff]  }
  0xa4   : > { %4820 = vmatpush1.bf16.msra.mxu0 %v7085_v2  ;;  %v7177_v2 = vld [vmem:[%s9183_s1 + $0x270] ss:$8 sps:$4 sm:$0xff]  }
  0xa5   : > { %4821 = vmatprep.subr.bf16.mxu0 %v7099_v4  ;;  %v7192_v4 = vld [vmem:[%s9183_s1 + $0x284] ss:$8 sps:$4 sm:$0xff]  }
  0xa6   : > { %3800 = vmatmul.mubr.bf16.gmra.mrb[48].mxu1 %v7044_v3  ;;  %v7140_v3 = vld [vmem:[%s7851_s13 + $0x248] ss:$72 sps:$4 sm:$0xff]  }
  0xa7   : > { %4685 = vmatmul.mubr.bf16.gmra.mrb[16].mxu0 %v7048_v5  ;;  %3809 = vmatprep.mubr.bf16.mxu1 %v7052_v6  ;;  %v7144_v5 = vld [vmem:[%s7851_s13 + $0x6e8] ss:$72 sps:$4 sm:$0xff]   ;;  %v7148_v6 = vld [vmem:[%s7851_s13 + $0x2dc] ss:$72 sps:$4 sm:$0xff]  }
  0xa8   : > { %4694 = vmatprep.mubr.bf16.mxu0 %v7054_v7  ;;  %4822 = vmatpush1.bf16.msra.mxu0 %v7097_v8  ;;  %v7150_v7 = vld [vmem:[%s7851_s13 + $0x77c] ss:$72 sps:$4 sm:$0xff]   ;;  %v7190_v8 = vld [vmem:[%s9183_s1 + $0x280] ss:$8 sps:$4 sm:$0xff]  }
  0xa9   : > { %4823 = vmatprep.subr.bf16.mxu0 %v7111_v9  ;;  %v7203_v9 = vld [vmem:[%s9183_s1 + $0x294] ss:$8 sps:$4 sm:$0xff]  }
  0xac   : > { %4824 = vmatpush1.bf16.msra.mxu0 %v7109_v10  ;;  %v7201_v10 = vld [vmem:[%s9183_s1 + $0x290] ss:$8 sps:$4 sm:$0xff]  }
  0xad   : > { %4825 = vmatprep.subr.bf16.mxu0 %v7123_v11  ;;  %v7215_v11 = vld [vmem:[%s9183_s1 + $0x2a4] ss:$8 sps:$4 sm:$0xff]  }
  0xae   : > { %3810 = vmatmul.mubr.bf16.gmra.mrb[52].mxu1 %v7056_v12  ;;  %v7152_v12 = vld [vmem:[%s7851_s13 + $0x2d8] ss:$72 sps:$4 sm:$0xff]  }
  0xaf   : > { %4695 = vmatmul.mubr.bf16.gmra.mrb[20].mxu0 %v7060_v13  ;;  %3819 = vmatprep.mubr.bf16.mxu1 %v7064_v14  ;;  %v7156_v13 = vld [vmem:[%s7851_s13 + $0x778] ss:$72 sps:$4 sm:$0xff]   ;;  %v7160_v14 = vld [vmem:[%s7851_s13 + $0x36c] ss:$72 sps:$4 sm:$0xff]  }
  0xb0   : > { %4704 = vmatprep.mubr.bf16.mxu0 %v7066_v15  ;;  %4826 = vmatpush1.bf16.msra.mxu0 %v7121_v16  ;;  %v7162_v15 = vld [vmem:[%s7851_s13 + $0x80c] ss:$72 sps:$4 sm:$0xff]   ;;  %v7213_v16 = vld [vmem:[%s9183_s1 + $0x2a0] ss:$8 sps:$4 sm:$0xff]  }
  0xb1   : > { %4827 = vmatprep.subr.bf16.mxu0 %v7135_v17  ;;  %v7227_v17 = vld [vmem:[%s9183_s1 + $0x2b4] ss:$8 sps:$4 sm:$0xff]  }
  0xb4   : > { %4828 = vmatpush1.bf16.msra.mxu0 %v7133_v18  ;;  %v7225_v18 = vld [vmem:[%s9183_s1 + $0x2b0] ss:$8 sps:$4 sm:$0xff]  }
  0xb5   : > { %4829 = vmatprep.subr.bf16.mxu0 %v7147_v20  ;;  %v7239_v20 = vld [vmem:[%s9183_s1 + $0x2c4] ss:$8 sps:$4 sm:$0xff]  }
  0xb6   : > { %3820 = vmatmul.mubr.bf16.gmra.mrb[56].mxu1 %v7068_v19  ;;  %v7164_v19 = vld [vmem:[%s7851_s13 + $0x368] ss:$72 sps:$4 sm:$0xff]  }
  0xb7   : > { %4705 = vmatmul.mubr.bf16.gmra.mrb[24].mxu0 %v7072_v21  ;;  %3829 = vmatprep.mubr.bf16.mxu1 %v7076_v22  ;;  %v7168_v21 = vld [vmem:[%s7851_s13 + $0x808] ss:$72 sps:$4 sm:$0xff]   ;;  %v7172_v22 = vld [vmem:[%s7851_s13 + $0x3fc] ss:$72 sps:$4 sm:$0xff]  }
  0xb8   : > { %4714 = vmatprep.mubr.bf16.mxu0 %v7078_v23  ;;  %4830 = vmatpush1.bf16.msra.mxu0 %v7145_v24  ;;  %v7174_v23 = vld [vmem:[%s7851_s13 + $0x89c] ss:$72 sps:$4 sm:$0xff]   ;;  %v7237_v24 = vld [vmem:[%s9183_s1 + $0x2c0] ss:$8 sps:$4 sm:$0xff]  }
  0xb9   : > { %4831 = vmatprep.subr.bf16.mxu0 %v7159_v25  ;;  %v7251_v25 = vld [vmem:[%s9183_s1 + $0x2d4] ss:$8 sps:$4 sm:$0xff]  }
  0xbc   : > { %4832 = vmatpush1.bf16.msra.mxu0 %v7157_v26  ;;  %v7249_v26 = vld [vmem:[%s9183_s1 + $0x2d0] ss:$8 sps:$4 sm:$0xff]  }
  0xbd   : > { %4833 = vmatprep.subr.bf16.mxu0 %v7171_v27  ;;  %v7263_v27 = vld [vmem:[%s9183_s1 + $0x2e4] ss:$8 sps:$4 sm:$0xff]  }
  0xbe   : > { %3830 = vmatmul.mubr.bf16.gmra.mrb[60].mxu1 %v7080_v28  ;;  %v7176_v28 = vld [vmem:[%s7851_s13 + $0x3f8] ss:$72 sps:$4 sm:$0xff]  }
  0xbf   : > { %4715 = vmatmul.mubr.bf16.gmra.mrb[28].mxu0 %v7084_v29  ;;  %3872 = vmatprep.mubr.bf16.mxu1 %v7090_v30  ;;  %v7180_v29 = vld [vmem:[%s7851_s13 + $0x898] ss:$72 sps:$4 sm:$0xff]   ;;  %v7184_v30 = vld [vmem:[%s7851_s13 + $0x48c] ss:$72 sps:$4 sm:$0xff]  }
  0xc0   : > { %4724 = vmatprep.mubr.bf16.mxu0 %v7091_v31  ;;  %4834 = vmatpush1.bf16.msra.mxu0 %v7169_v32  ;;  %v7188_v31 = vld [vmem:[%s7851_s13 + $0x34] ss:$72 sps:$4 sm:$0xff]   ;;  %v7261_v32 = vld [vmem:[%s9183_s1 + $0x2e0] ss:$8 sps:$4 sm:$0xff]  }
  0xc1   : > { %4835 = vmatprep.subr.bf16.mxu0 %v7183_v33  ;;  %v7275_v33 = vld [vmem:[%s9183_s1 + $0x2f4] ss:$8 sps:$4 sm:$0xff]  }
  0xc4   : > { %4836 = vmatpush1.bf16.msra.mxu0 %v7181_v35  ;;  %v7273_v35 = vld [vmem:[%s9183_s1 + $0x2f0] ss:$8 sps:$4 sm:$0xff]  }
  0xc5   : > { %4998 = vmatprep.subr.bf16.mxu0 %v7195_v37  ;;  %v7287_v37 = vld [vmem:[%s9183_s1 + $0x304] ss:$8 sps:$4 sm:$0xff]  }
  0xc6   : > { %3873 = vmatmul.mubr.bf16.vlgmr.msra.gmra.mrb[0].mxu1 %v7088_v34  ;;  %v7186_v34 = vld [vmem:[%s7851_s13 + $0x30] ss:$72 sps:$4 sm:$0xff]  }
  0xc7   : > { %4725 = vmatmul.mubr.bf16.gmra.mrb[32].mxu0 %v7096_v38  ;;  %4034 = vmatpush1.bf16.msra.mxu1 %v7093_v36  ;;  %v7189_v36 = vld [vmem:[%s7851_s13 + $0x488] ss:$72 sps:$4 sm:$0xff]  }
  0xc8   : > { %3882 = vmatprep.mubr.bf16.mxu1 %v7100_v39  ;;  %4734 = vmatprep.mubr.bf16.mxu0 %v7102_v40  ;;  %v7193_v38 = vld [vmem:[%s9183_s1 + $0x700] ss:$8 sps:$4 sm:$0xff]   ;;  %v7196_v39 = vld [vmem:[%s7851_s13 + $0x51c] ss:$72 sps:$4 sm:$0xff]  }
  0xc9   : > { %4035 = vmatprep.subr.bf16.mxu1 %v7107_v41  ;;  %v7198_v40 = vld [vmem:[%s7851_s13 + $0xc4] ss:$72 sps:$4 sm:$0xff]   ;;  %v7207_v41 = vld [vmem:[%s9183_s1 + $0x714] ss:$8 sps:$4 sm:$0xff]  }
  0xcb   : > { %4036 = vmatpush1.bf16.msra.mxu1 %v7105_v42  ;;  %v7205_v42 = vld [vmem:[%s9183_s1 + $0x710] ss:$8 sps:$4 sm:$0xff]  }
  0xcc   : > { %4037 = vmatprep.subr.bf16.mxu1 %v7119_v43  ;;  %v7219_v43 = vld [vmem:[%s9183_s1 + $0x724] ss:$8 sps:$4 sm:$0xff]  }
  0xce   : > { %3883 = vmatmul.mubr.bf16.gmra.mrb[4].mxu1 %v7104_v44  ;;  %v7200_v44 = vld [vmem:[%s7851_s13 + $0x518] ss:$72 sps:$4 sm:$0xff]  }
  0xcf   : > { %4735 = vmatmul.mubr.bf16.gmra.mrb[36].mxu0 %v7108_v45  ;;  %3892 = vmatprep.mubr.bf16.mxu1 %v7112_v46  ;;  %v7204_v45 = vld [vmem:[%s7851_s13 + $0xc0] ss:$72 sps:$4 sm:$0xff]   ;;  %v7208_v46 = vld [vmem:[%s7851_s13 + $0x5ac] ss:$72 sps:$4 sm:$0xff]  }
  0xd0   : > { %4744 = vmatprep.mubr.bf16.mxu0 %v7114_v47  ;;  %4038 = vmatpush1.bf16.msra.mxu1 %v7117_v48  ;;  %v7210_v47 = vld [vmem:[%s7851_s13 + $0x154] ss:$72 sps:$4 sm:$0xff]   ;;  %v7217_v48 = vld [vmem:[%s9183_s1 + $0x720] ss:$8 sps:$4 sm:$0xff]  }
  0xd1   : > { %4039 = vmatprep.subr.bf16.mxu1 %v7131_v49  ;;  %v7231_v49 = vld [vmem:[%s9183_s1 + $0x734] ss:$8 sps:$4 sm:$0xff]  }
  0xd4   : > { %4040 = vmatpush1.bf16.msra.mxu1 %v7129_v50  ;;  %v7229_v50 = vld [vmem:[%s9183_s1 + $0x730] ss:$8 sps:$4 sm:$0xff]  }
  0xd5   : > { %4041 = vmatprep.subr.bf16.mxu1 %v7143_v52  ;;  %v7243_v52 = vld [vmem:[%s9183_s1 + $0x744] ss:$8 sps:$4 sm:$0xff]  }
  0xd6   : > { %3893 = vmatmul.mubr.bf16.gmra.mrb[8].mxu1 %v7116_v51  ;;  %v7212_v51 = vld [vmem:[%s7851_s13 + $0x5a8] ss:$72 sps:$4 sm:$0xff]  }
  0xd7   : > { %4745 = vmatmul.mubr.bf16.gmra.mrb[40].mxu0 %v7120_v53  ;;  %3902 = vmatprep.mubr.bf16.mxu1 %v7124_v54  ;;  %v7216_v53 = vld [vmem:[%s7851_s13 + $0x150] ss:$72 sps:$4 sm:$0xff]   ;;  %v7220_v54 = vld [vmem:[%s7851_s13 + $0x63c] ss:$72 sps:$4 sm:$0xff]  }
  0xd8   : > { %4754 = vmatprep.mubr.bf16.mxu0 %v7126_v55  ;;  %4042 = vmatpush1.bf16.msra.mxu1 %v7141_v56  ;;  %v7222_v55 = vld [vmem:[%s7851_s13 + $0x1e4] ss:$72 sps:$4 sm:$0xff]   ;;  %v7241_v56 = vld [vmem:[%s9183_s1 + $0x740] ss:$8 sps:$4 sm:$0xff]  }
  0xd9   : > { %4043 = vmatprep.subr.bf16.mxu1 %v7155_v57  ;;  %v7255_v57 = vld [vmem:[%s9183_s1 + $0x754] ss:$8 sps:$4 sm:$0xff]  }
  0xdc   : > { %4044 = vmatpush1.bf16.msra.mxu1 %v7153_v58  ;;  %v7253_v58 = vld [vmem:[%s9183_s1 + $0x750] ss:$8 sps:$4 sm:$0xff]  }
  0xdd   : > { %4045 = vmatprep.subr.bf16.mxu1 %v7167_v59  ;;  %v7267_v59 = vld [vmem:[%s9183_s1 + $0x764] ss:$8 sps:$4 sm:$0xff]  }
  0xde   : > { %3903 = vmatmul.mubr.bf16.gmra.mrb[12].mxu1 %v7128_v60  ;;  %v7224_v60 = vld [vmem:[%s7851_s13 + $0x638] ss:$72 sps:$4 sm:$0xff]  }
  0xdf   : > { %4755 = vmatmul.mubr.bf16.gmra.mrb[44].mxu0 %v7132_v61  ;;  %3912 = vmatprep.mubr.bf16.mxu1 %v7136_v62  ;;  %v7228_v61 = vld [vmem:[%s7851_s13 + $0x1e0] ss:$72 sps:$4 sm:$0xff]   ;;  %v7232_v62 = vld [vmem:[%s7851_s13 + $0x6cc] ss:$72 sps:$4 sm:$0xff]  }
  0xe0   : > { %4764 = vmatprep.mubr.bf16.mxu0 %v7138_v63  ;;  %4046 = vmatpush1.bf16.msra.mxu1 %v7165_v0  ;;  %v7234_v63 = vld [vmem:[%s7851_s13 + $0x274] ss:$72 sps:$4 sm:$0xff]   ;;  %v7265_v0 = vld [vmem:[%s9183_s1 + $0x760] ss:$8 sps:$4 sm:$0xff]  }
  0xe1   : > { %4047 = vmatprep.subr.bf16.mxu1 %v7179_v1  ;;  %v7279_v1 = vld [vmem:[%s9183_s1 + $0x774] ss:$8 sps:$4 sm:$0xff]  }
  0xe4   : > { %4048 = vmatpush1.bf16.msra.mxu1 %v7177_v2  ;;  %v7277_v2 = vld [vmem:[%s9183_s1 + $0x770] ss:$8 sps:$4 sm:$0xff]  }
  0xe5   : > { %4049 = vmatprep.subr.bf16.mxu1 %v7192_v4  ;;  %v7291_v4 = vld [vmem:[%s9183_s1 + $0x784] ss:$8 sps:$4 sm:$0xff]  }
  0xe6   : > { %3913 = vmatmul.mubr.bf16.gmra.mrb[16].mxu1 %v7140_v3  ;;  %v7236_v3 = vld [vmem:[%s7851_s13 + $0x6c8] ss:$72 sps:$4 sm:$0xff]  }
  0xe7   : > { %4765 = vmatmul.mubr.bf16.gmra.mrb[48].mxu0 %v7144_v5  ;;  %3922 = vmatprep.mubr.bf16.mxu1 %v7148_v6  ;;  %v7240_v5 = vld [vmem:[%s7851_s13 + $0x270] ss:$72 sps:$4 sm:$0xff]   ;;  %v7244_v6 = vld [vmem:[%s7851_s13 + $0x75c] ss:$72 sps:$4 sm:$0xff]  }
  0xe8   : > { %4774 = vmatprep.mubr.bf16.mxu0 %v7150_v7  ;;  %4050 = vmatpush1.bf16.msra.mxu1 %v7190_v8  ;;  %v7246_v7 = vld [vmem:[%s7851_s13 + $0x304] ss:$72 sps:$4 sm:$0xff]   ;;  %v7289_v8 = vld [vmem:[%s9183_s1 + $0x780] ss:$8 sps:$4 sm:$0xff]  }
  0xe9   : > { %4051 = vmatprep.subr.bf16.mxu1 %v7203_v9  ;;  %v7303_v9 = vld [vmem:[%s9183_s1 + $0x794] ss:$8 sps:$4 sm:$0xff]  }
  0xec   : > { %4052 = vmatpush1.bf16.msra.mxu1 %v7201_v10  ;;  %v7248_v10 = vld [vmem:[%s7851_s13 + $0x758] ss:$72 sps:$4 sm:$0xff]  }
  0xed   : > { %4053 = vmatprep.subr.bf16.mxu1 %v7215_v11  ;;  %v7252_v11 = vld [vmem:[%s7851_s13 + $0x300] ss:$72 sps:$4 sm:$0xff]  }
  0xee   : > { %3923 = vmatmul.mubr.bf16.gmra.mrb[20].mxu1 %v7152_v12  ;;  %v7301_v12 = vld [vmem:[%s9183_s1 + $0x790] ss:$8 sps:$4 sm:$0xff]  }
  0xef   : > { %4775 = vmatmul.mubr.bf16.gmra.mrb[52].mxu0 %v7156_v13  ;;  %3932 = vmatprep.mubr.bf16.mxu1 %v7160_v14  ;;  %v7256_v13 = vld [vmem:[%s7851_s13 + $0x7ec] ss:$72 sps:$4 sm:$0xff]  }
  0xf0   : > { %4784 = vmatprep.mubr.bf16.mxu0 %v7162_v15  ;;  %4054 = vmatpush1.bf16.msra.mxu1 %v7213_v16  ;;  %v7315_v14 = vld [vmem:[%s9183_s1 + $0x7a4] ss:$8 sps:$4 sm:$0xff]   ;;  %v7258_v15 = vld [vmem:[%s7851_s13 + $0x394] ss:$72 sps:$4 sm:$0xff]   ;;  %v7313_v16 = vld [vmem:[%s9183_s1 + $0x7a0] ss:$8 sps:$4 sm:$0xff]  }
  0xf1   : > { %4055 = vmatprep.subr.bf16.mxu1 %v7227_v17  ;;  %v7327_v17 = vld [vmem:[%s9183_s1 + $0x7b4] ss:$8 sps:$4 sm:$0xff]  }
  0xf4   : > { %4056 = vmatpush1.bf16.msra.mxu1 %v7225_v18  ;;  %v7325_v18 = vld [vmem:[%s9183_s1 + $0x7b0] ss:$8 sps:$4 sm:$0xff]  }
  0xf5   : > { %4057 = vmatprep.subr.bf16.mxu1 %v7239_v20  ;;  %v7264_v20 = vld [vmem:[%s7851_s13 + $0x390] ss:$72 sps:$4 sm:$0xff]  }
  0xf6   : > { %3933 = vmatmul.mubr.bf16.gmra.mrb[24].mxu1 %v7164_v19  ;;  %v7260_v19 = vld [vmem:[%s7851_s13 + $0x7e8] ss:$72 sps:$4 sm:$0xff]  }
  0xf7   : > { %4785 = vmatmul.mubr.bf16.gmra.mrb[56].mxu0 %v7168_v21  ;;  %3942 = vmatprep.mubr.bf16.mxu1 %v7172_v22  ;;  %v7339_v21 = vld [vmem:[%s9183_s1 + $0x7c4] ss:$8 sps:$4 sm:$0xff]  }
  0xf8   : > { %4794 = vmatprep.mubr.bf16.mxu0 %v7174_v23  ;;  %4058 = vmatpush1.bf16.msra.mxu1 %v7237_v24  ;;  %v7268_v22 = vld [vmem:[%s7851_s13 + $0x87c] ss:$72 sps:$4 sm:$0xff]   ;;  %v7337_v24 = vld [vmem:[%s9183_s1 + $0x7c0] ss:$8 sps:$4 sm:$0xff]  }
  0xf9   : > { %4059 = vmatprep.subr.bf16.mxu1 %v7251_v25  ;;  %v7270_v23 = vld [vmem:[%s7851_s13 + $0x424] ss:$72 sps:$4 sm:$0xff]   ;;  %v7351_v25 = vld [vmem:[%s9183_s1 + $0x7d4] ss:$8 sps:$4 sm:$0xff]  }
  0xfc   : > { %4060 = vmatpush1.bf16.msra.mxu1 %v7249_v26  ;;  %v7349_v26 = vld [vmem:[%s9183_s1 + $0x7d0] ss:$8 sps:$4 sm:$0xff]  }
  0xfd   : > { %4061 = vmatprep.subr.bf16.mxu1 %v7263_v27  ;;  %v7272_v27 = vld [vmem:[%s7851_s13 + $0x878] ss:$72 sps:$4 sm:$0xff]  }
  0xfe   : > { %3943 = vmatmul.mubr.bf16.gmra.mrb[28].mxu1 %v7176_v28  ;;  %v7276_v28 = vld [vmem:[%s7851_s13 + $0x420] ss:$72 sps:$4 sm:$0xff]  }
  0xff   : > { %4795 = vmatmul.mubr.bf16.gmra.mrb[60].mxu0 %v7180_v29  ;;  %3952 = vmatprep.mubr.bf16.mxu1 %v7184_v30  ;;  %v7363_v29 = vld [vmem:[%s9183_s1 + $0x7e4] ss:$8 sps:$4 sm:$0xff]   ;;  %v7282_v30 = vld [vmem:[%s7851_s13 + $0x14] ss:$72 sps:$4 sm:$0xff]  }
 0x100   : > { %4837 = vmatprep.mubr.bf16.mxu0 %v7188_v31  ;;  %4062 = vmatpush1.bf16.msra.mxu1 %v7261_v32  ;;  %v7283_v31 = vld [vmem:[%s7851_s13 + $0x4b4] ss:$72 sps:$4 sm:$0xff]   ;;  %v7361_v32 = vld [vmem:[%s9183_s1 + $0x7e0] ss:$8 sps:$4 sm:$0xff]  }
 0x101   : > { %4063 = vmatprep.subr.bf16.mxu1 %v7275_v33  ;;  %v7375_v33 = vld [vmem:[%s9183_s1 + $0x7f4] ss:$8 sps:$4 sm:$0xff]  }
 0x104   : > { %4064 = vmatpush1.bf16.msra.mxu1 %v7273_v35  ;;  %v7280_v35 = vld [vmem:[%s7851_s13 + $0x10] ss:$72 sps:$4 sm:$0xff]  }
 0x105   : > { %4226 = vmatprep.subr.bf16.mxu1 %v7287_v37  ;;  %v7387_v37 = vld [vmem:[%s9183_s1 + $0x804] ss:$8 sps:$4 sm:$0xff]  }
 0x106   : > { %3953 = vmatmul.mubr.bf16.gmra.mrb[32].mxu1 %v7189_v36  ;;  %v7288_v36 = vld [vmem:[%s7851_s13 + $0x4b0] ss:$72 sps:$4 sm:$0xff]  }
 0x107   : > { %4838 = vmatmul.mubr.bf16.vlgmr.msra.gmra.mrb[0].mxu0 %v7186_v34  ;;  %3962 = vmatprep.mubr.bf16.mxu1 %v7196_v39  ;;  %v7373_v34 = vld [vmem:[%s9183_s1 + $0x7f0] ss:$8 sps:$4 sm:$0xff]   ;;  %v7292_v39 = vld [vmem:[%s7851_s13 + $0xa4] ss:$72 sps:$4 sm:$0xff]  }
 0x108   : > { %4999 = vmatpush1.bf16.msra.mxu0 %v7193_v38  ;;  %4847 = vmatprep.mubr.bf16.mxu0 %v7198_v40  ;;  %v7285_v38 = vld [vmem:[%s9183_s1 + $0x300] ss:$8 sps:$4 sm:$0xff]   ;;  %v7294_v40 = vld [vmem:[%s7851_s13 + $0x544] ss:$72 sps:$4 sm:$0xff]  }
 0x109   : > { %5000 = vmatprep.subr.bf16.mxu0 %v7207_v41  ;;  %v7299_v41 = vld [vmem:[%s9183_s1 + $0x314] ss:$8 sps:$4 sm:$0xff]  }
 0x10c   : > { %5001 = vmatpush1.bf16.msra.mxu0 %v7205_v42  ;;  %v7297_v42 = vld [vmem:[%s9183_s1 + $0x310] ss:$8 sps:$4 sm:$0xff]  }
 0x10d   : > { %5002 = vmatprep.subr.bf16.mxu0 %v7219_v43  ;;  %v7296_v43 = vld [vmem:[%s7851_s13 + $0xa0] ss:$72 sps:$4 sm:$0xff]  }
 0x10e   : > { %3963 = vmatmul.mubr.bf16.gmra.mrb[36].mxu1 %v7200_v44  ;;  %v7300_v44 = vld [vmem:[%s7851_s13 + $0x540] ss:$72 sps:$4 sm:$0xff]  }
 0x10f   : > { %4848 = vmatmul.mubr.bf16.gmra.mrb[4].mxu0 %v7204_v45  ;;  %3972 = vmatprep.mubr.bf16.mxu1 %v7208_v46  ;;  %v7311_v45 = vld [vmem:[%s9183_s1 + $0x324] ss:$8 sps:$4 sm:$0xff]   ;;  %v7304_v46 = vld [vmem:[%s7851_s13 + $0x134] ss:$72 sps:$4 sm:$0xff]  }
 0x110   : > { %4857 = vmatprep.mubr.bf16.mxu0 %v7210_v47  ;;  %5003 = vmatpush1.bf16.msra.mxu0 %v7217_v48  ;;  %v7306_v47 = vld [vmem:[%s7851_s13 + $0x5d4] ss:$72 sps:$4 sm:$0xff]   ;;  %v7309_v48 = vld [vmem:[%s9183_s1 + $0x320] ss:$8 sps:$4 sm:$0xff]  }
 0x111   : > { %5004 = vmatprep.subr.bf16.mxu0 %v7231_v49  ;;  %v7323_v49 = vld [vmem:[%s9183_s1 + $0x334] ss:$8 sps:$4 sm:$0xff]  }
 0x114   : > { %5005 = vmatpush1.bf16.msra.mxu0 %v7229_v50  ;;  %v7321_v50 = vld [vmem:[%s9183_s1 + $0x330] ss:$8 sps:$4 sm:$0xff]  }
 0x115   : > { %5006 = vmatprep.subr.bf16.mxu0 %v7243_v52  ;;  %v7308_v52 = vld [vmem:[%s7851_s13 + $0x130] ss:$72 sps:$4 sm:$0xff]  }
 0x116   : > { %3973 = vmatmul.mubr.bf16.gmra.mrb[40].mxu1 %v7212_v51  ;;  %v7335_v51 = vld [vmem:[%s9183_s1 + $0x344] ss:$8 sps:$4 sm:$0xff]  }
 0x117   : > { %4858 = vmatmul.mubr.bf16.gmra.mrb[8].mxu0 %v7216_v53  ;;  %3982 = vmatprep.mubr.bf16.mxu1 %v7220_v54  ;;  %v7312_v53 = vld [vmem:[%s7851_s13 + $0x5d0] ss:$72 sps:$4 sm:$0xff]   ;;  %v7316_v54 = vld [vmem:[%s7851_s13 + $0x1c4] ss:$72 sps:$4 sm:$0xff]  }
 0x118   : > { %4867 = vmatprep.mubr.bf16.mxu0 %v7222_v55  ;;  %5007 = vmatpush1.bf16.msra.mxu0 %v7241_v56  ;;  %v7318_v55 = vld [vmem:[%s7851_s13 + $0x664] ss:$72 sps:$4 sm:$0xff]   ;;  %v7333_v56 = vld [vmem:[%s9183_s1 + $0x340] ss:$8 sps:$4 sm:$0xff]  }
 0x119   : > { %5008 = vmatprep.subr.bf16.mxu0 %v7255_v57  ;;  %v7347_v57 = vld [vmem:[%s9183_s1 + $0x354] ss:$8 sps:$4 sm:$0xff]  }
 0x11c   : > { %5009 = vmatpush1.bf16.msra.mxu0 %v7253_v58  ;;  %v7345_v58 = vld [vmem:[%s9183_s1 + $0x350] ss:$8 sps:$4 sm:$0xff]  }
 0x11d   : > { %5010 = vmatprep.subr.bf16.mxu0 %v7267_v59  ;;  %v7359_v59 = vld [vmem:[%s9183_s1 + $0x364] ss:$8 sps:$4 sm:$0xff]  }
 0x11e   : > { %3983 = vmatmul.mubr.bf16.gmra.mrb[44].mxu1 %v7224_v60  ;;  %v7320_v60 = vld [vmem:[%s7851_s13 + $0x1c0] ss:$72 sps:$4 sm:$0xff]  }
 0x11f   : > { %4868 = vmatmul.mubr.bf16.gmra.mrb[12].mxu0 %v7228_v61  ;;  %3992 = vmatprep.mubr.bf16.mxu1 %v7232_v62  ;;  %v7324_v61 = vld [vmem:[%s7851_s13 + $0x660] ss:$72 sps:$4 sm:$0xff]   ;;  %v7328_v62 = vld [vmem:[%s7851_s13 + $0x254] ss:$72 sps:$4 sm:$0xff]  }
 0x120   : > { %4877 = vmatprep.mubr.bf16.mxu0 %v7234_v63  ;;  %5011 = vmatpush1.bf16.msra.mxu0 %v7265_v0  ;;  %v7330_v63 = vld [vmem:[%s7851_s13 + $0x6f4] ss:$72 sps:$4 sm:$0xff]   ;;  %v7357_v0 = vld [vmem:[%s9183_s1 + $0x360] ss:$8 sps:$4 sm:$0xff]  }
 0x121   : > { %5012 = vmatprep.subr.bf16.mxu0 %v7279_v1  ;;  %v7371_v1 = vld [vmem:[%s9183_s1 + $0x374] ss:$8 sps:$4 sm:$0xff]  }
 0x124   : > { %5013 = vmatpush1.bf16.msra.mxu0 %v7277_v2  ;;  %v7369_v2 = vld [vmem:[%s9183_s1 + $0x370] ss:$8 sps:$4 sm:$0xff]  }
 0x125   : > { %5014 = vmatprep.subr.bf16.mxu0 %v7291_v4  ;;  %v7332_v4 = vld [vmem:[%s7851_s13 + $0x250] ss:$72 sps:$4 sm:$0xff]  }
 0x126   : > { %3993 = vmatmul.mubr.bf16.gmra.mrb[48].mxu1 %v7236_v3  ;;  %v7384_v3 = vld [vmem:[%s9183_s1 + $0x384] ss:$8 sps:$4 sm:$0xff]  }
 0x127   : > { %4878 = vmatmul.mubr.bf16.gmra.mrb[16].mxu0 %v7240_v5  ;;  %4002 = vmatprep.mubr.bf16.mxu1 %v7244_v6  ;;  %v7336_v5 = vld [vmem:[%s7851_s13 + $0x6f0] ss:$72 sps:$4 sm:$0xff]   ;;  %v7340_v6 = vld [vmem:[%s7851_s13 + $0x2e4] ss:$72 sps:$4 sm:$0xff]  }
 0x128   : > { %4887 = vmatprep.mubr.bf16.mxu0 %v7246_v7  ;;  %5015 = vmatpush1.bf16.msra.mxu0 %v7289_v8  ;;  %v7342_v7 = vld [vmem:[%s7851_s13 + $0x784] ss:$72 sps:$4 sm:$0xff]   ;;  %v7382_v8 = vld [vmem:[%s9183_s1 + $0x380] ss:$8 sps:$4 sm:$0xff]  }
 0x129   : > { %5016 = vmatprep.subr.bf16.mxu0 %v7303_v9  ;;  %v7395_v9 = vld [vmem:[%s9183_s1 + $0x394] ss:$8 sps:$4 sm:$0xff]  }
 0x12c   : > { %5017 = vmatpush1.bf16.msra.mxu0 %v7301_v12  ;;  %v7344_v12 = vld [vmem:[%s7851_s13 + $0x2e0] ss:$72 sps:$4 sm:$0xff]  }
 0x12d   : > { %5018 = vmatprep.subr.bf16.mxu0 %v7315_v14  ;;  %v7352_v14 = vld [vmem:[%s7851_s13 + $0x374] ss:$72 sps:$4 sm:$0xff]  }
 0x12e   : > { %4003 = vmatmul.mubr.bf16.gmra.mrb[52].mxu1 %v7248_v10  ;;  %v7393_v10 = vld [vmem:[%s9183_s1 + $0x390] ss:$8 sps:$4 sm:$0xff]  }
 0x12f   : > { %4888 = vmatmul.mubr.bf16.gmra.mrb[20].mxu0 %v7252_v11  ;;  %4012 = vmatprep.mubr.bf16.mxu1 %v7256_v13  ;;  %v7407_v11 = vld [vmem:[%s9183_s1 + $0x3a4] ss:$8 sps:$4 sm:$0xff]   ;;  %v7348_v13 = vld [vmem:[%s7851_s13 + $0x780] ss:$72 sps:$4 sm:$0xff]  }
 0x130   : > { %4897 = vmatprep.mubr.bf16.mxu0 %v7258_v15  ;;  %5019 = vmatpush1.bf16.msra.mxu0 %v7313_v16  ;;  %v7354_v15 = vld [vmem:[%s7851_s13 + $0x814] ss:$72 sps:$4 sm:$0xff]   ;;  %v7405_v16 = vld [vmem:[%s9183_s1 + $0x3a0] ss:$8 sps:$4 sm:$0xff]  }
 0x131   : > { %5020 = vmatprep.subr.bf16.mxu0 %v7327_v17  ;;  %v7419_v17 = vld [vmem:[%s9183_s1 + $0x3b4] ss:$8 sps:$4 sm:$0xff]  }
 0x134   : > { %5021 = vmatpush1.bf16.msra.mxu0 %v7325_v18  ;;  %v7417_v18 = vld [vmem:[%s9183_s1 + $0x3b0] ss:$8 sps:$4 sm:$0xff]  }
 0x135   : > { %5022 = vmatprep.subr.bf16.mxu0 %v7339_v21  ;;  %v7360_v21 = vld [vmem:[%s7851_s13 + $0x810] ss:$72 sps:$4 sm:$0xff]  }
 0x136   : > { %4013 = vmatmul.mubr.bf16.gmra.mrb[56].mxu1 %v7260_v19  ;;  %v7431_v19 = vld [vmem:[%s9183_s1 + $0x3c4] ss:$8 sps:$4 sm:$0xff]  }
 0x137   : > { %4898 = vmatmul.mubr.bf16.gmra.mrb[24].mxu0 %v7264_v20  ;;  %4022 = vmatprep.mubr.bf16.mxu1 %v7268_v22  ;;  %v7356_v20 = vld [vmem:[%s7851_s13 + $0x370] ss:$72 sps:$4 sm:$0xff]   ;;  %v7364_v22 = vld [vmem:[%s7851_s13 + $0x404] ss:$72 sps:$4 sm:$0xff]  }
 0x138   : > { %4907 = vmatprep.mubr.bf16.mxu0 %v7270_v23  ;;  %5023 = vmatpush1.bf16.msra.mxu0 %v7337_v24  ;;  %v7366_v23 = vld [vmem:[%s7851_s13 + $0x8a4] ss:$72 sps:$4 sm:$0xff]   ;;  %v7429_v24 = vld [vmem:[%s9183_s1 + $0x3c0] ss:$8 sps:$4 sm:$0xff]  }
 0x139   : > { %5024 = vmatprep.subr.bf16.mxu0 %v7351_v25  ;;  %v7443_v25 = vld [vmem:[%s9183_s1 + $0x3d4] ss:$8 sps:$4 sm:$0xff]  }
 0x13c   : > { %5025 = vmatpush1.bf16.msra.mxu0 %v7349_v26  ;;  %v7441_v26 = vld [vmem:[%s9183_s1 + $0x3d0] ss:$8 sps:$4 sm:$0xff]  }
 0x13d   : > { %5026 = vmatprep.subr.bf16.mxu0 %v7363_v29  ;;  %v7372_v29 = vld [vmem:[%s7851_s13 + $0x8a0] ss:$72 sps:$4 sm:$0xff]  }
 0x13e   : > { %4023 = vmatmul.mubr.bf16.gmra.mrb[60].mxu1 %v7272_v27  ;;  %v7455_v27 = vld [vmem:[%s9183_s1 + $0x3e4] ss:$8 sps:$4 sm:$0xff]  }
 0x13f   : > { %4908 = vmatmul.mubr.bf16.gmra.mrb[28].mxu0 %v7276_v28  ;;  %4065 = vmatprep.mubr.bf16.mxu1 %v7282_v30  ;;  %v7368_v28 = vld [vmem:[%s7851_s13 + $0x400] ss:$72 sps:$4 sm:$0xff]   ;;  %v7376_v30 = vld [vmem:[%s7851_s13 + $0x494] ss:$72 sps:$4 sm:$0xff]  }
 0x140   : > { %4917 = vmatprep.mubr.bf16.mxu0 %v7283_v31  ;;  %5027 = vmatpush1.bf16.msra.mxu0 %v7361_v32  ;;  %v7380_v31 = vld [vmem:[%s7851_s13 + $0x3c] ss:$72 sps:$4 sm:$0xff]   ;;  %v7453_v32 = vld [vmem:[%s9183_s1 + $0x3e0] ss:$8 sps:$4 sm:$0xff]  }
 0x141   : > { %5028 = vmatprep.subr.bf16.mxu0 %v7375_v33  ;;  %v7467_v33 = vld [vmem:[%s9183_s1 + $0x3f4] ss:$8 sps:$4 sm:$0xff]  }
 0x144   : > { %5029 = vmatpush1.bf16.msra.mxu0 %v7373_v34  ;;  %v7465_v34 = vld [vmem:[%s9183_s1 + $0x3f0] ss:$8 sps:$4 sm:$0xff]  }
 0x145   : > { %5191 = vmatprep.subr.bf16.mxu0 %v7387_v37  ;;  %v7385_v37 = vld [vmem:[%s9183_s1 + $0x800] ss:$8 sps:$4 sm:$0xff]  }
 0x146   : > { %4066 = vmatmul.mubr.bf16.vlgmr.msra.gmra.mrb[0].mxu1 %v7280_v35  ;;  %v7378_v35 = vld [vmem:[%s7851_s13 + $0x38] ss:$72 sps:$4 sm:$0xff]  }
 0x147   : > { %4918 = vmatmul.mubr.bf16.gmra.mrb[32].mxu0 %v7288_v36  ;;  %4227 = vmatpush1.bf16.msra.mxu1 %v7285_v38  ;;  %v7381_v36 = vld [vmem:[%s7851_s13 + $0x490] ss:$72 sps:$4 sm:$0xff]   ;;  %v7388_v38 = vld [vmem:[%s7851_s13 + $0x524] ss:$72 sps:$4 sm:$0xff]  }
 0x148   : > { %4075 = vmatprep.mubr.bf16.mxu1 %v7292_v39  ;;  %4927 = vmatprep.mubr.bf16.mxu0 %v7294_v40  ;;  %v7390_v39 = vld [vmem:[%s7851_s13 + $0xcc] ss:$72 sps:$4 sm:$0xff]  }
 0x149   : > { %4228 = vmatprep.subr.bf16.mxu1 %v7299_v41  ;;  %v7399_v40 = vld [vmem:[%s9183_s1 + $0x814] ss:$8 sps:$4 sm:$0xff]   ;;  %v7640_v41 = vld [vmem:[%s9183_s1 + $0x404] ss:$8 sps:$4 sm:$0xff]  }
 0x14b   : > { %4229 = vmatpush1.bf16.msra.mxu1 %v7297_v42  ;;  %v7397_v42 = vld [vmem:[%s9183_s1 + $0x810] ss:$8 sps:$4 sm:$0xff]  }
 0x14c   : > { %4230 = vmatprep.subr.bf16.mxu1 %v7311_v45  ;;  %v7396_v45 = vld [vmem:[%s7851_s13 + $0xc8] ss:$72 sps:$4 sm:$0xff]  }
 0x14e   : > { %4076 = vmatmul.mubr.bf16.gmra.mrb[4].mxu1 %v7296_v43  ;;  %v7411_v43 = vld [vmem:[%s9183_s1 + $0x824] ss:$8 sps:$4 sm:$0xff]  }
 0x14f   : > { %4928 = vmatmul.mubr.bf16.gmra.mrb[36].mxu0 %v7300_v44  ;;  %4085 = vmatprep.mubr.bf16.mxu1 %v7304_v46  ;;  %v7392_v44 = vld [vmem:[%s7851_s13 + $0x520] ss:$72 sps:$4 sm:$0xff]   ;;  %v7400_v46 = vld [vmem:[%s7851_s13 + $0x5b4] ss:$72 sps:$4 sm:$0xff]  }
 0x150   : > { %4937 = vmatprep.mubr.bf16.mxu0 %v7306_v47  ;;  %4231 = vmatpush1.bf16.msra.mxu1 %v7309_v48  ;;  %v7402_v47 = vld [vmem:[%s7851_s13 + $0x15c] ss:$72 sps:$4 sm:$0xff]   ;;  %v7409_v48 = vld [vmem:[%s9183_s1 + $0x820] ss:$8 sps:$4 sm:$0xff]  }
 0x151   : > { %4232 = vmatprep.subr.bf16.mxu1 %v7323_v49  ;;  %v7423_v49 = vld [vmem:[%s9183_s1 + $0x834] ss:$8 sps:$4 sm:$0xff]  }
 0x154   : > { %4233 = vmatpush1.bf16.msra.mxu1 %v7321_v50  ;;  %v7421_v50 = vld [vmem:[%s9183_s1 + $0x830] ss:$8 sps:$4 sm:$0xff]  }
 0x155   : > { %4234 = vmatprep.subr.bf16.mxu1 %v7335_v51  ;;  %v7435_v51 = vld [vmem:[%s9183_s1 + $0x844] ss:$8 sps:$4 sm:$0xff]  }
 0x156   : > { %4086 = vmatmul.mubr.bf16.gmra.mrb[8].mxu1 %v7308_v52  ;;  %v7404_v52 = vld [vmem:[%s7851_s13 + $0x5b0] ss:$72 sps:$4 sm:$0xff]  }
 0x157   : > { %4938 = vmatmul.mubr.bf16.gmra.mrb[40].mxu0 %v7312_v53  ;;  %4095 = vmatprep.mubr.bf16.mxu1 %v7316_v54  ;;  %v7408_v53 = vld [vmem:[%s7851_s13 + $0x158] ss:$72 sps:$4 sm:$0xff]   ;;  %v7412_v54 = vld [vmem:[%s7851_s13 + $0x644] ss:$72 sps:$4 sm:$0xff]  }
 0x158   : > { %4947 = vmatprep.mubr.bf16.mxu0 %v7318_v55  ;;  %4235 = vmatpush1.bf16.msra.mxu1 %v7333_v56  ;;  %v7414_v55 = vld [vmem:[%s7851_s13 + $0x1ec] ss:$72 sps:$4 sm:$0xff]   ;;  %v7433_v56 = vld [vmem:[%s9183_s1 + $0x840] ss:$8 sps:$4 sm:$0xff]  }
 0x159   : > { %4236 = vmatprep.subr.bf16.mxu1 %v7347_v57  ;;  %v7447_v57 = vld [vmem:[%s9183_s1 + $0x854] ss:$8 sps:$4 sm:$0xff]  }
 0x15c   : > { %4237 = vmatpush1.bf16.msra.mxu1 %v7345_v58  ;;  %v7445_v58 = vld [vmem:[%s9183_s1 + $0x850] ss:$8 sps:$4 sm:$0xff]  }
 0x15d   : > { %4238 = vmatprep.subr.bf16.mxu1 %v7359_v59  ;;  %v7459_v59 = vld [vmem:[%s9183_s1 + $0x864] ss:$8 sps:$4 sm:$0xff]  }
 0x15e   : > { %4096 = vmatmul.mubr.bf16.gmra.mrb[12].mxu1 %v7320_v60  ;;  %v7416_v60 = vld [vmem:[%s7851_s13 + $0x640] ss:$72 sps:$4 sm:$0xff]  }
 0x15f   : > { %4948 = vmatmul.mubr.bf16.gmra.mrb[44].mxu0 %v7324_v61  ;;  %4105 = vmatprep.mubr.bf16.mxu1 %v7328_v62  ;;  %v7420_v61 = vld [vmem:[%s7851_s13 + $0x1e8] ss:$72 sps:$4 sm:$0xff]   ;;  %v7424_v62 = vld [vmem:[%s7851_s13 + $0x6d4] ss:$72 sps:$4 sm:$0xff]  }
 0x160   : > { %4957 = vmatprep.mubr.bf16.mxu0 %v7330_v63  ;;  %4239 = vmatpush1.bf16.msra.mxu1 %v7357_v0  ;;  %v7426_v63 = vld [vmem:[%s7851_s13 + $0x27c] ss:$72 sps:$4 sm:$0xff]   ;;  %v7457_v0 = vld [vmem:[%s9183_s1 + $0x860] ss:$8 sps:$4 sm:$0xff]  }
 0x161   : > { %4240 = vmatprep.subr.bf16.mxu1 %v7371_v1  ;;  %v7471_v1 = vld [vmem:[%s9183_s1 + $0x874] ss:$8 sps:$4 sm:$0xff]  }
 0x164   : > { %4241 = vmatpush1.bf16.msra.mxu1 %v7369_v2  ;;  %v7469_v2 = vld [vmem:[%s9183_s1 + $0x870] ss:$8 sps:$4 sm:$0xff]  }
 0x165   : > { %4242 = vmatprep.subr.bf16.mxu1 %v7384_v3  ;;  %v7480_v3 = vld [vmem:[%s9183_s1 + $0x884] ss:$8 sps:$4 sm:$0xff]  }
 0x166   : > { %4106 = vmatmul.mubr.bf16.gmra.mrb[16].mxu1 %v7332_v4  ;;  %v7428_v4 = vld [vmem:[%s7851_s13 + $0x6d0] ss:$72 sps:$4 sm:$0xff]  }
 0x167   : > { %4958 = vmatmul.mubr.bf16.gmra.mrb[48].mxu0 %v7336_v5  ;;  %4115 = vmatprep.mubr.bf16.mxu1 %v7340_v6  ;;  %v7432_v5 = vld [vmem:[%s7851_s13 + $0x278] ss:$72 sps:$4 sm:$0xff]   ;;  %v7436_v6 = vld [vmem:[%s7851_s13 + $0x764] ss:$72 sps:$4 sm:$0xff]  }
 0x168   : > { %4967 = vmatprep.mubr.bf16.mxu0 %v7342_v7  ;;  %4243 = vmatpush1.bf16.msra.mxu1 %v7382_v8  ;;  %v7438_v7 = vld [vmem:[%s7851_s13 + $0x30c] ss:$72 sps:$4 sm:$0xff]   ;;  %v7478_v8 = vld [vmem:[%s9183_s1 + $0x880] ss:$8 sps:$4 sm:$0xff]  }
 0x169   : > { %4244 = vmatprep.subr.bf16.mxu1 %v7395_v9  ;;  %v7489_v9 = vld [vmem:[%s9183_s1 + $0x894] ss:$8 sps:$4 sm:$0xff]  }
 0x16c   : > { %4245 = vmatpush1.bf16.msra.mxu1 %v7393_v10  ;;  %v7487_v10 = vld [vmem:[%s9183_s1 + $0x890] ss:$8 sps:$4 sm:$0xff]  }
 0x16d   : > { %4246 = vmatprep.subr.bf16.mxu1 %v7407_v11  ;;  %v7498_v11 = vld [vmem:[%s9183_s1 + $0x8a4] ss:$8 sps:$4 sm:$0xff]  }
 0x16e   : > { %4116 = vmatmul.mubr.bf16.gmra.mrb[20].mxu1 %v7344_v12  ;;  %v7440_v12 = vld [vmem:[%s7851_s13 + $0x760] ss:$72 sps:$4 sm:$0xff]  }
 0x16f   : > { %4968 = vmatmul.mubr.bf16.gmra.mrb[52].mxu0 %v7348_v13  ;;  %4125 = vmatprep.mubr.bf16.mxu1 %v7352_v14  ;;  %v7444_v13 = vld [vmem:[%s7851_s13 + $0x308] ss:$72 sps:$4 sm:$0xff]   ;;  %v7448_v14 = vld [vmem:[%s7851_s13 + $0x7f4] ss:$72 sps:$4 sm:$0xff]  }
 0x170   : > { %4977 = vmatprep.mubr.bf16.mxu0 %v7354_v15  ;;  %4247 = vmatpush1.bf16.msra.mxu1 %v7405_v16  ;;  %v7450_v15 = vld [vmem:[%s7851_s13 + $0x39c] ss:$72 sps:$4 sm:$0xff]   ;;  %v7496_v16 = vld [vmem:[%s9183_s1 + $0x8a0] ss:$8 sps:$4 sm:$0xff]  }
 0x171   : > { %4248 = vmatprep.subr.bf16.mxu1 %v7419_v17  ;;  %v7507_v17 = vld [vmem:[%s9183_s1 + $0x8b4] ss:$8 sps:$4 sm:$0xff]  }
 0x174   : > { %4249 = vmatpush1.bf16.msra.mxu1 %v7417_v18  ;;  %v7505_v18 = vld [vmem:[%s9183_s1 + $0x8b0] ss:$8 sps:$4 sm:$0xff]  }
 0x175   : > { %4250 = vmatprep.subr.bf16.mxu1 %v7431_v19  ;;  %v7516_v19 = vld [vmem:[%s9183_s1 + $0x8c4] ss:$8 sps:$4 sm:$0xff]  }
 0x176   : > { %4126 = vmatmul.mubr.bf16.gmra.mrb[24].mxu1 %v7356_v20  ;;  %v7452_v20 = vld [vmem:[%s7851_s13 + $0x7f0] ss:$72 sps:$4 sm:$0xff]  }
 0x177   : > { %4978 = vmatmul.mubr.bf16.gmra.mrb[56].mxu0 %v7360_v21  ;;  %4135 = vmatprep.mubr.bf16.mxu1 %v7364_v22  ;;  %v7456_v21 = vld [vmem:[%s7851_s13 + $0x398] ss:$72 sps:$4 sm:$0xff]   ;;  %v7460_v22 = vld [vmem:[%s7851_s13 + $0x884] ss:$72 sps:$4 sm:$0xff]  }
 0x178   : > { %4987 = vmatprep.mubr.bf16.mxu0 %v7366_v23  ;;  %4251 = vmatpush1.bf16.msra.mxu1 %v7429_v24  ;;  %v7462_v23 = vld [vmem:[%s7851_s13 + $0x42c] ss:$72 sps:$4 sm:$0xff]   ;;  %v7514_v24 = vld [vmem:[%s9183_s1 + $0x8c0] ss:$8 sps:$4 sm:$0xff]  }
 0x179   : > { %4252 = vmatprep.subr.bf16.mxu1 %v7443_v25  ;;  %v7525_v25 = vld [vmem:[%s9183_s1 + $0x8d4] ss:$8 sps:$4 sm:$0xff]  }
 0x17c   : > { %4253 = vmatpush1.bf16.msra.mxu1 %v7441_v26  ;;  %v7523_v26 = vld [vmem:[%s9183_s1 + $0x8d0] ss:$8 sps:$4 sm:$0xff]  }
 0x17d   : > { %4254 = vmatprep.subr.bf16.mxu1 %v7455_v27  ;;  %v7534_v27 = vld [vmem:[%s9183_s1 + $0x8e4] ss:$8 sps:$4 sm:$0xff]  }
 0x17e   : > { %4136 = vmatmul.mubr.bf16.gmra.mrb[28].mxu1 %v7368_v28  ;;  %v7464_v28 = vld [vmem:[%s7851_s13 + $0x880] ss:$72 sps:$4 sm:$0xff]  }
 0x17f   : > { %4988 = vmatmul.mubr.bf16.gmra.mrb[60].mxu0 %v7372_v29  ;;  %4145 = vmatprep.mubr.bf16.mxu1 %v7376_v30  ;;  %v7468_v29 = vld [vmem:[%s7851_s13 + $0x428] ss:$72 sps:$4 sm:$0xff]   ;;  %v7474_v30 = vld [vmem:[%s7851_s13 + $0x1c] ss:$72 sps:$4 sm:$0xff]  }
 0x180   : > { %5030 = vmatprep.mubr.bf16.mxu0 %v7380_v31  ;;  %4255 = vmatpush1.bf16.msra.mxu1 %v7453_v32  ;;  %v7475_v31 = vld [vmem:[%s7851_s13 + $0x4bc] ss:$72 sps:$4 sm:$0xff]   ;;  %v7532_v32 = vld [vmem:[%s9183_s1 + $0x8e0] ss:$8 sps:$4 sm:$0xff]  }
 0x181   : > { %4256 = vmatprep.subr.bf16.mxu1 %v7467_v33  ;;  %v7543_v33 = vld [vmem:[%s9183_s1 + $0x8f4] ss:$8 sps:$4 sm:$0xff]  }
 0x184   : > { %4257 = vmatpush1.bf16.msra.mxu1 %v7465_v34  ;;  %v7541_v34 = vld [vmem:[%s9183_s1 + $0x8f0] ss:$8 sps:$4 sm:$0xff]  }
 0x185   : > { %6159 = vmatprep.subr.bf16.mxu1 %v7640_v41  ;;  %v7485_v41 = vld [vmem:[%s7851_s13 + $0xa8] ss:$72 sps:$4 sm:$0xff]  }
 0x186   : > { %4146 = vmatmul.mubr.bf16.gmra.mrb[32].mxu1 %v7381_v36  ;;  %v7477_v36 = vld [vmem:[%s7851_s13 + $0x4b8] ss:$72 sps:$4 sm:$0xff]  }
 0x187   : > { %5031 = vmatmul.mubr.bf16.vlgmr.msra.gmra.mrb[0].mxu0 %v7378_v35  ;;  %4155 = vmatprep.mubr.bf16.mxu1 %v7388_v38  ;;  %v7472_v35 = vld [vmem:[%s7851_s13 + $0x18] ss:$72 sps:$4 sm:$0xff]   ;;  %v7483_v38 = vld [vmem:[%s7851_s13 + $0x54c] ss:$72 sps:$4 sm:$0xff]  }
 0x188   : > { %5192 = vmatpush1.bf16.msra.mxu0 %v7385_v37  ;;  %5040 = vmatprep.mubr.bf16.mxu0 %v7390_v39  ;;  %v7481_v37 = vld [vmem:[%s7851_s13 + $0xac] ss:$72 sps:$4 sm:$0xff]   ;;  %v7641_v39 = vld [vmem:[%s9183_s1 + $0x400] ss:$8 sps:$4 sm:$0xff]  }
 0x189   : > { %5193 = vmatprep.subr.bf16.mxu0 %v7399_v40  ;;  %v7642_v40 = vld [vmem:[%s9183_s1 + $0x414] ss:$8 sps:$4 sm:$0xff]  }
 0x18c   : > { %5194 = vmatpush1.bf16.msra.mxu0 %v7397_v42  ;;  %v7486_v42 = vld [vmem:[%s7851_s13 + $0x548] ss:$72 sps:$4 sm:$0xff]  }
 0x18d   : > { %5195 = vmatprep.subr.bf16.mxu0 %v7411_v43  ;;  %v7643_v43 = vld [vmem:[%s9183_s1 + $0x410] ss:$8 sps:$4 sm:$0xff]  }
 0x18e   : > { %4156 = vmatmul.mubr.bf16.gmra.mrb[36].mxu1 %v7392_v44  ;;  %v7490_v44 = vld [vmem:[%s7851_s13 + $0x13c] ss:$72 sps:$4 sm:$0xff]  }
 0x18f   : > { %5041 = vmatmul.mubr.bf16.gmra.mrb[4].mxu0 %v7396_v45  ;;  %4165 = vmatprep.mubr.bf16.mxu1 %v7400_v46  ;;  %v7492_v45 = vld [vmem:[%s7851_s13 + $0x5dc] ss:$72 sps:$4 sm:$0xff]  }
 0x190   : > { %5050 = vmatprep.mubr.bf16.mxu0 %v7402_v47  ;;  %5196 = vmatpush1.bf16.msra.mxu0 %v7409_v48  ;;  %v7644_v46 = vld [vmem:[%s9183_s1 + $0x424] ss:$8 sps:$4 sm:$0xff]   ;;  %v7645_v47 = vld [vmem:[%s9183_s1 + $0x420] ss:$8 sps:$4 sm:$0xff]   ;;  %v7646_v48 = vld [vmem:[%s9183_s1 + $0x434] ss:$8 sps:$4 sm:$0xff]  }
 0x191   : > { %5197 = vmatprep.subr.bf16.mxu0 %v7423_v49  ;;  %v7494_v49 = vld [vmem:[%s7851_s13 + $0x138] ss:$72 sps:$4 sm:$0xff]  }
 0x194   : > { %5198 = vmatpush1.bf16.msra.mxu0 %v7421_v50  ;;  %v7495_v50 = vld [vmem:[%s7851_s13 + $0x5d8] ss:$72 sps:$4 sm:$0xff]  }
 0x195   : > { %5199 = vmatprep.subr.bf16.mxu0 %v7435_v51  ;;  %v7499_v51 = vld [vmem:[%s7851_s13 + $0x1cc] ss:$72 sps:$4 sm:$0xff]  }
 0x196   : > { %4166 = vmatmul.mubr.bf16.gmra.mrb[40].mxu1 %v7404_v52  ;;  %v7501_v52 = vld [vmem:[%s7851_s13 + $0x66c] ss:$72 sps:$4 sm:$0xff]  }
 0x197   : > { %5051 = vmatmul.mubr.bf16.gmra.mrb[8].mxu0 %v7408_v53  ;;  %4175 = vmatprep.mubr.bf16.mxu1 %v7412_v54  ;;  %v7647_v53 = vld [vmem:[%s9183_s1 + $0x430] ss:$8 sps:$4 sm:$0xff]   ;;  %v7648_v54 = vld [vmem:[%s9183_s1 + $0x444] ss:$8 sps:$4 sm:$0xff]  }
 0x198   : > { %5060 = vmatprep.mubr.bf16.mxu0 %v7414_v55  ;;  %5200 = vmatpush1.bf16.msra.mxu0 %v7433_v56  ;;  %v7649_v55 = vld [vmem:[%s9183_s1 + $0x440] ss:$8 sps:$4 sm:$0xff]   ;;  %v7650_v56 = vld [vmem:[%s9183_s1 + $0x454] ss:$8 sps:$4 sm:$0xff]  }
 0x199   : > { %5201 = vmatprep.subr.bf16.mxu0 %v7447_v57  ;;  %v7503_v57 = vld [vmem:[%s7851_s13 + $0x1c8] ss:$72 sps:$4 sm:$0xff]  }
 0x19c   : > { %5202 = vmatpush1.bf16.msra.mxu0 %v7445_v58  ;;  %v7504_v58 = vld [vmem:[%s7851_s13 + $0x668] ss:$72 sps:$4 sm:$0xff]  }
 0x19d   : > { %5203 = vmatprep.subr.bf16.mxu0 %v7459_v59  ;;  %v7508_v59 = vld [vmem:[%s7851_s13 + $0x25c] ss:$72 sps:$4 sm:$0xff]  }
 0x19e   : > { %4176 = vmatmul.mubr.bf16.gmra.mrb[44].mxu1 %v7416_v60  ;;  %v7510_v60 = vld [vmem:[%s7851_s13 + $0x6fc] ss:$72 sps:$4 sm:$0xff]  }
 0x19f   : > { %5061 = vmatmul.mubr.bf16.gmra.mrb[12].mxu0 %v7420_v61  ;;  %4185 = vmatprep.mubr.bf16.mxu1 %v7424_v62  ;;  %v7651_v61 = vld [vmem:[%s9183_s1 + $0x450] ss:$8 sps:$4 sm:$0xff]   ;;  %v7652_v62 = vld [vmem:[%s9183_s1 + $0x464] ss:$8 sps:$4 sm:$0xff]  }
 0x1a0   : > { %5070 = vmatprep.mubr.bf16.mxu0 %v7426_v63  ;;  %5204 = vmatpush1.bf16.msra.mxu0 %v7457_v0  ;;  %v7653_v63 = vld [vmem:[%s9183_s1 + $0x460] ss:$8 sps:$4 sm:$0xff]   ;;  %v7654_v0 = vld [vmem:[%s9183_s1 + $0x474] ss:$8 sps:$4 sm:$0xff]  }
 0x1a1   : > { %5205 = vmatprep.subr.bf16.mxu0 %v7471_v1  ;;  %v7512_v1 = vld [vmem:[%s7851_s13 + $0x258] ss:$72 sps:$4 sm:$0xff]  }
 0x1a4   : > { %5206 = vmatpush1.bf16.msra.mxu0 %v7469_v2  ;;  %v7513_v2 = vld [vmem:[%s7851_s13 + $0x6f8] ss:$72 sps:$4 sm:$0xff]  }
 0x1a5   : > { %5207 = vmatprep.subr.bf16.mxu0 %v7480_v3  ;;  %v7517_v3 = vld [vmem:[%s7851_s13 + $0x2ec] ss:$72 sps:$4 sm:$0xff]  }
 0x1a6   : > { %4186 = vmatmul.mubr.bf16.gmra.mrb[48].mxu1 %v7428_v4  ;;  %v7519_v4 = vld [vmem:[%s7851_s13 + $0x78c] ss:$72 sps:$4 sm:$0xff]  }
 0x1a7   : > { %5071 = vmatmul.mubr.bf16.gmra.mrb[16].mxu0 %v7432_v5  ;;  %4195 = vmatprep.mubr.bf16.mxu1 %v7436_v6  ;;  %v7655_v5 = vld [vmem:[%s9183_s1 + $0x470] ss:$8 sps:$4 sm:$0xff]   ;;  %v7656_v6 = vld [vmem:[%s9183_s1 + $0x484] ss:$8 sps:$4 sm:$0xff]  }
 0x1a8   : > { %5080 = vmatprep.mubr.bf16.mxu0 %v7438_v7  ;;  %5208 = vmatpush1.bf16.msra.mxu0 %v7478_v8  ;;  %v7657_v7 = vld [vmem:[%s9183_s1 + $0x480] ss:$8 sps:$4 sm:$0xff]   ;;  %v7658_v8 = vld [vmem:[%s9183_s1 + $0x494] ss:$8 sps:$4 sm:$0xff]  }
 0x1a9   : > { %5209 = vmatprep.subr.bf16.mxu0 %v7489_v9  ;;  %v7521_v9 = vld [vmem:[%s7851_s13 + $0x2e8] ss:$72 sps:$4 sm:$0xff]  }
 0x1ac   : > { %5210 = vmatpush1.bf16.msra.mxu0 %v7487_v10  ;;  %v7522_v10 = vld [vmem:[%s7851_s13 + $0x788] ss:$72 sps:$4 sm:$0xff]  }
 0x1ad   : > { %5211 = vmatprep.subr.bf16.mxu0 %v7498_v11  ;;  %v7526_v11 = vld [vmem:[%s7851_s13 + $0x37c] ss:$72 sps:$4 sm:$0xff]  }
 0x1ae   : > { %4196 = vmatmul.mubr.bf16.gmra.mrb[52].mxu1 %v7440_v12  ;;  %v7528_v12 = vld [vmem:[%s7851_s13 + $0x81c] ss:$72 sps:$4 sm:$0xff]  }
 0x1af   : > { %5081 = vmatmul.mubr.bf16.gmra.mrb[20].mxu0 %v7444_v13  ;;  %4205 = vmatprep.mubr.bf16.mxu1 %v7448_v14  ;;  %v7659_v13 = vld [vmem:[%s9183_s1 + $0x490] ss:$8 sps:$4 sm:$0xff]   ;;  %v7660_v14 = vld [vmem:[%s9183_s1 + $0x4a4] ss:$8 sps:$4 sm:$0xff]  }
 0x1b0   : > { %5090 = vmatprep.mubr.bf16.mxu0 %v7450_v15  ;;  %5212 = vmatpush1.bf16.msra.mxu0 %v7496_v16  ;;  %v7661_v15 = vld [vmem:[%s9183_s1 + $0x4a0] ss:$8 sps:$4 sm:$0xff]   ;;  %v7662_v16 = vld [vmem:[%s9183_s1 + $0x4b4] ss:$8 sps:$4 sm:$0xff]  }
 0x1b1   : > { %5213 = vmatprep.subr.bf16.mxu0 %v7507_v17  ;;  %v7530_v17 = vld [vmem:[%s7851_s13 + $0x378] ss:$72 sps:$4 sm:$0xff]  }
 0x1b4   : > { %5214 = vmatpush1.bf16.msra.mxu0 %v7505_v18  ;;  %v7531_v18 = vld [vmem:[%s7851_s13 + $0x818] ss:$72 sps:$4 sm:$0xff]  }
 0x1b5   : > { %5215 = vmatprep.subr.bf16.mxu0 %v7516_v19  ;;  %v7535_v19 = vld [vmem:[%s7851_s13 + $0x40c] ss:$72 sps:$4 sm:$0xff]  }
 0x1b6   : > { %4206 = vmatmul.mubr.bf16.gmra.mrb[56].mxu1 %v7452_v20  ;;  %v7537_v20 = vld [vmem:[%s7851_s13 + $0x8ac] ss:$72 sps:$4 sm:$0xff]  }
 0x1b7   : > { %5091 = vmatmul.mubr.bf16.gmra.mrb[24].mxu0 %v7456_v21  ;;  %4215 = vmatprep.mubr.bf16.mxu1 %v7460_v22  ;;  %v7663_v21 = vld [vmem:[%s9183_s1 + $0x4b0] ss:$8 sps:$4 sm:$0xff]   ;;  %v7664_v22 = vld [vmem:[%s9183_s1 + $0x4c4] ss:$8 sps:$4 sm:$0xff]  }
 0x1b8   : > { %5100 = vmatprep.mubr.bf16.mxu0 %v7462_v23  ;;  %5216 = vmatpush1.bf16.msra.mxu0 %v7514_v24  ;;  %v7665_v23 = vld [vmem:[%s9183_s1 + $0x4c0] ss:$8 sps:$4 sm:$0xff]   ;;  %v7666_v24 = vld [vmem:[%s9183_s1 + $0x4d4] ss:$8 sps:$4 sm:$0xff]  }
 0x1b9   : > { %5217 = vmatprep.subr.bf16.mxu0 %v7525_v25  ;;  %v7539_v25 = vld [vmem:[%s7851_s13 + $0x408] ss:$72 sps:$4 sm:$0xff]  }
 0x1bc   : > { %5218 = vmatpush1.bf16.msra.mxu0 %v7523_v26  ;;  %v7540_v26 = vld [vmem:[%s7851_s13 + $0x8a8] ss:$72 sps:$4 sm:$0xff]  }
 0x1bd   : > { %5219 = vmatprep.subr.bf16.mxu0 %v7534_v27  ;;  %v7544_v27 = vld [vmem:[%s7851_s13 + $0x49c] ss:$72 sps:$4 sm:$0xff]  }
 0x1be   : > { %4216 = vmatmul.mubr.bf16.gmra.mrb[60].mxu1 %v7464_v28  ;;  %v7548_v28 = vld [vmem:[%s7851_s13 + $0x44] ss:$72 sps:$4 sm:$0xff]  }
 0x1bf   : > { %5101 = vmatmul.mubr.bf16.gmra.mrb[28].mxu0 %v7468_v29  ;;  %4258 = vmatprep.mubr.bf16.mxu1 %v7474_v30  ;;  %v7667_v29 = vld [vmem:[%s9183_s1 + $0x4d0] ss:$8 sps:$4 sm:$0xff]   ;;  %v7668_v30 = vld [vmem:[%s9183_s1 + $0x4e4] ss:$8 sps:$4 sm:$0xff]  }
 0x1c0   : > { %5110 = vmatprep.mubr.bf16.mxu0 %v7475_v31  ;;  %5220 = vmatpush1.bf16.msra.mxu0 %v7532_v32  ;;  %v7669_v31 = vld [vmem:[%s9183_s1 + $0x4e0] ss:$8 sps:$4 sm:$0xff]   ;;  %v7670_v32 = vld [vmem:[%s9183_s1 + $0x4f4] ss:$8 sps:$4 sm:$0xff]  }
 0x1c1   : > { %5221 = vmatprep.subr.bf16.mxu0 %v7543_v33  ;;  %v7546_v33 = vld [vmem:[%s7851_s13 + $0x40] ss:$72 sps:$4 sm:$0xff]  }
 0x1c4   : > { %5222 = vmatpush1.bf16.msra.mxu0 %v7541_v34  ;;  %v7549_v34 = vld [vmem:[%s7851_s13 + $0x498] ss:$72 sps:$4 sm:$0xff]  }
 0x1c6   : > { %4259 = vmatmul.mubr.bf16.vlgmr.msra.gmra.mrb[0].mxu1 %v7472_v35  ;;  %v7550_v35 = vld [vmem:[%s7851_s13 + $0x52c] ss:$72 sps:$4 sm:$0xff]  }
 0x1c7   : > { %5111 = vmatmul.mubr.bf16.gmra.mrb[32].mxu0 %v7477_v36  ;;  %6175 = vmatpush1.bf16.msra.mxu1 %v7641_v39  ;;  %v7552_v36 = vld [vmem:[%s7851_s13 + $0xd4] ss:$72 sps:$4 sm:$0xff]   ;;  %v7555_v39 = vld [vmem:[%s7851_s13 + $0xd0] ss:$72 sps:$4 sm:$0xff]  }
 0x1c8   : > { %4268 = vmatprep.mubr.bf16.mxu1 %v7481_v37  ;;  %5120 = vmatprep.mubr.bf16.mxu0 %v7483_v38  ;;  %v7671_v37 = vld [vmem:[%s9183_s1 + $0x4f0] ss:$8 sps:$4 sm:$0xff]  }
 0x1c9   : > { %6160 = vmatprep.subr.bf16.mxu1 %v7642_v40  ;;  %v7554_v38 = vld [vmem:[%s7851_s13 + $0x528] ss:$72 sps:$4 sm:$0xff]   ;;  %v7556_v40 = vld [vmem:[%s7851_s13 + $0x5bc] ss:$72 sps:$4 sm:$0xff]  }
 0x1cb   : > { %6176 = vmatpush1.bf16.msra.mxu1 %v7643_v43  ;;  %v7561_v43 = vld [vmem:[%s7851_s13 + $0x160] ss:$72 sps:$4 sm:$0xff]  }
 0x1cc   : > { %6161 = vmatprep.subr.bf16.mxu1 %v7644_v46  ;;  %v7566_v46 = vld [vmem:[%s7851_s13 + $0x648] ss:$72 sps:$4 sm:$0xff]  }
 0x1ce   : > { %4269 = vmatmul.mubr.bf16.gmra.mrb[4].mxu1 %v7485_v41  ;;  %v7558_v41 = vld [vmem:[%s7851_s13 + $0x164] ss:$72 sps:$4 sm:$0xff]  }
 0x1cf   : > { %5121 = vmatmul.mubr.bf16.gmra.mrb[36].mxu0 %v7486_v42  ;;  %4278 = vmatprep.mubr.bf16.mxu1 %v7490_v44  ;;  %v7560_v42 = vld [vmem:[%s7851_s13 + $0x5b8] ss:$72 sps:$4 sm:$0xff]   ;;  %v7562_v44 = vld [vmem:[%s7851_s13 + $0x64c] ss:$72 sps:$4 sm:$0xff]  }
 0x1d0   : > { %5130 = vmatprep.mubr.bf16.mxu0 %v7492_v45  ;;  %6177 = vmatpush1.bf16.msra.mxu1 %v7645_v47  ;;  %v7564_v45 = vld [vmem:[%s7851_s13 + $0x1f4] ss:$72 sps:$4 sm:$0xff]   ;;  %v7567_v47 = vld [vmem:[%s7851_s13 + $0x1f0] ss:$72 sps:$4 sm:$0xff]  }
 0x1d1   : > { %6162 = vmatprep.subr.bf16.mxu1 %v7646_v48  ;;  %v7568_v48 = vld [vmem:[%s7851_s13 + $0x6dc] ss:$72 sps:$4 sm:$0xff]  }
 0x1d4   : > { %6178 = vmatpush1.bf16.msra.mxu1 %v7647_v53  ;;  %v7576_v53 = vld [vmem:[%s7851_s13 + $0x314] ss:$72 sps:$4 sm:$0xff]  }
 0x1d5   : > { %6163 = vmatprep.subr.bf16.mxu1 %v7648_v54  ;;  %v7578_v54 = vld [vmem:[%s7851_s13 + $0x768] ss:$72 sps:$4 sm:$0xff]  }
 0x1d6   : > { %4279 = vmatmul.mubr.bf16.gmra.mrb[8].mxu1 %v7494_v49  ;;  %v7570_v49 = vld [vmem:[%s7851_s13 + $0x284] ss:$72 sps:$4 sm:$0xff]  }
 0x1d7   : > { %5131 = vmatmul.mubr.bf16.gmra.mrb[40].mxu0 %v7495_v50  ;;  %4288 = vmatprep.mubr.bf16.mxu1 %v7499_v51  ;;  %v7572_v50 = vld [vmem:[%s7851_s13 + $0x6d8] ss:$72 sps:$4 sm:$0xff]  }
 0x1d8   : > { %5140 = vmatprep.mubr.bf16.mxu0 %v7501_v52  ;;  %6179 = vmatpush1.bf16.msra.mxu1 %v7649_v55  ;;  %v7573_v51 = vld [vmem:[%s7851_s13 + $0x280] ss:$72 sps:$4 sm:$0xff]   ;;  %v7574_v52 = vld [vmem:[%s7851_s13 + $0x76c] ss:$72 sps:$4 sm:$0xff]   ;;  %v7579_v55 = vld [vmem:[%s7851_s13 + $0x310] ss:$72 sps:$4 sm:$0xff]  }
 0x1d9   : > { %6164 = vmatprep.subr.bf16.mxu1 %v7650_v56  ;;  %v7580_v56 = vld [vmem:[%s7851_s13 + $0x7fc] ss:$72 sps:$4 sm:$0xff]  }
 0x1dc   : > { %6180 = vmatpush1.bf16.msra.mxu1 %v7651_v61  ;;  %v7588_v61 = vld [vmem:[%s7851_s13 + $0x434] ss:$72 sps:$4 sm:$0xff]  }
 0x1dd   : > { %6165 = vmatprep.subr.bf16.mxu1 %v7652_v62  ;;  %v7590_v62 = vld [vmem:[%s7851_s13 + $0x888] ss:$72 sps:$4 sm:$0xff]  }
 0x1de   : > { %4289 = vmatmul.mubr.bf16.gmra.mrb[12].mxu1 %v7503_v57  ;;  %v7582_v57 = vld [vmem:[%s7851_s13 + $0x3a4] ss:$72 sps:$4 sm:$0xff]  }
 0x1df   : > { %5141 = vmatmul.mubr.bf16.gmra.mrb[44].mxu0 %v7504_v58  ;;  %4298 = vmatprep.mubr.bf16.mxu1 %v7508_v59  ;;  %v7584_v58 = vld [vmem:[%s7851_s13 + $0x7f8] ss:$72 sps:$4 sm:$0xff]  }
 0x1e0   : > { %5150 = vmatprep.mubr.bf16.mxu0 %v7510_v60  ;;  %6181 = vmatpush1.bf16.msra.mxu1 %v7653_v63  ;;  %v7585_v59 = vld [vmem:[%s7851_s13 + $0x3a0] ss:$72 sps:$4 sm:$0xff]   ;;  %v7586_v60 = vld [vmem:[%s7851_s13 + $0x88c] ss:$72 sps:$4 sm:$0xff]   ;;  %v7591_v63 = vld [vmem:[%s7851_s13 + $0x430] ss:$72 sps:$4 sm:$0xff]  }
 0x1e1   : > { %6166 = vmatprep.subr.bf16.mxu1 %v7654_v0  ;;  %v7594_v0 = vld [vmem:[%s7851_s13 + $0x4a4] ss:$72 sps:$4 sm:$0xff]  }
 0x1e4   : > { %6182 = vmatpush1.bf16.msra.mxu1 %v7655_v5  ;;  %v7600_v5 = vld [vmem:[%s7851_s13 + $0x554] ss:$72 sps:$4 sm:$0xff]  }
 0x1e5   : > { %6167 = vmatprep.subr.bf16.mxu1 %v7656_v6  ;;  %v7602_v6 = vld [vmem:[%s7851_s13 + $0x530] ss:$72 sps:$4 sm:$0xff]  }
 0x1e6   : > { %4299 = vmatmul.mubr.bf16.gmra.mrb[16].mxu1 %v7512_v1  ;;  %v7595_v1 = vld [vmem:[%s7851_s13 + $0x4c4] ss:$72 sps:$4 sm:$0xff]  }
 0x1e7   : > { %5151 = vmatmul.mubr.bf16.gmra.mrb[48].mxu0 %v7513_v2  ;;  %4308 = vmatprep.mubr.bf16.mxu1 %v7517_v3  ;;  %v7592_v2 = vld [vmem:[%s7851_s13 + $0x4a0] ss:$72 sps:$4 sm:$0xff]  }
 0x1e8   : > { %5160 = vmatprep.mubr.bf16.mxu0 %v7519_v4  ;;  %6183 = vmatpush1.bf16.msra.mxu1 %v7657_v7  ;;  %v7597_v3 = vld [vmem:[%s7851_s13 + $0x4c0] ss:$72 sps:$4 sm:$0xff]   ;;  %v7598_v4 = vld [vmem:[%s7851_s13 + $0x534] ss:$72 sps:$4 sm:$0xff]   ;;  %v7603_v7 = vld [vmem:[%s7851_s13 + $0x550] ss:$72 sps:$4 sm:$0xff]  }
 0x1e9   : > { %6168 = vmatprep.subr.bf16.mxu1 %v7658_v8  ;;  %v7604_v8 = vld [vmem:[%s7851_s13 + $0x5c4] ss:$72 sps:$4 sm:$0xff]  }
 0x1ec   : > { %6184 = vmatpush1.bf16.msra.mxu1 %v7659_v13  ;;  %v7612_v13 = vld [vmem:[%s7851_s13 + $0x674] ss:$72 sps:$4 sm:$0xff]  }
 0x1ed   : > { %6169 = vmatprep.subr.bf16.mxu1 %v7660_v14  ;;  %v7614_v14 = vld [vmem:[%s7851_s13 + $0x650] ss:$72 sps:$4 sm:$0xff]  }
 0x1ee   : > { %4309 = vmatmul.mubr.bf16.gmra.mrb[20].mxu1 %v7521_v9  ;;  %v7606_v9 = vld [vmem:[%s7851_s13 + $0x5e4] ss:$72 sps:$4 sm:$0xff]  }
 0x1ef   : > { %5161 = vmatmul.mubr.bf16.gmra.mrb[52].mxu0 %v7522_v10  ;;  %4318 = vmatprep.mubr.bf16.mxu1 %v7526_v11  ;;  %v7608_v10 = vld [vmem:[%s7851_s13 + $0x5c0] ss:$72 sps:$4 sm:$0xff]  }
 0x1f0   : > { %5170 = vmatprep.mubr.bf16.mxu0 %v7528_v12  ;;  %6185 = vmatpush1.bf16.msra.mxu1 %v7661_v15  ;;  %v7609_v11 = vld [vmem:[%s7851_s13 + $0x5e0] ss:$72 sps:$4 sm:$0xff]   ;;  %v7610_v12 = vld [vmem:[%s7851_s13 + $0x654] ss:$72 sps:$4 sm:$0xff]   ;;  %v7615_v15 = vld [vmem:[%s7851_s13 + $0x670] ss:$72 sps:$4 sm:$0xff]  }
 0x1f1   : > { %6170 = vmatprep.subr.bf16.mxu1 %v7662_v16  ;;  %v7616_v16 = vld [vmem:[%s7851_s13 + $0x6e4] ss:$72 sps:$4 sm:$0xff]  }
 0x1f4   : > { %6186 = vmatpush1.bf16.msra.mxu1 %v7663_v21  ;;  %v7624_v21 = vld [vmem:[%s7851_s13 + $0x794] ss:$72 sps:$4 sm:$0xff]  }
 0x1f5   : > { %6171 = vmatprep.subr.bf16.mxu1 %v7664_v22  ;;  %v7626_v22 = vld [vmem:[%s7851_s13 + $0x770] ss:$72 sps:$4 sm:$0xff]  }
 0x1f6   : > { %4319 = vmatmul.mubr.bf16.gmra.mrb[24].mxu1 %v7530_v17  ;;  %v7618_v17 = vld [vmem:[%s7851_s13 + $0x704] ss:$72 sps:$4 sm:$0xff]  }
 0x1f7   : > { %5171 = vmatmul.mubr.bf16.gmra.mrb[56].mxu0 %v7531_v18  ;;  %4328 = vmatprep.mubr.bf16.mxu1 %v7535_v19  ;;  %v7620_v18 = vld [vmem:[%s7851_s13 + $0x6e0] ss:$72 sps:$4 sm:$0xff]  }
 0x1f8   : > { %5180 = vmatprep.mubr.bf16.mxu0 %v7537_v20  ;;  %6187 = vmatpush1.bf16.msra.mxu1 %v7665_v23  ;;  %v7621_v19 = vld [vmem:[%s7851_s13 + $0x700] ss:$72 sps:$4 sm:$0xff]   ;;  %v7622_v20 = vld [vmem:[%s7851_s13 + $0x774] ss:$72 sps:$4 sm:$0xff]   ;;  %v7627_v23 = vld [vmem:[%s7851_s13 + $0x790] ss:$72 sps:$4 sm:$0xff]  }
 0x1f9   : > { %6172 = vmatprep.subr.bf16.mxu1 %v7666_v24  ;;  %v7628_v24 = vld [vmem:[%s7851_s13 + $0x804] ss:$72 sps:$4 sm:$0xff]  }
 0x1fc   : > { %6188 = vmatpush1.bf16.msra.mxu1 %v7667_v29  ;;  %v7636_v29 = vld [vmem:[%s7851_s13 + $0x8b4] ss:$72 sps:$4 sm:$0xff]  }
 0x1fd   : > { %6173 = vmatprep.subr.bf16.mxu1 %v7668_v30  ;;  %v7638_v30 = vld [vmem:[%s7851_s13 + $0x890] ss:$72 sps:$4 sm:$0xff]  }
 0x1fe   : > { %4329 = vmatmul.mubr.bf16.gmra.mrb[28].mxu1 %v7539_v25  ;;  %v7630_v25 = vld [vmem:[%s7851_s13 + $0x824] ss:$72 sps:$4 sm:$0xff]  }
 0x1ff   : > { %5181 = vmatmul.mubr.bf16.gmra.mrb[60].mxu0 %v7540_v26  ;;  %4338 = vmatprep.mubr.bf16.mxu1 %v7544_v27  ;;  %v7632_v26 = vld [vmem:[%s7851_s13 + $0x800] ss:$72 sps:$4 sm:$0xff]  }
 0x200   : > { %5223 = vmatprep.mubr.bf16.mxu0 %v7548_v28  ;;  %6189 = vmatpush1.bf16.msra.mxu1 %v7669_v31  ;;  %v7633_v27 = vld [vmem:[%s7851_s13 + $0x820] ss:$72 sps:$4 sm:$0xff]   ;;  %v7634_v28 = vld [vmem:[%s7851_s13 + $0x894] ss:$72 sps:$4 sm:$0xff]   ;;  %v7639_v31 = vld [vmem:[%s7851_s13 + $0x8b0] ss:$72 sps:$4 sm:$0xff]  }
 0x201   : > { %6174 = vmatprep.subr.bf16.mxu1 %v7670_v32 }
 0x204   : > { %6190 = vmatpush1.bf16.msra.mxu1 %v7671_v37 }
 0x206   : > { %4339 = vmatmul.mubr.bf16.gmra.mrb[32].mxu1 %v7549_v34 }
 0x207   : > { %5224 = vmatmul.mubr.bf16.vlgmr.msra.gmra.mrb[0].mxu0 %v7546_v33  ;;  %4348 = vmatprep.mubr.bf16.mxu1 %v7550_v35 }
 0x208   : > { %5233 = vmatprep.mubr.bf16.mxu0 %v7552_v36 }
 0x20e   : > { %4349 = vmatmul.mubr.bf16.gmra.mrb[36].mxu1 %v7554_v38 }
 0x20f   : > { %5234 = vmatmul.mubr.bf16.gmra.mrb[4].mxu0 %v7555_v39  ;;  %4358 = vmatprep.mubr.bf16.mxu1 %v7556_v40 }
 0x210   : > { %5243 = vmatprep.mubr.bf16.mxu0 %v7558_v41 }
 0x216   : > { %4359 = vmatmul.mubr.bf16.gmra.mrb[40].mxu1 %v7560_v42 }
 0x217   : > { %5244 = vmatmul.mubr.bf16.gmra.mrb[8].mxu0 %v7561_v43  ;;  %4368 = vmatprep.mubr.bf16.mxu1 %v7562_v44 }
 0x218   : > { %5253 = vmatprep.mubr.bf16.mxu0 %v7564_v45 }
 0x21e   : > { %4369 = vmatmul.mubr.bf16.gmra.mrb[44].mxu1 %v7566_v46 }
 0x21f   : > { %5254 = vmatmul.mubr.bf16.gmra.mrb[12].mxu0 %v7567_v47  ;;  %4378 = vmatprep.mubr.bf16.mxu1 %v7568_v48 }
 0x220   : > { %5263 = vmatprep.mubr.bf16.mxu0 %v7570_v49 }
 0x226   : > { %4379 = vmatmul.mubr.bf16.gmra.mrb[48].mxu1 %v7572_v50 }
 0x227   : > { %5264 = vmatmul.mubr.bf16.gmra.mrb[16].mxu0 %v7573_v51  ;;  %4388 = vmatprep.mubr.bf16.mxu1 %v7574_v52 }
 0x228   : > { %5273 = vmatprep.mubr.bf16.mxu0 %v7576_v53 }
 0x22e   : > { %4389 = vmatmul.mubr.bf16.gmra.mrb[52].mxu1 %v7578_v54 }
 0x22f   : > { %5274 = vmatmul.mubr.bf16.gmra.mrb[20].mxu0 %v7579_v55  ;;  %4398 = vmatprep.mubr.bf16.mxu1 %v7580_v56  ;;  %v757_v56 = vlaneseq }
 0x230   : > { %5283 = vmatprep.mubr.bf16.mxu0 %v7582_v57 }
 0x236   : > { %4399 = vmatmul.mubr.bf16.gmra.mrb[56].mxu1 %v7584_v58 }
 0x237   : > { %5284 = vmatmul.mubr.bf16.gmra.mrb[24].mxu0 %v7585_v59  ;;  %4408 = vmatprep.mubr.bf16.mxu1 %v7586_v60  ;;  %v758_v60 = vshrl.u32 %v757_v56, 7 }
 0x238   : > { %5293 = vmatprep.mubr.bf16.mxu0 %v7588_v61 }
 0x23e   : > { %4409 = vmatmul.mubr.bf16.gmra.mrb[60].mxu1 %v7590_v62  ;;  %v759_v62 = vsub.s32 0, %v758_v60 }
 0x23f   : > { %5294 = vmatmul.mubr.bf16.gmra.mrb[28].mxu0 %v7591_v63  ;;  %4531 = vmatprep.mubr.bf16.mxu1 %v7594_v0  ;;  %v755_v63 = vld [vmem:[%s9184_s2] sm:$0x3]  ;;  %v763_v0 = vsub.s32 1, %v758_v60 }
 0x240   : > { %5303 = vmatprep.mubr.bf16.mxu0 %v7595_v1 }
 0x246   : > { %4532 = vmatmul.mubr.bf16.vlgmr.msra.gmra.mrb[32].mxu1 %v7592_v2 }
 0x247   : > { %5304 = vmatmul.mubr.bf16.gmra.mrb[32].mxu0 %v7597_v3  ;;  %4541 = vmatprep.mubr.bf16.mxu1 %v7598_v4  ;;  %v9015_v4 = vrot.slane %v755_v63, %v759_v62 }
 0x248   : > { %5313 = vmatprep.mubr.bf16.mxu0 %v7600_v5 }
 0x24e   : > { %4542 = vmatmul.mubr.bf16.gmra.mrb[36].mxu1 %v7602_v6  ;;  %v9019_v6 = vrot.slane %v755_v63, %v763_v0 }
 0x24f   : > { %5314 = vmatmul.mubr.bf16.gmra.mrb[36].mxu0 %v7603_v7  ;;  %4551 = vmatprep.mubr.bf16.mxu1 %v7604_v8 }
 0x250   : > { %5323 = vmatprep.mubr.bf16.mxu0 %v7606_v9 }
 0x256   : > { %4552 = vmatmul.mubr.bf16.gmra.mrb[40].mxu1 %v7608_v10 }
 0x257   : > { %5324 = vmatmul.mubr.bf16.gmra.mrb[40].mxu0 %v7609_v11  ;;  %4561 = vmatprep.mubr.bf16.mxu1 %v7610_v12 }
 0x258   : > { %5333 = vmatprep.mubr.bf16.mxu0 %v7612_v13 }
 0x25e   : > { %4562 = vmatmul.mubr.bf16.gmra.mrb[44].mxu1 %v7614_v14 }
 0x25f   : > { %5334 = vmatmul.mubr.bf16.gmra.mrb[44].mxu0 %v7615_v15  ;;  %4571 = vmatprep.mubr.bf16.mxu1 %v7616_v16 }
 0x260   : > { %5343 = vmatprep.mubr.bf16.mxu0 %v7618_v17 }
 0x266   : > { %4572 = vmatmul.mubr.bf16.gmra.mrb[48].mxu1 %v7620_v18 }
 0x267   : > { %5344 = vmatmul.mubr.bf16.gmra.mrb[48].mxu0 %v7621_v19  ;;  %4581 = vmatprep.mubr.bf16.mxu1 %v7622_v20 }
 0x268   : > { %5353 = vmatprep.mubr.bf16.mxu0 %v7624_v21 }
 0x26e   : > { %4582 = vmatmul.mubr.bf16.gmra.mrb[52].mxu1 %v7626_v22 }
 0x26f   : > { %5354 = vmatmul.mubr.bf16.gmra.mrb[52].mxu0 %v7627_v23  ;;  %4591 = vmatprep.mubr.bf16.mxu1 %v7628_v24 }
 0x270   : > { %5363 = vmatprep.mubr.bf16.mxu0 %v7630_v25 }
 0x276   : > { %4592 = vmatmul.mubr.bf16.gmra.mrb[56].mxu1 %v7632_v26 }
 0x277   : > { %5364 = vmatmul.mubr.bf16.gmra.mrb[56].mxu0 %v7633_v27  ;;  %4601 = vmatprep.mubr.bf16.mxu1 %v7634_v28 }
 0x278   : > { %5373 = vmatprep.mubr.bf16.mxu0 %v7636_v29 }
 0x27e   : > { %4602 = vmatmul.mubr.bf16.gmra.mrb[60].mxu1 %v7638_v30 }
 0x27f   : > { %5374 = vmatmul.mubr.bf16.gmra.mrb[60].mxu0 %v7639_v31 }
 0x299   : > { %v4260_v32 = vpop.f32.mrb[0].mxu1 }
 0x29a   : > { %v4262_v33 = vpop.f32.mrb[1].mxu1  ;;  %v6191_v7 = vadd.f32 %v4260_v32, %v9015_v4 }
 0x29b   : > { %v4264_v34 = vpop.f32.mrb[2].mxu1  ;;  %v6193_v8 = vadd.f32 %v4262_v33, %v9019_v6 }
 0x29c   : > { %v4266_v35 = vpop.f32.mrb[3].mxu1  ;;  %v6195_v10 = vadd.f32 %v4264_v34, %v9015_v4 }
 0x29d   : > { %v6197_v13 = vadd.f32 %v4266_v35, %v9019_v6 }
 0x2a1   : > { %v4270_v36 = vpop.f32.mrb[4].mxu1 }
 0x2a2   : > { %v4272_v37 = vpop.f32.mrb[5].mxu1  ;;  %v6199_v23 = vadd.f32 %v4270_v36, %v9015_v4 }
 0x2a3   : > { %v4274_v38 = vpop.f32.mrb[6].mxu1  ;;  %v6201_v24 = vadd.f32 %v4272_v37, %v9019_v6 }
 0x2a4   : > { %v4276_v39 = vpop.f32.mrb[7].mxu1  ;;  %v6203_v26 = vadd.f32 %v4274_v38, %v9015_v4 }
 0x2a5   : > { %v6205_v29 = vadd.f32 %v4276_v39, %v9019_v6 }
 0x2a9   : > { %v8966_v40 = vpop.f32.mrb[8].mxu1 }
 0x2aa   : > { %v8968_v41 = vpop.f32.mrb[9].mxu1  ;;  %v6207_v38 = vadd.f32 %v8966_v40, %v9015_v4 }
 0x2ab   : > { %v8970_v42 = vpop.f32.mrb[10].mxu1  ;;  %v6209_v60 = vadd.f32 %v8968_v41, %v9019_v6 }
 0x2ac   : > { %v8972_v43 = vpop.f32.mrb[11].mxu1  ;;  %v6211_v62 = vadd.f32 %v8970_v42, %v9015_v4 }
 0x2b1   : > { %v8974_v44 = vpop.f32.mrb[12].mxu1 }
 0x2b2   : > { %v8976_v45 = vpop.f32.mrb[13].mxu1  ;;  %v6215_v42 = vadd.f32 %v8974_v44, %v9015_v4 }
 0x2b3   : > { %v8978_v46 = vpop.f32.mrb[14].mxu1 }
 0x2b4   : > { %v8980_v47 = vpop.f32.mrb[15].mxu1 }
 0x2b9   : > { %v8982_v48 = vpop.f32.mrb[16].mxu1 }
 0x2ba   : > { %v8984_v49 = vpop.f32.mrb[17].mxu1 }
 0x2bb   : > { %v8986_v50 = vpop.f32.mrb[18].mxu1 }
 0x2bc   : > { %v8988_v51 = vpop.f32.mrb[19].mxu1 }
 0x2c1   : > { %v8990_v52 = vpop.f32.mrb[20].mxu1 }
 0x2c2   : > { %v8992_v53 = vpop.f32.mrb[21].mxu1 }
 0x2c3   : > { %v8994_v54 = vpop.f32.mrb[22].mxu1 }
 0x2c4   : > { %v8996_v55 = vpop.f32.mrb[23].mxu1 }
 0x2c9   : > { %v8998_v57 = vpop.f32.mrb[24].mxu1 }
 0x2ca   : > { %v9000_v58 = vpop.f32.mrb[25].mxu1 }
 0x2cb   : > { %v9002_v59 = vpop.f32.mrb[26].mxu1 }
 0x2cc   : > { %v9004_v61 = vpop.f32.mrb[27].mxu1 }
 0x2d1   : > { %v9009_v1 = vpop.f32.mrb[28].mxu1 }
 0x2d2   : > { %v9011_v2 = vpop.f32.mrb[29].mxu1 }
 0x2d3   : > { %v9013_v3 = vpop.f32.mrb[30].mxu1 }
 0x2d4   : > { %v9017_v5 = vpop.f32.mrb[31].mxu1 }
 0x2da   : > { %v5225_v9 = vpop.f32.mrb[0].mxu0 }
 0x2db   : > { %v6192_v11 = vadd.f32 %v6191_v7, %v5225_v9  ;;  %v5227_v12 = vpop.f32.mrb[1].mxu0  ;;  %v6213_v7 = vadd.f32 %v8972_v43, %v9019_v6 }
 0x2dc   : > { %v6194_v14 = vadd.f32 %v6193_v8, %v5227_v12  ;;  %v5229_v15 = vpop.f32.mrb[2].mxu0 }
 0x2dd   : > { %v5384_v16 = vmax.f32 %v6192_v11, 0.0  ;;  %v6196_v17 = vadd.f32 %v6195_v10, %v5229_v15  ;;  %v5231_v18 = vpop.f32.mrb[3].mxu0  ;;  %v6217_v15 = vadd.f32 %v8976_v45, %v9019_v6 }
 0x2de   : > { %v5385_v19 = vmax.f32 %v6194_v14, 0.0  ;;  %v6198_v20 = vadd.f32 %v6197_v13, %v5231_v18 }
 0x2df   : > { %5448 = vst [vmem:[%s9029_s8] sm:$0xff] %v5384_v16  ;;  %v5386_v21 = vmax.f32 %v6196_v17, 0.0  ;;  %v6219_v16 = vadd.f32 %v8978_v46, %v9015_v4  ;;  %v6223_v46 = vadd.f32 %v8982_v48, %v9015_v4 }
 0x2e0   : > { %5449 = vst [vmem:[%s9029_s8 + $0x8] sm:$0xff] %v5385_v19  ;;  %v5387_v22 = vmax.f32 %v6198_v20, 0.0  ;;  %v6221_v19 = vadd.f32 %v8980_v47, %v9019_v6 }
 0x2e1   : > { %5450 = vst [vmem:[%s9029_s8 + $0x10] sm:$0xff] %v5386_v21 }
 0x2e2   : > { %5451 = vst [vmem:[%s9029_s8 + $0x18] sm:$0xff] %v5387_v22  ;;  %v5235_v25 = vpop.f32.mrb[4].mxu0 }
 0x2e3   : > { %v6200_v27 = vadd.f32 %v6199_v23, %v5235_v25  ;;  %v5237_v28 = vpop.f32.mrb[5].mxu0 }
 0x2e4   : > { %v6202_v30 = vadd.f32 %v6201_v24, %v5237_v28  ;;  %v5239_v31 = vpop.f32.mrb[6].mxu0  ;;  %v6227_v28 = vadd.f32 %v8986_v50, %v9015_v4  ;;  %v6231_v50 = vadd.f32 %v8990_v52, %v9015_v4 }
 0x2e5   : > { %v5388_v32 = vmax.f32 %v6200_v27, 0.0  ;;  %v6204_v33 = vadd.f32 %v6203_v26, %v5239_v31  ;;  %v5241_v34 = vpop.f32.mrb[7].mxu0  ;;  %v6225_v27 = vadd.f32 %v8984_v49, %v9019_v6  ;;  %v6229_v31 = vadd.f32 %v8988_v51, %v9019_v6 }
 0x2e6   : > { %v5389_v35 = vmax.f32 %v6202_v30, 0.0  ;;  %v6206_v36 = vadd.f32 %v6205_v29, %v5241_v34 }
 0x2e7   : > { %5452 = vst [vmem:[%s9029_s8 + $0x20] sm:$0xff] %v5388_v32  ;;  %v5390_v37 = vmax.f32 %v6204_v33, 0.0 }
 0x2e8   : > { %5453 = vst [vmem:[%s9029_s8 + $0x28] sm:$0xff] %v5389_v35  ;;  %v5391_v56 = vmax.f32 %v6206_v36, 0.0 }
 0x2e9   : > { %5454 = vst [vmem:[%s9029_s8 + $0x30] sm:$0xff] %v5390_v37 }
 0x2ea   : > { %5455 = vst [vmem:[%s9029_s8 + $0x38] sm:$0xff] %v5391_v56  ;;  %v5245_v39 = vpop.f32.mrb[8].mxu0 }
 0x2eb   : > { %v6208_v63 = vadd.f32 %v6207_v38, %v5245_v39  ;;  %v5247_v0 = vpop.f32.mrb[9].mxu0  ;;  %v6233_v38 = vadd.f32 %v8992_v53, %v9019_v6 }
 0x2ec   : > { %v6210_v8 = vadd.f32 %v6209_v60, %v5247_v0  ;;  %v5249_v40 = vpop.f32.mrb[10].mxu0  ;;  %v6235_v60 = vadd.f32 %v8994_v54, %v9015_v4  ;;  %v6239_v54 = vadd.f32 %v8998_v57, %v9015_v4 }
 0x2ed   : > { %v5392_v9 = vmax.f32 %v6208_v63, 0.0  ;;  %v6212_v10 = vadd.f32 %v6211_v62, %v5249_v40  ;;  %v5251_v11 = vpop.f32.mrb[11].mxu0  ;;  %v6237_v63 = vadd.f32 %v8996_v55, %v9019_v6 }
 0x2ee   : > { %v5393_v12 = vmax.f32 %v6210_v8, 0.0  ;;  %v6214_v41 = vadd.f32 %v6213_v7, %v5251_v11 }
 0x2ef   : > { %5456 = vst [vmem:[%s9029_s8 + $0x40] sm:$0xff] %v5392_v9  ;;  %v5394_v13 = vmax.f32 %v6212_v10, 0.0 }
 0x2f0   : > { %5457 = vst [vmem:[%s9029_s8 + $0x48] sm:$0xff] %v5393_v12  ;;  %v5395_v14 = vmax.f32 %v6214_v41, 0.0  ;;  %v6241_v12 = vadd.f32 %v9000_v58, %v9019_v6  ;;  %v6243_v41 = vadd.f32 %v9002_v59, %v9015_v4  ;;  %v6247_v59 = vadd.f32 %v9009_v1, %v9015_v4 }
 0x2f1   : > { %5458 = vst [vmem:[%s9029_s8 + $0x50] sm:$0xff] %v5394_v13 }
 0x2f2   : > { %5459 = vst [vmem:[%s9029_s8 + $0x58] sm:$0xff] %v5395_v14  ;;  %v5255_v43 = vpop.f32.mrb[12].mxu0 }
 0x2f3   : > { %v6216_v17 = vadd.f32 %v6215_v42, %v5255_v43  ;;  %v5257_v18 = vpop.f32.mrb[13].mxu0  ;;  %v6245_v42 = vadd.f32 %v9004_v61, %v9019_v6 }
 0x2f4   : > { %v6218_v20 = vadd.f32 %v6217_v15, %v5257_v18  ;;  %v5259_v44 = vpop.f32.mrb[14].mxu0 }
 0x2f5   : > { %v5396_v21 = vmax.f32 %v6216_v17, 0.0  ;;  %v6220_v22 = vadd.f32 %v6219_v16, %v5259_v44  ;;  %v5261_v23 = vpop.f32.mrb[15].mxu0  ;;  %v6249_v44 = vadd.f32 %v9011_v2, %v9019_v6 }
 0x2f6   : > { %v5397_v24 = vmax.f32 %v6218_v20, 0.0  ;;  %v6222_v45 = vadd.f32 %v6221_v19, %v5261_v23 }
 0x2f7   : > { %5460 = vst [vmem:[%s9029_s8 + $0x60] sm:$0xff] %v5396_v21  ;;  %v5398_v25 = vmax.f32 %v6220_v22, 0.0  ;;  %v6251_v21 = vadd.f32 %v9013_v3, %v9015_v4 }
 0x2f8   : > { %5461 = vst [vmem:[%s9029_s8 + $0x68] sm:$0xff] %v5397_v24  ;;  %v5399_v26 = vmax.f32 %v6222_v45, 0.0  ;;  %v6253_v24 = vadd.f32 %v9017_v5, %v9019_v6 }
 0x2f9   : > { %5462 = vst [vmem:[%s9029_s8 + $0x70] sm:$0xff] %v5398_v25 }
 0x2fa   : > { %5463 = vst [vmem:[%s9029_s8 + $0x78] sm:$0xff] %v5399_v26  ;;  %v5265_v47 = vpop.f32.mrb[16].mxu0 }
 0x2fb   : > { %v6224_v29 = vadd.f32 %v6223_v46, %v5265_v47  ;;  %v5267_v30 = vpop.f32.mrb[17].mxu0 }
 0x2fc   : > { %v6226_v32 = vadd.f32 %v6225_v27, %v5267_v30  ;;  %v5269_v48 = vpop.f32.mrb[18].mxu0 }
 0x2fd   : > { %v5400_v33 = vmax.f32 %v6224_v29, 0.0  ;;  %v6228_v34 = vadd.f32 %v6227_v28, %v5269_v48  ;;  %v5271_v35 = vpop.f32.mrb[19].mxu0 }
 0x2fe   : > { %v5401_v36 = vmax.f32 %v6226_v32, 0.0  ;;  %v6230_v49 = vadd.f32 %v6229_v31, %v5271_v35 }
 0x2ff   : > { %5464 = vst [vmem:[%s9029_s8 + $0x80] sm:$0xff] %v5400_v33  ;;  %v5402_v37 = vmax.f32 %v6228_v34, 0.0 }
 0x300   : > { %5465 = vst [vmem:[%s9029_s8 + $0x88] sm:$0xff] %v5401_v36  ;;  %v5403_v56 = vmax.f32 %v6230_v49, 0.0 }
 0x301   : > { %5466 = vst [vmem:[%s9029_s8 + $0x90] sm:$0xff] %v5402_v37 }
 0x302   : > { %5467 = vst [vmem:[%s9029_s8 + $0x98] sm:$0xff] %v5403_v56  ;;  %v5275_v51 = vpop.f32.mrb[20].mxu0 }
 0x303   : > { %v6232_v39 = vadd.f32 %v6231_v50, %v5275_v51  ;;  %v5277_v62 = vpop.f32.mrb[21].mxu0 }
 0x304   : > { %v6234_v0 = vadd.f32 %v6233_v38, %v5277_v62  ;;  %v5279_v52 = vpop.f32.mrb[22].mxu0 }
 0x305   : > { %v5404_v7 = vmax.f32 %v6232_v39, 0.0  ;;  %v6236_v8 = vadd.f32 %v6235_v60, %v5279_v52  ;;  %v5281_v40 = vpop.f32.mrb[23].mxu0 }
 0x306   : > { %v5405_v9 = vmax.f32 %v6234_v0, 0.0  ;;  %v6238_v53 = vadd.f32 %v6237_v63, %v5281_v40 }
 0x307   : > { %5468 = vst [vmem:[%s9029_s8 + $0xa0] sm:$0xff] %v5404_v7  ;;  %v5406_v10 = vmax.f32 %v6236_v8, 0.0 }
 0x308   : > { %5469 = vst [vmem:[%s9029_s8 + $0xa8] sm:$0xff] %v5405_v9  ;;  %v5407_v11 = vmax.f32 %v6238_v53, 0.0 }
 0x309   : > { %5470 = vst [vmem:[%s9029_s8 + $0xb0] sm:$0xff] %v5406_v10 }
 0x30a   : > { %5471 = vst [vmem:[%s9029_s8 + $0xb8] sm:$0xff] %v5407_v11  ;;  %v5285_v55 = vpop.f32.mrb[24].mxu0 }
 0x30b   : > { %v6240_v13 = vadd.f32 %v6239_v54, %v5285_v55  ;;  %v5287_v14 = vpop.f32.mrb[25].mxu0 }
 0x30c   : > { %v6242_v15 = vadd.f32 %v6241_v12, %v5287_v14  ;;  %v5289_v57 = vpop.f32.mrb[26].mxu0 }
 0x30d   : > { %v5408_v43 = vmax.f32 %v6240_v13, 0.0  ;;  %v6244_v16 = vadd.f32 %v6243_v41, %v5289_v57  ;;  %v5291_v17 = vpop.f32.mrb[27].mxu0 }
 0x30e   : > { %v5409_v18 = vmax.f32 %v6242_v15, 0.0  ;;  %v6246_v58 = vadd.f32 %v6245_v42, %v5291_v17 }
 0x30f   : > { %5472 = vst [vmem:[%s9029_s8 + $0xc0] sm:$0xff] %v5408_v43  ;;  %v5410_v19 = vmax.f32 %v6244_v16, 0.0 }
 0x310   : > { %5473 = vst [vmem:[%s9029_s8 + $0xc8] sm:$0xff] %v5409_v18  ;;  %v5411_v20 = vmax.f32 %v6246_v58, 0.0 }
 0x311   : > { %5474 = vst [vmem:[%s9029_s8 + $0xd0] sm:$0xff] %v5410_v19 }
 0x312   : > { %5475 = vst [vmem:[%s9029_s8 + $0xd8] sm:$0xff] %v5411_v20  ;;  %v5295_v61 = vpop.f32.mrb[28].mxu0 }
 0x313   : > { %v6248_v22 = vadd.f32 %v6247_v59, %v5295_v61  ;;  %v5297_v23 = vpop.f32.mrb[29].mxu0 }
 0x314   : > { %v6250_v45 = vadd.f32 %v6249_v44, %v5297_v23  ;;  %v5299_v1 = vpop.f32.mrb[30].mxu0 }
 0x315   : > { %v5412_v25 = vmax.f32 %v6248_v22, 0.0  ;;  %v6252_v26 = vadd.f32 %v6251_v21, %v5299_v1  ;;  %v5301_v46 = vpop.f32.mrb[31].mxu0 }
 0x316   : > { %v5413_v27 = vmax.f32 %v6250_v45, 0.0  ;;  %v6254_v2 = vadd.f32 %v6253_v24, %v5301_v46 }
 0x317   : > { %5476 = vst [vmem:[%s9029_s8 + $0xe0] sm:$0xff] %v5412_v25  ;;  %v5414_v47 = vmax.f32 %v6252_v26, 0.0 }
 0x318   : > { %5477 = vst [vmem:[%s9029_s8 + $0xe8] sm:$0xff] %v5413_v27  ;;  %v5415_v28 = vmax.f32 %v6254_v2, 0.0 }
 0x319   : > { %5478 = vst [vmem:[%s9029_s8 + $0xf0] sm:$0xff] %v5414_v47  ;;  %v4533_v3 = vpop.f32.mrb[32].mxu1 }
 0x31a   : > { %5479 = vst [vmem:[%s9029_s8 + $0xf8] sm:$0xff] %v5415_v28  ;;  %v5305_v29 = vpop.f32.mrb[32].mxu0  ;;  %v6255_v30 = vadd.f32 %v4533_v3, %v9015_v4  ;;  %v4535_v31 = vpop.f32.mrb[33].mxu1 }
 0x31b   : > { %v5307_v5 = vpop.f32.mrb[33].mxu0  ;;  %v6257_v32 = vadd.f32 %v4535_v31, %v9019_v6  ;;  %v4537_v48 = vpop.f32.mrb[34].mxu1 }
 0x31c   : > { %v5309_v33 = vpop.f32.mrb[34].mxu0  ;;  %v6256_v34 = vadd.f32 %v6255_v30, %v5305_v29  ;;  %v6259_v35 = vadd.f32 %v4537_v48, %v9015_v4  ;;  %v4539_v36 = vpop.f32.mrb[35].mxu1 }
 0x31d   : > { %v5311_v49 = vpop.f32.mrb[35].mxu0  ;;  %v6258_v37 = vadd.f32 %v6257_v32, %v5307_v5  ;;  %v6261_v56 = vadd.f32 %v4539_v36, %v9019_v6 }
 0x31e   : > { %v5416_v50 = vmax.f32 %v6256_v34, 0.0  ;;  %v6260_v38 = vadd.f32 %v6259_v35, %v5309_v33 }
 0x31f   : > { %v5417_v51 = vmax.f32 %v6258_v37, 0.0  ;;  %v6262_v60 = vadd.f32 %v6261_v56, %v5311_v49 }
 0x320   : > { %5480 = vst [vmem:[%s9029_s8 + $0x100] sm:$0xff] %v5416_v50  ;;  %v5418_v39 = vmax.f32 %v6260_v38, 0.0 }
 0x321   : > { %5481 = vst [vmem:[%s9029_s8 + $0x108] sm:$0xff] %v5417_v51  ;;  %v5419_v62 = vmax.f32 %v6262_v60, 0.0  ;;  %v4543_v63 = vpop.f32.mrb[36].mxu1 }
 0x322   : > { %v5315_v0 = vpop.f32.mrb[36].mxu0  ;;  %5482 = vst [vmem:[%s9029_s8 + $0x110] sm:$0xff] %v5418_v39  ;;  %v6263_v52 = vadd.f32 %v4543_v63, %v9015_v4  ;;  %v4545_v7 = vpop.f32.mrb[37].mxu1 }
 0x323   : > { %v5317_v8 = vpop.f32.mrb[37].mxu0  ;;  %5483 = vst [vmem:[%s9029_s8 + $0x118] sm:$0xff] %v5419_v62  ;;  %v6265_v40 = vadd.f32 %v4545_v7, %v9019_v6  ;;  %v4547_v9 = vpop.f32.mrb[38].mxu1 }
 0x324   : > { %v5319_v53 = vpop.f32.mrb[38].mxu0  ;;  %v6264_v10 = vadd.f32 %v6263_v52, %v5315_v0  ;;  %v6267_v11 = vadd.f32 %v4547_v9, %v9015_v4  ;;  %v4549_v54 = vpop.f32.mrb[39].mxu1 }
 0x325   : > { %v5321_v12 = vpop.f32.mrb[39].mxu0  ;;  %v6266_v55 = vadd.f32 %v6265_v40, %v5317_v8  ;;  %v6269_v41 = vadd.f32 %v4549_v54, %v9019_v6 }
 0x326   : > { %v5420_v13 = vmax.f32 %v6264_v10, 0.0  ;;  %v6268_v14 = vadd.f32 %v6267_v11, %v5319_v53 }
 0x327   : > { %v5421_v42 = vmax.f32 %v6266_v55, 0.0  ;;  %v6270_v15 = vadd.f32 %v6269_v41, %v5321_v12 }
 0x328   : > { %5484 = vst [vmem:[%s9029_s8 + $0x120] sm:$0xff] %v5420_v13  ;;  %v5422_v57 = vmax.f32 %v6268_v14, 0.0 }
 0x329   : > { %5485 = vst [vmem:[%s9029_s8 + $0x128] sm:$0xff] %v5421_v42  ;;  %v5423_v43 = vmax.f32 %v6270_v15, 0.0  ;;  %v4553_v16 = vpop.f32.mrb[40].mxu1 }
 0x32a   : > { %v5325_v17 = vpop.f32.mrb[40].mxu0  ;;  %5486 = vst [vmem:[%s9029_s8 + $0x130] sm:$0xff] %v5422_v57  ;;  %v6271_v18 = vadd.f32 %v4553_v16, %v9015_v4  ;;  %v4555_v58 = vpop.f32.mrb[41].mxu1 }
 0x32b   : > { %v5327_v19 = vpop.f32.mrb[41].mxu0  ;;  %5487 = vst [vmem:[%s9029_s8 + $0x138] sm:$0xff] %v5423_v43  ;;  %v6273_v20 = vadd.f32 %v4555_v58, %v9019_v6  ;;  %v4557_v59 = vpop.f32.mrb[42].mxu1 }
 0x32c   : > { %v5329_v44 = vpop.f32.mrb[42].mxu0  ;;  %v6272_v61 = vadd.f32 %v6271_v18, %v5325_v17  ;;  %v6275_v21 = vadd.f32 %v4557_v59, %v9015_v4  ;;  %v4559_v22 = vpop.f32.mrb[43].mxu1 }
 0x32d   : > { %v5331_v23 = vpop.f32.mrb[43].mxu0  ;;  %v6274_v24 = vadd.f32 %v6273_v20, %v5327_v19  ;;  %v6277_v45 = vadd.f32 %v4559_v22, %v9019_v6 }
 0x32e   : > { %v5424_v1 = vmax.f32 %v6272_v61, 0.0  ;;  %v6276_v25 = vadd.f32 %v6275_v21, %v5329_v44 }
 0x32f   : > { %v5425_v26 = vmax.f32 %v6274_v24, 0.0  ;;  %v6278_v46 = vadd.f32 %v6277_v45, %v5331_v23 }
 0x330   : > { %5488 = vst [vmem:[%s9029_s8 + $0x140] sm:$0xff] %v5424_v1  ;;  %v5426_v27 = vmax.f32 %v6276_v25, 0.0 }
 0x331   : > { %5489 = vst [vmem:[%s9029_s8 + $0x148] sm:$0xff] %v5425_v26  ;;  %v5427_v2 = vmax.f32 %v6278_v46, 0.0  ;;  %v4563_v47 = vpop.f32.mrb[44].mxu1 }
 0x332   : > { %v5335_v28 = vpop.f32.mrb[44].mxu0  ;;  %5490 = vst [vmem:[%s9029_s8 + $0x150] sm:$0xff] %v5426_v27  ;;  %v6279_v3 = vadd.f32 %v4563_v47, %v9015_v4  ;;  %v4565_v29 = vpop.f32.mrb[45].mxu1 }
 0x333   : > { %v5337_v30 = vpop.f32.mrb[45].mxu0  ;;  %5491 = vst [vmem:[%s9029_s8 + $0x158] sm:$0xff] %v5427_v2  ;;  %v6281_v31 = vadd.f32 %v4565_v29, %v9019_v6  ;;  %v4567_v5 = vpop.f32.mrb[46].mxu1 }
 0x334   : > { %v5339_v32 = vpop.f32.mrb[46].mxu0  ;;  %v6280_v48 = vadd.f32 %v6279_v3, %v5335_v28  ;;  %v6283_v33 = vadd.f32 %v4567_v5, %v9015_v4  ;;  %v4569_v34 = vpop.f32.mrb[47].mxu1 }
 0x335   : > { %v5341_v35 = vpop.f32.mrb[47].mxu0  ;;  %v6282_v36 = vadd.f32 %v6281_v31, %v5337_v30  ;;  %v6285_v49 = vadd.f32 %v4569_v34, %v9019_v6 }
 0x336   : > { %v5428_v37 = vmax.f32 %v6280_v48, 0.0  ;;  %v6284_v56 = vadd.f32 %v6283_v33, %v5339_v32 }
 0x337   : > { %v5429_v50 = vmax.f32 %v6282_v36, 0.0  ;;  %v6286_v38 = vadd.f32 %v6285_v49, %v5341_v35 }
 0x338   : > { %5492 = vst [vmem:[%s9029_s8 + $0x160] sm:$0xff] %v5428_v37  ;;  %v5430_v51 = vmax.f32 %v6284_v56, 0.0 }
 0x339   : > { %5493 = vst [vmem:[%s9029_s8 + $0x168] sm:$0xff] %v5429_v50  ;;  %v5431_v60 = vmax.f32 %v6286_v38, 0.0  ;;  %v4573_v39 = vpop.f32.mrb[48].mxu1 }
 0x33a   : > { %v5345_v62 = vpop.f32.mrb[48].mxu0  ;;  %5494 = vst [vmem:[%s9029_s8 + $0x170] sm:$0xff] %v5430_v51  ;;  %v6287_v63 = vadd.f32 %v4573_v39, %v9015_v4  ;;  %v4575_v0 = vpop.f32.mrb[49].mxu1 }
 0x33b   : > { %v5347_v52 = vpop.f32.mrb[49].mxu0  ;;  %5495 = vst [vmem:[%s9029_s8 + $0x178] sm:$0xff] %v5431_v60  ;;  %v6289_v7 = vadd.f32 %v4575_v0, %v9019_v6  ;;  %v4577_v8 = vpop.f32.mrb[50].mxu1 }
 0x33c   : > { %v5349_v40 = vpop.f32.mrb[50].mxu0  ;;  %v6288_v9 = vadd.f32 %v6287_v63, %v5345_v62  ;;  %v6291_v53 = vadd.f32 %v4577_v8, %v9015_v4  ;;  %v4579_v10 = vpop.f32.mrb[51].mxu1 }
 0x33d   : > { %v5351_v11 = vpop.f32.mrb[51].mxu0  ;;  %v6290_v54 = vadd.f32 %v6289_v7, %v5347_v52  ;;  %v6293_v12 = vadd.f32 %v4579_v10, %v9019_v6 }
 0x33e   : > { %v5432_v55 = vmax.f32 %v6288_v9, 0.0  ;;  %v6292_v41 = vadd.f32 %v6291_v53, %v5349_v40 }
 0x33f   : > { %v5433_v13 = vmax.f32 %v6290_v54, 0.0  ;;  %v6294_v14 = vadd.f32 %v6293_v12, %v5351_v11 }
 0x340   : > { %5496 = vst [vmem:[%s9029_s8 + $0x180] sm:$0xff] %v5432_v55  ;;  %v5434_v42 = vmax.f32 %v6292_v41, 0.0 }
 0x341   : > { %5497 = vst [vmem:[%s9029_s8 + $0x188] sm:$0xff] %v5433_v13  ;;  %v5435_v15 = vmax.f32 %v6294_v14, 0.0  ;;  %v4583_v57 = vpop.f32.mrb[52].mxu1 }
 0x342   : > { %v5355_v43 = vpop.f32.mrb[52].mxu0  ;;  %5498 = vst [vmem:[%s9029_s8 + $0x190] sm:$0xff] %v5434_v42  ;;  %v6295_v16 = vadd.f32 %v4583_v57, %v9015_v4  ;;  %v4585_v17 = vpop.f32.mrb[53].mxu1 }
 0x343   : > { %v5357_v18 = vpop.f32.mrb[53].mxu0  ;;  %5499 = vst [vmem:[%s9029_s8 + $0x198] sm:$0xff] %v5435_v15  ;;  %v6297_v58 = vadd.f32 %v4585_v17, %v9019_v6  ;;  %v4587_v19 = vpop.f32.mrb[54].mxu1 }
 0x344   : > { %v5359_v20 = vpop.f32.mrb[54].mxu0  ;;  %v6296_v59 = vadd.f32 %v6295_v16, %v5355_v43  ;;  %v6299_v44 = vadd.f32 %v4587_v19, %v9015_v4  ;;  %v4589_v61 = vpop.f32.mrb[55].mxu1 }
 0x345   : > { %v5361_v21 = vpop.f32.mrb[55].mxu0  ;;  %v6298_v22 = vadd.f32 %v6297_v58, %v5357_v18  ;;  %v6301_v23 = vadd.f32 %v4589_v61, %v9019_v6 }
 0x346   : > { %v5436_v24 = vmax.f32 %v6296_v59, 0.0  ;;  %v6300_v45 = vadd.f32 %v6299_v44, %v5359_v20 }
 0x347   : > { %v5437_v1 = vmax.f32 %v6298_v22, 0.0  ;;  %v6302_v25 = vadd.f32 %v6301_v23, %v5361_v21 }
 0x348   : > { %5500 = vst [vmem:[%s9029_s8 + $0x1a0] sm:$0xff] %v5436_v24  ;;  %v5438_v26 = vmax.f32 %v6300_v45, 0.0 }
 0x349   : > { %5501 = vst [vmem:[%s9029_s8 + $0x1a8] sm:$0xff] %v5437_v1  ;;  %v5439_v46 = vmax.f32 %v6302_v25, 0.0  ;;  %v4593_v27 = vpop.f32.mrb[56].mxu1 }
 0x34a   : > { %v5365_v2 = vpop.f32.mrb[56].mxu0  ;;  %5502 = vst [vmem:[%s9029_s8 + $0x1b0] sm:$0xff] %v5438_v26  ;;  %v6303_v47 = vadd.f32 %v4593_v27, %v9015_v4  ;;  %v4595_v28 = vpop.f32.mrb[57].mxu1 }
 0x34b   : > { %v5367_v3 = vpop.f32.mrb[57].mxu0  ;;  %5503 = vst [vmem:[%s9029_s8 + $0x1b8] sm:$0xff] %v5439_v46  ;;  %v6305_v29 = vadd.f32 %v4595_v28, %v9019_v6  ;;  %v4597_v30 = vpop.f32.mrb[58].mxu1 }
 0x34c   : > { %v5369_v31 = vpop.f32.mrb[58].mxu0  ;;  %v6304_v5 = vadd.f32 %v6303_v47, %v5365_v2  ;;  %v6307_v32 = vadd.f32 %v4597_v30, %v9015_v4  ;;  %v4599_v48 = vpop.f32.mrb[59].mxu1 }
 0x34d   : > { %v5371_v33 = vpop.f32.mrb[59].mxu0  ;;  %v6306_v34 = vadd.f32 %v6305_v29, %v5367_v3  ;;  %v6309_v35 = vadd.f32 %v4599_v48, %v9019_v6 }
 0x34e   : > { %v5440_v36 = vmax.f32 %v6304_v5, 0.0  ;;  %v6308_v49 = vadd.f32 %v6307_v32, %v5369_v31 }
 0x34f   : > { %v5441_v37 = vmax.f32 %v6306_v34, 0.0  ;;  %v6310_v56 = vadd.f32 %v6309_v35, %v5371_v33 }
 0x350   : > { %5504 = vst [vmem:[%s9029_s8 + $0x1c0] sm:$0xff] %v5440_v36  ;;  %v5442_v50 = vmax.f32 %v6308_v49, 0.0 }
 0x351   : > { %5505 = vst [vmem:[%s9029_s8 + $0x1c8] sm:$0xff] %v5441_v37  ;;  %v5443_v38 = vmax.f32 %v6310_v56, 0.0  ;;  %v4603_v51 = vpop.f32.mrb[60].mxu1 }
 0x352   : > { %v5375_v60 = vpop.f32.mrb[60].mxu0  ;;  %5506 = vst [vmem:[%s9029_s8 + $0x1d0] sm:$0xff] %v5442_v50  ;;  %v6311_v39 = vadd.f32 %v4603_v51, %v9015_v4  ;;  %v4605_v62 = vpop.f32.mrb[61].mxu1 }
 0x353   : > { %v5377_v63 = vpop.f32.mrb[61].mxu0  ;;  %5507 = vst [vmem:[%s9029_s8 + $0x1d8] sm:$0xff] %v5443_v38  ;;  %v6313_v0 = vadd.f32 %v4605_v62, %v9019_v6  ;;  %v4607_v52 = vpop.f32.mrb[62].mxu1 }
 0x354   : > { %v5379_v7 = vpop.f32.mrb[62].mxu0  ;;  %v6312_v8 = vadd.f32 %v6311_v39, %v5375_v60  ;;  %v6315_v40 = vadd.f32 %v4607_v52, %v9015_v4  ;;  %v4609_v9 = vpop.f32.mrb[63].mxu1 }
 0x355   : > { %v5381_v53 = vpop.f32.mrb[63].mxu0  ;;  %v6314_v10 = vadd.f32 %v6313_v0, %v5377_v63  ;;  %v6317_v11 = vadd.f32 %v4609_v9, %v9019_v6 }
 0x356   : > { %v5444_v54 = vmax.f32 %v6312_v8, 0.0  ;;  %v6316_v12 = vadd.f32 %v6315_v40, %v5379_v7 }
 0x357   : > { %v5445_v55 = vmax.f32 %v6314_v10, 0.0  ;;  %v6318_v41 = vadd.f32 %v6317_v11, %v5381_v53 }
 0x358   : > { %5508 = vst [vmem:[%s9029_s8 + $0x1e0] sm:$0xff] %v5444_v54  ;;  %v5446_v13 = vmax.f32 %v6316_v12, 0.0 }
 0x359   : > { %5509 = vst [vmem:[%s9029_s8 + $0x1e8] sm:$0xff] %v5445_v55  ;;  %v5447_v14 = vmax.f32 %v6318_v41, 0.0 }
 0x35a   : > { %5510 = vst [vmem:[%s9029_s8 + $0x1f0] sm:$0xff] %v5446_v13 }
 0x35b   : > { %5511 = vst [vmem:[%s9029_s8 + $0x1f8] sm:$0xff] %v5447_v14 }
 0x35c PF: > { %s13_s12 = sadd.s32 1, %s7678_s12  }
 0x35d   : > { %p10_p4 = scmp.ge.s32.totalorder %s13_s12, 4  }
 0x35f   :  { %12 = sbr.rel (!%p10_p4) target bundleno = 1 (0x1), region = 62 }

// kernel: reduction_a_forward.7
= control target key start
LH: loop header
LB: loop body
LE: loop exit
PB: predicated region body
PF: predicated region fallthrough
CT: control target
= control target key end

     0   :  { %s6155_s1 = inlined_call_operand.vmem [shape: bf16[2304,256], index: 1, kind: input, shape index: {}]   ;;  %s6156_s0 = inlined_call_operand.vmem [shape: bf16[104,2304], index: 0, kind: input, shape index: {}]   ;;  %s6157_s2 = inlined_call_operand.vmem [shape: f32[1,256], index: 2, kind: input, shape index: {}]   ;;  %s6158_s3 = inlined_call_operand.vmem [shape: f32[104,256], index: 3, kind: output, shape index: {}]  }
   0x1   :  { %v4131_v0 = vld [vmem:[%s6155_s1 + $0x4] ss:$8 sps:$4 sm:$0xff]   ;;  %v4135_v2 = vld [vmem:[%s6155_s1] ss:$8 sps:$4 sm:$0xff]   ;;  %v4137_v4 = vld [vmem:[%s6155_s1 + $0x14] ss:$8 sps:$4 sm:$0xff]  }
   0x2   :  { %v4133_v1 = vld [vmem:[%s6155_s1 + $0x404] ss:$8 sps:$4 sm:$0xff]   ;;  %2474 = vmatprep.subr.bf16.mxu1 %v4131_v0  ;;  %v4136_v3 = vld [vmem:[%s6155_s1 + $0x400] ss:$8 sps:$4 sm:$0xff]   ;;  %v4139_v5 = vld [vmem:[%s6155_s1 + $0x414] ss:$8 sps:$4 sm:$0xff]  }
   0x3   :  { %2878 = vmatprep.subr.bf16.mxu0 %v4133_v1  ;;  %2475 = vmatpush1.bf16.msra.mxu1 %v4135_v2  ;;  %v4141_v6 = vld [vmem:[%s6155_s1 + $0x10] ss:$8 sps:$4 sm:$0xff]   ;;  %v4143_v8 = vld [vmem:[%s6155_s1 + $0x24] ss:$8 sps:$4 sm:$0xff]   ;;  %v4147_v10 = vld [vmem:[%s6155_s1 + $0x20] ss:$8 sps:$4 sm:$0xff]  }
   0x4   :  { %2879 = vmatpush1.bf16.msra.mxu0 %v4136_v3  ;;  %2476 = vmatprep.subr.bf16.mxu1 %v4137_v4  ;;  %v4142_v7 = vld [vmem:[%s6155_s1 + $0x410] ss:$8 sps:$4 sm:$0xff]   ;;  %v4145_v9 = vld [vmem:[%s6155_s1 + $0x424] ss:$8 sps:$4 sm:$0xff]   ;;  %v4148_v11 = vld [vmem:[%s6155_s1 + $0x420] ss:$8 sps:$4 sm:$0xff]  }
   0x5   :  { %2880 = vmatprep.subr.bf16.mxu0 %v4139_v5  ;;  %v4149_v12 = vld [vmem:[%s6155_s1 + $0x34] ss:$8 sps:$4 sm:$0xff]   ;;  %v4153_v14 = vld [vmem:[%s6155_s1 + $0x30] ss:$8 sps:$4 sm:$0xff]   ;;  %v4155_v16 = vld [vmem:[%s6155_s1 + $0x44] ss:$8 sps:$4 sm:$0xff]  }
   0x6   :  { %v4151_v13 = vld [vmem:[%s6155_s1 + $0x434] ss:$8 sps:$4 sm:$0xff]   ;;  %v4154_v15 = vld [vmem:[%s6155_s1 + $0x430] ss:$8 sps:$4 sm:$0xff]   ;;  %v4157_v17 = vld [vmem:[%s6155_s1 + $0x444] ss:$8 sps:$4 sm:$0xff]  }
   0x7   :  { %2477 = vmatpush1.bf16.msra.mxu1 %v4141_v6  ;;  %v4159_v18 = vld [vmem:[%s6155_s1 + $0x40] ss:$8 sps:$4 sm:$0xff]   ;;  %v4161_v20 = vld [vmem:[%s6155_s1 + $0x54] ss:$8 sps:$4 sm:$0xff]   ;;  %v4165_v22 = vld [vmem:[%s6155_s1 + $0x50] ss:$8 sps:$4 sm:$0xff]  }
   0x8   :  { %2881 = vmatpush1.bf16.msra.mxu0 %v4142_v7  ;;  %2478 = vmatprep.subr.bf16.mxu1 %v4143_v8  ;;  %v4160_v19 = vld [vmem:[%s6155_s1 + $0x440] ss:$8 sps:$4 sm:$0xff]   ;;  %v4163_v21 = vld [vmem:[%s6155_s1 + $0x454] ss:$8 sps:$4 sm:$0xff]   ;;  %v4166_v23 = vld [vmem:[%s6155_s1 + $0x450] ss:$8 sps:$4 sm:$0xff]  }
   0x9   :  { %2882 = vmatprep.subr.bf16.mxu0 %v4145_v9  ;;  %v4167_v24 = vld [vmem:[%s6155_s1 + $0x64] ss:$8 sps:$4 sm:$0xff]   ;;  %v4171_v26 = vld [vmem:[%s6155_s1 + $0x60] ss:$8 sps:$4 sm:$0xff]   ;;  %v4173_v28 = vld [vmem:[%s6155_s1 + $0x74] ss:$8 sps:$4 sm:$0xff]  }
   0xa   :  { %v4169_v25 = vld [vmem:[%s6155_s1 + $0x464] ss:$8 sps:$4 sm:$0xff]   ;;  %v4172_v27 = vld [vmem:[%s6155_s1 + $0x460] ss:$8 sps:$4 sm:$0xff]   ;;  %v4175_v29 = vld [vmem:[%s6155_s1 + $0x474] ss:$8 sps:$4 sm:$0xff]  }
   0xb   :  { %2479 = vmatpush1.bf16.msra.mxu1 %v4147_v10  ;;  %v4177_v30 = vld [vmem:[%s6155_s1 + $0x70] ss:$8 sps:$4 sm:$0xff]   ;;  %v4179_v32 = vld [vmem:[%s6155_s1 + $0x84] ss:$8 sps:$4 sm:$0xff]   ;;  %v4183_v34 = vld [vmem:[%s6155_s1 + $0x80] ss:$8 sps:$4 sm:$0xff]  }
   0xc   :  { %2883 = vmatpush1.bf16.msra.mxu0 %v4148_v11  ;;  %2480 = vmatprep.subr.bf16.mxu1 %v4149_v12  ;;  %v4178_v31 = vld [vmem:[%s6155_s1 + $0x470] ss:$8 sps:$4 sm:$0xff]   ;;  %v4181_v33 = vld [vmem:[%s6155_s1 + $0x484] ss:$8 sps:$4 sm:$0xff]   ;;  %v4184_v35 = vld [vmem:[%s6155_s1 + $0x480] ss:$8 sps:$4 sm:$0xff]  }
   0xd   :  { %2884 = vmatprep.subr.bf16.mxu0 %v4151_v13  ;;  %v4185_v36 = vld [vmem:[%s6155_s1 + $0x94] ss:$8 sps:$4 sm:$0xff]   ;;  %v4189_v38 = vld [vmem:[%s6155_s1 + $0x90] ss:$8 sps:$4 sm:$0xff]   ;;  %v4191_v40 = vld [vmem:[%s6155_s1 + $0xa4] ss:$8 sps:$4 sm:$0xff]  }
   0xe   :  { %v4187_v37 = vld [vmem:[%s6155_s1 + $0x494] ss:$8 sps:$4 sm:$0xff]   ;;  %v4190_v39 = vld [vmem:[%s6155_s1 + $0x490] ss:$8 sps:$4 sm:$0xff]   ;;  %v4193_v41 = vld [vmem:[%s6155_s1 + $0x4a4] ss:$8 sps:$4 sm:$0xff]  }
   0xf   :  { %2481 = vmatpush1.bf16.msra.mxu1 %v4153_v14  ;;  %v4195_v42 = vld [vmem:[%s6155_s1 + $0xa0] ss:$8 sps:$4 sm:$0xff]   ;;  %v4197_v44 = vld [vmem:[%s6155_s1 + $0xb4] ss:$8 sps:$4 sm:$0xff]   ;;  %v4201_v46 = vld [vmem:[%s6155_s1 + $0xb0] ss:$8 sps:$4 sm:$0xff]  }
  0x10   :  { %2885 = vmatpush1.bf16.msra.mxu0 %v4154_v15  ;;  %2482 = vmatprep.subr.bf16.mxu1 %v4155_v16  ;;  %v4196_v43 = vld [vmem:[%s6155_s1 + $0x4a0] ss:$8 sps:$4 sm:$0xff]   ;;  %v4199_v45 = vld [vmem:[%s6155_s1 + $0x4b4] ss:$8 sps:$4 sm:$0xff]   ;;  %v4202_v47 = vld [vmem:[%s6155_s1 + $0x4b0] ss:$8 sps:$4 sm:$0xff]  }
  0x11   :  { %2886 = vmatprep.subr.bf16.mxu0 %v4157_v17  ;;  %v4229_v48 = vld [vmem:[%s6156_s0 + $0x4] ss:$72 sps:$4 sm:$0xff]   ;;  %v4207_v52 = vld [vmem:[%s6155_s1 + $0xc0] ss:$8 sps:$4 sm:$0xff]   ;;  %v4209_v54 = vld [vmem:[%s6155_s1 + $0xd4] ss:$8 sps:$4 sm:$0xff]  }
  0x12   :  { %v4203_v49 = vld [vmem:[%s6155_s1 + $0xc4] ss:$8 sps:$4 sm:$0xff]   ;;  %2506 = vmatprep.mubr.bf16.mxu1 %v4229_v48  ;;  %v4208_v53 = vld [vmem:[%s6155_s1 + $0x4c0] ss:$8 sps:$4 sm:$0xff]   ;;  %v4211_v55 = vld [vmem:[%s6155_s1 + $0x4d4] ss:$8 sps:$4 sm:$0xff]  }
  0x13   :  { %2483 = vmatpush1.bf16.msra.mxu1 %v4159_v18  ;;  %v4205_v50 = vld [vmem:[%s6155_s1 + $0x4c4] ss:$8 sps:$4 sm:$0xff]   ;;  %v4213_v56 = vld [vmem:[%s6155_s1 + $0xd0] ss:$8 sps:$4 sm:$0xff]   ;;  %v4219_v60 = vld [vmem:[%s6155_s1 + $0xe0] ss:$8 sps:$4 sm:$0xff]  }
  0x14   :  { %2887 = vmatpush1.bf16.msra.mxu0 %v4160_v19  ;;  %2484 = vmatprep.subr.bf16.mxu1 %v4161_v20  ;;  %v4235_v51 = vld [vmem:[%s6156_s0 + $0x24] ss:$72 sps:$4 sm:$0xff]   ;;  %v4214_v57 = vld [vmem:[%s6155_s1 + $0x4d0] ss:$8 sps:$4 sm:$0xff]   ;;  %v4220_v61 = vld [vmem:[%s6155_s1 + $0x4e0] ss:$8 sps:$4 sm:$0xff]  }
  0x15   :  { %2888 = vmatprep.subr.bf16.mxu0 %v4163_v21  ;;  %2910 = vmatprep.mubr.bf16.mxu0 %v4235_v51  ;;  %v4215_v58 = vld [vmem:[%s6155_s1 + $0xe4] ss:$8 sps:$4 sm:$0xff]   ;;  %v4221_v62 = vld [vmem:[%s6155_s1 + $0xf4] ss:$8 sps:$4 sm:$0xff]   ;;  %v4225_v0 = vld [vmem:[%s6155_s1 + $0xf0] ss:$8 sps:$4 sm:$0xff]  }
  0x16   :  { %v4217_v59 = vld [vmem:[%s6155_s1 + $0x4e4] ss:$8 sps:$4 sm:$0xff]   ;;  %v4223_v63 = vld [vmem:[%s6155_s1 + $0x4f4] ss:$8 sps:$4 sm:$0xff]   ;;  %v4226_v1 = vld [vmem:[%s6155_s1 + $0x4f0] ss:$8 sps:$4 sm:$0xff]  }
  0x17   :  { %2485 = vmatpush1.bf16.msra.mxu1 %v4165_v22  ;;  %v4232_v2 = vld [vmem:[%s6155_s1 + $0x104] ss:$8 sps:$4 sm:$0xff]   ;;  %v4227_v3 = vld [vmem:[%s6156_s0] ss:$72 sps:$4 sm:$0xff]   ;;  %v4241_v8 = vld [vmem:[%s6155_s1 + $0x114] ss:$8 sps:$4 sm:$0xff]  }
  0x18   :  { %2889 = vmatpush1.bf16.msra.mxu0 %v4166_v23  ;;  %2486 = vmatprep.subr.bf16.mxu1 %v4167_v24  ;;  %v4238_v4 = vld [vmem:[%s6155_s1 + $0x504] ss:$8 sps:$4 sm:$0xff]   ;;  %v4230_v5 = vld [vmem:[%s6155_s1 + $0x100] ss:$8 sps:$4 sm:$0xff]   ;;  %v4244_v9 = vld [vmem:[%s6155_s1 + $0x514] ss:$8 sps:$4 sm:$0xff]  }
  0x19   :  { %2890 = vmatprep.subr.bf16.mxu0 %v4169_v25  ;;  %v4233_v6 = vld [vmem:[%s6156_s0 + $0x20] ss:$72 sps:$4 sm:$0xff]   ;;  %v4257_v10 = vld [vmem:[%s6156_s0 + $0x94] ss:$72 sps:$4 sm:$0xff]   ;;  %v4239_v12 = vld [vmem:[%s6155_s1 + $0x110] ss:$8 sps:$4 sm:$0xff]  }
  0x1a   :  { %v4236_v7 = vld [vmem:[%s6155_s1 + $0x500] ss:$8 sps:$4 sm:$0xff]   ;;  %v4262_v11 = vld [vmem:[%s6156_s0 + $0xb4] ss:$72 sps:$4 sm:$0xff]   ;;  %v4242_v13 = vld [vmem:[%s6155_s1 + $0x510] ss:$8 sps:$4 sm:$0xff]  }
  0x1b   :  { %2487 = vmatpush1.bf16.msra.mxu1 %v4171_v26  ;;  %v4247_v14 = vld [vmem:[%s6155_s1 + $0x124] ss:$8 sps:$4 sm:$0xff]   ;;  %v4245_v16 = vld [vmem:[%s6155_s1 + $0x120] ss:$8 sps:$4 sm:$0xff]   ;;  %v4253_v18 = vld [vmem:[%s6155_s1 + $0x134] ss:$8 sps:$4 sm:$0xff]  }
  0x1c   :  { %2891 = vmatpush1.bf16.msra.mxu0 %v4172_v27  ;;  %2488 = vmatprep.subr.bf16.mxu1 %v4173_v28  ;;  %v4250_v15 = vld [vmem:[%s6155_s1 + $0x524] ss:$8 sps:$4 sm:$0xff]   ;;  %v4248_v17 = vld [vmem:[%s6155_s1 + $0x520] ss:$8 sps:$4 sm:$0xff]   ;;  %v4267_v19 = vld [vmem:[%s6156_s0 + $0x90] ss:$72 sps:$4 sm:$0xff]  }
  0x1d   :  { %2892 = vmatprep.subr.bf16.mxu0 %v4175_v29  ;;  %v4268_v20 = vld [vmem:[%s6156_s0 + $0xb0] ss:$72 sps:$4 sm:$0xff]   ;;  %v4256_v21 = vld [vmem:[%s6155_s1 + $0x534] ss:$8 sps:$4 sm:$0xff]   ;;  %v4275_v22 = vld [vmem:[%s6156_s0 + $0x124] ss:$72 sps:$4 sm:$0xff]  }
  0x1e   :  { %v4280_v23 = vld [vmem:[%s6156_s0 + $0x144] ss:$72 sps:$4 sm:$0xff]   ;;  %v4251_v24 = vld [vmem:[%s6155_s1 + $0x130] ss:$8 sps:$4 sm:$0xff]   ;;  %v4259_v28 = vld [vmem:[%s6155_s1 + $0x140] ss:$8 sps:$4 sm:$0xff]  }
  0x1f   :  { %2489 = vmatpush1.bf16.msra.mxu1 %v4177_v30  ;;  %v4254_v25 = vld [vmem:[%s6155_s1 + $0x530] ss:$8 sps:$4 sm:$0xff]   ;;  %v4261_v26 = vld [vmem:[%s6155_s1 + $0x144] ss:$8 sps:$4 sm:$0xff]   ;;  %v4264_v29 = vld [vmem:[%s6155_s1 + $0x540] ss:$8 sps:$4 sm:$0xff]  }
  0x20   :  { %2893 = vmatpush1.bf16.msra.mxu0 %v4178_v31  ;;  %2490 = vmatprep.subr.bf16.mxu1 %v4179_v32  ;;  %v4266_v27 = vld [vmem:[%s6155_s1 + $0x544] ss:$8 sps:$4 sm:$0xff]   ;;  %v4271_v30 = vld [vmem:[%s6155_s1 + $0x154] ss:$8 sps:$4 sm:$0xff]   ;;  %v4285_v31 = vld [vmem:[%s6156_s0 + $0x120] ss:$72 sps:$4 sm:$0xff]  }
  0x21   :  { %2894 = vmatprep.subr.bf16.mxu0 %v4181_v33  ;;  %v4286_v32 = vld [vmem:[%s6156_s0 + $0x140] ss:$72 sps:$4 sm:$0xff]   ;;  %v4274_v33 = vld [vmem:[%s6155_s1 + $0x554] ss:$8 sps:$4 sm:$0xff]   ;;  %v4287_v48 = vld [vmem:[%s6155_s1 + $0x170] ss:$8 sps:$4 sm:$0xff]  }
  0x22   :  { %v4302_v51 = vld [vmem:[%s6155_s1 + $0x584] ss:$8 sps:$4 sm:$0xff]  }
  0x23   :  { %2491 = vmatpush1.bf16.msra.mxu1 %v4183_v34  ;;  %v4293_v34 = vld [vmem:[%s6156_s0 + $0x1b4] ss:$72 sps:$4 sm:$0xff]  }
  0x24   :  { %2895 = vmatpush1.bf16.msra.mxu0 %v4184_v35  ;;  %2492 = vmatprep.subr.bf16.mxu1 %v4185_v36  ;;  %v4298_v35 = vld [vmem:[%s6156_s0 + $0x1d4] ss:$72 sps:$4 sm:$0xff]   ;;  %v4269_v36 = vld [vmem:[%s6155_s1 + $0x150] ss:$8 sps:$4 sm:$0xff]  }
  0x25   :  { %2896 = vmatprep.subr.bf16.mxu0 %v4187_v37  ;;  %v4272_v37 = vld [vmem:[%s6155_s1 + $0x550] ss:$8 sps:$4 sm:$0xff]  }
  0x27   :  { %2493 = vmatpush1.bf16.msra.mxu1 %v4189_v38  ;;  %v4279_v38 = vld [vmem:[%s6155_s1 + $0x164] ss:$8 sps:$4 sm:$0xff]  }
  0x28   :  { %2897 = vmatpush1.bf16.msra.mxu0 %v4190_v39  ;;  %2494 = vmatprep.subr.bf16.mxu1 %v4191_v40  ;;  %v4284_v39 = vld [vmem:[%s6155_s1 + $0x564] ss:$8 sps:$4 sm:$0xff]   ;;  %v4277_v40 = vld [vmem:[%s6155_s1 + $0x160] ss:$8 sps:$4 sm:$0xff]  }
  0x29   :  { %2898 = vmatprep.subr.bf16.mxu0 %v4193_v41  ;;  %v4282_v41 = vld [vmem:[%s6155_s1 + $0x560] ss:$8 sps:$4 sm:$0xff]  }
  0x2b   :  { %2495 = vmatpush1.bf16.msra.mxu1 %v4195_v42  ;;  %v4289_v42 = vld [vmem:[%s6155_s1 + $0x174] ss:$8 sps:$4 sm:$0xff]  }
  0x2c   :  { %2899 = vmatpush1.bf16.msra.mxu0 %v4196_v43  ;;  %2496 = vmatprep.subr.bf16.mxu1 %v4197_v44  ;;  %v4303_v43 = vld [vmem:[%s6156_s0 + $0x1b0] ss:$72 sps:$4 sm:$0xff]  }
  0x2d   :  { %2900 = vmatprep.subr.bf16.mxu0 %v4199_v45  ;;  %v4304_v44 = vld [vmem:[%s6156_s0 + $0x1d0] ss:$72 sps:$4 sm:$0xff]   ;;  %v4292_v45 = vld [vmem:[%s6155_s1 + $0x574] ss:$8 sps:$4 sm:$0xff]  }
  0x2f   :  { %2497 = vmatpush1.bf16.msra.mxu1 %v4201_v46  ;;  %v4311_v46 = vld [vmem:[%s6156_s0 + $0x244] ss:$72 sps:$4 sm:$0xff]  }
  0x30   :  { %2901 = vmatpush1.bf16.msra.mxu0 %v4202_v47  ;;  %2498 = vmatprep.subr.bf16.mxu1 %v4203_v49  ;;  %v4316_v47 = vld [vmem:[%s6156_s0 + $0x264] ss:$72 sps:$4 sm:$0xff]   ;;  %v4290_v49 = vld [vmem:[%s6155_s1 + $0x570] ss:$8 sps:$4 sm:$0xff]  }
  0x31   :  { %2902 = vmatprep.subr.bf16.mxu0 %v4205_v50  ;;  %v4297_v50 = vld [vmem:[%s6155_s1 + $0x184] ss:$8 sps:$4 sm:$0xff]  }
  0x33   :  { %2499 = vmatpush1.bf16.msra.mxu1 %v4207_v52  ;;  %v4295_v52 = vld [vmem:[%s6155_s1 + $0x180] ss:$8 sps:$4 sm:$0xff]  }
  0x34   :  { %2903 = vmatpush1.bf16.msra.mxu0 %v4208_v53  ;;  %2500 = vmatprep.subr.bf16.mxu1 %v4209_v54  ;;  %v4321_v53 = vld [vmem:[%s6156_s0 + $0x240] ss:$72 sps:$4 sm:$0xff]  }
  0x35   :  { %2904 = vmatprep.subr.bf16.mxu0 %v4211_v55  ;;  %v4322_v54 = vld [vmem:[%s6156_s0 + $0x260] ss:$72 sps:$4 sm:$0xff]  }
  0x36   :  { %v4300_v55 = vld [vmem:[%s6155_s1 + $0x580] ss:$8 sps:$4 sm:$0xff]  }
  0x37   :  { %2501 = vmatpush1.bf16.msra.mxu1 %v4213_v56  ;;  %v4307_v56 = vld [vmem:[%s6155_s1 + $0x194] ss:$8 sps:$4 sm:$0xff]  }
  0x38   :  { %2905 = vmatpush1.bf16.msra.mxu0 %v4214_v57  ;;  %2502 = vmatprep.subr.bf16.mxu1 %v4215_v58  ;;  %v4310_v57 = vld [vmem:[%s6155_s1 + $0x594] ss:$8 sps:$4 sm:$0xff]  }
  0x39   :  { %2906 = vmatprep.subr.bf16.mxu0 %v4217_v59  ;;  %v4329_v58 = vld [vmem:[%s6156_s0 + $0x2d4] ss:$72 sps:$4 sm:$0xff]   ;;  %v4305_v59 = vld [vmem:[%s6155_s1 + $0x190] ss:$8 sps:$4 sm:$0xff]  }
  0x3b   :  { %2503 = vmatpush1.bf16.msra.mxu1 %v4219_v60  ;;  %v4334_v60 = vld [vmem:[%s6156_s0 + $0x2f4] ss:$72 sps:$4 sm:$0xff]  }
  0x3c   :  { %2907 = vmatpush1.bf16.msra.mxu0 %v4220_v61  ;;  %2504 = vmatprep.subr.bf16.mxu1 %v4221_v62  ;;  %v4308_v61 = vld [vmem:[%s6155_s1 + $0x590] ss:$8 sps:$4 sm:$0xff]   ;;  %v4315_v62 = vld [vmem:[%s6155_s1 + $0x1a4] ss:$8 sps:$4 sm:$0xff]  }
  0x3d   :  { %2908 = vmatprep.subr.bf16.mxu0 %v4223_v63  ;;  %v4320_v63 = vld [vmem:[%s6155_s1 + $0x5a4] ss:$8 sps:$4 sm:$0xff]  }
  0x3f   :  { %2505 = vmatpush1.bf16.msra.mxu1 %v4225_v0  ;;  %v4339_v0 = vld [vmem:[%s6156_s0 + $0x2d0] ss:$72 sps:$4 sm:$0xff]  }
  0x40   :  { %2909 = vmatpush1.bf16.msra.mxu0 %v4226_v1  ;;  %2575 = vmatprep.subr.bf16.mxu1 %v4232_v2  ;;  %v4340_v1 = vld [vmem:[%s6156_s0 + $0x2f0] ss:$72 sps:$4 sm:$0xff]   ;;  %v122_v2 = vld [vmem:[%s6156_s0 + $0x360] sm:$0xff] }
  0x41   :  { %2979 = vmatprep.subr.bf16.mxu0 %v4238_v4  ;;  %v4313_v4 = vld [vmem:[%s6155_s1 + $0x1a0] ss:$8 sps:$4 sm:$0xff]  }
  0x42   :  { %2507 = vmatmul.mubr.bf16.vlgmr.msra.gmra.mrb[0].mxu1 %v4227_v3  ;;  %v126_v3 = vld [vmem:[%s6156_s0 + $0x380] sm:$0xff] }
  0x43   :  { %2911 = vmatmul.mubr.bf16.vlgmr.msra.gmra.mrb[0].mxu0 %v4233_v6  ;;  %2576 = vmatpush1.bf16.msra.mxu1 %v4230_v5  ;;  %v4318_v5 = vld [vmem:[%s6155_s1 + $0x5a0] ss:$8 sps:$4 sm:$0xff]   ;;  %v4325_v6 = vld [vmem:[%s6155_s1 + $0x1b4] ss:$8 sps:$4 sm:$0xff]  }
  0x44   :  { %2980 = vmatpush1.bf16.msra.mxu0 %v4236_v7  ;;  %2577 = vmatprep.subr.bf16.mxu1 %v4241_v8  ;;  %v4328_v7 = vld [vmem:[%s6155_s1 + $0x5b4] ss:$8 sps:$4 sm:$0xff]   ;;  %v3548_v8 = vcombine.high %v122_v2, %v122_v2 }
  0x45   :  { %2981 = vmatprep.subr.bf16.mxu0 %v4244_v9  ;;  %2516 = vmatprep.mubr.bf16.mxu1 %v4257_v10  ;;  %v3556_v9 = vcombine.high %v126_v3, %v126_v3  ;;  %v4323_v10 = vld [vmem:[%s6155_s1 + $0x1b0] ss:$8 sps:$4 sm:$0xff]  }
  0x46   :  { %2920 = vmatprep.mubr.bf16.mxu0 %v4262_v11  ;;  %v4326_v11 = vld [vmem:[%s6155_s1 + $0x5b0] ss:$8 sps:$4 sm:$0xff]  }
  0x47   :  { %2578 = vmatpush1.bf16.msra.mxu1 %v4239_v12  ;;  %v4333_v12 = vld [vmem:[%s6155_s1 + $0x1c4] ss:$8 sps:$4 sm:$0xff]  }
  0x48   :  { %2982 = vmatpush1.bf16.msra.mxu0 %v4242_v13  ;;  %2579 = vmatprep.subr.bf16.mxu1 %v4247_v14  ;;  %v4338_v13 = vld [vmem:[%s6155_s1 + $0x5c4] ss:$8 sps:$4 sm:$0xff]   ;;  %v4331_v14 = vld [vmem:[%s6155_s1 + $0x1c0] ss:$8 sps:$4 sm:$0xff]  }
  0x49   :  { %2983 = vmatprep.subr.bf16.mxu0 %v4250_v15  ;;  %v3547_v15 = vcombine.low %v122_v2, %v122_v2  ;;  %v4405_v2 = vld [vmem:[%s6155_s1 + $0x250] ss:$8 sps:$4 sm:$0xff]  }
  0x4a   :  { %2517 = vmatmul.mubr.bf16.gmra.mrb[4].mxu1 %v4267_v19  ;;  %v4346_v19 = vld [vmem:[%s6155_s1 + $0x5d4] ss:$8 sps:$4 sm:$0xff]  }
  0x4b   :  { %2921 = vmatmul.mubr.bf16.gmra.mrb[4].mxu0 %v4268_v20  ;;  %2580 = vmatpush1.bf16.msra.mxu1 %v4245_v16  ;;  %v3555_v16 = vcombine.low %v126_v3, %v126_v3  ;;  %v4365_v20 = vld [vmem:[%s6156_s0 + $0xc] ss:$72 sps:$4 sm:$0xff]   ;;  %v4408_v3 = vld [vmem:[%s6155_s1 + $0x650] ss:$8 sps:$4 sm:$0xff]  }
  0x4c   :  { %2984 = vmatpush1.bf16.msra.mxu0 %v4248_v17  ;;  %2581 = vmatprep.subr.bf16.mxu1 %v4253_v18  ;;  %v4336_v17 = vld [vmem:[%s6155_s1 + $0x5c0] ss:$8 sps:$4 sm:$0xff]   ;;  %v4343_v18 = vld [vmem:[%s6155_s1 + $0x1d4] ss:$8 sps:$4 sm:$0xff]  }
  0x4d   :  { %2985 = vmatprep.subr.bf16.mxu0 %v4256_v21  ;;  %2526 = vmatprep.mubr.bf16.mxu1 %v4275_v22  ;;  %v4371_v21 = vld [vmem:[%s6156_s0 + $0x2c] ss:$72 sps:$4 sm:$0xff]   ;;  %v4341_v22 = vld [vmem:[%s6155_s1 + $0x1d0] ss:$8 sps:$4 sm:$0xff]  }
  0x4e   :  { %2930 = vmatprep.mubr.bf16.mxu0 %v4280_v23  ;;  %v4344_v23 = vld [vmem:[%s6155_s1 + $0x5d0] ss:$8 sps:$4 sm:$0xff]  }
  0x4f   :  { %2582 = vmatpush1.bf16.msra.mxu1 %v4251_v24  ;;  %v4350_v24 = vld [vmem:[%s6155_s1 + $0x1e4] ss:$8 sps:$4 sm:$0xff]  }
  0x50   :  { %2986 = vmatpush1.bf16.msra.mxu0 %v4254_v25  ;;  %2583 = vmatprep.subr.bf16.mxu1 %v4261_v26  ;;  %v4354_v25 = vld [vmem:[%s6155_s1 + $0x5e4] ss:$8 sps:$4 sm:$0xff]   ;;  %v4348_v26 = vld [vmem:[%s6155_s1 + $0x1e0] ss:$8 sps:$4 sm:$0xff]  }
  0x51   :  { %2987 = vmatprep.subr.bf16.mxu0 %v4266_v27  ;;  %v4352_v27 = vld [vmem:[%s6155_s1 + $0x5e0] ss:$8 sps:$4 sm:$0xff]  }
  0x52   :  { %2527 = vmatmul.mubr.bf16.gmra.mrb[8].mxu1 %v4285_v31  ;;  %v4360_v31 = vld [vmem:[%s6155_s1 + $0x5f0] ss:$8 sps:$4 sm:$0xff]  }
  0x53   :  { %2931 = vmatmul.mubr.bf16.gmra.mrb[8].mxu0 %v4286_v32  ;;  %2584 = vmatpush1.bf16.msra.mxu1 %v4259_v28  ;;  %v4359_v28 = vld [vmem:[%s6155_s1 + $0x1f4] ss:$8 sps:$4 sm:$0xff]   ;;  %v4368_v32 = vld [vmem:[%s6155_s1 + $0x204] ss:$8 sps:$4 sm:$0xff]  }
  0x54   :  { %2988 = vmatpush1.bf16.msra.mxu0 %v4264_v29  ;;  %2585 = vmatprep.subr.bf16.mxu1 %v4271_v30  ;;  %v4362_v29 = vld [vmem:[%s6155_s1 + $0x5f4] ss:$8 sps:$4 sm:$0xff]   ;;  %v4357_v30 = vld [vmem:[%s6155_s1 + $0x1f0] ss:$8 sps:$4 sm:$0xff]  }
  0x55   :  { %2989 = vmatprep.subr.bf16.mxu0 %v4274_v33  ;;  %2536 = vmatprep.mubr.bf16.mxu1 %v4293_v34  ;;  %v4374_v33 = vld [vmem:[%s6155_s1 + $0x604] ss:$8 sps:$4 sm:$0xff]   ;;  %v4363_v34 = vld [vmem:[%s6156_s0 + $0x8] ss:$72 sps:$4 sm:$0xff]  }
  0x56   :  { %2940 = vmatprep.mubr.bf16.mxu0 %v4298_v35  ;;  %v4366_v35 = vld [vmem:[%s6155_s1 + $0x200] ss:$8 sps:$4 sm:$0xff]  }
  0x57   :  { %2586 = vmatpush1.bf16.msra.mxu1 %v4269_v36  ;;  %v4369_v36 = vld [vmem:[%s6156_s0 + $0x28] ss:$72 sps:$4 sm:$0xff]  }
  0x58   :  { %2990 = vmatpush1.bf16.msra.mxu0 %v4272_v37  ;;  %2587 = vmatprep.subr.bf16.mxu1 %v4279_v38  ;;  %v4372_v37 = vld [vmem:[%s6155_s1 + $0x600] ss:$8 sps:$4 sm:$0xff]   ;;  %v4377_v38 = vld [vmem:[%s6155_s1 + $0x214] ss:$8 sps:$4 sm:$0xff]  }
  0x59   :  { %2991 = vmatprep.subr.bf16.mxu0 %v4284_v39  ;;  %v4380_v39 = vld [vmem:[%s6155_s1 + $0x614] ss:$8 sps:$4 sm:$0xff]  }
  0x5a   :  { %2537 = vmatmul.mubr.bf16.gmra.mrb[12].mxu1 %v4303_v43  ;;  %v4378_v43 = vld [vmem:[%s6155_s1 + $0x610] ss:$8 sps:$4 sm:$0xff]  }
  0x5b   :  { %2941 = vmatmul.mubr.bf16.gmra.mrb[12].mxu0 %v4304_v44  ;;  %2588 = vmatpush1.bf16.msra.mxu1 %v4277_v40  ;;  %v4393_v40 = vld [vmem:[%s6156_s0 + $0x9c] ss:$72 sps:$4 sm:$0xff]  }
  0x5c   :  { %2992 = vmatpush1.bf16.msra.mxu0 %v4282_v41  ;;  %2589 = vmatprep.subr.bf16.mxu1 %v4289_v42  ;;  %v4398_v41 = vld [vmem:[%s6156_s0 + $0xbc] ss:$72 sps:$4 sm:$0xff]   ;;  %v4375_v42 = vld [vmem:[%s6155_s1 + $0x210] ss:$8 sps:$4 sm:$0xff]  }
  0x5d   :  { %2993 = vmatprep.subr.bf16.mxu0 %v4292_v45  ;;  %2546 = vmatprep.mubr.bf16.mxu1 %v4311_v46  ;;  %v4383_v44 = vld [vmem:[%s6155_s1 + $0x224] ss:$8 sps:$4 sm:$0xff]   ;;  %v4381_v46 = vld [vmem:[%s6155_s1 + $0x220] ss:$8 sps:$4 sm:$0xff]  }
  0x5e   :  { %2950 = vmatprep.mubr.bf16.mxu0 %v4316_v47  ;;  %v4386_v45 = vld [vmem:[%s6155_s1 + $0x624] ss:$8 sps:$4 sm:$0xff]   ;;  %v4403_v47 = vld [vmem:[%s6156_s0 + $0x98] ss:$72 sps:$4 sm:$0xff]  }
  0x5f   :  { %2590 = vmatpush1.bf16.msra.mxu1 %v4287_v48  ;;  %v4404_v48 = vld [vmem:[%s6156_s0 + $0xb8] ss:$72 sps:$4 sm:$0xff]  }
  0x60   :  { %2994 = vmatpush1.bf16.msra.mxu0 %v4290_v49  ;;  %2591 = vmatprep.subr.bf16.mxu1 %v4297_v50  ;;  %v4384_v49 = vld [vmem:[%s6155_s1 + $0x620] ss:$8 sps:$4 sm:$0xff]   ;;  %v4389_v50 = vld [vmem:[%s6155_s1 + $0x234] ss:$8 sps:$4 sm:$0xff]  }
  0x61   :  { %2995 = vmatprep.subr.bf16.mxu0 %v4302_v51  ;;  %v4392_v51 = vld [vmem:[%s6155_s1 + $0x634] ss:$8 sps:$4 sm:$0xff]  }
  0x62   :  { %2547 = vmatmul.mubr.bf16.gmra.mrb[16].mxu1 %v4321_v53  ;;  %v4416_v53 = vld [vmem:[%s6156_s0 + $0x14c] ss:$72 sps:$4 sm:$0xff]  }
  0x63   :  { %2951 = vmatmul.mubr.bf16.gmra.mrb[16].mxu0 %v4322_v54  ;;  %2592 = vmatpush1.bf16.msra.mxu1 %v4295_v52  ;;  %v4411_v52 = vld [vmem:[%s6156_s0 + $0x12c] ss:$72 sps:$4 sm:$0xff]   ;;  %v4387_v54 = vld [vmem:[%s6155_s1 + $0x230] ss:$8 sps:$4 sm:$0xff]  }
  0x64   :  { %2996 = vmatpush1.bf16.msra.mxu0 %v4300_v55  ;;  %2593 = vmatprep.subr.bf16.mxu1 %v4307_v56  ;;  %v4390_v55 = vld [vmem:[%s6155_s1 + $0x630] ss:$8 sps:$4 sm:$0xff]   ;;  %v4397_v56 = vld [vmem:[%s6155_s1 + $0x244] ss:$8 sps:$4 sm:$0xff]  }
  0x65   :  { %2997 = vmatprep.subr.bf16.mxu0 %v4310_v57  ;;  %2556 = vmatprep.mubr.bf16.mxu1 %v4329_v58  ;;  %v4402_v57 = vld [vmem:[%s6155_s1 + $0x644] ss:$8 sps:$4 sm:$0xff]   ;;  %v4395_v58 = vld [vmem:[%s6155_s1 + $0x240] ss:$8 sps:$4 sm:$0xff]  }
  0x66   :  { %2960 = vmatprep.mubr.bf16.mxu0 %v4334_v60  ;;  %v4422_v60 = vld [vmem:[%s6156_s0 + $0x148] ss:$72 sps:$4 sm:$0xff]  }
  0x67   :  { %2594 = vmatpush1.bf16.msra.mxu1 %v4305_v59  ;;  %v4421_v59 = vld [vmem:[%s6156_s0 + $0x128] ss:$72 sps:$4 sm:$0xff]  }
  0x68   :  { %2998 = vmatpush1.bf16.msra.mxu0 %v4308_v61  ;;  %2595 = vmatprep.subr.bf16.mxu1 %v4315_v62  ;;  %v4400_v61 = vld [vmem:[%s6155_s1 + $0x640] ss:$8 sps:$4 sm:$0xff]   ;;  %v4407_v62 = vld [vmem:[%s6155_s1 + $0x254] ss:$8 sps:$4 sm:$0xff]  }
  0x69   :  { %2999 = vmatprep.subr.bf16.mxu0 %v4320_v63  ;;  %v4410_v63 = vld [vmem:[%s6155_s1 + $0x654] ss:$8 sps:$4 sm:$0xff]  }
  0x6a   :  { %2557 = vmatmul.mubr.bf16.gmra.mrb[20].mxu1 %v4339_v0  ;;  %v4429_v0 = vld [vmem:[%s6156_s0 + $0x1bc] ss:$72 sps:$4 sm:$0xff]  }
  0x6b   :  { %2961 = vmatmul.mubr.bf16.gmra.mrb[20].mxu0 %v4340_v1  ;;  %2596 = vmatpush1.bf16.msra.mxu1 %v4313_v4  ;;  %v4434_v1 = vld [vmem:[%s6156_s0 + $0x1dc] ss:$72 sps:$4 sm:$0xff]  }
  0x6c   :  { %3000 = vmatpush1.bf16.msra.mxu0 %v4318_v5  ;;  %2597 = vmatprep.subr.bf16.mxu1 %v4325_v6  ;;  %v4415_v4 = vld [vmem:[%s6155_s1 + $0x264] ss:$8 sps:$4 sm:$0xff]   ;;  %v4413_v6 = vld [vmem:[%s6155_s1 + $0x260] ss:$8 sps:$4 sm:$0xff]  }
  0x6d   :  { %3001 = vmatprep.subr.bf16.mxu0 %v4328_v7  ;;  %2566 = vmatprep.mubr.bf16.mxu1 %v3548_v8  ;;  %v4420_v5 = vld [vmem:[%s6155_s1 + $0x664] ss:$8 sps:$4 sm:$0xff]   ;;  %v4439_v7 = vld [vmem:[%s6156_s0 + $0x1b8] ss:$72 sps:$4 sm:$0xff]  }
  0x6e   :  { %2970 = vmatprep.mubr.bf16.mxu0 %v3556_v9  ;;  %v4440_v8 = vld [vmem:[%s6156_s0 + $0x1d8] ss:$72 sps:$4 sm:$0xff]  }
  0x6f   :  { %2598 = vmatpush1.bf16.msra.mxu1 %v4323_v10  ;;  %v4418_v9 = vld [vmem:[%s6155_s1 + $0x660] ss:$8 sps:$4 sm:$0xff]   ;;  %v4425_v10 = vld [vmem:[%s6155_s1 + $0x274] ss:$8 sps:$4 sm:$0xff]  }
  0x70   :  { %3002 = vmatpush1.bf16.msra.mxu0 %v4326_v11  ;;  %2599 = vmatprep.subr.bf16.mxu1 %v4333_v12  ;;  %v4428_v11 = vld [vmem:[%s6155_s1 + $0x674] ss:$8 sps:$4 sm:$0xff]  }
  0x71   :  { %3003 = vmatprep.subr.bf16.mxu0 %v4338_v13  ;;  %v4447_v12 = vld [vmem:[%s6156_s0 + $0x24c] ss:$72 sps:$4 sm:$0xff]  }
  0x72   :  { %2567 = vmatmul.mubr.bf16.gmra.mrb[24].mxu1 %v3547_v15  ;;  %v4452_v13 = vld [vmem:[%s6156_s0 + $0x26c] ss:$72 sps:$4 sm:$0xff]   ;;  %v4426_v15 = vld [vmem:[%s6155_s1 + $0x670] ss:$8 sps:$4 sm:$0xff]  }
  0x73   :  { %2971 = vmatmul.mubr.bf16.gmra.mrb[24].mxu0 %v3555_v16  ;;  %2600 = vmatpush1.bf16.msra.mxu1 %v4331_v14  ;;  %v4423_v14 = vld [vmem:[%s6155_s1 + $0x270] ss:$8 sps:$4 sm:$0xff]   ;;  %v4433_v16 = vld [vmem:[%s6155_s1 + $0x284] ss:$8 sps:$4 sm:$0xff]  }
  0x74   :  { %3004 = vmatpush1.bf16.msra.mxu0 %v4336_v17  ;;  %2601 = vmatprep.subr.bf16.mxu1 %v4343_v18  ;;  %v4438_v17 = vld [vmem:[%s6155_s1 + $0x684] ss:$8 sps:$4 sm:$0xff]   ;;  %v4431_v18 = vld [vmem:[%s6155_s1 + $0x280] ss:$8 sps:$4 sm:$0xff]  }
  0x75   :  { %3005 = vmatprep.subr.bf16.mxu0 %v4346_v19  ;;  %2607 = vmatprep.mubr.bf16.mxu1 %v4365_v20  ;;  %v4436_v19 = vld [vmem:[%s6155_s1 + $0x680] ss:$8 sps:$4 sm:$0xff]  }
  0x76   :  { %3011 = vmatprep.mubr.bf16.mxu0 %v4371_v21  ;;  %v4457_v20 = vld [vmem:[%s6156_s0 + $0x248] ss:$72 sps:$4 sm:$0xff]  }
  0x77   :  { %2602 = vmatpush1.bf16.msra.mxu1 %v4341_v22  ;;  %v4458_v21 = vld [vmem:[%s6156_s0 + $0x268] ss:$72 sps:$4 sm:$0xff]   ;;  %v4443_v22 = vld [vmem:[%s6155_s1 + $0x294] ss:$8 sps:$4 sm:$0xff]  }
  0x78   :  { %3006 = vmatpush1.bf16.msra.mxu0 %v4344_v23  ;;  %2603 = vmatprep.subr.bf16.mxu1 %v4350_v24  ;;  %v4446_v23 = vld [vmem:[%s6155_s1 + $0x694] ss:$8 sps:$4 sm:$0xff]  }
  0x79   :  { %3007 = vmatprep.subr.bf16.mxu0 %v4354_v25  ;;  %v4465_v24 = vld [vmem:[%s6156_s0 + $0x2dc] ss:$72 sps:$4 sm:$0xff]  }
  0x7a   :  { %v4470_v25 = vld [vmem:[%s6156_s0 + $0x2fc] ss:$72 sps:$4 sm:$0xff]  }
  0x7b   :  { %2604 = vmatpush1.bf16.msra.mxu1 %v4348_v26  ;;  %v4441_v26 = vld [vmem:[%s6155_s1 + $0x290] ss:$8 sps:$4 sm:$0xff]  }
  0x7c   :  { %3008 = vmatpush1.bf16.msra.mxu0 %v4352_v27  ;;  %2605 = vmatprep.subr.bf16.mxu1 %v4359_v28  ;;  %v4444_v27 = vld [vmem:[%s6155_s1 + $0x690] ss:$8 sps:$4 sm:$0xff]   ;;  %v4451_v28 = vld [vmem:[%s6155_s1 + $0x2a4] ss:$8 sps:$4 sm:$0xff]  }
  0x7d   :  { %3009 = vmatprep.subr.bf16.mxu0 %v4362_v29  ;;  %v4456_v29 = vld [vmem:[%s6155_s1 + $0x6a4] ss:$8 sps:$4 sm:$0xff]  }
  0x7f   :  { %2606 = vmatpush1.bf16.msra.mxu1 %v4357_v30  ;;  %v4449_v30 = vld [vmem:[%s6155_s1 + $0x2a0] ss:$8 sps:$4 sm:$0xff]  }
  0x80   :  { %3010 = vmatpush1.bf16.msra.mxu0 %v4360_v31  ;;  %2676 = vmatprep.subr.bf16.mxu1 %v4368_v32  ;;  %v4454_v31 = vld [vmem:[%s6155_s1 + $0x6a0] ss:$8 sps:$4 sm:$0xff]  }
  0x81   :  { %3080 = vmatprep.subr.bf16.mxu0 %v4374_v33  ;;  %v4475_v32 = vld [vmem:[%s6156_s0 + $0x2d8] ss:$72 sps:$4 sm:$0xff]  }
  0x82   :  { %2608 = vmatmul.mubr.bf16.vlgmr.msra.gmra.mrb[0].mxu1 %v4363_v34  ;;  %v4476_v33 = vld [vmem:[%s6156_s0 + $0x2f8] ss:$72 sps:$4 sm:$0xff]   ;;  %v123_v34 = vld [vmem:[%s6156_s0 + $0x368] sm:$0xff] }
  0x83   :  { %3012 = vmatmul.mubr.bf16.vlgmr.msra.gmra.mrb[0].mxu0 %v4369_v36  ;;  %2677 = vmatpush1.bf16.msra.mxu1 %v4366_v35  ;;  %v127_v35 = vld [vmem:[%s6156_s0 + $0x388] sm:$0xff]  ;;  %v4461_v36 = vld [vmem:[%s6155_s1 + $0x2b4] ss:$8 sps:$4 sm:$0xff]  }
  0x84   :  { %3081 = vmatpush1.bf16.msra.mxu0 %v4372_v37  ;;  %2678 = vmatprep.subr.bf16.mxu1 %v4377_v38  ;;  %v4464_v37 = vld [vmem:[%s6155_s1 + $0x6b4] ss:$8 sps:$4 sm:$0xff]   ;;  %v3550_v38 = vcombine.high %v123_v34, %v123_v34 }
  0x85   :  { %3082 = vmatprep.subr.bf16.mxu0 %v4380_v39  ;;  %2617 = vmatprep.mubr.bf16.mxu1 %v4393_v40  ;;  %v3558_v39 = vcombine.high %v127_v35, %v127_v35  ;;  %v4459_v40 = vld [vmem:[%s6155_s1 + $0x2b0] ss:$8 sps:$4 sm:$0xff]  }
  0x86   :  { %3021 = vmatprep.mubr.bf16.mxu0 %v4398_v41  ;;  %v4462_v41 = vld [vmem:[%s6155_s1 + $0x6b0] ss:$8 sps:$4 sm:$0xff]  }
  0x87   :  { %2679 = vmatpush1.bf16.msra.mxu1 %v4375_v42  ;;  %v4469_v42 = vld [vmem:[%s6155_s1 + $0x2c4] ss:$8 sps:$4 sm:$0xff]  }
  0x88   :  { %3083 = vmatpush1.bf16.msra.mxu0 %v4378_v43  ;;  %2680 = vmatprep.subr.bf16.mxu1 %v4383_v44  ;;  %v4474_v43 = vld [vmem:[%s6155_s1 + $0x6c4] ss:$8 sps:$4 sm:$0xff]   ;;  %v4467_v44 = vld [vmem:[%s6155_s1 + $0x2c0] ss:$8 sps:$4 sm:$0xff]  }
  0x89   :  { %3084 = vmatprep.subr.bf16.mxu0 %v4386_v45  ;;  %v3549_v45 = vcombine.low %v123_v34, %v123_v34  ;;  %v4554_v34 = vld [vmem:[%s6155_s1 + $0x364] ss:$8 sps:$4 sm:$0xff]  }
  0x8a   :  { %2618 = vmatmul.mubr.bf16.gmra.mrb[4].mxu1 %v4403_v47  ;;  %v4472_v47 = vld [vmem:[%s6155_s1 + $0x6c0] ss:$8 sps:$4 sm:$0xff]  }
  0x8b   :  { %3022 = vmatmul.mubr.bf16.gmra.mrb[4].mxu0 %v4404_v48  ;;  %2681 = vmatpush1.bf16.msra.mxu1 %v4381_v46  ;;  %v3557_v46 = vcombine.low %v127_v35, %v127_v35  ;;  %v4479_v48 = vld [vmem:[%s6155_s1 + $0x2d4] ss:$8 sps:$4 sm:$0xff]   ;;  %v4558_v35 = vld [vmem:[%s6155_s1 + $0x764] ss:$8 sps:$4 sm:$0xff]  }
  0x8c   :  { %3085 = vmatpush1.bf16.msra.mxu0 %v4384_v49  ;;  %2682 = vmatprep.subr.bf16.mxu1 %v4389_v50  ;;  %v4482_v49 = vld [vmem:[%s6155_s1 + $0x6d4] ss:$8 sps:$4 sm:$0xff]  }
  0x8d   :  { %3086 = vmatprep.subr.bf16.mxu0 %v4392_v51  ;;  %2627 = vmatprep.mubr.bf16.mxu1 %v4411_v52  ;;  %v4501_v50 = vld [vmem:[%s6156_s0 + $0x14] ss:$72 sps:$4 sm:$0xff]   ;;  %v4477_v52 = vld [vmem:[%s6155_s1 + $0x2d0] ss:$8 sps:$4 sm:$0xff]  }
  0x8e   :  { %3031 = vmatprep.mubr.bf16.mxu0 %v4416_v53  ;;  %v4507_v51 = vld [vmem:[%s6156_s0 + $0x34] ss:$72 sps:$4 sm:$0xff]   ;;  %v4480_v53 = vld [vmem:[%s6155_s1 + $0x6d0] ss:$8 sps:$4 sm:$0xff]  }
  0x8f   :  { %2683 = vmatpush1.bf16.msra.mxu1 %v4387_v54  ;;  %v4486_v54 = vld [vmem:[%s6155_s1 + $0x2e4] ss:$8 sps:$4 sm:$0xff]  }
  0x90   :  { %3087 = vmatpush1.bf16.msra.mxu0 %v4390_v55  ;;  %2684 = vmatprep.subr.bf16.mxu1 %v4397_v56  ;;  %v4490_v55 = vld [vmem:[%s6155_s1 + $0x6e4] ss:$8 sps:$4 sm:$0xff]   ;;  %v4484_v56 = vld [vmem:[%s6155_s1 + $0x2e0] ss:$8 sps:$4 sm:$0xff]  }
  0x91   :  { %3088 = vmatprep.subr.bf16.mxu0 %v4402_v57  ;;  %v4488_v57 = vld [vmem:[%s6155_s1 + $0x6e0] ss:$8 sps:$4 sm:$0xff]  }
  0x92   :  { %2628 = vmatmul.mubr.bf16.gmra.mrb[8].mxu1 %v4421_v59  ;;  %v4498_v59 = vld [vmem:[%s6155_s1 + $0x6f4] ss:$8 sps:$4 sm:$0xff]  }
  0x93   :  { %3032 = vmatmul.mubr.bf16.gmra.mrb[8].mxu0 %v4422_v60  ;;  %2685 = vmatpush1.bf16.msra.mxu1 %v4395_v58  ;;  %v4495_v58 = vld [vmem:[%s6155_s1 + $0x2f4] ss:$8 sps:$4 sm:$0xff]   ;;  %v4493_v60 = vld [vmem:[%s6155_s1 + $0x2f0] ss:$8 sps:$4 sm:$0xff]  }
  0x94   :  { %3089 = vmatpush1.bf16.msra.mxu0 %v4400_v61  ;;  %2686 = vmatprep.subr.bf16.mxu1 %v4407_v62  ;;  %v4496_v61 = vld [vmem:[%s6155_s1 + $0x6f0] ss:$8 sps:$4 sm:$0xff]   ;;  %v4504_v62 = vld [vmem:[%s6155_s1 + $0x304] ss:$8 sps:$4 sm:$0xff]  }
  0x95   :  { %3090 = vmatprep.subr.bf16.mxu0 %v4410_v63  ;;  %2637 = vmatprep.mubr.bf16.mxu1 %v4429_v0  ;;  %v4510_v63 = vld [vmem:[%s6155_s1 + $0x704] ss:$8 sps:$4 sm:$0xff]   ;;  %v4499_v0 = vld [vmem:[%s6156_s0 + $0x10] ss:$72 sps:$4 sm:$0xff]  }
  0x96   :  { %3041 = vmatprep.mubr.bf16.mxu0 %v4434_v1  ;;  %v4502_v1 = vld [vmem:[%s6155_s1 + $0x300] ss:$8 sps:$4 sm:$0xff]  }
  0x97   :  { %2687 = vmatpush1.bf16.msra.mxu1 %v4405_v2  ;;  %v4505_v2 = vld [vmem:[%s6156_s0 + $0x30] ss:$72 sps:$4 sm:$0xff]  }
  0x98   :  { %3091 = vmatpush1.bf16.msra.mxu0 %v4408_v3  ;;  %2688 = vmatprep.subr.bf16.mxu1 %v4415_v4  ;;  %v4508_v3 = vld [vmem:[%s6155_s1 + $0x700] ss:$8 sps:$4 sm:$0xff]   ;;  %v4513_v4 = vld [vmem:[%s6155_s1 + $0x314] ss:$8 sps:$4 sm:$0xff]  }
  0x99   :  { %3092 = vmatprep.subr.bf16.mxu0 %v4420_v5  ;;  %v4516_v5 = vld [vmem:[%s6155_s1 + $0x714] ss:$8 sps:$4 sm:$0xff]  }
  0x9a   :  { %2638 = vmatmul.mubr.bf16.gmra.mrb[12].mxu1 %v4439_v7  ;;  %v4531_v7 = vld [vmem:[%s6156_s0 + $0xc4] ss:$72 sps:$4 sm:$0xff]  }
  0x9b   :  { %3042 = vmatmul.mubr.bf16.gmra.mrb[12].mxu0 %v4440_v8  ;;  %2689 = vmatpush1.bf16.msra.mxu1 %v4413_v6  ;;  %v4529_v6 = vld [vmem:[%s6156_s0 + $0xa4] ss:$72 sps:$4 sm:$0xff]   ;;  %v4511_v8 = vld [vmem:[%s6155_s1 + $0x310] ss:$8 sps:$4 sm:$0xff]  }
  0x9c   :  { %3093 = vmatpush1.bf16.msra.mxu0 %v4418_v9  ;;  %2690 = vmatprep.subr.bf16.mxu1 %v4425_v10  ;;  %v4514_v9 = vld [vmem:[%s6155_s1 + $0x710] ss:$8 sps:$4 sm:$0xff]   ;;  %v4519_v10 = vld [vmem:[%s6155_s1 + $0x324] ss:$8 sps:$4 sm:$0xff]  }
  0x9d   :  { %3094 = vmatprep.subr.bf16.mxu0 %v4428_v11  ;;  %2647 = vmatprep.mubr.bf16.mxu1 %v4447_v12  ;;  %v4522_v11 = vld [vmem:[%s6155_s1 + $0x724] ss:$8 sps:$4 sm:$0xff]   ;;  %v4517_v12 = vld [vmem:[%s6155_s1 + $0x320] ss:$8 sps:$4 sm:$0xff]  }
  0x9e   :  { %3051 = vmatprep.mubr.bf16.mxu0 %v4452_v13  ;;  %v4533_v13 = vld [vmem:[%s6156_s0 + $0xa0] ss:$72 sps:$4 sm:$0xff]  }
  0x9f   :  { %2691 = vmatpush1.bf16.msra.mxu1 %v4423_v14  ;;  %v4537_v14 = vld [vmem:[%s6156_s0 + $0xc0] ss:$72 sps:$4 sm:$0xff]  }
  0xa0   :  { %3095 = vmatpush1.bf16.msra.mxu0 %v4426_v15  ;;  %2692 = vmatprep.subr.bf16.mxu1 %v4433_v16  ;;  %v4520_v15 = vld [vmem:[%s6155_s1 + $0x720] ss:$8 sps:$4 sm:$0xff]   ;;  %v4525_v16 = vld [vmem:[%s6155_s1 + $0x334] ss:$8 sps:$4 sm:$0xff]  }
  0xa1   :  { %3096 = vmatprep.subr.bf16.mxu0 %v4438_v17  ;;  %v4528_v17 = vld [vmem:[%s6155_s1 + $0x734] ss:$8 sps:$4 sm:$0xff]  }
  0xa2   :  { %2648 = vmatmul.mubr.bf16.gmra.mrb[16].mxu1 %v4457_v20  ;;  %v4523_v20 = vld [vmem:[%s6155_s1 + $0x330] ss:$8 sps:$4 sm:$0xff]  }
  0xa3   :  { %3052 = vmatmul.mubr.bf16.gmra.mrb[16].mxu0 %v4458_v21  ;;  %2693 = vmatpush1.bf16.msra.mxu1 %v4431_v18  ;;  %v4547_v18 = vld [vmem:[%s6156_s0 + $0x134] ss:$72 sps:$4 sm:$0xff]   ;;  %v4526_v21 = vld [vmem:[%s6155_s1 + $0x730] ss:$8 sps:$4 sm:$0xff]  }
  0xa4   :  { %3097 = vmatpush1.bf16.msra.mxu0 %v4436_v19  ;;  %2694 = vmatprep.subr.bf16.mxu1 %v4443_v22  ;;  %v4549_v19 = vld [vmem:[%s6156_s0 + $0x154] ss:$72 sps:$4 sm:$0xff]   ;;  %v4536_v22 = vld [vmem:[%s6155_s1 + $0x344] ss:$8 sps:$4 sm:$0xff]  }
  0xa5   :  { %3098 = vmatprep.subr.bf16.mxu0 %v4446_v23  ;;  %2657 = vmatprep.mubr.bf16.mxu1 %v4465_v24  ;;  %v4540_v23 = vld [vmem:[%s6155_s1 + $0x744] ss:$8 sps:$4 sm:$0xff]   ;;  %v4534_v24 = vld [vmem:[%s6155_s1 + $0x340] ss:$8 sps:$4 sm:$0xff]  }
  0xa6   :  { %3061 = vmatprep.mubr.bf16.mxu0 %v4470_v25  ;;  %v4551_v25 = vld [vmem:[%s6156_s0 + $0x130] ss:$72 sps:$4 sm:$0xff]  }
  0xa7   :  { %2695 = vmatpush1.bf16.msra.mxu1 %v4441_v26  ;;  %v4555_v26 = vld [vmem:[%s6156_s0 + $0x150] ss:$72 sps:$4 sm:$0xff]  }
  0xa8   :  { %3099 = vmatpush1.bf16.msra.mxu0 %v4444_v27  ;;  %2696 = vmatprep.subr.bf16.mxu1 %v4451_v28  ;;  %v4538_v27 = vld [vmem:[%s6155_s1 + $0x740] ss:$8 sps:$4 sm:$0xff]   ;;  %v4543_v28 = vld [vmem:[%s6155_s1 + $0x354] ss:$8 sps:$4 sm:$0xff]  }
  0xa9   :  { %3100 = vmatprep.subr.bf16.mxu0 %v4456_v29  ;;  %v4546_v29 = vld [vmem:[%s6155_s1 + $0x754] ss:$8 sps:$4 sm:$0xff]  }
  0xaa   :  { %2658 = vmatmul.mubr.bf16.gmra.mrb[20].mxu1 %v4475_v32  ;;  %v4541_v32 = vld [vmem:[%s6155_s1 + $0x350] ss:$8 sps:$4 sm:$0xff]  }
  0xab   :  { %3062 = vmatmul.mubr.bf16.gmra.mrb[20].mxu0 %v4476_v33  ;;  %2697 = vmatpush1.bf16.msra.mxu1 %v4449_v30  ;;  %v4565_v30 = vld [vmem:[%s6156_s0 + $0x1c4] ss:$72 sps:$4 sm:$0xff]   ;;  %v4544_v33 = vld [vmem:[%s6155_s1 + $0x750] ss:$8 sps:$4 sm:$0xff]  }
  0xac   :  { %3101 = vmatpush1.bf16.msra.mxu0 %v4454_v31  ;;  %2698 = vmatprep.subr.bf16.mxu1 %v4461_v36  ;;  %v4567_v31 = vld [vmem:[%s6156_s0 + $0x1e4] ss:$72 sps:$4 sm:$0xff]   ;;  %v4552_v36 = vld [vmem:[%s6155_s1 + $0x360] ss:$8 sps:$4 sm:$0xff]  }
  0xad   :  { %3102 = vmatprep.subr.bf16.mxu0 %v4464_v37  ;;  %2667 = vmatprep.mubr.bf16.mxu1 %v3550_v38  ;;  %v4569_v37 = vld [vmem:[%s6156_s0 + $0x1c0] ss:$72 sps:$4 sm:$0xff]  }
  0xae   :  { %3071 = vmatprep.mubr.bf16.mxu0 %v3558_v39  ;;  %v4573_v38 = vld [vmem:[%s6156_s0 + $0x1e0] ss:$72 sps:$4 sm:$0xff]  }
  0xaf   :  { %2699 = vmatpush1.bf16.msra.mxu1 %v4459_v40  ;;  %v4556_v39 = vld [vmem:[%s6155_s1 + $0x760] ss:$8 sps:$4 sm:$0xff]   ;;  %v4561_v40 = vld [vmem:[%s6155_s1 + $0x374] ss:$8 sps:$4 sm:$0xff]  }
  0xb0   :  { %3103 = vmatpush1.bf16.msra.mxu0 %v4462_v41  ;;  %2700 = vmatprep.subr.bf16.mxu1 %v4469_v42  ;;  %v4564_v41 = vld [vmem:[%s6155_s1 + $0x774] ss:$8 sps:$4 sm:$0xff]  }
  0xb1   :  { %3104 = vmatprep.subr.bf16.mxu0 %v4474_v43  ;;  %v4583_v42 = vld [vmem:[%s6156_s0 + $0x254] ss:$72 sps:$4 sm:$0xff]  }
  0xb2   :  { %2668 = vmatmul.mubr.bf16.gmra.mrb[24].mxu1 %v3549_v45  ;;  %v4585_v43 = vld [vmem:[%s6156_s0 + $0x274] ss:$72 sps:$4 sm:$0xff]   ;;  %v4562_v45 = vld [vmem:[%s6155_s1 + $0x770] ss:$8 sps:$4 sm:$0xff]  }
  0xb3   :  { %3072 = vmatmul.mubr.bf16.gmra.mrb[24].mxu0 %v3557_v46  ;;  %2701 = vmatpush1.bf16.msra.mxu1 %v4467_v44  ;;  %v4559_v44 = vld [vmem:[%s6155_s1 + $0x370] ss:$8 sps:$4 sm:$0xff]   ;;  %v4572_v46 = vld [vmem:[%s6155_s1 + $0x384] ss:$8 sps:$4 sm:$0xff]  }
  0xb4   :  { %3105 = vmatpush1.bf16.msra.mxu0 %v4472_v47  ;;  %2702 = vmatprep.subr.bf16.mxu1 %v4479_v48  ;;  %v4576_v47 = vld [vmem:[%s6155_s1 + $0x784] ss:$8 sps:$4 sm:$0xff]   ;;  %v4570_v48 = vld [vmem:[%s6155_s1 + $0x380] ss:$8 sps:$4 sm:$0xff]  }
  0xb5   :  { %3106 = vmatprep.subr.bf16.mxu0 %v4482_v49  ;;  %2708 = vmatprep.mubr.bf16.mxu1 %v4501_v50  ;;  %v4587_v49 = vld [vmem:[%s6156_s0 + $0x250] ss:$72 sps:$4 sm:$0xff]  }
  0xb6   :  { %3112 = vmatprep.mubr.bf16.mxu0 %v4507_v51  ;;  %v4591_v50 = vld [vmem:[%s6156_s0 + $0x270] ss:$72 sps:$4 sm:$0xff]   ;;  %v4574_v51 = vld [vmem:[%s6155_s1 + $0x780] ss:$8 sps:$4 sm:$0xff]  }
  0xb7   :  { %2703 = vmatpush1.bf16.msra.mxu1 %v4477_v52  ;;  %v4579_v52 = vld [vmem:[%s6155_s1 + $0x394] ss:$8 sps:$4 sm:$0xff]  }
  0xb8   :  { %3107 = vmatpush1.bf16.msra.mxu0 %v4480_v53  ;;  %2704 = vmatprep.subr.bf16.mxu1 %v4486_v54  ;;  %v4582_v53 = vld [vmem:[%s6155_s1 + $0x794] ss:$8 sps:$4 sm:$0xff]   ;;  %v4601_v54 = vld [vmem:[%s6156_s0 + $0x2e4] ss:$72 sps:$4 sm:$0xff]  }
  0xb9   :  { %3108 = vmatprep.subr.bf16.mxu0 %v4490_v55  ;;  %v4577_v55 = vld [vmem:[%s6155_s1 + $0x390] ss:$8 sps:$4 sm:$0xff]  }
  0xbb   :  { %2705 = vmatpush1.bf16.msra.mxu1 %v4484_v56  ;;  %v4603_v56 = vld [vmem:[%s6156_s0 + $0x304] ss:$72 sps:$4 sm:$0xff]  }
  0xbc   :  { %3109 = vmatpush1.bf16.msra.mxu0 %v4488_v57  ;;  %2706 = vmatprep.subr.bf16.mxu1 %v4495_v58  ;;  %v4580_v57 = vld [vmem:[%s6155_s1 + $0x790] ss:$8 sps:$4 sm:$0xff]   ;;  %v4590_v58 = vld [vmem:[%s6155_s1 + $0x3a4] ss:$8 sps:$4 sm:$0xff]  }
  0xbd   :  { %3110 = vmatprep.subr.bf16.mxu0 %v4498_v59  ;;  %v4594_v59 = vld [vmem:[%s6155_s1 + $0x7a4] ss:$8 sps:$4 sm:$0xff]  }
  0xbf   :  { %2707 = vmatpush1.bf16.msra.mxu1 %v4493_v60  ;;  %v4605_v60 = vld [vmem:[%s6156_s0 + $0x2e0] ss:$72 sps:$4 sm:$0xff]  }
  0xc0   :  { %3111 = vmatpush1.bf16.msra.mxu0 %v4496_v61  ;;  %2777 = vmatprep.subr.bf16.mxu1 %v4504_v62  ;;  %v4609_v61 = vld [vmem:[%s6156_s0 + $0x300] ss:$72 sps:$4 sm:$0xff]  }
  0xc1   :  { %3181 = vmatprep.subr.bf16.mxu0 %v4510_v63  ;;  %v4588_v62 = vld [vmem:[%s6155_s1 + $0x3a0] ss:$8 sps:$4 sm:$0xff]   ;;  %v124_v63 = vld [vmem:[%s6156_s0 + $0x370] sm:$0xff] }
  0xc2   :  { %2709 = vmatmul.mubr.bf16.vlgmr.msra.gmra.mrb[0].mxu1 %v4499_v0  ;;  %v128_v0 = vld [vmem:[%s6156_s0 + $0x390] sm:$0xff] }
  0xc3   :  { %3113 = vmatmul.mubr.bf16.vlgmr.msra.gmra.mrb[0].mxu0 %v4505_v2  ;;  %2778 = vmatpush1.bf16.msra.mxu1 %v4502_v1  ;;  %v4592_v1 = vld [vmem:[%s6155_s1 + $0x7a0] ss:$8 sps:$4 sm:$0xff]   ;;  %v4597_v2 = vld [vmem:[%s6155_s1 + $0x3b4] ss:$8 sps:$4 sm:$0xff]  }
  0xc4   :  { %3182 = vmatpush1.bf16.msra.mxu0 %v4508_v3  ;;  %2779 = vmatprep.subr.bf16.mxu1 %v4513_v4  ;;  %v4600_v3 = vld [vmem:[%s6155_s1 + $0x7b4] ss:$8 sps:$4 sm:$0xff]   ;;  %v3552_v4 = vcombine.high %v124_v63, %v124_v63 }
  0xc5   :  { %3183 = vmatprep.subr.bf16.mxu0 %v4516_v5  ;;  %2718 = vmatprep.mubr.bf16.mxu1 %v4529_v6  ;;  %v3560_v5 = vcombine.high %v128_v0, %v128_v0  ;;  %v4595_v6 = vld [vmem:[%s6155_s1 + $0x3b0] ss:$8 sps:$4 sm:$0xff]  }
  0xc6   :  { %3122 = vmatprep.mubr.bf16.mxu0 %v4531_v7  ;;  %v4598_v7 = vld [vmem:[%s6155_s1 + $0x7b0] ss:$8 sps:$4 sm:$0xff]  }
  0xc7   :  { %2780 = vmatpush1.bf16.msra.mxu1 %v4511_v8  ;;  %v4608_v8 = vld [vmem:[%s6155_s1 + $0x3c4] ss:$8 sps:$4 sm:$0xff]  }
  0xc8   :  { %3184 = vmatpush1.bf16.msra.mxu0 %v4514_v9  ;;  %2781 = vmatprep.subr.bf16.mxu1 %v4519_v10  ;;  %v4612_v9 = vld [vmem:[%s6155_s1 + $0x7c4] ss:$8 sps:$4 sm:$0xff]   ;;  %v4606_v10 = vld [vmem:[%s6155_s1 + $0x3c0] ss:$8 sps:$4 sm:$0xff]  }
  0xc9   :  { %3185 = vmatprep.subr.bf16.mxu0 %v4522_v11  ;;  %v3551_v11 = vcombine.low %v124_v63, %v124_v63  ;;  %v4689_v63 = vld [vmem:[%s6155_s1 + $0x880] ss:$8 sps:$4 sm:$0xff]  }
  0xca   :  { %2719 = vmatmul.mubr.bf16.gmra.mrb[4].mxu1 %v4533_v13  ;;  %v4610_v13 = vld [vmem:[%s6155_s1 + $0x7c0] ss:$8 sps:$4 sm:$0xff]  }
  0xcb   :  { %3123 = vmatmul.mubr.bf16.gmra.mrb[4].mxu0 %v4537_v14  ;;  %2782 = vmatpush1.bf16.msra.mxu1 %v4517_v12  ;;  %v3559_v12 = vcombine.low %v128_v0, %v128_v0  ;;  %v4615_v14 = vld [vmem:[%s6155_s1 + $0x3d4] ss:$8 sps:$4 sm:$0xff]  }
  0xcc   :  { %3186 = vmatpush1.bf16.msra.mxu0 %v4520_v15  ;;  %2783 = vmatprep.subr.bf16.mxu1 %v4525_v16  ;;  %v4618_v15 = vld [vmem:[%s6155_s1 + $0x7d4] ss:$8 sps:$4 sm:$0xff]  }
  0xcd   :  { %3187 = vmatprep.subr.bf16.mxu0 %v4528_v17  ;;  %2728 = vmatprep.mubr.bf16.mxu1 %v4547_v18  ;;  %v4637_v16 = vld [vmem:[%s6156_s0 + $0x1c] ss:$72 sps:$4 sm:$0xff]   ;;  %v4613_v18 = vld [vmem:[%s6155_s1 + $0x3d0] ss:$8 sps:$4 sm:$0xff]  }
  0xce   :  { %3132 = vmatprep.mubr.bf16.mxu0 %v4549_v19  ;;  %v4640_v17 = vld [vmem:[%s6156_s0 + $0x3c] ss:$72 sps:$4 sm:$0xff]   ;;  %v4616_v19 = vld [vmem:[%s6155_s1 + $0x7d0] ss:$8 sps:$4 sm:$0xff]  }
  0xcf   :  { %2784 = vmatpush1.bf16.msra.mxu1 %v4523_v20  ;;  %v4624_v20 = vld [vmem:[%s6155_s1 + $0x3e4] ss:$8 sps:$4 sm:$0xff]   ;;  %v4694_v0 = vld [vmem:[%s6155_s1 + $0x894] ss:$8 sps:$4 sm:$0xff]  }
  0xd0   :  { %3188 = vmatpush1.bf16.msra.mxu0 %v4526_v21  ;;  %2785 = vmatprep.subr.bf16.mxu1 %v4536_v22  ;;  %v4628_v21 = vld [vmem:[%s6155_s1 + $0x7e4] ss:$8 sps:$4 sm:$0xff]   ;;  %v4622_v22 = vld [vmem:[%s6155_s1 + $0x3e0] ss:$8 sps:$4 sm:$0xff]  }
  0xd1   :  { %3189 = vmatprep.subr.bf16.mxu0 %v4540_v23  ;;  %v4626_v23 = vld [vmem:[%s6155_s1 + $0x7e0] ss:$8 sps:$4 sm:$0xff]  }
  0xd2   :  { %2729 = vmatmul.mubr.bf16.gmra.mrb[8].mxu1 %v4551_v25  ;;  %v4634_v25 = vld [vmem:[%s6155_s1 + $0x7f4] ss:$8 sps:$4 sm:$0xff]  }
  0xd3   :  { %3133 = vmatmul.mubr.bf16.gmra.mrb[8].mxu0 %v4555_v26  ;;  %2786 = vmatpush1.bf16.msra.mxu1 %v4534_v24  ;;  %v4631_v24 = vld [vmem:[%s6155_s1 + $0x3f4] ss:$8 sps:$4 sm:$0xff]   ;;  %v4629_v26 = vld [vmem:[%s6155_s1 + $0x3f0] ss:$8 sps:$4 sm:$0xff]  }
  0xd4   :  { %3190 = vmatpush1.bf16.msra.mxu0 %v4538_v27  ;;  %2787 = vmatprep.subr.bf16.mxu1 %v4543_v28  ;;  %v4632_v27 = vld [vmem:[%s6155_s1 + $0x7f0] ss:$8 sps:$4 sm:$0xff]   ;;  %v4643_v28 = vld [vmem:[%s6155_s1 + $0x804] ss:$8 sps:$4 sm:$0xff]  }
  0xd5   :  { %3191 = vmatprep.subr.bf16.mxu0 %v4546_v29  ;;  %2738 = vmatprep.mubr.bf16.mxu1 %v4565_v30  ;;  %v4635_v29 = vld [vmem:[%s6156_s0 + $0x18] ss:$72 sps:$4 sm:$0xff]  }
  0xd6   :  { %3142 = vmatprep.mubr.bf16.mxu0 %v4567_v31  ;;  %v4638_v30 = vld [vmem:[%s6156_s0 + $0x38] ss:$72 sps:$4 sm:$0xff]  }
  0xd7   :  { %2788 = vmatpush1.bf16.msra.mxu1 %v4541_v32  ;;  %v4641_v31 = vld [vmem:[%s6155_s1 + $0x800] ss:$8 sps:$4 sm:$0xff]   ;;  %v4646_v32 = vld [vmem:[%s6155_s1 + $0x814] ss:$8 sps:$4 sm:$0xff]  }
  0xd8   :  { %3192 = vmatpush1.bf16.msra.mxu0 %v4544_v33  ;;  %2789 = vmatprep.subr.bf16.mxu1 %v4554_v34  ;;  %v4647_v33 = vld [vmem:[%s6156_s0 + $0xac] ss:$72 sps:$4 sm:$0xff]  }
  0xd9   :  { %3193 = vmatprep.subr.bf16.mxu0 %v4558_v35  ;;  %v4649_v34 = vld [vmem:[%s6156_s0 + $0xcc] ss:$72 sps:$4 sm:$0xff]   ;;  %v4644_v35 = vld [vmem:[%s6155_s1 + $0x810] ss:$8 sps:$4 sm:$0xff]  }
  0xda   :  { %2739 = vmatmul.mubr.bf16.gmra.mrb[12].mxu1 %v4569_v37  ;;  %v4651_v37 = vld [vmem:[%s6156_s0 + $0xa8] ss:$72 sps:$4 sm:$0xff]  }
  0xdb   :  { %3143 = vmatmul.mubr.bf16.gmra.mrb[12].mxu0 %v4573_v38  ;;  %2790 = vmatpush1.bf16.msra.mxu1 %v4552_v36  ;;  %v4655_v36 = vld [vmem:[%s6155_s1 + $0x824] ss:$8 sps:$4 sm:$0xff]   ;;  %v4652_v38 = vld [vmem:[%s6156_s0 + $0xc8] ss:$72 sps:$4 sm:$0xff]  }
  0xdc   :  { %3194 = vmatpush1.bf16.msra.mxu0 %v4556_v39  ;;  %2791 = vmatprep.subr.bf16.mxu1 %v4561_v40  ;;  %v4653_v39 = vld [vmem:[%s6155_s1 + $0x820] ss:$8 sps:$4 sm:$0xff]   ;;  %v4658_v40 = vld [vmem:[%s6155_s1 + $0x834] ss:$8 sps:$4 sm:$0xff]  }
  0xdd   :  { %3195 = vmatprep.subr.bf16.mxu0 %v4564_v41  ;;  %2748 = vmatprep.mubr.bf16.mxu1 %v4583_v42  ;;  %v4659_v41 = vld [vmem:[%s6156_s0 + $0x13c] ss:$72 sps:$4 sm:$0xff]  }
  0xde   :  { %3152 = vmatprep.mubr.bf16.mxu0 %v4585_v43  ;;  %v4661_v42 = vld [vmem:[%s6156_s0 + $0x15c] ss:$72 sps:$4 sm:$0xff]   ;;  %v4656_v43 = vld [vmem:[%s6155_s1 + $0x830] ss:$8 sps:$4 sm:$0xff]  }
  0xdf   :  { %2792 = vmatpush1.bf16.msra.mxu1 %v4559_v44  ;;  %v4667_v44 = vld [vmem:[%s6155_s1 + $0x844] ss:$8 sps:$4 sm:$0xff]  }
  0xe0   :  { %3196 = vmatpush1.bf16.msra.mxu0 %v4562_v45  ;;  %2793 = vmatprep.subr.bf16.mxu1 %v4572_v46  ;;  %v4663_v45 = vld [vmem:[%s6156_s0 + $0x138] ss:$72 sps:$4 sm:$0xff]  }
  0xe1   :  { %3197 = vmatprep.subr.bf16.mxu0 %v4576_v47  ;;  %v4664_v46 = vld [vmem:[%s6156_s0 + $0x158] ss:$72 sps:$4 sm:$0xff]  }
  0xe2   :  { %2749 = vmatmul.mubr.bf16.gmra.mrb[16].mxu1 %v4587_v49  ;;  %v4665_v47 = vld [vmem:[%s6155_s1 + $0x840] ss:$8 sps:$4 sm:$0xff]   ;;  %v4671_v49 = vld [vmem:[%s6156_s0 + $0x1cc] ss:$72 sps:$4 sm:$0xff]  }
  0xe3   :  { %3153 = vmatmul.mubr.bf16.gmra.mrb[16].mxu0 %v4591_v50  ;;  %2794 = vmatpush1.bf16.msra.mxu1 %v4570_v48  ;;  %v4670_v48 = vld [vmem:[%s6155_s1 + $0x854] ss:$8 sps:$4 sm:$0xff]  }
  0xe4   :  { %3198 = vmatpush1.bf16.msra.mxu0 %v4574_v51  ;;  %2795 = vmatprep.subr.bf16.mxu1 %v4579_v52  ;;  %v4673_v50 = vld [vmem:[%s6156_s0 + $0x1ec] ss:$72 sps:$4 sm:$0xff]   ;;  %v4668_v51 = vld [vmem:[%s6155_s1 + $0x850] ss:$8 sps:$4 sm:$0xff]  }
  0xe5   :  { %3199 = vmatprep.subr.bf16.mxu0 %v4582_v53  ;;  %2758 = vmatprep.mubr.bf16.mxu1 %v4601_v54  ;;  %v4679_v52 = vld [vmem:[%s6155_s1 + $0x864] ss:$8 sps:$4 sm:$0xff]   ;;  %v4675_v53 = vld [vmem:[%s6156_s0 + $0x1c8] ss:$72 sps:$4 sm:$0xff]  }
  0xe6   :  { %3162 = vmatprep.mubr.bf16.mxu0 %v4603_v56  ;;  %v4676_v54 = vld [vmem:[%s6156_s0 + $0x1e8] ss:$72 sps:$4 sm:$0xff]   ;;  %v4682_v56 = vld [vmem:[%s6155_s1 + $0x874] ss:$8 sps:$4 sm:$0xff]  }
  0xe7   :  { %2796 = vmatpush1.bf16.msra.mxu1 %v4577_v55  ;;  %v4677_v55 = vld [vmem:[%s6155_s1 + $0x860] ss:$8 sps:$4 sm:$0xff]  }
  0xe8   :  { %3200 = vmatpush1.bf16.msra.mxu0 %v4580_v57  ;;  %2797 = vmatprep.subr.bf16.mxu1 %v4590_v58  ;;  %v4683_v57 = vld [vmem:[%s6156_s0 + $0x25c] ss:$72 sps:$4 sm:$0xff]  }
  0xe9   :  { %3201 = vmatprep.subr.bf16.mxu0 %v4594_v59  ;;  %v4685_v58 = vld [vmem:[%s6156_s0 + $0x27c] ss:$72 sps:$4 sm:$0xff]   ;;  %v4680_v59 = vld [vmem:[%s6155_s1 + $0x870] ss:$8 sps:$4 sm:$0xff]  }
  0xea   :  { %2759 = vmatmul.mubr.bf16.gmra.mrb[20].mxu1 %v4605_v60  ;;  %v4691_v60 = vld [vmem:[%s6155_s1 + $0x884] ss:$8 sps:$4 sm:$0xff]  }
  0xeb   :  { %3163 = vmatmul.mubr.bf16.gmra.mrb[20].mxu0 %v4609_v61  ;;  %2798 = vmatpush1.bf16.msra.mxu1 %v4588_v62  ;;  %v4687_v61 = vld [vmem:[%s6156_s0 + $0x258] ss:$72 sps:$4 sm:$0xff]  }
  0xec   :  { %3202 = vmatpush1.bf16.msra.mxu0 %v4592_v1  ;;  %2799 = vmatprep.subr.bf16.mxu1 %v4597_v2  ;;  %v4688_v62 = vld [vmem:[%s6156_s0 + $0x278] ss:$72 sps:$4 sm:$0xff]   ;;  %v4695_v1 = vld [vmem:[%s6156_s0 + $0x2ec] ss:$72 sps:$4 sm:$0xff]  }
  0xed   :  { %3203 = vmatprep.subr.bf16.mxu0 %v4600_v3  ;;  %2768 = vmatprep.mubr.bf16.mxu1 %v3552_v4  ;;  %v4697_v2 = vld [vmem:[%s6156_s0 + $0x30c] ss:$72 sps:$4 sm:$0xff]   ;;  %v4692_v3 = vld [vmem:[%s6155_s1 + $0x890] ss:$8 sps:$4 sm:$0xff]  }
  0xee   :  { %3172 = vmatprep.mubr.bf16.mxu0 %v3560_v5  ;;  %v4703_v4 = vld [vmem:[%s6155_s1 + $0x8a4] ss:$8 sps:$4 sm:$0xff]   ;;  %v4699_v5 = vld [vmem:[%s6156_s0 + $0x2e8] ss:$72 sps:$4 sm:$0xff]  }
  0xef   :  { %2800 = vmatpush1.bf16.msra.mxu1 %v4595_v6  ;;  %v4700_v6 = vld [vmem:[%s6156_s0 + $0x308] ss:$72 sps:$4 sm:$0xff]  }
  0xf0   :  { %3204 = vmatpush1.bf16.msra.mxu0 %v4598_v7  ;;  %2801 = vmatprep.subr.bf16.mxu1 %v4608_v8  ;;  %v125_v7 = vld [vmem:[%s6156_s0 + $0x378] sm:$0xff] }
  0xf1   :  { %3205 = vmatprep.subr.bf16.mxu0 %v4612_v9  ;;  %v129_v8 = vld [vmem:[%s6156_s0 + $0x398] sm:$0xff]  ;;  %v4701_v9 = vld [vmem:[%s6155_s1 + $0x8a0] ss:$8 sps:$4 sm:$0xff]  }
  0xf2   :  { %2769 = vmatmul.mubr.bf16.gmra.mrb[24].mxu1 %v3551_v11  ;;  %v3554_v11 = vcombine.high %v125_v7, %v125_v7 }
  0xf3   :  { %3173 = vmatmul.mubr.bf16.gmra.mrb[24].mxu0 %v3559_v12  ;;  %2802 = vmatpush1.bf16.msra.mxu1 %v4606_v10  ;;  %v4706_v10 = vld [vmem:[%s6155_s1 + $0x8b4] ss:$8 sps:$4 sm:$0xff]   ;;  %v3562_v12 = vcombine.high %v129_v8, %v129_v8 }
  0xf4   :  { %3206 = vmatpush1.bf16.msra.mxu0 %v4610_v13  ;;  %2803 = vmatprep.subr.bf16.mxu1 %v4615_v14  ;;  %v4704_v13 = vld [vmem:[%s6155_s1 + $0x8b0] ss:$8 sps:$4 sm:$0xff]   ;;  %v4713_v14 = vld [vmem:[%s6155_s1 + $0x8c4] ss:$8 sps:$4 sm:$0xff]  }
  0xf5   :  { %3207 = vmatprep.subr.bf16.mxu0 %v4618_v15  ;;  %2809 = vmatprep.mubr.bf16.mxu1 %v4637_v16  ;;  %v3553_v15 = vcombine.low %v125_v7, %v125_v7  ;;  %v3561_v16 = vcombine.low %v129_v8, %v129_v8 }
  0xf6   :  { %3213 = vmatprep.mubr.bf16.mxu0 %v4640_v17  ;;  %v4711_v17 = vld [vmem:[%s6155_s1 + $0x8c0] ss:$8 sps:$4 sm:$0xff]  }
  0xf7   :  { %2804 = vmatpush1.bf16.msra.mxu1 %v4613_v18  ;;  %v4716_v18 = vld [vmem:[%s6155_s1 + $0x8d4] ss:$8 sps:$4 sm:$0xff]  }
  0xf8   :  { %3208 = vmatpush1.bf16.msra.mxu0 %v4616_v19  ;;  %2805 = vmatprep.subr.bf16.mxu1 %v4624_v20  ;;  %v4725_v19 = vld [vmem:[%s6156_s0 + $0x44] ss:$72 sps:$4 sm:$0xff]  }
  0xf9   :  { %3209 = vmatprep.subr.bf16.mxu0 %v4628_v21  ;;  %v4728_v20 = vld [vmem:[%s6156_s0 + $0x284] ss:$72 sps:$4 sm:$0xff]   ;;  %v4714_v21 = vld [vmem:[%s6155_s1 + $0x8d0] ss:$8 sps:$4 sm:$0xff]  }
  0xfb   :  { %2806 = vmatpush1.bf16.msra.mxu1 %v4622_v22  ;;  %v4719_v22 = vld [vmem:[%s6155_s1 + $0x8e4] ss:$8 sps:$4 sm:$0xff]  }
  0xfc   :  { %3210 = vmatpush1.bf16.msra.mxu0 %v4626_v23  ;;  %2807 = vmatprep.subr.bf16.mxu1 %v4631_v24  ;;  %v4717_v23 = vld [vmem:[%s6155_s1 + $0x8e0] ss:$8 sps:$4 sm:$0xff]   ;;  %v4722_v24 = vld [vmem:[%s6155_s1 + $0x8f4] ss:$8 sps:$4 sm:$0xff]  }
  0xfd   :  { %3211 = vmatprep.subr.bf16.mxu0 %v4634_v25  ;;  %v4720_v25 = vld [vmem:[%s6155_s1 + $0x8f0] ss:$8 sps:$4 sm:$0xff]  }
  0xff   :  { %2808 = vmatpush1.bf16.msra.mxu1 %v4629_v26  ;;  %v4723_v26 = vld [vmem:[%s6156_s0 + $0x40] ss:$72 sps:$4 sm:$0xff]  }
 0x100   :  { %3212 = vmatpush1.bf16.msra.mxu0 %v4632_v27  ;;  %3853 = vmatprep.subr.bf16.mxu1 %v4643_v28  ;;  %v4726_v27 = vld [vmem:[%s6156_s0 + $0x280] ss:$72 sps:$4 sm:$0xff]  }
 0x101   :  { %3282 = vmatprep.subr.bf16.mxu0 %v4643_v28  ;;  %v4729_v28 = vld [vmem:[%s6156_s0 + $0xd4] ss:$72 sps:$4 sm:$0xff]  }
 0x102   :  { %2810 = vmatmul.mubr.bf16.vlgmr.msra.gmra.mrb[0].mxu1 %v4635_v29  ;;  %v4731_v29 = vld [vmem:[%s6156_s0 + $0x314] ss:$72 sps:$4 sm:$0xff]  }
 0x103   :  { %3214 = vmatmul.mubr.bf16.vlgmr.msra.gmra.mrb[0].mxu0 %v4638_v30  ;;  %3869 = vmatpush1.bf16.msra.mxu1 %v4641_v31  ;;  %v130_v30 = vld [vmem:[%s6156_s0 + $0x3a0] sm:$0xff] }
 0x104   :  { %3283 = vmatpush1.bf16.msra.mxu0 %v4641_v31  ;;  %3854 = vmatprep.subr.bf16.mxu1 %v4646_v32  ;;  %v4733_v31 = vld [vmem:[%s6156_s0 + $0xd0] ss:$72 sps:$4 sm:$0xff]  }
 0x105   :  { %3284 = vmatprep.subr.bf16.mxu0 %v4646_v32  ;;  %2819 = vmatprep.mubr.bf16.mxu1 %v4647_v33  ;;  %v4734_v32 = vld [vmem:[%s6156_s0 + $0x310] ss:$72 sps:$4 sm:$0xff]   ;;  %v4735_v33 = vld [vmem:[%s6156_s0 + $0x164] ss:$72 sps:$4 sm:$0xff]  }
 0x106   :  { %3223 = vmatprep.mubr.bf16.mxu0 %v4649_v34  ;;  %v3564_v34 = vcombine.high %v130_v30, %v130_v30 }
 0x107   :  { %3870 = vmatpush1.bf16.msra.mxu1 %v4644_v35 }
 0x108   :  { %3285 = vmatpush1.bf16.msra.mxu0 %v4644_v35  ;;  %3855 = vmatprep.subr.bf16.mxu1 %v4655_v36  ;;  %v4738_v35 = vld [vmem:[%s6156_s0 + $0x160] ss:$72 sps:$4 sm:$0xff]  }
 0x109   :  { %3286 = vmatprep.subr.bf16.mxu0 %v4655_v36  ;;  %v3563_v36 = vcombine.low %v130_v30, %v130_v30 }
 0x10a   :  { %2820 = vmatmul.mubr.bf16.gmra.mrb[4].mxu1 %v4651_v37  ;;  %v4740_v37 = vld [vmem:[%s6156_s0 + $0x1f4] ss:$72 sps:$4 sm:$0xff]  }
 0x10b   :  { %3224 = vmatmul.mubr.bf16.gmra.mrb[4].mxu0 %v4652_v38  ;;  %3871 = vmatpush1.bf16.msra.mxu1 %v4653_v39  ;;  %v4742_v38 = vld [vmem:[%s6156_s0 + $0x1f0] ss:$72 sps:$4 sm:$0xff]  }
 0x10c   :  { %3287 = vmatpush1.bf16.msra.mxu0 %v4653_v39  ;;  %3856 = vmatprep.subr.bf16.mxu1 %v4658_v40 }
 0x10d   :  { %3288 = vmatprep.subr.bf16.mxu0 %v4658_v40  ;;  %2829 = vmatprep.mubr.bf16.mxu1 %v4659_v41 }
 0x10e   :  { %3233 = vmatprep.mubr.bf16.mxu0 %v4661_v42 }
 0x10f   :  { %3872 = vmatpush1.bf16.msra.mxu1 %v4656_v43 }
 0x110   :  { %3289 = vmatpush1.bf16.msra.mxu0 %v4656_v43  ;;  %3857 = vmatprep.subr.bf16.mxu1 %v4667_v44 }
 0x111   :  { %3290 = vmatprep.subr.bf16.mxu0 %v4667_v44 }
 0x112   :  { %2830 = vmatmul.mubr.bf16.gmra.mrb[8].mxu1 %v4663_v45 }
 0x113   :  { %3234 = vmatmul.mubr.bf16.gmra.mrb[8].mxu0 %v4664_v46  ;;  %3873 = vmatpush1.bf16.msra.mxu1 %v4665_v47 }
 0x114   :  { %3291 = vmatpush1.bf16.msra.mxu0 %v4665_v47  ;;  %3858 = vmatprep.subr.bf16.mxu1 %v4670_v48 }
 0x115   :  { %3292 = vmatprep.subr.bf16.mxu0 %v4670_v48  ;;  %2839 = vmatprep.mubr.bf16.mxu1 %v4671_v49 }
 0x116   :  { %3243 = vmatprep.mubr.bf16.mxu0 %v4673_v50  ;;  %v421_v50 = vlaneseq }
 0x117   :  { %3874 = vmatpush1.bf16.msra.mxu1 %v4668_v51 }
 0x118   :  { %3293 = vmatpush1.bf16.msra.mxu0 %v4668_v51  ;;  %3859 = vmatprep.subr.bf16.mxu1 %v4679_v52 }
 0x119   :  { %3294 = vmatprep.subr.bf16.mxu0 %v4679_v52  ;;  %v422_v52 = vshrl.u32 %v421_v50, 7 }
 0x11a   :  { %2840 = vmatmul.mubr.bf16.gmra.mrb[12].mxu1 %v4675_v53 }
 0x11b   :  { %3244 = vmatmul.mubr.bf16.gmra.mrb[12].mxu0 %v4676_v54  ;;  %3875 = vmatpush1.bf16.msra.mxu1 %v4677_v55 }
 0x11c   :  { %3295 = vmatpush1.bf16.msra.mxu0 %v4677_v55  ;;  %3860 = vmatprep.subr.bf16.mxu1 %v4682_v56 }
 0x11d   :  { %3296 = vmatprep.subr.bf16.mxu0 %v4682_v56  ;;  %2849 = vmatprep.mubr.bf16.mxu1 %v4683_v57  ;;  %v423_v56 = vsub.s32 0, %v422_v52 }
 0x11e   :  { %3253 = vmatprep.mubr.bf16.mxu0 %v4685_v58  ;;  %v419_v58 = vld [vmem:[%s6157_s2] sm:$0x3] }
 0x11f   :  { %3876 = vmatpush1.bf16.msra.mxu1 %v4680_v59 }
 0x120   :  { %3297 = vmatpush1.bf16.msra.mxu0 %v4680_v59  ;;  %3861 = vmatprep.subr.bf16.mxu1 %v4691_v60  ;;  %v427_v59 = vsub.s32 1, %v422_v52 }
 0x121   :  { %3298 = vmatprep.subr.bf16.mxu0 %v4691_v60  ;;  %v6013_v60 = vrot.slane %v419_v58, %v423_v56 }
 0x122   :  { %2850 = vmatmul.mubr.bf16.gmra.mrb[16].mxu1 %v4687_v61  ;;  %v6015_v61 = vrot.slane %v419_v58, %v427_v59 }
 0x123   :  { %3254 = vmatmul.mubr.bf16.gmra.mrb[16].mxu0 %v4688_v62  ;;  %3877 = vmatpush1.bf16.msra.mxu1 %v4689_v63 }
 0x124   :  { %3299 = vmatpush1.bf16.msra.mxu0 %v4689_v63  ;;  %3862 = vmatprep.subr.bf16.mxu1 %v4694_v0 }
 0x125   :  { %3300 = vmatprep.subr.bf16.mxu0 %v4694_v0  ;;  %2859 = vmatprep.mubr.bf16.mxu1 %v4695_v1 }
 0x126   :  { %3263 = vmatprep.mubr.bf16.mxu0 %v4697_v2 }
 0x127   :  { %3878 = vmatpush1.bf16.msra.mxu1 %v4692_v3 }
 0x128   :  { %3301 = vmatpush1.bf16.msra.mxu0 %v4692_v3  ;;  %3863 = vmatprep.subr.bf16.mxu1 %v4703_v4 }
 0x129   :  { %3302 = vmatprep.subr.bf16.mxu0 %v4703_v4 }
 0x12a   :  { %2860 = vmatmul.mubr.bf16.gmra.mrb[20].mxu1 %v4699_v5 }
 0x12b   :  { %3264 = vmatmul.mubr.bf16.gmra.mrb[20].mxu0 %v4700_v6  ;;  %3879 = vmatpush1.bf16.msra.mxu1 %v4701_v9 }
 0x12c   :  { %3303 = vmatpush1.bf16.msra.mxu0 %v4701_v9  ;;  %3864 = vmatprep.subr.bf16.mxu1 %v4706_v10 }
 0x12d   :  { %3304 = vmatprep.subr.bf16.mxu0 %v4706_v10  ;;  %2869 = vmatprep.mubr.bf16.mxu1 %v3554_v11 }
 0x12e   :  { %3273 = vmatprep.mubr.bf16.mxu0 %v3562_v12 }
 0x12f   :  { %3880 = vmatpush1.bf16.msra.mxu1 %v4704_v13 }
 0x130   :  { %3305 = vmatpush1.bf16.msra.mxu0 %v4704_v13  ;;  %3865 = vmatprep.subr.bf16.mxu1 %v4713_v14 }
 0x131   :  { %3306 = vmatprep.subr.bf16.mxu0 %v4713_v14 }
 0x132   :  { %2870 = vmatmul.mubr.bf16.gmra.mrb[24].mxu1 %v3553_v15 }
 0x133   :  { %3274 = vmatmul.mubr.bf16.gmra.mrb[24].mxu0 %v3561_v16  ;;  %3881 = vmatpush1.bf16.msra.mxu1 %v4711_v17 }
 0x134   :  { %3307 = vmatpush1.bf16.msra.mxu0 %v4711_v17  ;;  %3866 = vmatprep.subr.bf16.mxu1 %v4716_v18 }
 0x135   :  { %3308 = vmatprep.subr.bf16.mxu0 %v4716_v18  ;;  %3314 = vmatprep.mubr.bf16.mxu0 %v4725_v19 }
 0x136   :  { %3354 = vmatprep.mubr.bf16.mxu1 %v4728_v20 }
 0x137   :  { %3882 = vmatpush1.bf16.msra.mxu1 %v4714_v21 }
 0x138   :  { %3309 = vmatpush1.bf16.msra.mxu0 %v4714_v21  ;;  %3867 = vmatprep.subr.bf16.mxu1 %v4719_v22 }
 0x139   :  { %3310 = vmatprep.subr.bf16.mxu0 %v4719_v22 }
 0x13b   :  { %3883 = vmatpush1.bf16.msra.mxu1 %v4717_v23 }
 0x13c   :  { %3311 = vmatpush1.bf16.msra.mxu0 %v4717_v23  ;;  %3868 = vmatprep.subr.bf16.mxu1 %v4722_v24 }
 0x13d   :  { %3312 = vmatprep.subr.bf16.mxu0 %v4722_v24 }
 0x13f   :  { %3884 = vmatpush1.bf16.msra.mxu1 %v4720_v25 }
 0x140   :  { %3313 = vmatpush1.bf16.msra.mxu0 %v4720_v25 }
 0x142   :  { %3355 = vmatmul.mubr.bf16.vlgmr.msra.gmra.mrb[28].mxu1 %v4726_v27 }
 0x143   :  { %3315 = vmatmul.mubr.bf16.vlgmr.msra.gmra.mrb[0].mxu0 %v4723_v26  ;;  %3364 = vmatprep.mubr.bf16.mxu1 %v4731_v29 }
 0x144   :  { %3324 = vmatprep.mubr.bf16.mxu0 %v4729_v28 }
 0x14a   :  { %3365 = vmatmul.mubr.bf16.gmra.mrb[32].mxu1 %v4734_v32 }
 0x14b   :  { %3325 = vmatmul.mubr.bf16.gmra.mrb[4].mxu0 %v4733_v31  ;;  %3374 = vmatprep.mubr.bf16.mxu1 %v3564_v34 }
 0x14c   :  { %3334 = vmatprep.mubr.bf16.mxu0 %v4735_v33 }
 0x152   :  { %3375 = vmatmul.mubr.bf16.gmra.mrb[36].mxu1 %v3563_v36 }
 0x153   :  { %3335 = vmatmul.mubr.bf16.gmra.mrb[8].mxu0 %v4738_v35 }
 0x154   :  { %3344 = vmatprep.mubr.bf16.mxu0 %v4740_v37 }
 0x15b   :  { %3345 = vmatmul.mubr.bf16.gmra.mrb[12].mxu0 %v4742_v38 }
 0x1d5   :  { %v5978_v39 = vpop.f32.mrb[0].mxu1 }
 0x1d6   :  { %v5980_v40 = vpop.f32.mrb[1].mxu1  ;;  %v3885_v58 = vadd.f32 %v5978_v39, %v6013_v60 }
 0x1d7   :  { %v5982_v41 = vpop.f32.mrb[2].mxu1  ;;  %v3887_v59 = vadd.f32 %v5980_v40, %v6015_v61 }
 0x1d8   :  { %v5984_v42 = vpop.f32.mrb[3].mxu1 }
 0x1dd   :  { %v5986_v43 = vpop.f32.mrb[4].mxu1 }
 0x1de   :  { %v5988_v44 = vpop.f32.mrb[5].mxu1 }
 0x1df   :  { %v5990_v45 = vpop.f32.mrb[6].mxu1 }
 0x1e0   :  { %v5992_v46 = vpop.f32.mrb[7].mxu1 }
 0x1e5   :  { %v5994_v47 = vpop.f32.mrb[8].mxu1 }
 0x1e6   :  { %v5996_v48 = vpop.f32.mrb[9].mxu1 }
 0x1e7   :  { %v5998_v49 = vpop.f32.mrb[10].mxu1 }
 0x1e8   :  { %v6000_v51 = vpop.f32.mrb[11].mxu1 }
 0x1ed   :  { %v6002_v53 = vpop.f32.mrb[12].mxu1 }
 0x1ee   :  { %v6004_v54 = vpop.f32.mrb[13].mxu1 }
 0x1ef   :  { %v6006_v55 = vpop.f32.mrb[14].mxu1 }
 0x1f0   :  { %v6008_v57 = vpop.f32.mrb[15].mxu1 }
 0x1f5   :  { %v2851_v62 = vpop.f32.mrb[16].mxu1 }
 0x1f6   :  { %v3255_v63 = vpop.f32.mrb[16].mxu0  ;;  %v3917_v0 = vadd.f32 %v2851_v62, %v6013_v60  ;;  %v2853_v1 = vpop.f32.mrb[17].mxu1 }
 0x1f7   :  { %v3257_v2 = vpop.f32.mrb[17].mxu0  ;;  %v3920_v3 = vadd.f32 %v2853_v1, %v6015_v61  ;;  %v2855_v4 = vpop.f32.mrb[18].mxu1 }
 0x1f8   :  { %v3259_v5 = vpop.f32.mrb[18].mxu0  ;;  %v3918_v6 = vadd.f32 %v3917_v0, %v3255_v63  ;;  %v3923_v7 = vadd.f32 %v2855_v4, %v6013_v60  ;;  %v2857_v8 = vpop.f32.mrb[19].mxu1  ;;  %v3889_v0 = vadd.f32 %v5982_v41, %v6013_v60 }
 0x1f9   :  { %v3261_v9 = vpop.f32.mrb[19].mxu0  ;;  %v3921_v10 = vadd.f32 %v3920_v3, %v3257_v2  ;;  %v3926_v11 = vadd.f32 %v2857_v8, %v6015_v61 }
 0x1fa   :  { %v3924_v12 = vadd.f32 %v3923_v7, %v3259_v5  ;;  %v3891_v5 = vadd.f32 %v5984_v42, %v6015_v61 }
 0x1fb   :  { %v3927_v13 = vadd.f32 %v3926_v11, %v3261_v9 }
 0x1fd   :  { %v2861_v14 = vpop.f32.mrb[20].mxu1 }
 0x1fe   :  { %v3265_v15 = vpop.f32.mrb[20].mxu0  ;;  %v3929_v16 = vadd.f32 %v2861_v14, %v6013_v60  ;;  %v2863_v17 = vpop.f32.mrb[21].mxu1 }
 0x1ff   :  { %v3267_v18 = vpop.f32.mrb[21].mxu0  ;;  %v3932_v19 = vadd.f32 %v2863_v17, %v6015_v61  ;;  %v2865_v20 = vpop.f32.mrb[22].mxu1 }
 0x200   :  { %v3269_v21 = vpop.f32.mrb[22].mxu0  ;;  %v6023_v22 = vadd.f32 %v3929_v16, %v3265_v15  ;;  %v3935_v23 = vadd.f32 %v2865_v20, %v6013_v60  ;;  %v2867_v24 = vpop.f32.mrb[23].mxu1 }
 0x201   :  { %v3271_v25 = vpop.f32.mrb[23].mxu0  ;;  %v6026_v26 = vadd.f32 %v3932_v19, %v3267_v18  ;;  %v3938_v27 = vadd.f32 %v2867_v24, %v6015_v61  ;;  %v3897_v24 = vadd.f32 %v5990_v45, %v6013_v60 }
 0x202   :  { %v6029_v28 = vadd.f32 %v3935_v23, %v3269_v21  ;;  %v3895_v21 = vadd.f32 %v5988_v44, %v6015_v61  ;;  %v3899_v44 = vadd.f32 %v5992_v46, %v6015_v61 }
 0x203   :  { %v6031_v29 = vadd.f32 %v3938_v27, %v3271_v25 }
 0x205   :  { %v2871_v30 = vpop.f32.mrb[24].mxu1 }
 0x206   :  { %v3275_v31 = vpop.f32.mrb[24].mxu0  ;;  %v3941_v32 = vadd.f32 %v2871_v30, %v6013_v60  ;;  %v2873_v33 = vpop.f32.mrb[25].mxu1 }
 0x207   :  { %v3277_v34 = vpop.f32.mrb[25].mxu0  ;;  %v3944_v35 = vadd.f32 %v2873_v33, %v6015_v61  ;;  %v2875_v36 = vpop.f32.mrb[26].mxu1 }
 0x208   :  { %v3279_v37 = vpop.f32.mrb[26].mxu0  ;;  %v6035_v38 = vadd.f32 %v3941_v32, %v3275_v31  ;;  %v2876_v50 = vpop.f32.mrb[27].mxu1 }
 0x209   :  { %v3280_v52 = vpop.f32.mrb[27].mxu0  ;;  %v6037_v56 = vadd.f32 %v3944_v35, %v3277_v34 }
 0x215   :  { %v3356_v63 = vpop.f32.mrb[28].mxu1 }
 0x216   :  { %v3316_v62 = vpop.f32.mrb[0].mxu0  ;;  %v3919_v2 = vadd.f32 %v3918_v6, %v3356_v63  ;;  %v3358_v4 = vpop.f32.mrb[29].mxu1 }
 0x217   :  { %v3886_v1 = vadd.f32 %v3885_v58, %v3316_v62  ;;  %v3318_v3 = vpop.f32.mrb[1].mxu0  ;;  %v3922_v8 = vadd.f32 %v3921_v10, %v3358_v4  ;;  %v3360_v11 = vpop.f32.mrb[30].mxu1 }
 0x218   :  { %v3888_v7 = vadd.f32 %v3887_v59, %v3318_v3  ;;  %v3320_v9 = vpop.f32.mrb[2].mxu0  ;;  %v3399_v14 = vmax.f32 %v3919_v2, 0.0  ;;  %v3925_v40 = vadd.f32 %v3924_v12, %v3360_v11  ;;  %v3362_v17 = vpop.f32.mrb[31].mxu1  ;;  %v3905_v3 = vadd.f32 %v5998_v49, %v6013_v60 }
 0x219   :  { %v3383_v39 = vmax.f32 %v3886_v1, 0.0  ;;  %v3890_v15 = vadd.f32 %v3889_v0, %v3320_v9  ;;  %v3322_v16 = vpop.f32.mrb[3].mxu0  ;;  %v3400_v19 = vmax.f32 %v3922_v8, 0.0  ;;  %v3928_v20 = vadd.f32 %v3927_v13, %v3362_v17 }
 0x21a   :  { %v3384_v18 = vmax.f32 %v3888_v7, 0.0  ;;  %v3892_v41 = vadd.f32 %v3891_v5, %v3322_v16  ;;  %3425 = vst [vmem:[%s6158_s3 + $0x80] sm:$0xff] %v3399_v14  ;;  %v3401_v6 = vmax.f32 %v3925_v40, 0.0  ;;  %v3893_v13 = vadd.f32 %v5986_v43, %v6013_v60 }
 0x21b   :  { %3409 = vst [vmem:[%s6158_s3] sm:$0xff] %v3383_v39  ;;  %v3385_v42 = vmax.f32 %v3890_v15, 0.0  ;;  %3426 = vst [vmem:[%s6158_s3 + $0x88] sm:$0xff] %v3400_v19  ;;  %v3402_v12 = vmax.f32 %v3928_v20, 0.0  ;;  %v3901_v0 = vadd.f32 %v5994_v47, %v6013_v60  ;;  %v3903_v1 = vadd.f32 %v5996_v48, %v6015_v61 }
 0x21c   :  { %3410 = vst [vmem:[%s6158_s3 + $0x8] sm:$0xff] %v3384_v18  ;;  %v3386_v10 = vmax.f32 %v3892_v41, 0.0  ;;  %3427 = vst [vmem:[%s6158_s3 + $0x90] sm:$0xff] %v3401_v6  ;;  %v3907_v48 = vadd.f32 %v6000_v51, %v6015_v61  ;;  %v3911_v20 = vadd.f32 %v6004_v54, %v6015_v61  ;;  %v3913_v6 = vadd.f32 %v6006_v55, %v6013_v60 }
 0x21d   :  { %3411 = vst [vmem:[%s6158_s3 + $0x10] sm:$0xff] %v3385_v42  ;;  %3428 = vst [vmem:[%s6158_s3 + $0x98] sm:$0xff] %v3402_v12  ;;  %v3366_v23 = vpop.f32.mrb[32].mxu1 }
 0x21e   :  { %3412 = vst [vmem:[%s6158_s3 + $0x18] sm:$0xff] %v3386_v10  ;;  %v3326_v43 = vpop.f32.mrb[4].mxu0  ;;  %v3931_v27 = vadd.f32 %v6023_v22, %v3366_v23  ;;  %v3368_v31 = vpop.f32.mrb[33].mxu1 }
 0x21f   :  { %v3894_v25 = vadd.f32 %v3893_v13, %v3326_v43  ;;  %v3328_v30 = vpop.f32.mrb[5].mxu0  ;;  %v3934_v33 = vadd.f32 %v6026_v26, %v3368_v31  ;;  %v3370_v35 = vpop.f32.mrb[34].mxu1 }
 0x220   :  { %v3896_v32 = vadd.f32 %v3895_v21, %v3328_v30  ;;  %v3330_v34 = vpop.f32.mrb[6].mxu0  ;;  %v3403_v37 = vmax.f32 %v3931_v27, 0.0  ;;  %v3937_v52 = vadd.f32 %v6029_v28, %v3370_v35  ;;  %v3372_v45 = vpop.f32.mrb[35].mxu1 }
 0x221   :  { %v3387_v36 = vmax.f32 %v3894_v25, 0.0  ;;  %v3898_v50 = vadd.f32 %v3897_v24, %v3330_v34  ;;  %v3332_v58 = vpop.f32.mrb[7].mxu0  ;;  %v3404_v62 = vmax.f32 %v3934_v33, 0.0  ;;  %v3940_v63 = vadd.f32 %v6031_v29, %v3372_v45 }
 0x222   :  { %v3388_v59 = vmax.f32 %v3896_v32, 0.0  ;;  %v3900_v22 = vadd.f32 %v3899_v44, %v3332_v58  ;;  %3429 = vst [vmem:[%s6158_s3 + $0xa0] sm:$0xff] %v3403_v37  ;;  %v3405_v26 = vmax.f32 %v3937_v52, 0.0 }
 0x223   :  { %3413 = vst [vmem:[%s6158_s3 + $0x20] sm:$0xff] %v3387_v36  ;;  %v3389_v46 = vmax.f32 %v3898_v50, 0.0  ;;  %3430 = vst [vmem:[%s6158_s3 + $0xa8] sm:$0xff] %v3404_v62  ;;  %v3406_v29 = vmax.f32 %v3940_v63, 0.0 }
 0x224   :  { %3414 = vst [vmem:[%s6158_s3 + $0x28] sm:$0xff] %v3388_v59  ;;  %v3390_v28 = vmax.f32 %v3900_v22, 0.0  ;;  %3431 = vst [vmem:[%s6158_s3 + $0xb0] sm:$0xff] %v3405_v26 }
 0x225   :  { %3415 = vst [vmem:[%s6158_s3 + $0x30] sm:$0xff] %v3389_v46  ;;  %3432 = vst [vmem:[%s6158_s3 + $0xb8] sm:$0xff] %v3406_v29  ;;  %v3376_v2 = vpop.f32.mrb[36].mxu1 }
 0x226   :  { %3416 = vst [vmem:[%s6158_s3 + $0x38] sm:$0xff] %v3390_v28  ;;  %v3336_v47 = vpop.f32.mrb[8].mxu0  ;;  %v3943_v5 = vadd.f32 %v6035_v38, %v3376_v2  ;;  %v3378_v8 = vpop.f32.mrb[37].mxu1 }
 0x227   :  { %v3902_v4 = vadd.f32 %v3901_v0, %v3336_v47  ;;  %v3338_v7 = vpop.f32.mrb[9].mxu0  ;;  %v3946_v11 = vadd.f32 %v6037_v56, %v3378_v8  ;;  %v3380_v14 = vpop.f32.mrb[38].mxu1  ;;  %v3909_v56 = vadd.f32 %v6002_v53, %v6013_v60  ;;  %v3915_v53 = vadd.f32 %v6008_v57, %v6015_v61 }
 0x228   :  { %v3904_v9 = vadd.f32 %v3903_v1, %v3338_v7  ;;  %v3340_v39 = vpop.f32.mrb[10].mxu0  ;;  %v3407_v40 = vmax.f32 %v3943_v5, 0.0  ;;  %v3381_v18 = vpop.f32.mrb[39].mxu1 }
 0x229   :  { %v3391_v15 = vmax.f32 %v3902_v4, 0.0  ;;  %v3906_v16 = vadd.f32 %v3905_v3, %v3340_v39  ;;  %v3342_v17 = vpop.f32.mrb[11].mxu0  ;;  %v3408_v49 = vmax.f32 %v3946_v11, 0.0 }
 0x22a   :  { %v3392_v19 = vmax.f32 %v3904_v9, 0.0  ;;  %v3908_v41 = vadd.f32 %v3907_v48, %v3342_v17  ;;  %3433 = vst [vmem:[%s6158_s3 + $0xc0] sm:$0xff] %v3407_v40 }
 0x22b   :  { %3417 = vst [vmem:[%s6158_s3 + $0x40] sm:$0xff] %v3391_v15  ;;  %v3393_v51 = vmax.f32 %v3906_v16, 0.0  ;;  %3434 = vst [vmem:[%s6158_s3 + $0xc8] sm:$0xff] %v3408_v49 }
 0x22c   :  { %3418 = vst [vmem:[%s6158_s3 + $0x48] sm:$0xff] %v3392_v19  ;;  %v3394_v38 = vmax.f32 %v3908_v41, 0.0 }
 0x22d   :  { %3419 = vst [vmem:[%s6158_s3 + $0x50] sm:$0xff] %v3393_v51 }
 0x22e   :  { %3420 = vst [vmem:[%s6158_s3 + $0x58] sm:$0xff] %v3394_v38  ;;  %v3346_v42 = vpop.f32.mrb[12].mxu0 }
 0x22f   :  { %v3910_v10 = vadd.f32 %v3909_v56, %v3346_v42  ;;  %v3348_v12 = vpop.f32.mrb[13].mxu0 }
 0x230   :  { %v3912_v13 = vadd.f32 %v3911_v20, %v3348_v12  ;;  %v3350_v21 = vpop.f32.mrb[14].mxu0 }
 0x231   :  { %v3395_v43 = vmax.f32 %v3910_v10, 0.0  ;;  %v3914_v23 = vadd.f32 %v3913_v6, %v3350_v21  ;;  %v3352_v24 = vpop.f32.mrb[15].mxu0 }
 0x232   :  { %v3396_v25 = vmax.f32 %v3912_v13, 0.0  ;;  %v3916_v54 = vadd.f32 %v3915_v53, %v3352_v24 }
 0x233   :  { %3421 = vst [vmem:[%s6158_s3 + $0x60] sm:$0xff] %v3395_v43  ;;  %v3397_v27 = vmax.f32 %v3914_v23, 0.0 }
 0x234   :  { %3422 = vst [vmem:[%s6158_s3 + $0x68] sm:$0xff] %v3396_v25  ;;  %v3398_v55 = vmax.f32 %v3916_v54, 0.0 }
 0x235   :  { %3423 = vst [vmem:[%s6158_s3 + $0x70] sm:$0xff] %v3397_v27 }
 0x236   :  { %3424 = vst [vmem:[%s6158_s3 + $0x78] sm:$0xff] %v3398_v55 }

// kernel: reduction_a_forward.4
= control target key start
LH: loop header
LB: loop body
LE: loop exit
PB: predicated region body
PF: predicated region fallthrough
CT: control target
= control target key end

     0   :  { %v17104_v1 = vmov 0   ;;  %vm249_vm0 = vcmask 1043456   ;;  %vm11922_vm1 = vmmov 0   ;;  %s17084_s1 = inlined_call_operand.vmem [shape: bf16[3456,384], index: 1, kind: input, shape index: {}]   ;;  %s17085_s0 = inlined_call_operand.vmem [shape: bf16[104,3456], index: 0, kind: input, shape index: {}]   ;;  %s17086_s3 = inlined_call_operand.vmem [shape: f32[104,768], index: 3, kind: output, shape index: {}]   ;;  %s17087_s2 = inlined_call_operand.vmem [shape: f32[1,384], index: 2, kind: input, shape index: {}]  }
   0x1   :  { %v10761_v0 = vld [vmem:[%s17084_s1 + $0x4] ss:$12 sps:$4 sm:$0xff]   ;;  %7337 = vmatprep.mubr.bf16.mxu1 %v17104_v1  ;;  %v10765_v3 = vld [vmem:[%s17084_s1] ss:$12 sps:$4 sm:$0xff]   ;;  %v10767_v5 = vld [vmem:[%s17084_s1 + $0x1c] ss:$12 sps:$4 sm:$0xff]  }
   0x2   :  { %v10763_v2 = vld [vmem:[%s17084_s1 + $0x1384] ss:$12 sps:$4 sm:$0xff]   ;;  %5992 = vmatprep.subr.bf16.mxu0 %v10761_v0  ;;  %v10766_v4 = vld [vmem:[%s17084_s1 + $0x1380] ss:$12 sps:$4 sm:$0xff]   ;;  %v10769_v6 = vld [vmem:[%s17084_s1 + $0x139c] ss:$12 sps:$4 sm:$0xff]  }
   0x3   :  { %7305 = vmatprep.subr.bf16.mxu1 %v10763_v2  ;;  %5993 = vmatpush1.bf16.msra.mxu0 %v10765_v3  ;;  %v10771_v7 = vld [vmem:[%s17084_s1 + $0x18] ss:$12 sps:$4 sm:$0xff]   ;;  %v10773_v9 = vld [vmem:[%s17084_s1 + $0x34] ss:$12 sps:$4 sm:$0xff]   ;;  %v10777_v11 = vld [vmem:[%s17084_s1 + $0x30] ss:$12 sps:$4 sm:$0xff]  }
   0x4   :  { %7306 = vmatpush1.bf16.msra.mxu1 %v10766_v4  ;;  %5994 = vmatprep.subr.bf16.mxu0 %v10767_v5  ;;  %v10772_v8 = vld [vmem:[%s17084_s1 + $0x1398] ss:$12 sps:$4 sm:$0xff]   ;;  %v10775_v10 = vld [vmem:[%s17084_s1 + $0x13b4] ss:$12 sps:$4 sm:$0xff]   ;;  %v10778_v12 = vld [vmem:[%s17084_s1 + $0x13b0] ss:$12 sps:$4 sm:$0xff]  }
   0x5   :  { %7307 = vmatprep.subr.bf16.mxu1 %v10769_v6  ;;  %v10779_v13 = vld [vmem:[%s17084_s1 + $0x4c] ss:$12 sps:$4 sm:$0xff]   ;;  %v10783_v15 = vld [vmem:[%s17084_s1 + $0x48] ss:$12 sps:$4 sm:$0xff]   ;;  %v10785_v17 = vld [vmem:[%s17084_s1 + $0x64] ss:$12 sps:$4 sm:$0xff]  }
   0x6   :  { %v10781_v14 = vld [vmem:[%s17084_s1 + $0x13cc] ss:$12 sps:$4 sm:$0xff]   ;;  %v10784_v16 = vld [vmem:[%s17084_s1 + $0x13c8] ss:$12 sps:$4 sm:$0xff]   ;;  %v10787_v18 = vld [vmem:[%s17084_s1 + $0x13e4] ss:$12 sps:$4 sm:$0xff]  }
   0x7   :  { %5995 = vmatpush1.bf16.msra.mxu0 %v10771_v7  ;;  %v10789_v19 = vld [vmem:[%s17084_s1 + $0x60] ss:$12 sps:$4 sm:$0xff]   ;;  %v10791_v21 = vld [vmem:[%s17084_s1 + $0x7c] ss:$12 sps:$4 sm:$0xff]   ;;  %v10795_v23 = vld [vmem:[%s17084_s1 + $0x78] ss:$12 sps:$4 sm:$0xff]  }
   0x8   :  { %7308 = vmatpush1.bf16.msra.mxu1 %v10772_v8  ;;  %5996 = vmatprep.subr.bf16.mxu0 %v10773_v9  ;;  %v10790_v20 = vld [vmem:[%s17084_s1 + $0x13e0] ss:$12 sps:$4 sm:$0xff]   ;;  %v10793_v22 = vld [vmem:[%s17084_s1 + $0x13fc] ss:$12 sps:$4 sm:$0xff]   ;;  %v10796_v24 = vld [vmem:[%s17084_s1 + $0x13f8] ss:$12 sps:$4 sm:$0xff]  }
   0x9   :  { %7309 = vmatprep.subr.bf16.mxu1 %v10775_v10  ;;  %v10797_v25 = vld [vmem:[%s17084_s1 + $0x94] ss:$12 sps:$4 sm:$0xff]   ;;  %v16_v27 = vld [vmem:[%s17085_s0 + $0x8] sm:$0xff]  ;;  %v10801_v29 = vld [vmem:[%s17084_s1 + $0x90] ss:$12 sps:$4 sm:$0xff]  }
   0xa   :  { %v10799_v26 = vld [vmem:[%s17084_s1 + $0x1414] ss:$12 sps:$4 sm:$0xff]   ;;  %v223_v31 = vrot.slane %v16_v27, 4  ;;  %v10802_v32 = vld [vmem:[%s17084_s1 + $0x1410] ss:$12 sps:$4 sm:$0xff]   ;;  %v12043_v34 = vld [vmem:[%s17085_s0 + $0x28] sm:$0xff] }
   0xb   :  { %5997 = vmatpush1.bf16.msra.mxu0 %v10777_v11  ;;  %v12028_v28 = vld [vmem:[%s17085_s0 + $0x10] sm:$0xff]  ;;  %v10803_v33 = vld [vmem:[%s17084_s1 + $0xac] ss:$12 sps:$4 sm:$0xff]   ;;  %17166 = vst [vmem:[#allocation2_spill] sm:$0xff] %v12043_v34  ;;  %v12054_v37 = vld [vmem:[%s17085_s0 + $0x7c] sm:$0xff]  ;;  %v17103_v39 = vrot.slane %v12043_v34, 4 }
   0xc   :  { %7310 = vmatpush1.bf16.msra.mxu1 %v10778_v12  ;;  %5998 = vmatprep.subr.bf16.mxu0 %v10779_v13  ;;  %v224_v30 = vrot.slane %v12028_v28, 4  ;;  %v10805_v35 = vld [vmem:[%s17084_s1 + $0x142c] ss:$12 sps:$4 sm:$0xff]   ;;  %v10807_v41 = vld [vmem:[%s17084_s1 + $0xa8] ss:$12 sps:$4 sm:$0xff]   ;;  %v19_v42 = vld [vmem:[%s17085_s0 + $0x20] sm:$0xff] }
   0xd   :  { %7311 = vmatprep.subr.bf16.mxu1 %v10781_v14  ;;  %v30_v36 = vld [vmem:[%s17085_s0 + $0x74] sm:$0xff]  ;;  %v226_v43 = vrot.slane %v12054_v37, 4  ;;  %v10809_v48 = vld [vmem:[%s17084_s1 + $0xc4] ss:$12 sps:$4 sm:$0xff]   ;;  %v12090_v52 = vld [vmem:[%s17085_s0 + $0x68] sm:$0xf] }
   0xe   :  { %v290_v38 = vmax.bf16 %v224_v30, %v16_v27  ;;  %v12058_v40 = vsel %vm249_vm0, %v223_v31, %v224_v30  ;;  %v225_v44 = vrot.slane %v30_v36, 4  ;;  %v12067_v45 = vcombine.high %v16_v27, %v30_v36  ;;  %v10808_v47 = vld [vmem:[%s17084_s1 + $0x1428] ss:$12 sps:$4 sm:$0xff]   ;;  %v12085_v51 = vld [vmem:[%s17085_s0 + $0x40] sm:$0xff]  ;;  %v33_v56 = vld [vmem:[%s17085_s0 + $0x8c] sm:$0xff] }
   0xf   :  { %5999 = vmatpush1.bf16.msra.mxu0 %v10783_v15  ;;  %v12069_v46 = vcombine.low %v16_v27, %v30_v36  ;;  %v12080_v49 = vld [vmem:[%s17085_s0 + $0x94] sm:$0xff]  ;;  %17168 = vst [vmem:[#allocation4_spill] sm:$0xff] %v12085_v51  ;;  %v292_v54 = vmax.bf16 %v226_v43, %v30_v36  ;;  %v17094_v58 = vrot.slane %v12085_v51, 4  ;;  %v12113_v62 = vld [vmem:[%s17085_s0 + $0xac] sm:$0xff]  ;;  %v12122_v2 = vld [vmem:[%s17085_s0 + $0xe0] sm:$0xff] }
  0x10   :  { %7312 = vmatpush1.bf16.msra.mxu1 %v10784_v16  ;;  %6000 = vmatprep.subr.bf16.mxu0 %v10785_v17  ;;  %17167 = vst [vmem:[#allocation3_spill] sm:$0xff] %v12080_v49  ;;  %v316_v50 = vmax.bf16 %v290_v38, %v19_v42  ;;  %v12095_v53 = vld [vmem:[%s17085_s0 + $0xd4] sm:$0xf]  ;;  %v17097_v55 = vrot.slane %v12080_v49, 4  ;;  %v22_v59 = vld [vmem:[%s17085_s0 + $0x38] sm:$0xff]  ;;  %v12108_v61 = vsel %vm249_vm0, %v225_v44, %v226_v43  ;;  %17170 = vst [vmem:[#allocation6_spill] sm:$0xff] %v12113_v62 }
  0x11   :  { %7313 = vmatprep.subr.bf16.mxu1 %v10787_v18  ;;  %v318_v60 = vmax.bf16 %v292_v54, %v33_v56  ;;  %17169 = vst [vmem:[#allocation5_spill] sm:$0xff] %v12108_v61  ;;  %v12117_v0 = vcombine.low %v12090_v52, %v12095_v53  ;;  %v12127_v3 = vld [vmem:[%s17085_s0 + $0xe8] sm:$0xff]  ;;  %v25_v4 = vld [vmem:[%s17085_s0 + $0x50] sm:$0xff]  ;;  %v12135_v5 = vld [vmem:[%s17085_s0 + $0x58] sm:$0xff]  ;;  %v17091_v7 = vrot.slane %v12113_v62, 4  ;;  %v227_v10 = vrot.slane %v12122_v2, 4 }
  0x12   :  { %v433_v57 = vmax.bf16 %v17103_v39, %v316_v50  ;;  %17172 = vst [vmem:[#allocation8_spill] sm:$0xff] %v12135_v5  ;;  %v10814_v8 = vld [vmem:[%s17084_s1 + $0xc0] ss:$12 sps:$4 sm:$0xff]   ;;  %v228_v9 = vrot.slane %v12127_v3, 4  ;;  %v36_v11 = vld [vmem:[%s17085_s0 + $0xa4] sm:$0xff]  ;;  %v17089_v13 = vrot.slane %v12135_v5, 4 }
  0x13   :  { %6001 = vmatpush1.bf16.msra.mxu0 %v10789_v19  ;;  %17171 = vst [vmem:[#allocation7_spill] sm:$0xff] %v12117_v0  ;;  %v435_v6 = vmax.bf16 %v17097_v55, %v318_v60  ;;  %v10815_v14 = vld [vmem:[%s17084_s1 + $0xdc] ss:$12 sps:$4 sm:$0xff]   ;;  %v12157_v15 = vld [vmem:[%s17085_s0 + $0x100] sm:$0xff]  ;;  %v58_v18 = vld [vmem:[%s17085_s0 + $0x14c] sm:$0xff] }
  0x14   :  { %7314 = vmatpush1.bf16.msra.mxu1 %v10790_v20  ;;  %6002 = vmatprep.subr.bf16.mxu0 %v10791_v21  ;;  %v459_v63 = vmax.bf16 %v433_v57, %v22_v59  ;;  %17173 = vst [vmem:[#allocation9_spill] sm:$0xff] %v12157_v15  ;;  %v12162_v16 = vld [vmem:[%s17085_s0 + $0xc4] sm:$0xff]  ;;  %v12170_v19 = vld [vmem:[%s17085_s0 + $0x154] sm:$0xff]  ;;  %v294_v20 = vmax.bf16 %v228_v9, %v12122_v2  ;;  %v17096_v21 = vrot.slane %v12157_v15, 4  ;;  %v229_v36 = vrot.slane %v58_v18, 4  ;;  %v12675_v62 = vld [vmem:[%s17085_s0 + $0x40c] sm:$0xff] }
  0x15   :  { %7315 = vmatprep.subr.bf16.mxu1 %v10793_v22  ;;  %17174 = vst [vmem:[#allocation10_spill] sm:$0xff] %v12162_v16  ;;  %v461_v17 = vmax.bf16 %v435_v6, %v36_v11  ;;  %v39_v22 = vld [vmem:[%s17085_s0 + $0xbc] sm:$0xff]  ;;  %v230_v27 = vrot.slane %v12170_v19, 4  ;;  %v12206_v38 = vcombine.high %v12122_v2, %v58_v18  ;;  %v61_v43 = vld [vmem:[%s17085_s0 + $0x164] sm:$0xff]  ;;  %v12221_v44 = vld [vmem:[%s17085_s0 + $0x1ac] sm:$0xf] }
  0x16   :  { %v576_v12 = vmax.bf16 %v17094_v58, %v459_v63  ;;  %v10818_v31 = vld [vmem:[%s17084_s1 + $0xf4] ss:$12 sps:$4 sm:$0xff]   ;;  %v12213_v42 = vld [vmem:[%s17085_s0 + $0x118] sm:$0xff]  ;;  %v12227_v54 = vld [vmem:[%s17085_s0 + $0x184] sm:$0xff]  ;;  %17208 = vst [vmem:[#allocation36_spill] sm:$0xff] %v12675_v62 }
  0x17   :  { %6003 = vmatpush1.bf16.msra.mxu0 %v10795_v23  ;;  %v578_v30 = vmax.bf16 %v17091_v7, %v461_v17  ;;  %17176 = vst [vmem:[#allocation12_spill] sm:$0xff] %v12213_v42  ;;  %17177 = vst [vmem:[#allocation13_spill] sm:$0xff] %v12227_v54  ;;  %v17090_v57 = vrot.slane %v12213_v42, 4  ;;  %v50_v60 = vld [vmem:[%s17085_s0 + $0x110] sm:$0xff]  ;;  %v12254_v11 = vld [vmem:[%s17085_s0 + $0x1c0] sm:$0xff] }
  0x18   :  { %7316 = vmatpush1.bf16.msra.mxu1 %v10796_v24  ;;  %6004 = vmatprep.subr.bf16.mxu0 %v10797_v25  ;;  %v602_v23 = vmax.bf16 %v576_v12, %v25_v4  ;;  %v17088_v24 = vrot.slane %v12162_v16, 4  ;;  %v10817_v25 = vld [vmem:[%s17084_s1 + $0xd8] ss:$12 sps:$4 sm:$0xff]   ;;  %v17092_v4 = vrot.slane %v12227_v54, 4  ;;  %v12257_v12 = vsel %vm249_vm0, %v229_v36, %v230_v27  ;;  %v10836_v55 = vld [vmem:[%s17084_s1 + $0x8] ss:$12 sps:$4 sm:$0xff]  }
  0x19   :  { %7317 = vmatprep.subr.bf16.mxu1 %v10799_v26  ;;  %v47_v26 = vld [vmem:[%s17085_s0 + $0xf8] sm:$0xff]  ;;  %v604_v50 = vmax.bf16 %v578_v30, %v39_v22  ;;  %v12268_v22 = vld [vmem:[%s17085_s0 + $0x130] sm:$0xff] }
  0x1a   :  { %17179 = vst [vmem:[#allocation15_spill] sm:$0xff] %v12268_v22  ;;  %v12284_v30 = vld [vmem:[%s17085_s0 + $0x19c] sm:$0xff]  ;;  %v12520_v39 = vld [vmem:[%s17085_s0 + $0x334] sm:$0xff] }
  0x1b   :  { %6005 = vmatpush1.bf16.msra.mxu0 %v10801_v29  ;;  %v12187_v29 = vsel %vm249_vm0, %v227_v10, %v228_v9  ;;  %v12249_v10 = vld [vmem:[%s17085_s0 + $0x1b8] sm:$0xff]  ;;  %17180 = vst [vmem:[#allocation16_spill] sm:$0xff] %v12284_v30  ;;  %17193 = vst [vmem:[#allocation28_spill] sm:$0xff] %v12520_v39  ;;  %v10875_v49 = vld [vmem:[%s17084_s1 + $0x128] ss:$12 sps:$4 sm:$0xff]  }
  0x1c   :  { %7318 = vmatpush1.bf16.msra.mxu1 %v10802_v32  ;;  %6006 = vmatprep.subr.bf16.mxu0 %v10803_v33  ;;  %v12198_v32 = vld [vmem:[%s17085_s0 + $0x140] sm:$0xf]  ;;  %v12203_v33 = vld [vmem:[%s17085_s0 + $0x16c] sm:$0xff]  ;;  %v12292_v36 = vld [vmem:[%s17085_s0 + $0x1d8] sm:$0xff] }
  0x1d   :  { %7319 = vmatprep.subr.bf16.mxu1 %v10805_v35  ;;  %17175 = vst [vmem:[#allocation11_spill] sm:$0xff] %v12203_v33  ;;  %v320_v35 = vmax.bf16 %v294_v20, %v47_v26  ;;  %v12239_v6 = vcombine.low %v12198_v32, %v12221_v44  ;;  %v53_v20 = vld [vmem:[%s17085_s0 + $0x128] sm:$0xff]  ;;  %17181 = vst [vmem:[#allocation17_spill] sm:$0xff] %v12292_v36  ;;  %v134_v42 = vld [vmem:[%s17085_s0 + $0x398] sm:$0xff] }
  0x1f   :  { %6007 = vmatpush1.bf16.msra.mxu0 %v10807_v41  ;;  %v719_v41 = vmax.bf16 %v17089_v13, %v602_v23  ;;  %v437_v56 = vmax.bf16 %v17096_v21, %v320_v35  ;;  %17178 = vst [vmem:[#allocation14_spill] sm:$0xff] %v12239_v6  ;;  %v17093_v35 = vrot.slane %v12268_v22, 4 }
  0x20   :  { %7320 = vmatpush1.bf16.msra.mxu1 %v10808_v47  ;;  %6008 = vmatprep.subr.bf16.mxu0 %v10809_v48  ;;  %v296_v47 = vmax.bf16 %v230_v27, %v58_v18  ;;  %v17095_v48 = vrot.slane %v12203_v33, 4  ;;  %v64_v27 = vld [vmem:[%s17085_s0 + $0x17c] sm:$0xff]  ;;  %v12827_v33 = vld [vmem:[%s17085_s0 + $0x50c] sm:$0xf] }
  0x21   :  { %v745_v59 = vmax.bf16 %v719_v41, %v12090_v52  ;;  %v463_v9 = vmax.bf16 %v437_v56, %v50_v60  ;;  %v10824_v52 = vld [vmem:[%s17084_s1 + $0xf0] ss:$12 sps:$4 sm:$0xff]   ;;  %v17098_v41 = vrot.slane %v12284_v30, 4 }
  0x22   :  { %v322_v63 = vmax.bf16 %v296_v47, %v61_v43  ;;  %v10827_v43 = vld [vmem:[%s17084_s1 + $0x108] ss:$12 sps:$4 sm:$0xff]  }
  0x23   :  { %7338 = vmatmul.mubr.bf16.vlgmr.msra.gmra.mrb[0].mxu1 %v12117_v0  ;;  %6009 = vmatpush1.bf16.msra.mxu0 %v10814_v8  ;;  %v721_v8 = vmax.bf16 %v17088_v24, %v604_v50  ;;  %v772_v17 = vunpack.c.l.bf16 %v745_v59  ;;  %v12305_v47 = vld [vmem:[%s17085_s0 + $0x1f0] sm:$0xff]  ;;  %v17102_v59 = vrot.slane %v12292_v36, 4  ;;  %v12342_v24 = vld [vmem:[%s17085_s0 + $0x244] sm:$0xff]  ;;  %v10847_v0 = vld [vmem:[%s17084_s1 + $0xe0] ss:$12 sps:$4 sm:$0xff]  }
  0x24   :  { %7347 = vmatprep.mubr.bf16.mxu1 %v17104_v1  ;;  %6010 = vmatprep.subr.bf16.mxu0 %v10815_v14  ;;  %v12260_v14 = vcombine.low %v12122_v2, %v58_v18  ;;  %v439_v23 = vmax.bf16 %v17095_v48, %v322_v63  ;;  %v232_v2 = vrot.slane %v12254_v11, 4  ;;  %v231_v18 = vrot.slane %v12249_v10, 4  ;;  %17182 = vst [vmem:[#allocation18_spill] sm:$0xff] %v12305_v47  ;;  %v12310_v50 = vld [vmem:[%s17085_s0 + $0x22c] sm:$0xff]  ;;  %v67_v63 = vld [vmem:[%s17085_s0 + $0x194] sm:$0xff] }
  0x25   :  { %v747_v26 = vmax.bf16 %v721_v8, %v12095_v53  ;;  %811 = vst [vmem:[%s17086_s3 + $0x10] sm:$0xff] %v772_v17  ;;  %v75_v17 = vld [vmem:[%s17085_s0 + $0x1d0] sm:$0xff]  ;;  %17183 = vst [vmem:[#allocation19_spill] sm:$0xff] %v12342_v24 }
  0x26   :  { %v465_v53 = vmax.bf16 %v439_v23, %v64_v27  ;;  %v298_v56 = vmax.bf16 %v232_v2, %v12249_v10  ;;  %v86_v23 = vld [vmem:[%s17085_s0 + $0x224] sm:$0xff]  ;;  %v17100_v27 = vrot.slane %v12305_v47, 4  ;;  %v12345_v7 = vsel %vm249_vm0, %v231_v18, %v232_v2 }
  0x27   :  { %6011 = vmatpush1.bf16.msra.mxu0 %v10817_v25  ;;  %v10825_v25 = vld [vmem:[%s17084_s1 + $0x10c] ss:$12 sps:$4 sm:$0xff]   ;;  %v775_v60 = vunpack.c.l.bf16 %v747_v26  ;;  %v234_v26 = vrot.slane %v12310_v50, 4  ;;  %v12363_v2 = vld [vmem:[%s17085_s0 + $0x284] sm:$0xf] }
  0x28   :  { %6012 = vmatprep.subr.bf16.mxu0 %v10818_v31  ;;  %v580_v31 = vmax.bf16 %v17090_v57, %v463_v9  ;;  %v10828_v9 = vld [vmem:[%s17084_s1 + $0x124] ss:$12 sps:$4 sm:$0xff]   ;;  %v324_v13 = vmax.bf16 %v298_v56, %v75_v17  ;;  %v233_v57 = vrot.slane %v86_v23, 4  ;;  %v17101_v56 = vrot.slane %v12342_v24, 4 }
  0x29   :  { %814 = vst [vmem:[%s17086_s3 + $0x40] sm:$0xff] %v775_v60  ;;  %v300_v18 = vmax.bf16 %v234_v26, %v86_v23  ;;  %v10834_v60 = vld [vmem:[%s17084_s1 + $0x120] ss:$12 sps:$4 sm:$0xff]  }
  0x2a   :  { %v606_v8 = vmax.bf16 %v580_v31, %v53_v20  ;;  %v12334_v20 = vld [vmem:[%s17085_s0 + $0x218] sm:$0xf]  ;;  %v89_v31 = vld [vmem:[%s17085_s0 + $0x23c] sm:$0xff]  ;;  %v441_v17 = vmax.bf16 %v17102_v59, %v324_v13 }
  0x2b   :  { %7348 = vmatmul.mubr.bf16.gmra.mrb[4].mxu1 %v12239_v6  ;;  %6013 = vmatpush1.bf16.msra.mxu0 %v10824_v52  ;;  %v582_v52 = vmax.bf16 %v17092_v4, %v465_v53  ;;  %v78_v53 = vld [vmem:[%s17085_s0 + $0x1e8] sm:$0xff]  ;;  %v12358_v4 = vld [vmem:[%s17085_s0 + $0x25c] sm:$0xff]  ;;  %v326_v48 = vmax.bf16 %v300_v18, %v89_v31  ;;  %v12377_v21 = vcombine.low %v12334_v20, %v12363_v2 }
  0x2c   :  { %7357 = vmatprep.mubr.bf16.mxu1 %v17104_v1  ;;  %6014 = vmatprep.subr.bf16.mxu0 %v10825_v25  ;;  %v723_v25 = vmax.bf16 %v17093_v35, %v606_v8  ;;  %17184 = vst [vmem:[#allocation20_spill] sm:$0xff] %v12358_v4  ;;  %v10835_v35 = vld [vmem:[%s17084_s1 + $0xc8] ss:$12 sps:$4 sm:$0xff]   ;;  %v467_v13 = vmax.bf16 %v441_v17, %v78_v53  ;;  %v12626_v47 = vld [vmem:[%s17085_s0 + $0x3a0] sm:$0xff] }
  0x2d   :  { %v608_v8 = vmax.bf16 %v582_v52, %v67_v63  ;;  %17185 = vst [vmem:[#allocation21_spill] sm:$0xff] %v12377_v21  ;;  %v17099_v52 = vrot.slane %v12358_v4, 4  ;;  %9557 = vmatprep.subr.bf16.mxu1 %v10835_v35  ;;  %v12399_v53 = vcombine.high %v12249_v10, %v86_v23  ;;  %v12402_v35 = vcombine.low %v12249_v10, %v86_v23  ;;  %v10839_v23 = vld [vmem:[%s17084_s1 + $0x138] ss:$12 sps:$4 sm:$0xff]  }
  0x2e   :  { %v749_v58 = vmax.bf16 %v723_v25, %v12198_v32  ;;  %v10837_v32 = vld [vmem:[%s17084_s1 + $0x13c] ss:$12 sps:$4 sm:$0xff]   ;;  %9558 = vmatpush3.bf16.msra.mxu1 %v10836_v55  ;;  %v12415_v55 = vld [vmem:[%s17085_s0 + $0x290] sm:$0xff]  ;;  %17204 = vst [vmem:[#allocation33_spill] sm:$0xff] %v12626_v47 }
  0x2f   :  { %6015 = vmatpush1.bf16.msra.mxu0 %v10827_v43  ;;  %v725_v63 = vmax.bf16 %v17098_v41, %v608_v8  ;;  %v12389_v43 = vsel %vm249_vm0, %v233_v57, %v234_v26  ;;  %v12394_v25 = vld [vmem:[%s17085_s0 + $0x208] sm:$0xff]  ;;  %v584_v57 = vmax.bf16 %v17100_v27, %v467_v13  ;;  %v235_v17 = vrot.slane %v12415_v55, 4  ;;  %v12437_v13 = vld [vmem:[%s17085_s0 + $0x274] sm:$0xff]  ;;  %9559 = vmatprep.subr.bf16.mxu1 %v10847_v0 }
  0x30   :  { %6016 = vmatprep.subr.bf16.mxu0 %v10828_v9  ;;  %v778_v31 = vunpack.c.l.bf16 %v749_v58  ;;  %17186 = vst [vmem:[#allocation22_spill] sm:$0xff] %v12394_v25  ;;  %v443_v9 = vmax.bf16 %v17101_v56, %v326_v48  ;;  %v92_v58 = vld [vmem:[%s17085_s0 + $0x254] sm:$0xff]  ;;  %v17106_v26 = vrot.slane %v12394_v25, 4  ;;  %v81_v48 = vld [vmem:[%s17085_s0 + $0x200] sm:$0xff]  ;;  %17187 = vst [vmem:[#allocation23_spill] sm:$0xff] %v12437_v13 }
  0x31   :  { %v751_v18 = vmax.bf16 %v725_v63, %v12221_v44  ;;  %v12420_v44 = vld [vmem:[%s17085_s0 + $0x298] sm:$0xff]  ;;  %v12453_v41 = vld [vmem:[%s17085_s0 + $0x2c8] sm:$0xff] }
  0x32   :  { %817 = vst [vmem:[%s17086_s3 + $0x70] sm:$0xff] %v778_v31  ;;  %v469_v10 = vmax.bf16 %v443_v9, %v92_v58  ;;  %v236_v8 = vrot.slane %v12420_v44, 4  ;;  %v610_v31 = vmax.bf16 %v584_v57, %v81_v48  ;;  %v12445_v9 = vld [vmem:[%s17085_s0 + $0x2b0] sm:$0xff]  ;;  %17189 = vst [vmem:[#allocation25_spill] sm:$0xff] %v12453_v41  ;;  %v12461_v57 = vld [vmem:[%s17085_s0 + $0x304] sm:$0xff] }
  0x33   :  { %7358 = vmatmul.mubr.bf16.gmra.mrb[8].mxu1 %v12377_v21  ;;  %6017 = vmatpush1.bf16.msra.mxu0 %v10834_v60  ;;  %v781_v63 = vunpack.c.l.bf16 %v751_v18  ;;  %v10840_v60 = vld [vmem:[%s17084_s1 + $0x154] ss:$12 sps:$4 sm:$0xff]   ;;  %17188 = vst [vmem:[#allocation24_spill] sm:$0xff] %v12445_v9  ;;  %v103_v56 = vld [vmem:[%s17085_s0 + $0x2a8] sm:$0xff]  ;;  %v238_v59 = vrot.slane %v12461_v57, 4  ;;  %v17194_v6 = vrot.slane %v12445_v9, 4 }
  0x34   :  { %7367 = vmatprep.mubr.bf16.mxu1 %v17104_v1  ;;  %6018 = vmatprep.subr.bf16.mxu0 %v10837_v32  ;;  %v586_v58 = vmax.bf16 %v17099_v52, %v469_v10  ;;  %v114_v32 = vld [vmem:[%s17085_s0 + $0x2fc] sm:$0xff]  ;;  %v302_v48 = vmax.bf16 %v236_v8, %v12415_v55  ;;  %v95_v52 = vld [vmem:[%s17085_s0 + $0x26c] sm:$0xff]  ;;  %v727_v27 = vmax.bf16 %v17106_v26, %v610_v31 }
  0x35   :  { %820 = vst [vmem:[%s17086_s3 + $0xa0] sm:$0xff] %v781_v63  ;;  %v12479_v1 = vsel %vm249_vm0, %v235_v17, %v236_v8  ;;  %v12484_v63 = vld [vmem:[%s17085_s0 + $0x2f0] sm:$0xf]  ;;  %v12489_v31 = vld [vmem:[%s17085_s0 + $0x31c] sm:$0xff]  ;;  %v237_v18 = vrot.slane %v114_v32, 4  ;;  %v12492_v21 = vcombine.high %v12415_v55, %v114_v32 }
  0x36   :  { %v612_v10 = vmax.bf16 %v586_v58, %v95_v52  ;;  %17190 = vst [vmem:[#allocation26_spill] sm:$0xff] %v12489_v31  ;;  %v328_v26 = vmax.bf16 %v302_v48, %v103_v56  ;;  %v753_v8 = vmax.bf16 %v727_v27, %v12334_v20  ;;  %v106_v52 = vld [vmem:[%s17085_s0 + $0x2c0] sm:$0xff]  ;;  %v12504_v17 = vld [vmem:[%s17085_s0 + $0x35c] sm:$0xf]  ;;  %v304_v56 = vmax.bf16 %v238_v59, %v114_v32 }
  0x37   :  { %6019 = vmatpush1.bf16.msra.mxu0 %v10839_v23  ;;  %v117_v23 = vld [vmem:[%s17085_s0 + $0x314] sm:$0xff]  ;;  %v10846_v27 = vld [vmem:[%s17084_s1 + $0x150] ss:$12 sps:$4 sm:$0xff]   ;;  %v17191_v20 = vrot.slane %v12437_v13, 4  ;;  %v12515_v48 = vld [vmem:[%s17085_s0 + $0x2e0] sm:$0xff] }
  0x38   :  { %6020 = vmatprep.subr.bf16.mxu0 %v10840_v60  ;;  %17192 = vst [vmem:[#allocation27_spill] sm:$0xff] %v12515_v48  ;;  %v445_v58 = vmax.bf16 %v17194_v6, %v328_v26  ;;  %v784_v25 = vunpack.c.l.bf16 %v753_v8  ;;  %v330_v13 = vmax.bf16 %v304_v56, %v117_v23  ;;  %v10849_v6 = vld [vmem:[%s17084_s1 + $0x16c] ss:$12 sps:$4 sm:$0xff]   ;;  %v12539_v26 = vsel %vm249_vm0, %v237_v18, %v238_v59  ;;  %v10851_v59 = vld [vmem:[%s17084_s1 + $0x168] ss:$12 sps:$4 sm:$0xff]  }
  0x39   :  { %v729_v60 = vmax.bf16 %v17191_v20, %v612_v10  ;;  %v12529_v10 = vcombine.low %v12484_v63, %v12504_v17  ;;  %v10848_v20 = vld [vmem:[%s17084_s1 + $0x20] ss:$12 sps:$4 sm:$0xff]   ;;  %v109_v8 = vld [vmem:[%s17085_s0 + $0x2d8] sm:$0xff] }
  0x3a   :  { %v471_v22 = vmax.bf16 %v445_v58, %v106_v52  ;;  %823 = vst [vmem:[%s17086_s3 + $0xd0] sm:$0xff] %v784_v25  ;;  %v12558_v25 = vld [vmem:[%s17085_s0] sm:$0xff]  ;;  %v12563_v18 = vld [vmem:[%s17085_s0 + $0x6c] sm:$0xff]  ;;  %9560 = vmatpush3.bf16.msra.mxu1 %v10848_v20  ;;  %v12650_v4 = vld [vmem:[%s17085_s0 + $0x3b8] sm:$0xff] }
  0x3b   :  { %17195 = vst [vmem:[#allocation29_spill] sm:$0xff] %v12529_v10  ;;  %v755_v30 = vmax.bf16 %v729_v60, %v12363_v2  ;;  %6021 = vmatpush1.bf16.msra.mxu0 %v10846_v27  ;;  %v17196_v2 = vrot.slane %v12489_v31, 4  ;;  %7368 = vmatmul.mubr.bf16.gmra.mrb[12].mxu1 %v12529_v10  ;;  %17197 = vst [vmem:[#allocation30_spill] sm:$0xff] %v12563_v18  ;;  %v120_v58 = vld [vmem:[%s17085_s0 + $0x32c] sm:$0xff]  ;;  %v17198_v27 = vrot.slane %v12453_v41, 4  ;;  %v17199_v10 = vmov 0  }
  0x3c   :  { %6022 = vmatprep.subr.bf16.mxu0 %v10849_v6  ;;  %7377 = vmatprep.mubr.bf16.mxu1 %v17199_v10  ;;  %v12595_v20 = vcombine.low %v12558_v25, %v12563_v18  ;;  %v12603_v6 = vld [vmem:[%s17085_s0 + $0x34c] sm:$0xff]  ;;  %17205 = vst [vmem:[#allocation34_spill] sm:$0xff] %v12650_v4 }
  0x3d   :  { %v447_v52 = vmax.bf16 %v17196_v2, %v330_v13  ;;  %v12566_v13 = vcombine.low %v12415_v55, %v114_v32  ;;  %v787_v56 = vunpack.c.l.bf16 %v755_v30  ;;  %v588_v60 = vmax.bf16 %v17198_v27, %v471_v22  ;;  %v10855_v55 = vld [vmem:[%s17084_s1 + $0x184] ss:$12 sps:$4 sm:$0xff]   ;;  %v128_v22 = vld [vmem:[%s17085_s0 + $0x368] sm:$0xff]  ;;  %17200 = vst [vmem:[#allocation31_spill] sm:$0xff] %v12603_v6 }
  0x3e   :  { %v12580_v30 = vcombine.high %v12558_v25, %v12563_v18  ;;  %v12591_v32 = vld [vmem:[%s17085_s0 + $0x370] sm:$0xff]  ;;  %v239_v23 = vrot.slane %v128_v22, 4  ;;  %v123_v2 = vld [vmem:[%s17085_s0 + $0x344] sm:$0xff] }
  0x3f   :  { %v473_v0 = vmax.bf16 %v447_v52, %v120_v58  ;;  %826 = vst [vmem:[%s17086_s3 + $0x100] sm:$0xff] %v787_v56  ;;  %v614_v52 = vmax.bf16 %v588_v60, %v109_v8  ;;  %6023 = vmatpush1.bf16.msra.mxu0 %v10851_v59  ;;  %v10853_v58 = vld [vmem:[%s17084_s1 + $0x180] ss:$12 sps:$4 sm:$0xff]   ;;  %v240_v27 = vrot.slane %v12591_v32, 4  ;;  %v17201_v56 = vrot.slane %v12520_v39, 4 }
  0x40   :  { %6024 = vmatprep.mubr.bf16.mxu0 %v12580_v30  ;;  %6093 = vmatprep.subr.bf16.mxu0 %v10855_v55  ;;  %v12619_v8 = vld [vmem:[%s17085_s0 + $0x388] sm:$0xff]  ;;  %v17203_v59 = vrot.slane %v12515_v48, 4  ;;  %v12634_v55 = vld [vmem:[%s17085_s0 + $0x3dc] sm:$0xff]  ;;  %v17207_v48 = vrot.slane %v12603_v6, 4  ;;  %v10860_v6 = vld [vmem:[%s17084_s1 + $0xf8] ss:$12 sps:$4 sm:$0xff]  }
  0x41   :  { %v590_v41 = vmax.bf16 %v17201_v56, %v473_v0  ;;  %17202 = vst [vmem:[#allocation32_spill] sm:$0xff] %v12619_v8  ;;  %v142_v0 = vld [vmem:[%s17085_s0 + $0x3d4] sm:$0xff]  ;;  %v306_v56 = vmax.bf16 %v240_v27, %v128_v22  ;;  %v12644_v16 = vsel %vm249_vm0, %v239_v23, %v240_v27  ;;  %9561 = vmatprep.subr.bf16.mxu1 %v10860_v6 }
  0x42   :  { %v731_v60 = vmax.bf16 %v17203_v59, %v614_v52  ;;  %v131_v52 = vld [vmem:[%s17085_s0 + $0x380] sm:$0xff]  ;;  %v242_v59 = vrot.slane %v12634_v55, 4  ;;  %6025 = vmatmul.mubr.bf16.vlgmr.msra.gmra.mrb[0].mxu0 %v12595_v20  ;;  %v12663_v23 = vld [vmem:[%s17085_s0 + $0x3f4] sm:$0xff]  ;;  %v241_v27 = vrot.slane %v142_v0, 4 }
  0x43   :  { %v616_v39 = vmax.bf16 %v590_v41, %v123_v2  ;;  %v12655_v41 = vld [vmem:[%s17085_s0 + $0x3c8] sm:$0xf]  ;;  %v145_v2 = vld [vmem:[%s17085_s0 + $0x3ec] sm:$0xff]  ;;  %17206 = vst [vmem:[#allocation35_spill] sm:$0xff] %v12663_v23  ;;  %6094 = vmatpush1.bf16.msra.mxu0 %v10853_v58 }
  0x44   :  { %v757_v5 = vmax.bf16 %v731_v60, %v12484_v63  ;;  %v332_v63 = vmax.bf16 %v306_v56, %v131_v52  ;;  %v12665_v60 = vcombine.high %v128_v22, %v142_v0  ;;  %v12680_v56 = vld [vmem:[%s17085_s0 + $0x434] sm:$0xf]  ;;  %v308_v58 = vmax.bf16 %v242_v59, %v142_v0 }
  0x45   :  { %v733_v54 = vmax.bf16 %v17207_v48, %v616_v39  ;;  %v17131_v52 = vrot.slane %v12663_v23, 4  ;;  %v17209_v39 = vrot.slane %v12619_v8, 4  ;;  %v12692_v36 = vcombine.low %v12655_v41, %v12680_v56 }
  0x46   :  { %v790_v51 = vunpack.c.l.bf16 %v757_v5  ;;  %v334_v9 = vmax.bf16 %v308_v58, %v145_v2  ;;  %v10862_v5 = vld [vmem:[%s17084_s1 + $0x38] ss:$12 sps:$4 sm:$0xff]   ;;  %v10865_v58 = vld [vmem:[%s17084_s1 + $0x19c] ss:$12 sps:$4 sm:$0xff]  }
  0x47   :  { %v449_v48 = vmax.bf16 %v17209_v39, %v332_v63  ;;  %v759_v31 = vmax.bf16 %v733_v54, %v12504_v17  ;;  %17210 = vst [vmem:[#allocation37_spill] sm:$0xff] %v12692_v36  ;;  %v148_v63 = vld [vmem:[%s17085_s0 + $0x404] sm:$0xff]  ;;  %v17133_v17 = vrot.slane %v12675_v62, 4  ;;  %v12711_v39 = vsel %vm249_vm0, %v241_v27, %v242_v59  ;;  %7378 = vmatmul.mubr.bf16.gmra.mrb[16].mxu1 %v12692_v36  ;;  %v10868_v27 = vld [vmem:[%s17084_s1 + $0x1b0] ss:$12 sps:$4 sm:$0xff]  }
  0x48   :  { %829 = vst [vmem:[%s17086_s3 + $0x130] sm:$0xff] %v790_v51  ;;  %v10863_v2 = vld [vmem:[%s17084_s1 + $0x198] ss:$12 sps:$4 sm:$0xff]   ;;  %v12713_v51 = vcombine.low %v128_v22, %v142_v0  ;;  %v451_v6 = vmax.bf16 %v17131_v52, %v334_v9  ;;  %9562 = vmatpush3.bf16.msra.mxu1 %v10862_v5  ;;  %6095 = vmatprep.subr.bf16.mxu0 %v10865_v58  ;;  %v10867_v9 = vld [vmem:[%s17084_s1 + $0x50] ss:$12 sps:$4 sm:$0xff]  }
  0x49   :  { %v475_v54 = vmax.bf16 %v449_v48, %v134_v42  ;;  %v793_v24 = vunpack.c.l.bf16 %v759_v31  ;;  %v137_v42 = vld [vmem:[%s17085_s0 + $0x3b0] sm:$0xff]  ;;  %v12727_v59 = vld [vmem:[%s17085_s0 + $0x424] sm:$0xff]  ;;  %v17212_v31 = vrot.slane %v12626_v47, 4  ;;  %6096 = vmatpush1.bf16.msra.mxu0 %v10863_v2  ;;  %7387 = vmatprep.mubr.bf16.mxu1 %v17199_v10 }
  0x4a   :  { %v10866_v48 = vld [vmem:[%s17084_s1 + $0x110] ss:$12 sps:$4 sm:$0xff]   ;;  %17211 = vst [vmem:[#allocation38_spill] sm:$0xff] %v12727_v59  ;;  %v477_v0 = vmax.bf16 %v451_v6, %v148_v63  ;;  %v10870_v5 = vld [vmem:[%s17084_s1 + $0x1b4] ss:$12 sps:$4 sm:$0xff]   ;;  %v12754_v63 = vcombine.high %v12028_v28, %v12054_v37 }
  0x4b   :  { %v592_v22 = vmax.bf16 %v17212_v31, %v475_v54  ;;  %832 = vst [vmem:[%s17086_s3 + $0x160] sm:$0xff] %v793_v24  ;;  %9563 = vmatprep.subr.bf16.mxu1 %v10866_v48  ;;  %v156_v54 = vld [vmem:[%s17085_s0 + $0x440] sm:$0xff]  ;;  %v12750_v24 = vld [vmem:[%s17085_s0 + $0x448] sm:$0xff]  ;;  %v17213_v31 = vrot.slane %v12650_v4, 4  ;;  %6097 = vmatprep.subr.bf16.mxu0 %v10870_v5 }
  0x4c   :  { %v594_v2 = vmax.bf16 %v17133_v17, %v477_v0  ;;  %v243_v6 = vrot.slane %v156_v54, 4  ;;  %v151_v48 = vld [vmem:[%s17085_s0 + $0x41c] sm:$0xff]  ;;  %9564 = vmatpush3.bf16.msra.mxu1 %v10867_v9  ;;  %v170_v58 = vld [vmem:[%s17085_s0 + $0x4ac] sm:$0xff] }
  0x4d   :  { %v618_v52 = vmax.bf16 %v592_v22, %v137_v42  ;;  %v244_v42 = vrot.slane %v12750_v24, 4  ;;  %v12768_v36 = vld [vmem:[%s17085_s0 + $0x460] sm:$0xff]  ;;  %v12773_v0 = vld [vmem:[%s17085_s0 + $0x478] sm:$0xff]  ;;  %6098 = vmatpush1.bf16.msra.mxu0 %v10868_v27  ;;  %v245_v47 = vrot.slane %v170_v58, 4  ;;  %v12811_v5 = vld [vmem:[%s17085_s0 + $0x4cc] sm:$0xff]  ;;  %9565 = vmatprep.subr.bf16.mxu1 %v10875_v49  ;;  %v12859_v18 = vcombine.low %v156_v54, %v170_v58 }
  0x4e   :  { %17214 = vst [vmem:[#allocation39_spill] sm:$0xff] %v12768_v36  ;;  %17215 = vst [vmem:[#allocation40_spill] sm:$0xff] %v12773_v0  ;;  %v620_v17 = vmax.bf16 %v594_v2, %v151_v48  ;;  %v159_v2 = vld [vmem:[%s17085_s0 + $0x458] sm:$0xff]  ;;  %v12792_v48 = vld [vmem:[%s17085_s0 + $0x490] sm:$0xff] }
  0x4f   :  { %v735_v22 = vmax.bf16 %v17213_v31, %v618_v52  ;;  %v12781_v52 = vld [vmem:[%s17085_s0 + $0x4b4] sm:$0xff]  ;;  %v310_v9 = vmax.bf16 %v244_v42, %v156_v54  ;;  %17216 = vst [vmem:[#allocation41_spill] sm:$0xff] %v12792_v48  ;;  %v12796_v23 = vsel %vm249_vm0, %v243_v6, %v244_v42  ;;  %v17217_v31 = vrot.slane %v12727_v59, 4  ;;  %17218 = vst [vmem:[#allocation42_spill] sm:$0xff] %v12811_v5  ;;  %v12822_v59 = vld [vmem:[%s17085_s0 + $0x4e4] sm:$0xff] }
  0x50   :  { %v246_v62 = vrot.slane %v12781_v52, 4  ;;  %v12814_v6 = vcombine.high %v156_v54, %v170_v58  ;;  %17219 = vst [vmem:[#allocation43_spill] sm:$0xff] %v12822_v59 }
  0x51   :  { %v761_v4 = vmax.bf16 %v735_v22, %v12655_v41  ;;  %v737_v27 = vmax.bf16 %v17217_v31, %v620_v17  ;;  %v12803_v41 = vld [vmem:[%s17085_s0 + $0x4a0] sm:$0xf]  ;;  %v173_v22 = vld [vmem:[%s17085_s0 + $0x4c4] sm:$0xff]  ;;  %v336_v8 = vmax.bf16 %v310_v9, %v159_v2  ;;  %v162_v31 = vld [vmem:[%s17085_s0 + $0x470] sm:$0xff]  ;;  %v17146_v2 = vrot.slane %v12811_v5, 4 }
  0x52   :  { %v312_v9 = vmax.bf16 %v246_v62, %v170_v58  ;;  %v12842_v61 = vcombine.low %v12803_v41, %v12827_v33 }
  0x53   :  { %v796_v17 = vunpack.c.l.bf16 %v761_v4  ;;  %v763_v42 = vmax.bf16 %v737_v27, %v12680_v56  ;;  %v17220_v4 = vrot.slane %v12768_v36, 4  ;;  %v10876_v56 = vld [vmem:[%s17084_s1 + $0x68] ss:$12 sps:$4 sm:$0xff]  }
  0x54   :  { %v338_v34 = vmax.bf16 %v312_v9, %v173_v22  ;;  %17221 = vst [vmem:[#allocation44_spill] sm:$0xff] %v12842_v61  ;;  %v10877_v22 = vld [vmem:[%s17084_s1 + $0x1c8] ss:$12 sps:$4 sm:$0xff]   ;;  %v10879_v9 = vld [vmem:[%s17084_s1 + $0x1cc] ss:$12 sps:$4 sm:$0xff]   ;;  %7388 = vmatmul.mubr.bf16.gmra.mrb[20].mxu1 %v12842_v61 }
  0x55   :  { %v453_v15 = vmax.bf16 %v17220_v4, %v336_v8  ;;  %835 = vst [vmem:[%s17086_s3 + $0x190] sm:$0xff] %v796_v17  ;;  %v12848_v8 = vsel %vm249_vm0, %v245_v47, %v246_v62  ;;  %v799_v27 = vunpack.c.l.bf16 %v763_v42  ;;  %v176_v4 = vld [vmem:[%s17085_s0 + $0x4dc] sm:$0xff]  ;;  %v12863_v62 = vcombine.low %v12028_v28, %v12054_v37  ;;  %v165_v47 = vld [vmem:[%s17085_s0 + $0x488] sm:$0xff]  ;;  %9566 = vmatpush3.bf16.msra.mxu1 %v10876_v56  ;;  %v187_v61 = vld [vmem:[%s17085_s0 + $0x530] sm:$0xff] }
  0x56   :  { %v455_v49 = vmax.bf16 %v17146_v2, %v338_v34  ;;  %v12880_v28 = vld [vmem:[%s17085_s0 + $0x4fc] sm:$0xff]  ;;  %v17223_v37 = vrot.slane %v12773_v0, 4  ;;  %6099 = vmatprep.subr.bf16.mxu0 %v10879_v9  ;;  %7397 = vmatprep.mubr.bf16.mxu1 %v17199_v10  ;;  %v10885_v9 = vld [vmem:[%s17084_s1 + $0x1e4] ss:$12 sps:$4 sm:$0xff]   ;;  %v17224_v10 = vrot.slane %v12822_v59, 4  ;;  %v179_v2 = vld [vmem:[%s17085_s0 + $0x4f4] sm:$0xff] }
  0x57   :  { %v479_v17 = vmax.bf16 %v453_v15, %v162_v31  ;;  %v10880_v15 = vld [vmem:[%s17084_s1 + $0x140] ss:$12 sps:$4 sm:$0xff]   ;;  %838 = vst [vmem:[%s17086_s3 + $0x1c0] sm:$0xff] %v799_v27  ;;  %17222 = vst [vmem:[#allocation45_spill] sm:$0xff] %v12880_v28  ;;  %6100 = vmatpush1.bf16.msra.mxu0 %v10877_v22  ;;  %v12890_v42 = vld [vmem:[%s17085_s0 + $0xd8] sm:$0xff] }
  0x58   :  { %v10881_v34 = vld [vmem:[%s17084_s1 + $0x80] ss:$12 sps:$4 sm:$0xff]   ;;  %v481_v58 = vmax.bf16 %v455_v49, %v176_v4  ;;  %9567 = vmatprep.subr.bf16.mxu1 %v10880_v15  ;;  %v12895_v31 = vld [vmem:[%s17085_s0 + $0x144] sm:$0xff]  ;;  %v12918_v15 = vld [vmem:[%s17085_s0 + $0x518] sm:$0xff]  ;;  %6101 = vmatprep.subr.bf16.mxu0 %v10885_v9 }
  0x59   :  { %v596_v54 = vmax.bf16 %v17223_v37, %v479_v17  ;;  %v12904_v17 = vcombine.high %v12890_v42, %v12895_v31  ;;  %v10883_v22 = vld [vmem:[%s17084_s1 + $0x1e0] ss:$12 sps:$4 sm:$0xff]   ;;  %9568 = vmatpush3.bf16.msra.mxu1 %v10881_v34  ;;  %v247_v56 = vrot.slane %v12918_v15, 4  ;;  %v12940_v59 = vld [vmem:[%s17085_s0 + $0x538] sm:$0xff]  ;;  %v12945_v34 = vld [vmem:[%s17085_s0 + $0x550] sm:$0xff] }
  0x5a   :  { %v185_v37 = vld [vmem:[%s17085_s0 + $0x520] sm:$0xff]  ;;  %17226 = vst [vmem:[#allocation46_spill] sm:$0xff] %v12945_v34  ;;  %v17154_v36 = vrot.slane %v12945_v34, 4  ;;  %v10950_v34 = vld [vmem:[%s17084_s1 + $0x2a8] ss:$12 sps:$4 sm:$0xff]  }
  0x5b   :  { %v622_v27 = vmax.bf16 %v596_v54, %v165_v47  ;;  %v598_v47 = vmax.bf16 %v17224_v10, %v481_v58  ;;  %v12925_v54 = vcombine.low %v12890_v42, %v12895_v31  ;;  %v17225_v58 = vrot.slane %v12792_v48, 4  ;;  %6034 = vmatprep.mubr.bf16.mxu0 %v12904_v17  ;;  %6102 = vmatpush1.bf16.msra.mxu0 %v10883_v22  ;;  %v10890_v0 = vld [vmem:[%s17084_s1 + $0x158] ss:$12 sps:$4 sm:$0xff]  }
  0x5c   :  { %v248_v4 = vrot.slane %v185_v37, 4  ;;  %v17227_v37 = vrot.slane %v12880_v28, 4  ;;  %v10892_v22 = vld [vmem:[%s17084_s1 + $0x98] ss:$12 sps:$4 sm:$0xff]   ;;  %9569 = vmatprep.subr.bf16.mxu1 %v10890_v0  ;;  %v10896_v0 = vld [vmem:[%s17084_s1 + $0x170] ss:$12 sps:$4 sm:$0xff]  }
  0x5d   :  { %v739_v10 = vmax.bf16 %v17225_v58, %v622_v27  ;;  %v624_v49 = vmax.bf16 %v598_v47, %v179_v2  ;;  %v12950_v27 = vld [vmem:[%s17085_s0 + $0x578] sm:$0xf]  ;;  %6035 = vmatmul.mubr.bf16.gmra.mrb[4].mxu0 %v12925_v54  ;;  %9570 = vmatpush3.bf16.msra.mxu1 %v10892_v22  ;;  %v10899_v22 = vld [vmem:[%s17084_s1 + $0x210] ss:$12 sps:$4 sm:$0xff]  }
  0x5e   :  { %v314_v9 = vmax.bf16 %v248_v4, %v12918_v15  ;;  %v12960_v48 = vcombine.low %v12950_v27, %v12950_v27  ;;  %v12966_v5 = vsel %vm249_vm0, %v247_v56, %v248_v4  ;;  %v10895_v56 = vld [vmem:[%s17084_s1 + $0x1fc] ss:$12 sps:$4 sm:$0xff]   ;;  %v12989_v4 = vcombine.low %v12127_v3, %v12170_v19  ;;  %9571 = vmatprep.subr.bf16.mxu1 %v10896_v0 }
  0x5f   :  { %v765_v2 = vmax.bf16 %v739_v10, %v12803_v41  ;;  %v741_v58 = vmax.bf16 %v17227_v37, %v624_v49  ;;  %v10893_v49 = vld [vmem:[%s17084_s1 + $0x1f8] ss:$12 sps:$4 sm:$0xff]   ;;  %v12977_v37 = vcombine.high %v12127_v3, %v12170_v19  ;;  %v13003_v3 = vld [vmem:[%s17085_s0 + $0x568] sm:$0xff]  ;;  %6103 = vmatprep.subr.bf16.mxu0 %v10895_v56  ;;  %v10897_v19 = vld [vmem:[%s17084_s1 + $0xb0] ss:$12 sps:$4 sm:$0xff]  }
  0x60   :  { %17228 = vst [vmem:[#allocation47_spill] sm:$0xff] %v12960_v48  ;;  %v340_v10 = vmax.bf16 %v314_v9, %v187_v61  ;;  %v190_v61 = vld [vmem:[%s17085_s0 + $0x548] sm:$0xff]  ;;  %7398 = vmatmul.mubr.bf16.gmra.mrb[24].mxu1 %v12960_v48  ;;  %17230 = vst [vmem:[#allocation48_spill] sm:$0xff] %v13003_v3  ;;  %6104 = vmatpush1.bf16.msra.mxu0 %v10893_v49  ;;  %v10901_v49 = vld [vmem:[%s17084_s1 + $0x214] ss:$12 sps:$4 sm:$0xff]   ;;  %v13057_v48 = vcombine.low %v12254_v11, %v12310_v50 }
  0x61   :  { %v802_v41 = vunpack.c.l.bf16 %v765_v2  ;;  %v767_v47 = vmax.bf16 %v741_v58, %v12827_v33  ;;  %v17229_v33 = vrot.slane %v12940_v59, 4  ;;  %7438 = vmatprep.mubr.bf16.mxu1 %v12580_v30  ;;  %v13011_v58 = vld [vmem:[%s17085_s0 + $0x1b0] sm:$0xff]  ;;  %v13016_v30 = vld [vmem:[%s17085_s0 + $0x21c] sm:$0xff]  ;;  %9572 = vmatpush3.bf16.msra.mxu1 %v10897_v19 }
  0x62   :  { %v8775_v56 = vcombine.high %v13011_v58, %v13016_v30  ;;  %6105 = vmatprep.subr.bf16.mxu0 %v10901_v49  ;;  %v10909_v49 = vld [vmem:[%s17084_s1 + $0x244] ss:$12 sps:$4 sm:$0xff]   ;;  %v10919_v19 = vld [vmem:[%s17084_s1 + $0x248] ss:$12 sps:$4 sm:$0xff]   ;;  %v13125_v28 = vld [vmem:[%s17085_s0 + $0x438] sm:$0xff] }
  0x63   :  { %841 = vst [vmem:[%s17086_s3 + $0x1f0] sm:$0xff] %v802_v41  ;;  %v457_v2 = vmax.bf16 %v17229_v33, %v340_v10  ;;  %v805_v9 = vunpack.c.l.bf16 %v767_v47  ;;  %v13039_v33 = vcombine.high %v12254_v11, %v12310_v50  ;;  %v10905_v10 = vld [vmem:[%s17084_s1 + $0x22c] ss:$12 sps:$4 sm:$0xff]   ;;  %v10903_v50 = vld [vmem:[%s17084_s1 + $0x228] ss:$12 sps:$4 sm:$0xff]   ;;  %9615 = vmatprep.subr.bf16.mxu1 %v10919_v19 }
  0x64   :  { %v13053_v41 = vld [vmem:[%s17085_s0 + $0x288] sm:$0xff]  ;;  %6044 = vmatprep.mubr.bf16.mxu0 %v8775_v56  ;;  %6106 = vmatpush1.bf16.msra.mxu0 %v10899_v22  ;;  %v10917_v19 = vld [vmem:[%s17084_s1 + $0x274] ss:$12 sps:$4 sm:$0xff]  }
  0x65   :  { %v483_v47 = vmax.bf16 %v457_v2, %v190_v61  ;;  %844 = vst [vmem:[%s17086_s3 + $0x220] sm:$0xff] %v805_v9  ;;  %v13035_v61 = vcombine.low %v13011_v58, %v13016_v30  ;;  %v193_v2 = vld [vmem:[%s17085_s0 + $0x560] sm:$0xff]  ;;  %6107 = vmatprep.subr.bf16.mxu0 %v10905_v10 }
  0x66   :  { %v13084_v9 = vld [vmem:[%s17085_s0 + $0x360] sm:$0xff] }
  0x67   :  { %v600_v0 = vmax.bf16 %v17154_v36, %v483_v47  ;;  %v13062_v47 = vld [vmem:[%s17085_s0 + $0x2f4] sm:$0xff]  ;;  %6045 = vmatmul.mubr.bf16.gmra.mrb[8].mxu0 %v13035_v61  ;;  %v10907_v22 = vld [vmem:[%s17084_s1 + $0x240] ss:$12 sps:$4 sm:$0xff]  }
  0x68   :  { %v8802_v11 = vcombine.high %v13053_v41, %v13062_v47  ;;  %7439 = vmatmul.mubr.bf16.vlgmr.msra.gmra.mrb[28].mxu1 %v12595_v20  ;;  %v13089_v20 = vld [vmem:[%s17085_s0 + $0x3cc] sm:$0xff]  ;;  %6108 = vmatpush1.bf16.msra.mxu0 %v10903_v50 }
  0x69   :  { %v626_v36 = vmax.bf16 %v600_v0, %v193_v2  ;;  %v17231_v2 = vrot.slane %v13003_v3, 4  ;;  %7446 = vmatprep.mubr.bf16.mxu1 %v12904_v17  ;;  %v10920_v3 = vld [vmem:[%s17084_s1 + $0x188] ss:$12 sps:$4 sm:$0xff]   ;;  %6109 = vmatprep.subr.bf16.mxu0 %v10909_v49  ;;  %v8829_v50 = vcombine.high %v13084_v9, %v13089_v20 }
  0x6a   :  { %6054 = vmatprep.mubr.bf16.mxu0 %v8802_v11  ;;  %9616 = vmatpush3.bf16.msra.mxu1 %v10920_v3  ;;  %v13130_v49 = vld [vmem:[%s17085_s0 + $0x4a4] sm:$0xff]  ;;  %v8828_v3 = vcombine.low %v13084_v9, %v13089_v20 }
  0x6b   :  { %v743_v0 = vmax.bf16 %v17231_v2, %v626_v36  ;;  %v13101_v2 = vcombine.low %v13053_v41, %v13062_v47  ;;  %v13111_v36 = vcombine.high %v12420_v44, %v12461_v57 }
  0x6c   :  { %6110 = vmatpush1.bf16.msra.mxu0 %v10907_v22  ;;  %v10944_v22 = vld [vmem:[%s17084_s1 + $0x290] ss:$12 sps:$4 sm:$0xff]  }
  0x6d   :  { %v769_v10 = vmax.bf16 %v743_v0, %v12950_v27  ;;  %v10913_v27 = vld [vmem:[%s17084_s1 + $0x25c] ss:$12 sps:$4 sm:$0xff]   ;;  %v13118_v0 = vcombine.low %v12420_v44, %v12461_v57  ;;  %v10911_v44 = vld [vmem:[%s17084_s1 + $0x258] ss:$12 sps:$4 sm:$0xff]   ;;  %v8856_v57 = vcombine.high %v13125_v28, %v13130_v49 }
  0x6e   :  { %6111 = vmatprep.subr.bf16.mxu0 %v10913_v27  ;;  %v10923_v27 = vld [vmem:[%s17084_s1 + $0x28c] ss:$12 sps:$4 sm:$0xff]  }
  0x6f   :  { %v808_v17 = vunpack.c.l.bf16 %v769_v10  ;;  %6055 = vmatmul.mubr.bf16.gmra.mrb[12].mxu0 %v13101_v2  ;;  %v10930_v10 = vld [vmem:[%s17084_s1 + $0x1a0] ss:$12 sps:$4 sm:$0xff]  }
  0x70   :  { %7447 = vmatmul.mubr.bf16.gmra.mrb[32].mxu1 %v12925_v54  ;;  %6064 = vmatprep.mubr.bf16.mxu0 %v8829_v50  ;;  %v13158_v54 = vld [vmem:[%s17085_s0 + $0x510] sm:$0xff] }
  0x71   :  { %847 = vst [vmem:[%s17086_s3 + $0x250] sm:$0xff] %v808_v17  ;;  %7454 = vmatprep.mubr.bf16.mxu1 %v8775_v56  ;;  %v10929_v17 = vld [vmem:[%s17084_s1 + $0x260] ss:$12 sps:$4 sm:$0xff]   ;;  %6112 = vmatpush1.bf16.msra.mxu0 %v10911_v44  ;;  %v10915_v56 = vld [vmem:[%s17084_s1 + $0x270] ss:$12 sps:$4 sm:$0xff]   ;;  %v13174_v44 = vcombine.low %v12591_v32, %v12634_v55 }
  0x72   :  { %9617 = vmatprep.subr.bf16.mxu1 %v10929_v17  ;;  %6113 = vmatprep.subr.bf16.mxu0 %v10917_v19  ;;  %v13170_v17 = vcombine.high %v12591_v32, %v12634_v55  ;;  %v10940_v19 = vld [vmem:[%s17084_s1 + $0x1b8] ss:$12 sps:$4 sm:$0xff]   ;;  %v10921_v32 = vld [vmem:[%s17084_s1 + $0x288] ss:$12 sps:$4 sm:$0xff]  }
  0x73   :  { %9618 = vmatpush3.bf16.msra.mxu1 %v10930_v10  ;;  %v10938_v10 = vld [vmem:[%s17084_s1 + $0x278] ss:$12 sps:$4 sm:$0xff]  }
  0x74   :  { %v10927_v55 = vld [vmem:[%s17084_s1 + $0x2a4] ss:$12 sps:$4 sm:$0xff]   ;;  %9619 = vmatprep.subr.bf16.mxu1 %v10938_v10  ;;  %v10933_v10 = vld [vmem:[%s17084_s1 + $0x2bc] ss:$12 sps:$4 sm:$0xff]  }
  0x75   :  { %6114 = vmatpush1.bf16.msra.mxu0 %v10915_v56  ;;  %v10945_v56 = vld [vmem:[%s17084_s1 + $0x1d0] ss:$12 sps:$4 sm:$0xff]  }
  0x76   :  { %6115 = vmatprep.subr.bf16.mxu0 %v10923_v27  ;;  %v10925_v27 = vld [vmem:[%s17084_s1 + $0x2a0] ss:$12 sps:$4 sm:$0xff]  }
  0x77   :  { %6065 = vmatmul.mubr.bf16.gmra.mrb[16].mxu0 %v8828_v3  ;;  %9620 = vmatpush3.bf16.msra.mxu1 %v10940_v19  ;;  %v13211_v19 = vcombine.low %v12750_v24, %v12781_v52 }
  0x78   :  { %7455 = vmatmul.mubr.bf16.gmra.mrb[36].mxu1 %v13035_v61  ;;  %6074 = vmatprep.mubr.bf16.mxu0 %v8856_v57  ;;  %v8855_v61 = vcombine.low %v13125_v28, %v13130_v49 }
  0x79   :  { %7462 = vmatprep.mubr.bf16.mxu1 %v8802_v11  ;;  %6116 = vmatpush1.bf16.msra.mxu0 %v10921_v32  ;;  %v13204_v11 = vcombine.high %v12750_v24, %v12781_v52  ;;  %v10931_v32 = vld [vmem:[%s17084_s1 + $0x2b8] ss:$12 sps:$4 sm:$0xff]   ;;  %v10956_v24 = vld [vmem:[%s17084_s1 + $0x2c0] ss:$12 sps:$4 sm:$0xff]  }
  0x7a   :  { %9621 = vmatprep.subr.bf16.mxu1 %v10944_v22  ;;  %6117 = vmatprep.subr.bf16.mxu0 %v10927_v55  ;;  %v8883_v22 = vcombine.high %v13158_v54, %v13158_v54  ;;  %v10952_v55 = vld [vmem:[%s17084_s1 + $0x1e8] ss:$12 sps:$4 sm:$0xff]  }
  0x7b   :  { %9622 = vmatpush3.bf16.msra.mxu1 %v10945_v56  ;;  %v10937_v52 = vld [vmem:[%s17084_s1 + $0x2d4] ss:$12 sps:$4 sm:$0xff]   ;;  %v8882_v56 = vcombine.low %v13158_v54, %v13158_v54 }
  0x7c   :  { %9623 = vmatprep.subr.bf16.mxu1 %v10950_v34  ;;  %v10941_v34 = vld [vmem:[%s17084_s1 + $0x2e8] ss:$12 sps:$4 sm:$0xff]  }
  0x7d   :  { %6118 = vmatpush1.bf16.msra.mxu0 %v10925_v27  ;;  %v10935_v27 = vld [vmem:[%s17084_s1 + $0x2d0] ss:$12 sps:$4 sm:$0xff]  }
  0x7e   :  { %6119 = vmatprep.subr.bf16.mxu0 %v10933_v10  ;;  %v10961_v10 = vld [vmem:[%s17084_s1 + $0x2d8] ss:$12 sps:$4 sm:$0xff]  }
  0x7f   :  { %6075 = vmatmul.mubr.bf16.gmra.mrb[20].mxu0 %v8855_v61  ;;  %9624 = vmatpush3.bf16.msra.mxu1 %v10952_v55  ;;  %v10966_v55 = vld [vmem:[%s17084_s1 + $0x2f0] ss:$12 sps:$4 sm:$0xff]  }
  0x80   :  { %7463 = vmatmul.mubr.bf16.gmra.mrb[40].mxu1 %v13101_v2  ;;  %6084 = vmatprep.mubr.bf16.mxu0 %v8883_v22  ;;  %v10957_v2 = vld [vmem:[%s17084_s1 + $0x200] ss:$12 sps:$4 sm:$0xff]  }
  0x81   :  { %7470 = vmatprep.mubr.bf16.mxu1 %v8829_v50  ;;  %6120 = vmatpush1.bf16.msra.mxu0 %v10931_v32  ;;  %v10943_v50 = vld [vmem:[%s17084_s1 + $0x2ec] ss:$12 sps:$4 sm:$0xff]  }
  0x82   :  { %9625 = vmatprep.subr.bf16.mxu1 %v10956_v24  ;;  %6121 = vmatprep.subr.bf16.mxu0 %v10937_v52  ;;  %v10962_v32 = vld [vmem:[%s17084_s1 + $0x218] ss:$12 sps:$4 sm:$0xff]   ;;  %v10967_v52 = vld [vmem:[%s17084_s1 + $0x230] ss:$12 sps:$4 sm:$0xff]  }
  0x83   :  { %9626 = vmatpush3.bf16.msra.mxu1 %v10957_v2  ;;  %v10949_v24 = vld [vmem:[%s17084_s1 + $0x304] ss:$12 sps:$4 sm:$0xff]   ;;  %v10989_v2 = vld [vmem:[%s17084_s1 + $0x3c8] ss:$12 sps:$4 sm:$0xff]  }
  0x84   :  { %9627 = vmatprep.subr.bf16.mxu1 %v10961_v10  ;;  %v10971_v10 = vld [vmem:[%s17084_s1 + $0x364] ss:$12 sps:$4 sm:$0xff]  }
  0x85   :  { %6122 = vmatpush1.bf16.msra.mxu0 %v10935_v27  ;;  %v10953_v27 = vld [vmem:[%s17084_s1 + $0x318] ss:$12 sps:$4 sm:$0xff]  }
  0x86   :  { %6123 = vmatprep.subr.bf16.mxu0 %v10943_v50  ;;  %v10960_v50 = vld [vmem:[%s17084_s1 + $0x334] ss:$12 sps:$4 sm:$0xff]  }
  0x87   :  { %6085 = vmatmul.mubr.bf16.gmra.mrb[24].mxu0 %v8882_v56  ;;  %9628 = vmatpush3.bf16.msra.mxu1 %v10962_v32  ;;  %v10969_v32 = vld [vmem:[%s17084_s1 + $0x360] ss:$12 sps:$4 sm:$0xff]  }
  0x88   :  { %7471 = vmatmul.mubr.bf16.gmra.mrb[44].mxu1 %v8828_v3  ;;  %6125 = vmatprep.mubr.bf16.mxu0 %v12067_v45  ;;  %v10947_v3 = vld [vmem:[%s17084_s1 + $0x300] ss:$12 sps:$4 sm:$0xff]  }
  0x89   :  { %7478 = vmatprep.mubr.bf16.mxu1 %v8856_v57  ;;  %6124 = vmatpush1.bf16.msra.mxu0 %v10941_v34  ;;  %v10955_v57 = vld [vmem:[%s17084_s1 + $0x31c] ss:$12 sps:$4 sm:$0xff]  }
  0x8a   :  { %9629 = vmatprep.subr.bf16.mxu1 %v10966_v55  ;;  %6194 = vmatprep.subr.bf16.mxu0 %v10949_v24  ;;  %v10958_v34 = vld [vmem:[%s17084_s1 + $0x330] ss:$12 sps:$4 sm:$0xff]   ;;  %v10999_v55 = vld [vmem:[%s17084_s1 + $0x3e0] ss:$12 sps:$4 sm:$0xff]   ;;  %v10973_v24 = vld [vmem:[%s17084_s1 + $0x378] ss:$12 sps:$4 sm:$0xff]  }
  0x8b   :  { %9630 = vmatpush3.bf16.msra.mxu1 %v10967_v52  ;;  %v10979_v52 = vld [vmem:[%s17084_s1 + $0x394] ss:$12 sps:$4 sm:$0xff]  }
  0x8c   :  { %9673 = vmatprep.subr.bf16.mxu1 %v10989_v2  ;;  %v11010_v2 = vld [vmem:[%s17084_s1 + $0x338] ss:$12 sps:$4 sm:$0xff]  }
  0x8f   :  { %6126 = vmatmul.mubr.bf16.vlgmr.msra.gmra.mrb[0].mxu0 %v12069_v46 }
  0x90   :  { %7479 = vmatmul.mubr.bf16.gmra.mrb[48].mxu1 %v8855_v61  ;;  %6195 = vmatpush1.bf16.msra.mxu0 %v10947_v3  ;;  %v10965_v61 = vld [vmem:[%s17084_s1 + $0x34c] ss:$12 sps:$4 sm:$0xff]  }
  0x91   :  { %6196 = vmatprep.subr.bf16.mxu0 %v10955_v57  ;;  %7486 = vmatprep.mubr.bf16.mxu1 %v8883_v22  ;;  %v10963_v22 = vld [vmem:[%s17084_s1 + $0x348] ss:$12 sps:$4 sm:$0xff]   ;;  %v11000_v3 = vld [vmem:[%s17084_s1 + $0x320] ss:$12 sps:$4 sm:$0xff]  }
  0x92   :  { %6135 = vmatprep.mubr.bf16.mxu0 %v12206_v38  ;;  %v10983_v57 = vld [vmem:[%s17084_s1 + $0x3ac] ss:$12 sps:$4 sm:$0xff]  }
  0x94   :  { %6197 = vmatpush1.bf16.msra.mxu0 %v10953_v27  ;;  %v11014_v27 = vld [vmem:[%s17084_s1 + $0x410] ss:$12 sps:$4 sm:$0xff]  }
  0x95   :  { %6198 = vmatprep.subr.bf16.mxu0 %v10960_v50  ;;  %v10981_v50 = vld [vmem:[%s17084_s1 + $0x3a8] ss:$12 sps:$4 sm:$0xff]  }
  0x97   :  { %6136 = vmatmul.mubr.bf16.gmra.mrb[4].mxu0 %v12260_v14 }
  0x98   :  { %7487 = vmatmul.mubr.bf16.gmra.mrb[52].mxu1 %v8882_v56  ;;  %6199 = vmatpush1.bf16.msra.mxu0 %v10958_v34  ;;  %v10975_v56 = vld [vmem:[%s17084_s1 + $0x37c] ss:$12 sps:$4 sm:$0xff]   ;;  %v10987_v34 = vld [vmem:[%s17084_s1 + $0x3c4] ss:$12 sps:$4 sm:$0xff]  }
  0x99   :  { %6200 = vmatprep.subr.bf16.mxu0 %v10965_v61  ;;  %7526 = vmatprep.mubr.bf16.mxu1 %v12067_v45  ;;  %v10990_v45 = vld [vmem:[%s17084_s1 + $0x308] ss:$12 sps:$4 sm:$0xff]   ;;  %v11015_v61 = vld [vmem:[%s17084_s1 + $0x350] ss:$12 sps:$4 sm:$0xff]  }
  0x9a   :  { %6145 = vmatprep.mubr.bf16.mxu0 %v12399_v53 }
  0x9c   :  { %6201 = vmatpush1.bf16.msra.mxu0 %v10963_v22  ;;  %v10993_v22 = vld [vmem:[%s17084_s1 + $0x3dc] ss:$12 sps:$4 sm:$0xff]  }
  0x9d   :  { %6202 = vmatprep.subr.bf16.mxu0 %v10971_v10  ;;  %v11022_v10 = vld [vmem:[%s17084_s1 + $0x368] ss:$12 sps:$4 sm:$0xff]  }
  0x9f   :  { %6146 = vmatmul.mubr.bf16.gmra.mrb[8].mxu0 %v12402_v35 }
  0xa0   :  { %7527 = vmatmul.mubr.bf16.vlgmr.msra.gmra.mrb[56].mxu1 %v12069_v46  ;;  %6203 = vmatpush1.bf16.msra.mxu0 %v10969_v32  ;;  %v11008_v46 = vld [vmem:[%s17084_s1 + $0x3f8] ss:$12 sps:$4 sm:$0xff]   ;;  %v11026_v32 = vld [vmem:[%s17084_s1 + $0x440] ss:$12 sps:$4 sm:$0xff]  }
  0xa1   :  { %6204 = vmatprep.subr.bf16.mxu0 %v10975_v56  ;;  %7534 = vmatprep.mubr.bf16.mxu1 %v12206_v38  ;;  %v10977_v38 = vld [vmem:[%s17084_s1 + $0x390] ss:$12 sps:$4 sm:$0xff]   ;;  %v10991_v56 = vld [vmem:[%s17084_s1 + $0x3d8] ss:$12 sps:$4 sm:$0xff]  }
  0xa2   :  { %6155 = vmatprep.mubr.bf16.mxu0 %v12492_v21  ;;  %9674 = vmatpush3.bf16.msra.mxu1 %v10990_v45  ;;  %v10997_v45 = vld [vmem:[%s17084_s1 + $0x3f4] ss:$12 sps:$4 sm:$0xff]  }
  0xa3   :  { %9675 = vmatprep.subr.bf16.mxu1 %v10999_v55  ;;  %v11027_v55 = vld [vmem:[%s17084_s1 + $0x380] ss:$12 sps:$4 sm:$0xff]  }
  0xa4   :  { %6205 = vmatpush1.bf16.msra.mxu0 %v10973_v24  ;;  %v11003_v24 = vld [vmem:[%s17084_s1 + $0x40c] ss:$12 sps:$4 sm:$0xff]  }
  0xa5   :  { %6206 = vmatprep.subr.bf16.mxu0 %v10979_v52  ;;  %v8885_v52 = vcombine.high %v12918_v15, %v12918_v15 }
  0xa6   :  { %9676 = vmatpush3.bf16.msra.mxu1 %v11000_v3  ;;  %v11034_v3 = vld [vmem:[%s17084_s1 + $0x398] ss:$12 sps:$4 sm:$0xff]  }
  0xa7   :  { %6156 = vmatmul.mubr.bf16.gmra.mrb[12].mxu0 %v12566_v13  ;;  %9677 = vmatprep.subr.bf16.mxu1 %v11008_v46  ;;  %v11038_v46 = vld [vmem:[%s17084_s1 + $0x470] ss:$12 sps:$4 sm:$0xff]  }
  0xa8   :  { %7535 = vmatmul.mubr.bf16.gmra.mrb[60].mxu1 %v12260_v14  ;;  %6207 = vmatpush1.bf16.msra.mxu0 %v10977_v38  ;;  %v11020_v14 = vld [vmem:[%s17084_s1 + $0x428] ss:$12 sps:$4 sm:$0xff]  }
  0xa9   :  { %6208 = vmatprep.subr.bf16.mxu0 %v10983_v57  ;;  %7542 = vmatprep.mubr.bf16.mxu1 %v12399_v53  ;;  %v10985_v53 = vld [vmem:[%s17084_s1 + $0x3c0] ss:$12 sps:$4 sm:$0xff]   ;;  %v11001_v38 = vld [vmem:[%s17084_s1 + $0x408] ss:$12 sps:$4 sm:$0xff]   ;;  %v11007_v57 = vld [vmem:[%s17084_s1 + $0x424] ss:$12 sps:$4 sm:$0xff]  }
  0xaa   :  { %6165 = vmatprep.mubr.bf16.mxu0 %v12665_v60  ;;  %9678 = vmatpush3.bf16.msra.mxu1 %v11010_v2  ;;  %v11039_v2 = vld [vmem:[%s17084_s1 + $0x3b0] ss:$12 sps:$4 sm:$0xff]  }
  0xab   :  { %9679 = vmatprep.subr.bf16.mxu1 %v11014_v27  ;;  %v11059_v27 = vld [vmem:[%s17084_s1 + $0x548] ss:$12 sps:$4 sm:$0xff]  }
  0xac   :  { %6209 = vmatpush1.bf16.msra.mxu0 %v10981_v50  ;;  %v11013_v50 = vld [vmem:[%s17084_s1 + $0x43c] ss:$12 sps:$4 sm:$0xff]  }
  0xad   :  { %6210 = vmatprep.subr.bf16.mxu0 %v10987_v34  ;;  %v11019_v34 = vld [vmem:[%s17084_s1 + $0x454] ss:$12 sps:$4 sm:$0xff]  }
  0xae   :  { %9680 = vmatpush3.bf16.msra.mxu1 %v11015_v61  ;;  %v11017_v61 = vld [vmem:[%s17084_s1 + $0x450] ss:$12 sps:$4 sm:$0xff]  }
  0xaf   :  { %6166 = vmatmul.mubr.bf16.gmra.mrb[16].mxu0 %v12713_v51  ;;  %9681 = vmatprep.subr.bf16.mxu1 %v11020_v14  ;;  %v11031_v14 = vld [vmem:[%s17084_s1 + $0x484] ss:$12 sps:$4 sm:$0xff]  }
  0xb0   :  { %7543 = vmatmul.mubr.bf16.gmra.mrb[64].mxu1 %v12402_v35  ;;  %6211 = vmatpush1.bf16.msra.mxu0 %v10985_v53  ;;  %v11032_v35 = vld [vmem:[%s17084_s1 + $0x458] ss:$12 sps:$4 sm:$0xff]   ;;  %v11029_v53 = vld [vmem:[%s17084_s1 + $0x480] ss:$12 sps:$4 sm:$0xff]  }
  0xb1   :  { %6212 = vmatprep.subr.bf16.mxu0 %v10993_v22  ;;  %7550 = vmatprep.mubr.bf16.mxu1 %v12492_v21  ;;  %v10995_v21 = vld [vmem:[%s17084_s1 + $0x3f0] ss:$12 sps:$4 sm:$0xff]  }
  0xb2   :  { %6175 = vmatprep.mubr.bf16.mxu0 %v12814_v6  ;;  %9682 = vmatpush3.bf16.msra.mxu1 %v11022_v10  ;;  %v13445_v22 = vld [vmem:[%s17085_s0 + $0x18] sm:$0xff]  ;;  %v13450_v10 = vld [vmem:[%s17085_s0 + $0x84] sm:$0xff] }
  0xb3   :  { %9683 = vmatprep.subr.bf16.mxu1 %v11026_v32  ;;  %v17232_v32 = vmax.bf16 %v12058_v40, %v12558_v25  ;;  %v11042_v40 = vld [vmem:[%s17084_s1 + $0x4b4] ss:$12 sps:$4 sm:$0xff]  }
  0xb4   :  { %6213 = vmatpush1.bf16.msra.mxu0 %v10991_v56  ;;  %v13474_v25 = vld [vmem:[%s17085_s0 + $0xf0] sm:$0xff] }
  0xb5   :  { %6214 = vmatprep.subr.bf16.mxu0 %v10997_v45  ;;  %v13456_v56 = vmax.bf16 %v17232_v32, %v13445_v22  ;;  %v17233_v45 = vld [vmem:[#allocation5_spill] sm:$0xff] }
  0xb6   :  { %9684 = vmatpush3.bf16.msra.mxu1 %v11027_v55  ;;  %v17234_v55 = vld [vmem:[#allocation30_spill] sm:$0xff] }
  0xb7   :  { %6176 = vmatmul.mubr.bf16.gmra.mrb[20].mxu0 %v12859_v18  ;;  %9685 = vmatprep.subr.bf16.mxu1 %v11032_v35  ;;  %v17235_v35 = vmax.bf16 %v17233_v45, %v17234_v55  ;;  %v11051_v32 = vld [vmem:[%s17084_s1 + $0x4f8] ss:$12 sps:$4 sm:$0xff]   ;;  %v17243_v45 = vmax.bf16 %v12711_v39, %v13089_v20  ;;  %v11055_v39 = vld [vmem:[%s17084_s1 + $0x510] ss:$12 sps:$4 sm:$0xff]   ;;  %v11092_v20 = vld [vmem:[%s17084_s1 + $0x4e8] ss:$12 sps:$4 sm:$0xff]  }
  0xb8   :  { %7551 = vmatmul.mubr.bf16.gmra.mrb[68].mxu1 %v12566_v13  ;;  %6215 = vmatpush1.bf16.msra.mxu0 %v10995_v21  ;;  %v8884_v13 = vcombine.low %v12918_v15, %v12918_v15  ;;  %v11011_v15 = vld [vmem:[%s17084_s1 + $0x438] ss:$12 sps:$4 sm:$0xff]  }
  0xb9   :  { %6216 = vmatprep.subr.bf16.mxu0 %v11003_v24  ;;  %7558 = vmatprep.mubr.bf16.mxu1 %v12665_v60  ;;  %v11005_v60 = vld [vmem:[%s17084_s1 + $0x420] ss:$12 sps:$4 sm:$0xff]   ;;  %v13462_v21 = vmax.bf16 %v17235_v35, %v13450_v10  ;;  %v11035_v24 = vld [vmem:[%s17084_s1 + $0x498] ss:$12 sps:$4 sm:$0xff]   ;;  %v13629_v35 = vld [vmem:[%s17085_s0 + $0x450] sm:$0xff] }
  0xba   :  { %6185 = vmatprep.mubr.bf16.mxu0 %v8885_v52  ;;  %9686 = vmatpush3.bf16.msra.mxu1 %v11034_v3  ;;  %v17236_v3 = vmax.bf16 %v12187_v29, %v12890_v42  ;;  %v13506_v29 = vld [vmem:[%s17085_s0 + $0x234] sm:$0xff]  ;;  %v17238_v42 = vmax.bf16 %v12345_v7, %v13011_v58  ;;  %v13541_v58 = vld [vmem:[%s17085_s0 + $0x2a0] sm:$0xff] }
  0xbb   :  { %9687 = vmatprep.subr.bf16.mxu1 %v11038_v46  ;;  %v11043_v7 = vld [vmem:[%s17084_s1 + $0x4c8] ss:$12 sps:$4 sm:$0xff]  }
  0xbc   :  { %6217 = vmatpush1.bf16.msra.mxu0 %v11001_v38  ;;  %v13486_v46 = vmax.bf16 %v17236_v3, %v13474_v25  ;;  %v17237_v38 = vmax.bf16 %v12257_v12, %v12895_v31  ;;  %v11045_v12 = vld [vmem:[%s17084_s1 + $0x4cc] ss:$12 sps:$4 sm:$0xff]   ;;  %v17244_v3 = vmax.bf16 %v12796_v23, %v13125_v28  ;;  %v11067_v23 = vld [vmem:[%s17084_s1 + $0x544] ss:$12 sps:$4 sm:$0xff]  }
  0xbd   :  { %6218 = vmatprep.subr.bf16.mxu0 %v11007_v57  ;;  %v11065_v28 = vld [vmem:[%s17084_s1 + $0x540] ss:$12 sps:$4 sm:$0xff]  }
  0xbe   :  { %9688 = vmatpush3.bf16.msra.mxu1 %v11039_v2  ;;  %v13501_v2 = vld [vmem:[%s17085_s0 + $0x1c8] sm:$0xff] }
  0xbf   :  { %6186 = vmatmul.mubr.bf16.gmra.mrb[24].mxu0 %v8884_v13  ;;  %9731 = vmatprep.subr.bf16.mxu1 %v11059_v27  ;;  %v13515_v31 = vmax.bf16 %v17238_v42, %v13501_v2  ;;  %v11061_v42 = vld [vmem:[%s17084_s1 + $0x528] ss:$12 sps:$4 sm:$0xff]  }
  0xc0   :  { %7559 = vmatmul.mubr.bf16.gmra.mrb[72].mxu1 %v12713_v51  ;;  %6219 = vmatpush1.bf16.msra.mxu0 %v11005_v60  ;;  %v11025_v51 = vld [vmem:[%s17084_s1 + $0x46c] ss:$12 sps:$4 sm:$0xff]   ;;  %v11060_v60 = vld [vmem:[%s17084_s1 + $0x488] ss:$12 sps:$4 sm:$0xff]  }
  0xc1   :  { %6220 = vmatprep.subr.bf16.mxu0 %v11013_v50  ;;  %7566 = vmatprep.mubr.bf16.mxu1 %v12814_v6  ;;  %v11023_v6 = vld [vmem:[%s17084_s1 + $0x468] ss:$12 sps:$4 sm:$0xff]   ;;  %v11069_v50 = vld [vmem:[%s17084_s1 + $0x560] ss:$12 sps:$4 sm:$0xff]  }
  0xc2   :  { %6226 = vmatprep.mubr.bf16.mxu0 %v12754_v63 }
  0xc4   :  { %6221 = vmatpush1.bf16.msra.mxu0 %v11011_v15 }
  0xc5   :  { %6222 = vmatprep.subr.bf16.mxu0 %v11019_v34  ;;  %v17241_v34 = vmax.bf16 %v12539_v26, %v13062_v47  ;;  %v11080_v26 = vld [vmem:[%s17084_s1 + $0x4b8] ss:$12 sps:$4 sm:$0xff]  }
  0xc6   :  { %v13582_v47 = vld [vmem:[%s17085_s0 + $0x378] sm:$0xff] }
  0xc8   :  { %7567 = vmatmul.mubr.bf16.gmra.mrb[76].mxu1 %v12859_v18  ;;  %6223 = vmatpush1.bf16.msra.mxu0 %v11017_v61  ;;  %v11037_v18 = vld [vmem:[%s17084_s1 + $0x49c] ss:$12 sps:$4 sm:$0xff]  }
  0xc9   :  { %6224 = vmatprep.subr.bf16.mxu0 %v11025_v51  ;;  %7574 = vmatprep.mubr.bf16.mxu1 %v8885_v52  ;;  %v13480_v52 = vld [vmem:[%s17085_s0 + $0x15c] sm:$0xff]  ;;  %v11079_v51 = vld [vmem:[%s17084_s1 + $0x578] ss:$12 sps:$4 sm:$0xff]  }
  0xca   :  { %v13493_v57 = vmax.bf16 %v17237_v38, %v13480_v52  ;;  %v13644_v38 = vmax.bf16 %v17244_v3, %v13629_v35 }
  0xcc   :  { %6225 = vmatpush1.bf16.msra.mxu0 %v11023_v6  ;;  %v11047_v6 = vld [vmem:[%s17084_s1 + $0x4e0] ss:$12 sps:$4 sm:$0xff]  }
  0xcd   :  { %6295 = vmatprep.subr.bf16.mxu0 %v11031_v14  ;;  %v13588_v14 = vld [vmem:[%s17085_s0 + $0x3e4] sm:$0xff] }
  0xce   :  { %v13604_v55 = vmax.bf16 %v17243_v45, %v13588_v14  ;;  %v11095_v45 = vld [vmem:[%s17084_s1 + $0x5bc] ss:$12 sps:$4 sm:$0xff]  }
  0xcf   :  { %6227 = vmatmul.mubr.bf16.vlgmr.msra.gmra.mrb[0].mxu0 %v12863_v62 }
  0xd0   :  { %7575 = vmatmul.mubr.bf16.gmra.mrb[80].mxu1 %v8884_v13  ;;  %6296 = vmatpush1.bf16.msra.mxu0 %v11029_v53  ;;  %v17239_v13 = vmax.bf16 %v12389_v43, %v13016_v30  ;;  %v11049_v43 = vld [vmem:[%s17084_s1 + $0x4e4] ss:$12 sps:$4 sm:$0xff]   ;;  %v17240_v30 = vmax.bf16 %v12479_v1, %v13053_v41  ;;  %v11053_v1 = vld [vmem:[%s17084_s1 + $0x4fc] ss:$12 sps:$4 sm:$0xff]   ;;  %v17242_v53 = vmax.bf16 %v12644_v16, %v13084_v9  ;;  %v11057_v16 = vld [vmem:[%s17084_s1 + $0x514] ss:$12 sps:$4 sm:$0xff]  }
  0xd1   :  { %6297 = vmatprep.subr.bf16.mxu0 %v11037_v18  ;;  %7614 = vmatprep.mubr.bf16.mxu1 %v12754_v63  ;;  %v11040_v63 = vld [vmem:[%s17084_s1 + $0x4b0] ss:$12 sps:$4 sm:$0xff]   ;;  %v11063_v9 = vld [vmem:[%s17084_s1 + $0x52c] ss:$12 sps:$4 sm:$0xff]  }
  0xd2   :  { %6236 = vmatprep.mubr.bf16.mxu0 %v12977_v37  ;;  %v13521_v27 = vmax.bf16 %v17239_v13, %v13506_v29  ;;  %v13556_v15 = vmax.bf16 %v17240_v30, %v13541_v58  ;;  %v11084_v41 = vld [vmem:[%s17084_s1 + $0x590] ss:$12 sps:$4 sm:$0xff]   ;;  %v13594_v18 = vmax.bf16 %v17242_v53, %v13582_v47  ;;  %v11104_v13 = vld [vmem:[%s17084_s1 + $0x518] ss:$12 sps:$4 sm:$0xff]  }
  0xd3   :  { %v11814_v30 = vld [vmem:[%s17085_s0 + $0x520] sm:$0xff] }
  0xd4   :  { %6298 = vmatpush1.bf16.msra.mxu0 %v11035_v24  ;;  %v13634_v24 = vld [vmem:[%s17085_s0 + $0x4bc] sm:$0xff] }
  0xd5   :  { %6299 = vmatprep.subr.bf16.mxu0 %v11042_v40  ;;  %v11096_v40 = vld [vmem:[%s17084_s1 + $0x5c0] ss:$12 sps:$4 sm:$0xff]  }
  0xd7   :  { %6237 = vmatmul.mubr.bf16.gmra.mrb[4].mxu0 %v12989_v4 }
  0xd8   :  { %7615 = vmatmul.mubr.bf16.vlgmr.msra.gmra.mrb[84].mxu1 %v12863_v62  ;;  %6300 = vmatpush1.bf16.msra.mxu0 %v11040_v63  ;;  %v13546_v62 = vld [vmem:[%s17085_s0 + $0x30c] sm:$0xff]  ;;  %v17245_v63 = vmax.bf16 %v12848_v8, %v13130_v49 }
  0xd9   :  { %6301 = vmatprep.subr.bf16.mxu0 %v11045_v12  ;;  %7622 = vmatprep.mubr.bf16.mxu1 %v12977_v37  ;;  %v11070_v37 = vld [vmem:[%s17084_s1 + $0x4a0] ss:$12 sps:$4 sm:$0xff]   ;;  %v13562_v61 = vmax.bf16 %v17241_v34, %v13546_v62  ;;  %v8887_v34 = vcombine.high %v11814_v30, %v11814_v30 }
  0xda   :  { %6246 = vmatprep.mubr.bf16.mxu0 %v13039_v33  ;;  %9732 = vmatpush3.bf16.msra.mxu1 %v11060_v60  ;;  %v13650_v12 = vmax.bf16 %v17245_v63, %v13634_v24  ;;  %v11097_v8 = vld [vmem:[%s17084_s1 + $0x500] ss:$12 sps:$4 sm:$0xff]   ;;  %v17246_v60 = vmax.bf16 %v12966_v5, %v13158_v54  ;;  %v11109_v54 = vld [vmem:[%s17084_s1 + $0x530] ss:$12 sps:$4 sm:$0xff]   ;;  %v11105_v63 = vld [vmem:[%s17084_s1 + $0x5e8] ss:$12 sps:$4 sm:$0xff]  }
  0xdb   :  { %9733 = vmatprep.subr.bf16.mxu1 %v11069_v50  ;;  %v13676_v49 = vld [vmem:[%s17085_s0 + $0x528] sm:$0xff]  ;;  %v11077_v5 = vld [vmem:[%s17084_s1 + $0x574] ss:$12 sps:$4 sm:$0xff]  }
  0xdc   :  { %6302 = vmatpush1.bf16.msra.mxu0 %v11043_v7  ;;  %v13685_v50 = vmax.bf16 %v17246_v60, %v13676_v49  ;;  %v11108_v7 = vld [vmem:[%s17084_s1 + $0x5f0] ss:$12 sps:$4 sm:$0xff]   ;;  %v8754_v60 = vcombine.high %v13474_v25, %v13480_v52 }
  0xdd   :  { %6303 = vmatprep.subr.bf16.mxu0 %v11049_v43  ;;  %v11071_v43 = vld [vmem:[%s17084_s1 + $0x558] ss:$12 sps:$4 sm:$0xff]  }
  0xde   :  { %9734 = vmatpush3.bf16.msra.mxu1 %v11070_v37  ;;  %v11083_v37 = vld [vmem:[%s17084_s1 + $0x58c] ss:$12 sps:$4 sm:$0xff]  }
  0xdf   :  { %6247 = vmatmul.mubr.bf16.gmra.mrb[8].mxu0 %v13057_v48  ;;  %9735 = vmatprep.subr.bf16.mxu1 %v11079_v51 }
  0xe0   :  { %7623 = vmatmul.mubr.bf16.gmra.mrb[88].mxu1 %v12989_v4  ;;  %6304 = vmatpush1.bf16.msra.mxu0 %v11047_v6  ;;  %v11085_v4 = vld [vmem:[%s17084_s1 + $0x4d0] ss:$12 sps:$4 sm:$0xff]  }
  0xe1   :  { %6305 = vmatprep.subr.bf16.mxu0 %v11053_v1  ;;  %7630 = vmatprep.mubr.bf16.mxu1 %v13039_v33  ;;  %v11091_v33 = vld [vmem:[%s17084_s1 + $0x5a8] ss:$12 sps:$4 sm:$0xff]  }
  0xe2   :  { %6256 = vmatprep.mubr.bf16.mxu0 %v13111_v36  ;;  %9736 = vmatpush3.bf16.msra.mxu1 %v11080_v26  ;;  %v11081_v1 = vld [vmem:[%s17084_s1 + $0x588] ss:$12 sps:$4 sm:$0xff]  }
  0xe3   :  { %9737 = vmatprep.subr.bf16.mxu1 %v11084_v41  ;;  %v11089_v41 = vld [vmem:[%s17084_s1 + $0x5a4] ss:$12 sps:$4 sm:$0xff]  }
  0xe4   :  { %6306 = vmatpush1.bf16.msra.mxu0 %v11051_v32  ;;  %v8886_v32 = vcombine.low %v11814_v30, %v11814_v30  ;;  %v11151_v30 = vld [vmem:[%s17084_s1 + $0x6f8] ss:$12 sps:$4 sm:$0xff]  }
  0xe5   :  { %6307 = vmatprep.subr.bf16.mxu0 %v11057_v16 }
  0xe6   :  { %9738 = vmatpush3.bf16.msra.mxu1 %v11085_v4  ;;  %v11093_v4 = vld [vmem:[%s17084_s1 + $0x5b8] ss:$12 sps:$4 sm:$0xff]  }
  0xe7   :  { %6257 = vmatmul.mubr.bf16.gmra.mrb[12].mxu0 %v13118_v0  ;;  %9739 = vmatprep.subr.bf16.mxu1 %v11091_v33 }
  0xe8   :  { %7631 = vmatmul.mubr.bf16.gmra.mrb[92].mxu1 %v13057_v48  ;;  %6308 = vmatpush1.bf16.msra.mxu0 %v11055_v39  ;;  %v11103_v48 = vld [vmem:[%s17084_s1 + $0x5d8] ss:$12 sps:$4 sm:$0xff]  }
  0xe9   :  { %6309 = vmatprep.subr.bf16.mxu0 %v11063_v9  ;;  %7638 = vmatprep.mubr.bf16.mxu1 %v13111_v36  ;;  %v11073_v36 = vld [vmem:[%s17084_s1 + $0x55c] ss:$12 sps:$4 sm:$0xff]   ;;  %v11101_v9 = vld [vmem:[%s17084_s1 + $0x5d4] ss:$12 sps:$4 sm:$0xff]  }
  0xea   :  { %6266 = vmatprep.mubr.bf16.mxu0 %v13170_v17  ;;  %9740 = vmatpush3.bf16.msra.mxu1 %v11092_v20 }
  0xeb   :  { %9741 = vmatprep.subr.bf16.mxu1 %v11096_v40  ;;  %v11099_v40 = vld [vmem:[%s17084_s1 + $0x5d0] ss:$12 sps:$4 sm:$0xff]  }
  0xec   :  { %6310 = vmatpush1.bf16.msra.mxu0 %v11061_v42 }
  0xed   :  { %6311 = vmatprep.subr.bf16.mxu0 %v11067_v23 }
  0xee   :  { %9742 = vmatpush3.bf16.msra.mxu1 %v11097_v8  ;;  %v11114_v8 = vld [vmem:[%s17084_s1 + $0x604] ss:$12 sps:$4 sm:$0xff]  }
  0xef   :  { %6267 = vmatmul.mubr.bf16.gmra.mrb[16].mxu0 %v13174_v44  ;;  %9743 = vmatprep.subr.bf16.mxu1 %v11103_v48 }
  0xf0   :  { %7639 = vmatmul.mubr.bf16.gmra.mrb[96].mxu1 %v13118_v0  ;;  %6312 = vmatpush1.bf16.msra.mxu0 %v11065_v28  ;;  %v11131_v0 = vld [vmem:[%s17084_s1 + $0x6c8] ss:$12 sps:$4 sm:$0xff]   ;;  %v8726_v28 = vcombine.low %v13445_v22, %v13450_v10 }
  0xf1   :  { %6313 = vmatprep.subr.bf16.mxu0 %v11073_v36  ;;  %7646 = vmatprep.mubr.bf16.mxu1 %v13170_v17  ;;  %v11075_v17 = vld [vmem:[%s17084_s1 + $0x570] ss:$12 sps:$4 sm:$0xff]   ;;  %v11112_v36 = vld [vmem:[%s17084_s1 + $0x600] ss:$12 sps:$4 sm:$0xff]  }
  0xf2   :  { %6276 = vmatprep.mubr.bf16.mxu0 %v13204_v11  ;;  %9744 = vmatpush3.bf16.msra.mxu1 %v11104_v13  ;;  %v11117_v13 = vld [vmem:[%s17084_s1 + $0x61c] ss:$12 sps:$4 sm:$0xff]  }
  0xf3   :  { %9745 = vmatprep.subr.bf16.mxu1 %v11108_v7  ;;  %v11132_v7 = vld [vmem:[%s17084_s1 + $0x608] ss:$12 sps:$4 sm:$0xff]  }
  0xf4   :  { %6314 = vmatpush1.bf16.msra.mxu0 %v11071_v43 }
  0xf5   :  { %6315 = vmatprep.subr.bf16.mxu0 %v11077_v5  ;;  %v11121_v5 = vld [vmem:[%s17084_s1 + $0x634] ss:$12 sps:$4 sm:$0xff]  }
  0xf6   :  { %9746 = vmatpush3.bf16.msra.mxu1 %v11109_v54  ;;  %v13715_v51 = vpop.f32.mrb[0].mxu1  ;;  %v11142_v54 = vld [vmem:[%s17084_s1 + $0x620] ss:$12 sps:$4 sm:$0xff]  }
  0xf7   :  { %17247 = vst [vmem:[#allocation5_spill] sm:$0xff] %v13715_v51  ;;  %6277 = vmatmul.mubr.bf16.gmra.mrb[20].mxu0 %v13211_v19  ;;  %v13718_v6 = vpop.f32.mrb[1].mxu1  ;;  %9789 = vmatprep.subr.bf16.mxu1 %v11131_v0 }
  0xf8   :  { %17248 = vst [vmem:[#allocation30_spill] sm:$0xff] %v13718_v6  ;;  %7647 = vmatmul.mubr.bf16.gmra.mrb[100].mxu1 %v13174_v44  ;;  %6316 = vmatpush1.bf16.msra.mxu0 %v11075_v17  ;;  %v13724_v26 = vpop.f32.mrb[2].mxu1  ;;  %v11087_v44 = vld [vmem:[%s17084_s1 + $0x5a0] ss:$12 sps:$4 sm:$0xff]   ;;  %v11581_v6 = vld [vmem:[%s17084_s1 + $0xebc] ss:$12 sps:$4 sm:$0xff]  }
  0xf9   :  { %17249 = vst [vmem:[#allocation49_spill] sm:$0xff] %v13724_v26  ;;  %6317 = vmatprep.subr.bf16.mxu0 %v11083_v37  ;;  %7654 = vmatprep.mubr.bf16.mxu1 %v13204_v11  ;;  %v13730_v53 = vpop.f32.mrb[3].mxu1  ;;  %v8727_v11 = vcombine.high %v13445_v22, %v13450_v10  ;;  %v11141_v22 = vld [vmem:[%s17084_s1 + $0x6e0] ss:$12 sps:$4 sm:$0xff]   ;;  %v11115_v10 = vld [vmem:[%s17084_s1 + $0x618] ss:$12 sps:$4 sm:$0xff]  }
  0xfa   :  { %17250 = vst [vmem:[#allocation50_spill] sm:$0xff] %v13730_v53  ;;  %6286 = vmatprep.mubr.bf16.mxu0 %v8887_v34 }
  0xfc   :  { %6318 = vmatpush1.bf16.msra.mxu0 %v11081_v1  ;;  %v8753_v1 = vcombine.low %v13474_v25, %v13480_v52  ;;  %v11123_v25 = vld [vmem:[%s17084_s1 + $0x648] ss:$12 sps:$4 sm:$0xff]   ;;  %v11129_v52 = vld [vmem:[%s17084_s1 + $0x664] ss:$12 sps:$4 sm:$0xff]  }
  0xfd   :  { %6319 = vmatprep.subr.bf16.mxu0 %v11089_v41  ;;  %v11125_v41 = vld [vmem:[%s17084_s1 + $0x64c] ss:$12 sps:$4 sm:$0xff]  }
  0xfe   :  { %v13740_v16 = vpop.f32.mrb[4].mxu1 }
  0xff   :  { %17251 = vst [vmem:[#allocation51_spill] sm:$0xff] %v13740_v16  ;;  %6287 = vmatmul.mubr.bf16.gmra.mrb[24].mxu0 %v8886_v32  ;;  %v13745_v39 = vpop.f32.mrb[5].mxu1  ;;  %v11602_v16 = vld [vmem:[%s17084_s1 + $0xf98] ss:$12 sps:$4 sm:$0xff]  }
 0x100   :  { %17252 = vst [vmem:[#allocation52_spill] sm:$0xff] %v13745_v39  ;;  %7655 = vmatmul.mubr.bf16.gmra.mrb[104].mxu1 %v13211_v19  ;;  %6320 = vmatpush1.bf16.msra.mxu0 %v11087_v44  ;;  %v13748_v33 = vpop.f32.mrb[6].mxu1  ;;  %v11107_v19 = vld [vmem:[%s17084_s1 + $0x5ec] ss:$12 sps:$4 sm:$0xff]  }
 0x101   :  { %17253 = vst [vmem:[#allocation53_spill] sm:$0xff] %v13748_v33  ;;  %6321 = vmatprep.subr.bf16.mxu0 %v11095_v45  ;;  %7662 = vmatprep.mubr.bf16.mxu1 %v8887_v34  ;;  %v13753_v20 = vpop.f32.mrb[7].mxu1  ;;  %v11119_v34 = vld [vmem:[%s17084_s1 + $0x630] ss:$12 sps:$4 sm:$0xff]   ;;  %v11152_v44 = vld [vmem:[%s17084_s1 + $0x638] ss:$12 sps:$4 sm:$0xff]  }
 0x102   :  { %17254 = vst [vmem:[#allocation54_spill] sm:$0xff] %v13753_v20  ;;  %6327 = vmatprep.mubr.bf16.mxu0 %v8727_v11  ;;  %v11156_v45 = vld [vmem:[%s17084_s1 + $0x710] ss:$12 sps:$4 sm:$0xff]   ;;  %v11590_v33 = vld [vmem:[%s17084_s1 + $0xf68] ss:$12 sps:$4 sm:$0xff]  }
 0x104   :  { %6322 = vmatpush1.bf16.msra.mxu0 %v11093_v4  ;;  %v11163_v4 = vld [vmem:[%s17084_s1 + $0x728] ss:$12 sps:$4 sm:$0xff]  }
 0x105   :  { %6323 = vmatprep.subr.bf16.mxu0 %v11101_v9  ;;  %v11127_v9 = vld [vmem:[%s17084_s1 + $0x660] ss:$12 sps:$4 sm:$0xff]  }
 0x106   :  { %v13761_v3 = vpop.f32.mrb[8].mxu1 }
 0x107   :  { %17255 = vst [vmem:[#allocation55_spill] sm:$0xff] %v13761_v3  ;;  %v13766_v42 = vpop.f32.mrb[9].mxu1  ;;  %v11578_v3 = vld [vmem:[%s17084_s1 + $0xf38] ss:$12 sps:$4 sm:$0xff]  }
 0x108   :  { %17256 = vst [vmem:[#allocation56_spill] sm:$0xff] %v13766_v42  ;;  %7663 = vmatmul.mubr.bf16.gmra.mrb[108].mxu1 %v8886_v32  ;;  %6324 = vmatpush1.bf16.msra.mxu0 %v11099_v40  ;;  %v13768_v23 = vpop.f32.mrb[10].mxu1  ;;  %v8781_v32 = vcombine.high %v13501_v2, %v13506_v29  ;;  %v8780_v40 = vcombine.low %v13501_v2, %v13506_v29  ;;  %v11168_v29 = vld [vmem:[%s17084_s1 + $0x740] ss:$12 sps:$4 sm:$0xff]  }
 0x109   :  { %17257 = vst [vmem:[#allocation57_spill] sm:$0xff] %v13768_v23  ;;  %6325 = vmatprep.subr.bf16.mxu0 %v11107_v19  ;;  %7702 = vmatprep.mubr.bf16.mxu1 %v8727_v11  ;;  %v13773_v48 = vpop.f32.mrb[11].mxu1  ;;  %v11157_v11 = vld [vmem:[%s17084_s1 + $0x650] ss:$12 sps:$4 sm:$0xff]  }
 0x10a   :  { %17258 = vst [vmem:[#allocation58_spill] sm:$0xff] %v13773_v48 }
 0x10c   :  { %6326 = vmatpush1.bf16.msra.mxu0 %v11105_v63  ;;  %v11135_v63 = vld [vmem:[%s17084_s1 + $0x67c] ss:$12 sps:$4 sm:$0xff]  }
 0x10d   :  { %6396 = vmatprep.subr.bf16.mxu0 %v11114_v8  ;;  %v8808_v8 = vcombine.high %v13541_v58, %v13546_v62 }
 0x10e   :  { %v13794_v43 = vpop.f32.mrb[12].mxu1 }
 0x10f   :  { %6328 = vmatmul.mubr.bf16.vlgmr.msra.gmra.mrb[0].mxu0 %v8726_v28  ;;  %17259 = vst [vmem:[#allocation59_spill] sm:$0xff] %v13794_v43  ;;  %v13802_v0 = vpop.f32.mrb[13].mxu1  ;;  %v11558_v43 = vld [vmem:[%s17084_s1 + $0xf08] ss:$12 sps:$4 sm:$0xff]  }
 0x110   :  { %7703 = vmatmul.mubr.bf16.vlgmr.msra.gmra.mrb[112].mxu1 %v8726_v28  ;;  %6397 = vmatpush1.bf16.msra.mxu0 %v11112_v36  ;;  %17260 = vst [vmem:[#allocation60_spill] sm:$0xff] %v13802_v0  ;;  %v13804_v17 = vpop.f32.mrb[14].mxu1  ;;  %v11164_v36 = vld [vmem:[%s17084_s1 + $0x668] ss:$12 sps:$4 sm:$0xff]  }
 0x111   :  { %6398 = vmatprep.subr.bf16.mxu0 %v11117_v13  ;;  %7710 = vmatprep.mubr.bf16.mxu1 %v8754_v60  ;;  %17261 = vst [vmem:[#allocation61_spill] sm:$0xff] %v13804_v17  ;;  %v13806_v37 = vpop.f32.mrb[15].mxu1  ;;  %v11225_v17 = vld [vmem:[%s17084_s1 + $0x828] ss:$12 sps:$4 sm:$0xff]  }
 0x112   :  { %6337 = vmatprep.mubr.bf16.mxu0 %v8754_v60  ;;  %9790 = vmatpush3.bf16.msra.mxu1 %v11132_v7  ;;  %17262 = vst [vmem:[#allocation62_spill] sm:$0xff] %v13806_v37  ;;  %v11133_v60 = vld [vmem:[%s17084_s1 + $0x678] ss:$12 sps:$4 sm:$0xff]   ;;  %v11139_v7 = vld [vmem:[%s17084_s1 + $0x694] ss:$12 sps:$4 sm:$0xff]  }
 0x113   :  { %9791 = vmatprep.subr.bf16.mxu1 %v11141_v22  ;;  %v11169_v22 = vld [vmem:[%s17084_s1 + $0x680] ss:$12 sps:$4 sm:$0xff]  }
 0x114   :  { %6399 = vmatpush1.bf16.msra.mxu0 %v11115_v10  ;;  %v11175_v10 = vld [vmem:[%s17084_s1 + $0x758] ss:$12 sps:$4 sm:$0xff]  }
 0x115   :  { %6400 = vmatprep.subr.bf16.mxu0 %v11121_v5  ;;  %v11137_v5 = vld [vmem:[%s17084_s1 + $0x690] ss:$12 sps:$4 sm:$0xff]  }
 0x116   :  { %9792 = vmatpush3.bf16.msra.mxu1 %v11142_v54  ;;  %v8807_v54 = vcombine.low %v13541_v58, %v13546_v62  ;;  %v11143_v58 = vld [vmem:[%s17084_s1 + $0x6a8] ss:$12 sps:$4 sm:$0xff]   ;;  %v11149_v62 = vld [vmem:[%s17084_s1 + $0x6c4] ss:$12 sps:$4 sm:$0xff]  }
 0x117   :  { %6338 = vmatmul.mubr.bf16.gmra.mrb[4].mxu0 %v8753_v1  ;;  %9793 = vmatprep.subr.bf16.mxu1 %v11151_v30  ;;  %v11145_v30 = vld [vmem:[%s17084_s1 + $0x6ac] ss:$12 sps:$4 sm:$0xff]  }
 0x118   :  { %7711 = vmatmul.mubr.bf16.gmra.mrb[116].mxu1 %v8753_v1  ;;  %6401 = vmatpush1.bf16.msra.mxu0 %v11119_v34  ;;  %v8835_v34 = vcombine.high %v13582_v47, %v13588_v14  ;;  %v11176_v1 = vld [vmem:[%s17084_s1 + $0x698] ss:$12 sps:$4 sm:$0xff]  }
 0x119   :  { %6402 = vmatprep.subr.bf16.mxu0 %v11125_v41  ;;  %7718 = vmatprep.mubr.bf16.mxu1 %v8781_v32  ;;  %v11180_v41 = vld [vmem:[%s17084_s1 + $0x770] ss:$12 sps:$4 sm:$0xff]  }
 0x11a   :  { %6347 = vmatprep.mubr.bf16.mxu0 %v8781_v32  ;;  %9794 = vmatpush3.bf16.msra.mxu1 %v11152_v44  ;;  %v13844_v19 = vpop.f32.mrb[16].mxu1 }
 0x11b   :  { %9795 = vmatprep.subr.bf16.mxu1 %v11156_v45  ;;  %17263 = vst [vmem:[#allocation63_spill] sm:$0xff] %v13844_v19  ;;  %v13851_v28 = vpop.f32.mrb[17].mxu1  ;;  %v11181_v45 = vld [vmem:[%s17084_s1 + $0x6b0] ss:$12 sps:$4 sm:$0xff]  }
 0x11c   :  { %6403 = vmatpush1.bf16.msra.mxu0 %v11123_v25  ;;  %17264 = vst [vmem:[#allocation64_spill] sm:$0xff] %v13851_v28  ;;  %v13856_v13 = vpop.f32.mrb[18].mxu1  ;;  %v11203_v25 = vld [vmem:[%s17084_s1 + $0x848] ss:$12 sps:$4 sm:$0xff]  }
 0x11d   :  { %6404 = vmatprep.subr.bf16.mxu0 %v11129_v52  ;;  %17265 = vst [vmem:[#allocation65_spill] sm:$0xff] %v13856_v13  ;;  %v13858_v2 = vpop.f32.mrb[19].mxu1  ;;  %v133_v28 = vld [vmem:[%s17085_s0 + $0x390] sm:$0xff] }
 0x11e   :  { %9796 = vmatpush3.bf16.msra.mxu1 %v11157_v11  ;;  %17266 = vst [vmem:[#allocation66_spill] sm:$0xff] %v13858_v2  ;;  %v11147_v11 = vld [vmem:[%s17084_s1 + $0x6c0] ss:$12 sps:$4 sm:$0xff]   ;;  %v105_v2 = vld [vmem:[%s17085_s0 + $0x2b8] sm:$0xff] }
 0x11f   :  { %6348 = vmatmul.mubr.bf16.gmra.mrb[8].mxu0 %v8780_v40  ;;  %9797 = vmatprep.subr.bf16.mxu1 %v11163_v4  ;;  %v8834_v4 = vcombine.low %v13582_v47, %v13588_v14  ;;  %v11161_v47 = vld [vmem:[%s17084_s1 + $0x6f4] ss:$12 sps:$4 sm:$0xff]  }
 0x120   :  { %7719 = vmatmul.mubr.bf16.gmra.mrb[120].mxu1 %v8780_v40  ;;  %6405 = vmatpush1.bf16.msra.mxu0 %v11127_v9  ;;  %v11155_v40 = vld [vmem:[%s17084_s1 + $0x6dc] ss:$12 sps:$4 sm:$0xff]  }
 0x121   :  { %6406 = vmatprep.subr.bf16.mxu0 %v11135_v63  ;;  %7726 = vmatprep.mubr.bf16.mxu1 %v8808_v8  ;;  %v8862_v63 = vcombine.high %v13629_v35, %v13634_v24 }
 0x122   :  { %6357 = vmatprep.mubr.bf16.mxu0 %v8808_v8  ;;  %9798 = vmatpush3.bf16.msra.mxu1 %v11164_v36  ;;  %v11153_v8 = vld [vmem:[%s17084_s1 + $0x6d8] ss:$12 sps:$4 sm:$0xff]   ;;  %v11159_v36 = vld [vmem:[%s17084_s1 + $0x6f0] ss:$12 sps:$4 sm:$0xff]  }
 0x123   :  { %9799 = vmatprep.subr.bf16.mxu1 %v11168_v29  ;;  %v8861_v29 = vcombine.low %v13629_v35, %v13634_v24  ;;  %v11173_v35 = vld [vmem:[%s17084_s1 + $0x724] ss:$12 sps:$4 sm:$0xff]  }
 0x124   :  { %6407 = vmatpush1.bf16.msra.mxu0 %v11133_v60  ;;  %v11167_v60 = vld [vmem:[%s17084_s1 + $0x70c] ss:$12 sps:$4 sm:$0xff]   ;;  %v11815_v24 = vld [vmem:[%s17085_s0 + $0x20] sm:$0xff] }
 0x125   :  { %6408 = vmatprep.subr.bf16.mxu0 %v11139_v7 }
 0x126   :  { %9800 = vmatpush3.bf16.msra.mxu1 %v11169_v22  ;;  %v8889_v22 = vcombine.high %v13676_v49, %v13676_v49 }
 0x127   :  { %6358 = vmatmul.mubr.bf16.gmra.mrb[12].mxu0 %v8807_v54  ;;  %9801 = vmatprep.subr.bf16.mxu1 %v11175_v10  ;;  %v13897_v32 = vpop.f32.mrb[20].mxu1 }
 0x128   :  { %7727 = vmatmul.mubr.bf16.gmra.mrb[124].mxu1 %v8807_v54  ;;  %6409 = vmatpush1.bf16.msra.mxu0 %v11137_v5  ;;  %17267 = vst [vmem:[#allocation67_spill] sm:$0xff] %v13897_v32  ;;  %v13899_v44 = vpop.f32.mrb[21].mxu1  ;;  %v11165_v54 = vld [vmem:[%s17084_s1 + $0x708] ss:$12 sps:$4 sm:$0xff]  }
 0x129   :  { %6410 = vmatprep.subr.bf16.mxu0 %v11145_v30  ;;  %7734 = vmatprep.mubr.bf16.mxu1 %v8835_v34  ;;  %17268 = vst [vmem:[#allocation68_spill] sm:$0xff] %v13899_v44  ;;  %v13907_v52 = vpop.f32.mrb[22].mxu1  ;;  %v367_v30 = vrot.slane %v11815_v24, 4  ;;  %v77_v44 = vld [vmem:[%s17085_s0 + $0x1e0] sm:$0xff] }
 0x12a   :  { %6367 = vmatprep.mubr.bf16.mxu0 %v8835_v34  ;;  %9802 = vmatpush3.bf16.msra.mxu1 %v11176_v1  ;;  %17269 = vst [vmem:[#allocation69_spill] sm:$0xff] %v13907_v52  ;;  %v13914_v9 = vpop.f32.mrb[23].mxu1  ;;  %v11816_v34 = vld [vmem:[%s17085_s0 + $0x8c] sm:$0xff] }
 0x12b   :  { %9803 = vmatprep.subr.bf16.mxu1 %v11180_v41  ;;  %17270 = vst [vmem:[#allocation70_spill] sm:$0xff] %v13914_v9  ;;  %v369_v1 = vrot.slane %v11816_v34, 4 }
 0x12c   :  { %6411 = vmatpush1.bf16.msra.mxu0 %v11143_v58  ;;  %v11171_v58 = vld [vmem:[%s17084_s1 + $0x720] ss:$12 sps:$4 sm:$0xff]  }
 0x12d   :  { %6412 = vmatprep.subr.bf16.mxu0 %v11149_v62  ;;  %v8888_v62 = vcombine.low %v13676_v49, %v13676_v49  ;;  %v21_v49 = vld [vmem:[%s17085_s0 + $0x30] sm:$0xff] }
 0x12e   :  { %9804 = vmatpush3.bf16.msra.mxu1 %v11181_v45 }
 0x12f   :  { %6368 = vmatmul.mubr.bf16.gmra.mrb[16].mxu0 %v8834_v4  ;;  %9847 = vmatprep.subr.bf16.mxu1 %v11203_v25  ;;  %v17273_v25 = vld [vmem:[#allocation2_spill] sm:$0xff] }
 0x130   :  { %7735 = vmatmul.mubr.bf16.gmra.mrb[128].mxu1 %v8834_v4  ;;  %6413 = vmatpush1.bf16.msra.mxu0 %v11147_v11  ;;  %v17274_v11 = vrot.slane %v17273_v25, 4  ;;  %v11818_v25 = vld [vmem:[%s17085_s0 + $0x164] sm:$0xff] }
 0x131   :  { %6414 = vmatprep.subr.bf16.mxu0 %v11155_v40  ;;  %7742 = vmatprep.mubr.bf16.mxu1 %v8862_v63  ;;  %v17275_v40 = vld [vmem:[#allocation3_spill] sm:$0xff] }
 0x132   :  { %6377 = vmatprep.mubr.bf16.mxu0 %v8862_v63  ;;  %v393_v4 = vsel %vm249_vm0, %v367_v30, %v17274_v11  ;;  %v17276_v63 = vrot.slane %v17275_v40, 4  ;;  %v11185_v30 = vld [vmem:[%s17084_s1 + $0x754] ss:$12 sps:$4 sm:$0xff]   ;;  %v373_v11 = vrot.slane %v11818_v25, 4  ;;  %v17277_v40 = vld [vmem:[#allocation9_spill] sm:$0xff] }
 0x133   :  { %v13927_v14 = vpop.f32.mrb[24].mxu1 }
 0x134   :  { %17271 = vst [vmem:[#allocation71_spill] sm:$0xff] %v13927_v14  ;;  %6415 = vmatpush1.bf16.msra.mxu0 %v11153_v8  ;;  %v13937_v7 = vpop.f32.mrb[25].mxu1  ;;  %v394_v8 = vsel %vm249_vm0, %v369_v1, %v17276_v63  ;;  %v17278_v63 = vrot.slane %v17277_v40, 4 }
 0x135   :  { %17272 = vst [vmem:[#allocation72_spill] sm:$0xff] %v13937_v7  ;;  %6416 = vmatprep.subr.bf16.mxu0 %v11161_v47  ;;  %v7403_v10 = vpop.f32.mrb[26].mxu1  ;;  %v11179_v47 = vld [vmem:[%s17084_s1 + $0x73c] ss:$12 sps:$4 sm:$0xff]  }
 0x136   :  { %v7404_v5 = vpop.f32.mrb[27].mxu1  ;;  %v434_v10 = vmax.bf16 %v394_v8, %v13462_v21  ;;  %v11817_v21 = vld [vmem:[%s17085_s0 + $0xf8] sm:$0xff]  ;;  %v17283_v7 = vld [vmem:[#allocation19_spill] sm:$0xff] }
 0x137   :  { %6378 = vmatmul.mubr.bf16.gmra.mrb[20].mxu0 %v8861_v29  ;;  %v11177_v5 = vld [vmem:[%s17084_s1 + $0x738] ss:$12 sps:$4 sm:$0xff]   ;;  %v8755_v9 = vcombine.low %v11817_v21, %v11818_v25 }
 0x138   :  { %7743 = vmatmul.mubr.bf16.gmra.mrb[132].mxu1 %v8861_v29  ;;  %6417 = vmatpush1.bf16.msra.mxu0 %v11159_v36  ;;  %v8729_v36 = vcombine.high %v11815_v24, %v11816_v34 }
 0x139   :  { %6418 = vmatprep.subr.bf16.mxu0 %v11167_v60  ;;  %7750 = vmatprep.mubr.bf16.mxu1 %v8889_v22 }
 0x13a   :  { %6387 = vmatprep.mubr.bf16.mxu0 %v8889_v22  ;;  %v432_v22 = vmax.bf16 %v393_v4, %v13456_v56  ;;  %v11183_v4 = vld [vmem:[%s17084_s1 + $0x750] ss:$12 sps:$4 sm:$0xff]  }
 0x13b   :  { %v9573_v41 = vpop.f32.mrb[28].mxu1 }
 0x13c   :  { %6419 = vmatpush1.bf16.msra.mxu0 %v11165_v54  ;;  %v9574_v45 = vpop.f32.mrb[29].mxu1 }
 0x13d   :  { %6420 = vmatprep.subr.bf16.mxu0 %v11173_v35  ;;  %v13967_v29 = vadd.f32 %v9574_v45, %v9573_v41  ;;  %v9576_v60 = vpop.f32.mrb[30].mxu1  ;;  %v35_v35 = vld [vmem:[%s17085_s0 + $0x9c] sm:$0xff]  ;;  %v13985_v41 = vmax.bf16 %v432_v22, %v21_v49  ;;  %v371_v45 = vrot.slane %v11817_v21, 4  ;;  %v8728_v22 = vcombine.low %v11815_v24, %v11816_v34  ;;  %v11187_v24 = vld [vmem:[%s17084_s1 + $0x768] ss:$12 sps:$4 sm:$0xff]  }
 0x13e   :  { %v9577_v54 = vpop.f32.mrb[31].mxu1  ;;  %v13987_v56 = vmax.bf16 %v434_v10, %v35_v35 }
 0x13f   :  { %6388 = vmatmul.mubr.bf16.gmra.mrb[24].mxu0 %v8888_v62  ;;  %v13983_v1 = vadd.f32 %v9577_v54, %v9576_v60  ;;  %v395_v8 = vsel %vm249_vm0, %v371_v45, %v17278_v63  ;;  %v63_v54 = vld [vmem:[%s17085_s0 + $0x174] sm:$0xff]  ;;  %v8756_v45 = vcombine.high %v11817_v21, %v11818_v25 }
 0x140   :  { %7751 = vmatmul.mubr.bf16.gmra.mrb[136].mxu1 %v8888_v62  ;;  %6421 = vmatpush1.bf16.msra.mxu0 %v11171_v58  ;;  %v11189_v58 = vld [vmem:[%s17084_s1 + $0x76c] ss:$12 sps:$4 sm:$0xff]   ;;  %v436_v35 = vmax.bf16 %v395_v8, %v13486_v46 }
 0x141   :  { %6422 = vmatprep.subr.bf16.mxu0 %v11179_v47  ;;  %7790 = vmatprep.mubr.bf16.mxu1 %v8729_v36  ;;  %v17279_v47 = vld [vmem:[#allocation11_spill] sm:$0xff]  ;;  %v11195_v21 = vld [vmem:[%s17084_s1 + $0x798] ss:$12 sps:$4 sm:$0xff]  }
 0x142   :  { %6428 = vmatprep.mubr.bf16.mxu0 %v8729_v36  ;;  %v17280_v60 = vrot.slane %v17279_v47, 4  ;;  %v49_v36 = vld [vmem:[%s17085_s0 + $0x108] sm:$0xff] }
 0x143   :  { %v9579_v62 = vpop.f32.mrb[32].mxu1  ;;  %v14023_v47 = vmax.bf16 %v436_v35, %v49_v36  ;;  %v11197_v36 = vld [vmem:[%s17084_s1 + $0x79c] ss:$12 sps:$4 sm:$0xff]   ;;  %v11223_v35 = vld [vmem:[%s17084_s1 + $0x878] ss:$12 sps:$4 sm:$0xff]  }
 0x144   :  { %v396_v49 = vsel %vm249_vm0, %v373_v11, %v17280_v60  ;;  %6423 = vmatpush1.bf16.msra.mxu0 %v11177_v5  ;;  %v9580_v10 = vpop.f32.mrb[33].mxu1  ;;  %v11204_v5 = vld [vmem:[%s17084_s1 + $0x788] ss:$12 sps:$4 sm:$0xff]  }
 0x145   :  { %v438_v40 = vmax.bf16 %v396_v49, %v13493_v57  ;;  %6424 = vmatprep.subr.bf16.mxu0 %v11185_v30  ;;  %v14015_v63 = vadd.f32 %v9580_v10, %v9579_v62  ;;  %v9582_v11 = vpop.f32.mrb[34].mxu1  ;;  %v11213_v57 = vld [vmem:[%s17084_s1 + $0x860] ss:$12 sps:$4 sm:$0xff]   ;;  %v11193_v30 = vld [vmem:[%s17084_s1 + $0x784] ss:$12 sps:$4 sm:$0xff]  }
 0x146   :  { %v9583_v34 = vpop.f32.mrb[35].mxu1  ;;  %v11819_v62 = vld [vmem:[%s17085_s0 + $0x1d0] sm:$0xff]  ;;  %v11820_v49 = vld [vmem:[%s17085_s0 + $0x23c] sm:$0xff] }
 0x147   :  { %v14025_v60 = vmax.bf16 %v438_v40, %v63_v54  ;;  %v14027_v46 = vadd.f32 %v9583_v34, %v9582_v11  ;;  %v375_v8 = vrot.slane %v11819_v62, 4  ;;  %v377_v10 = vrot.slane %v11820_v49, 4  ;;  %v17281_v40 = vld [vmem:[#allocation17_spill] sm:$0xff] }
 0x148   :  { %7791 = vmatmul.mubr.bf16.vlgmr.msra.gmra.mrb[140].mxu1 %v8728_v22  ;;  %6425 = vmatpush1.bf16.msra.mxu0 %v11183_v4  ;;  %v11191_v4 = vld [vmem:[%s17084_s1 + $0x780] ss:$12 sps:$4 sm:$0xff]   ;;  %v17282_v11 = vrot.slane %v17281_v40, 4 }
 0x149   :  { %6426 = vmatprep.subr.bf16.mxu0 %v11189_v58  ;;  %7798 = vmatprep.mubr.bf16.mxu1 %v8756_v45  ;;  %v11214_v58 = vld [vmem:[%s17084_s1 + $0x7a0] ss:$12 sps:$4 sm:$0xff]  }
 0x14a   :  { %9848 = vmatpush3.bf16.msra.mxu1 %v11204_v5  ;;  %v397_v34 = vsel %vm249_vm0, %v375_v8, %v17282_v11  ;;  %v17284_v5 = vrot.slane %v17283_v7, 4  ;;  %v8783_v8 = vcombine.high %v11819_v62, %v11820_v49 }
 0x14b   :  { %v9585_v54 = vpop.f32.mrb[36].mxu1  ;;  %9849 = vmatprep.subr.bf16.mxu1 %v11213_v57  ;;  %v91_v57 = vld [vmem:[%s17085_s0 + $0x24c] sm:$0xff]  ;;  %v440_v32 = vmax.bf16 %v397_v34, %v13515_v31 }
 0x14c   :  { %v398_v14 = vsel %vm249_vm0, %v377_v10, %v17284_v5  ;;  %6427 = vmatpush1.bf16.msra.mxu0 %v11187_v24  ;;  %v9586_v52 = vpop.f32.mrb[37].mxu1  ;;  %v11224_v24 = vld [vmem:[%s17084_s1 + $0x7b8] ss:$12 sps:$4 sm:$0xff]   ;;  %v17285_v34 = vld [vmem:[#allocation24_spill] sm:$0xff] }
 0x14d   :  { %v442_v40 = vmax.bf16 %v398_v14, %v13521_v27  ;;  %6497 = vmatprep.subr.bf16.mxu0 %v11193_v30  ;;  %v14067_v7 = vadd.f32 %v9586_v52, %v9585_v54  ;;  %v9588_v10 = vpop.f32.mrb[38].mxu1  ;;  %v14075_v11 = vmax.bf16 %v440_v32, %v77_v44  ;;  %v11228_v52 = vld [vmem:[%s17084_s1 + $0x890] ss:$12 sps:$4 sm:$0xff]   ;;  %v11201_v14 = vld [vmem:[%s17084_s1 + $0x7b4] ss:$12 sps:$4 sm:$0xff]   ;;  %v11821_v32 = vld [vmem:[%s17085_s0 + $0x2a8] sm:$0xff] }
 0x14e   :  { %v9589_v25 = vpop.f32.mrb[39].mxu1  ;;  %9850 = vmatpush3.bf16.msra.mxu1 %v11214_v58  ;;  %v379_v44 = vrot.slane %v11821_v32, 4  ;;  %v11229_v58 = vld [vmem:[%s17084_s1 + $0x7d0] ss:$12 sps:$4 sm:$0xff]   ;;  %v17286_v5 = vrot.slane %v17285_v34, 4 }
 0x14f   :  { %v14077_v31 = vmax.bf16 %v442_v40, %v91_v57  ;;  %6429 = vmatmul.mubr.bf16.vlgmr.msra.gmra.mrb[0].mxu0 %v8728_v22  ;;  %v14079_v27 = vadd.f32 %v9589_v25, %v9588_v10  ;;  %9851 = vmatprep.subr.bf16.mxu1 %v11223_v35  ;;  %v11822_v22 = vld [vmem:[%s17085_s0 + $0x314] sm:$0xff]  ;;  %v8782_v25 = vcombine.low %v11819_v62, %v11820_v49 }
 0x150   :  { %7799 = vmatmul.mubr.bf16.gmra.mrb[144].mxu1 %v8755_v9  ;;  %6498 = vmatpush1.bf16.msra.mxu0 %v11191_v4  ;;  %v381_v30 = vrot.slane %v11822_v22, 4  ;;  %v11199_v4 = vld [vmem:[%s17084_s1 + $0x7b0] ss:$12 sps:$4 sm:$0xff]   ;;  %v11235_v35 = vld [vmem:[%s17084_s1 + $0x8a8] ss:$12 sps:$4 sm:$0xff]   ;;  %v399_v57 = vsel %vm249_vm0, %v379_v44, %v17286_v5  ;;  %v14119_v44 = vcombine.high %v11821_v32, %v11822_v22 }
 0x151   :  { %6499 = vmatprep.subr.bf16.mxu0 %v11197_v36  ;;  %7806 = vmatprep.mubr.bf16.mxu1 %v8783_v8  ;;  %v11207_v36 = vld [vmem:[%s17084_s1 + $0x7cc] ss:$12 sps:$4 sm:$0xff]   ;;  %v444_v13 = vmax.bf16 %v399_v57, %v13556_v15  ;;  %v11205_v62 = vld [vmem:[%s17084_s1 + $0x7c8] ss:$12 sps:$4 sm:$0xff]  }
 0x152   :  { %6438 = vmatprep.mubr.bf16.mxu0 %v8756_v45  ;;  %9852 = vmatpush3.bf16.msra.mxu1 %v11224_v24  ;;  %v17287_v45 = vld [vmem:[#allocation26_spill] sm:$0xff] }
 0x153   :  { %v9591_v54 = vpop.f32.mrb[40].mxu1  ;;  %9853 = vmatprep.subr.bf16.mxu1 %v11228_v52  ;;  %v17288_v40 = vrot.slane %v17287_v45, 4  ;;  %v119_v52 = vld [vmem:[%s17085_s0 + $0x324] sm:$0xff]  ;;  %v14129_v45 = vmax.bf16 %v444_v13, %v105_v2 }
 0x154   :  { %6500 = vmatpush1.bf16.msra.mxu0 %v11195_v21  ;;  %v9592_v24 = vpop.f32.mrb[41].mxu1  ;;  %v11823_v13 = vld [vmem:[%s17085_s0 + $0x380] sm:$0xff] }
 0x155   :  { %v400_v10 = vsel %vm249_vm0, %v381_v30, %v17288_v40  ;;  %6501 = vmatprep.subr.bf16.mxu0 %v11201_v14  ;;  %v14121_v5 = vadd.f32 %v9592_v24, %v9591_v54  ;;  %v9594_v21 = vpop.f32.mrb[42].mxu1  ;;  %v11236_v30 = vld [vmem:[%s17084_s1 + $0x7e8] ss:$12 sps:$4 sm:$0xff]   ;;  %v383_v2 = vrot.slane %v11823_v13, 4  ;;  %v11247_v40 = vld [vmem:[%s17084_s1 + $0x8d8] ss:$12 sps:$4 sm:$0xff]  }
 0x156   :  { %v446_v34 = vmax.bf16 %v400_v10, %v13562_v61  ;;  %v9595_v49 = vpop.f32.mrb[43].mxu1  ;;  %9854 = vmatpush3.bf16.msra.mxu1 %v11229_v58  ;;  %v11211_v61 = vld [vmem:[%s17084_s1 + $0x7e4] ss:$12 sps:$4 sm:$0xff]   ;;  %v11240_v58 = vld [vmem:[%s17084_s1 + $0x8c0] ss:$12 sps:$4 sm:$0xff]  }
 0x157   :  { %6439 = vmatmul.mubr.bf16.gmra.mrb[4].mxu0 %v8755_v9  ;;  %v14136_v14 = vadd.f32 %v9595_v49, %v9594_v21  ;;  %9855 = vmatprep.subr.bf16.mxu1 %v11235_v35  ;;  %v11824_v9 = vld [vmem:[%s17085_s0 + $0x3ec] sm:$0xff]  ;;  %v8809_v49 = vcombine.low %v11821_v32, %v11822_v22  ;;  %v11215_v32 = vld [vmem:[%s17084_s1 + $0x7f8] ss:$12 sps:$4 sm:$0xff]  }
 0x158   :  { %v14131_v15 = vmax.bf16 %v446_v34, %v119_v52  ;;  %7807 = vmatmul.mubr.bf16.gmra.mrb[148].mxu1 %v8782_v25  ;;  %6502 = vmatpush1.bf16.msra.mxu0 %v11199_v4  ;;  %v385_v54 = vrot.slane %v11824_v9, 4  ;;  %v11209_v35 = vld [vmem:[%s17084_s1 + $0x7e0] ss:$12 sps:$4 sm:$0xff]   ;;  %v17289_v10 = vld [vmem:[#allocation32_spill] sm:$0xff] }
 0x159   :  { %6503 = vmatprep.subr.bf16.mxu0 %v11207_v36  ;;  %7814 = vmatprep.mubr.bf16.mxu1 %v14119_v44  ;;  %v11241_v4 = vld [vmem:[%s17084_s1 + $0x800] ss:$12 sps:$4 sm:$0xff]   ;;  %v11217_v36 = vld [vmem:[%s17084_s1 + $0x7fc] ss:$12 sps:$4 sm:$0xff]   ;;  %v17290_v24 = vrot.slane %v17289_v10, 4 }
 0x15a   :  { %6448 = vmatprep.mubr.bf16.mxu0 %v8783_v8  ;;  %9856 = vmatpush3.bf16.msra.mxu1 %v11236_v30  ;;  %v17291_v8 = vld [vmem:[#allocation35_spill] sm:$0xff] }
 0x15b   :  { %v9597_v57 = vpop.f32.mrb[44].mxu1  ;;  %9857 = vmatprep.subr.bf16.mxu1 %v11240_v58  ;;  %v401_v52 = vsel %vm249_vm0, %v383_v2, %v17290_v24  ;;  %v17292_v34 = vrot.slane %v17291_v8, 4  ;;  %v147_v58 = vld [vmem:[%s17085_s0 + $0x3fc] sm:$0xff]  ;;  %v8837_v2 = vcombine.high %v11823_v13, %v11824_v9 }
 0x15c   :  { %6504 = vmatpush1.bf16.msra.mxu0 %v11205_v62  ;;  %v9598_v30 = vpop.f32.mrb[45].mxu1  ;;  %v448_v19 = vmax.bf16 %v401_v52, %v13594_v18  ;;  %v11248_v62 = vld [vmem:[%s17084_s1 + $0x818] ss:$12 sps:$4 sm:$0xff]  }
 0x15d   :  { %v402_v21 = vsel %vm249_vm0, %v385_v54, %v17292_v34  ;;  %6505 = vmatprep.subr.bf16.mxu0 %v11211_v61  ;;  %v14174_v24 = vadd.f32 %v9598_v30, %v9597_v57  ;;  %v9600_v54 = vpop.f32.mrb[46].mxu1  ;;  %v11825_v57 = vld [vmem:[%s17085_s0 + $0x458] sm:$0xff] }
 0x15e   :  { %v450_v10 = vmax.bf16 %v402_v21, %v13604_v55  ;;  %v9601_v22 = vpop.f32.mrb[47].mxu1  ;;  %9858 = vmatpush3.bf16.msra.mxu1 %v11241_v4  ;;  %v14182_v8 = vmax.bf16 %v448_v19, %v133_v28  ;;  %v11221_v55 = vld [vmem:[%s17084_s1 + $0x814] ss:$12 sps:$4 sm:$0xff]   ;;  %v11252_v4 = vld [vmem:[%s17084_s1 + $0x8f0] ss:$12 sps:$4 sm:$0xff]   ;;  %v387_v19 = vrot.slane %v11825_v57, 4 }
 0x15f   :  { %6449 = vmatmul.mubr.bf16.gmra.mrb[8].mxu0 %v8782_v25  ;;  %v14189_v61 = vadd.f32 %v9601_v22, %v9600_v54  ;;  %9859 = vmatprep.subr.bf16.mxu1 %v11247_v40  ;;  %v11826_v28 = vld [vmem:[%s17085_s0 + $0x4c4] sm:$0xff]  ;;  %v11219_v54 = vld [vmem:[%s17084_s1 + $0x810] ss:$12 sps:$4 sm:$0xff]  }
 0x160   :  { %v14184_v18 = vmax.bf16 %v450_v10, %v147_v58  ;;  %v389_v52 = vrot.slane %v11826_v28, 4  ;;  %7815 = vmatmul.mubr.bf16.gmra.mrb[152].mxu1 %v8809_v49  ;;  %6506 = vmatpush1.bf16.msra.mxu0 %v11209_v35  ;;  %v17293_v25 = vld [vmem:[#allocation39_spill] sm:$0xff]  ;;  %v17295_v21 = vld [vmem:[#allocation42_spill] sm:$0xff]  ;;  %v1714_v10 = vlaneseq  ;;  %v11253_v35 = vld [vmem:[%s17084_s1 + $0x830] ss:$12 sps:$4 sm:$0xff]  }
 0x161   :  { %6507 = vmatprep.subr.bf16.mxu0 %v11217_v36  ;;  %7822 = vmatprep.mubr.bf16.mxu1 %v8837_v2  ;;  %v17294_v40 = vrot.slane %v17293_v25, 4  ;;  %v17296_v30 = vrot.slane %v17295_v21, 4  ;;  %v11275_v36 = vld [vmem:[%s17084_s1 + $0x9c8] ss:$12 sps:$4 sm:$0xff]   ;;  %v11227_v25 = vld [vmem:[%s17084_s1 + $0x82c] ss:$12 sps:$4 sm:$0xff]  }
 0x162   :  { %6458 = vmatprep.mubr.bf16.mxu0 %v14119_v44  ;;  %9860 = vmatpush3.bf16.msra.mxu1 %v11248_v62  ;;  %v161_v44 = vld [vmem:[%s17085_s0 + $0x468] sm:$0xff]  ;;  %v175_v62 = vld [vmem:[%s17085_s0 + $0x4d4] sm:$0xff] }
 0x163   :  { %v403_v34 = vsel %vm249_vm0, %v387_v19, %v17294_v40  ;;  %v404_v58 = vsel %vm249_vm0, %v389_v52, %v17296_v30  ;;  %v9603_v52 = vpop.f32.mrb[48].mxu1  ;;  %9861 = vmatprep.subr.bf16.mxu1 %v11252_v4  ;;  %v8836_v40 = vcombine.low %v11823_v13, %v11824_v9  ;;  %v8864_v4 = vcombine.high %v11825_v57, %v11826_v28  ;;  %v11233_v13 = vld [vmem:[%s17084_s1 + $0x844] ss:$12 sps:$4 sm:$0xff]  }
 0x164   :  { %v452_v22 = vmax.bf16 %v403_v34, %v13644_v38  ;;  %v454_v19 = vmax.bf16 %v404_v58, %v13650_v12  ;;  %6508 = vmatpush1.bf16.msra.mxu0 %v11215_v32  ;;  %v9604_v21 = vpop.f32.mrb[49].mxu1  ;;  %v14233_v58 = vshrl.u32 %v1714_v10, 7  ;;  %v11827_v9 = vld [vmem:[%s17085_s0 + $0x530] sm:$0xff] }
 0x165   :  { %6509 = vmatprep.subr.bf16.mxu0 %v11221_v55  ;;  %v14231_v34 = vadd.f32 %v9604_v21, %v9603_v52  ;;  %v9606_v30 = vpop.f32.mrb[50].mxu1  ;;  %v391_v55 = vrot.slane %v11827_v9, 4  ;;  %v8863_v52 = vcombine.low %v11825_v57, %v11826_v28  ;;  %v8891_v21 = vcombine.high %v11827_v9, %v11827_v9  ;;  %v11243_v57 = vld [vmem:[%s17084_s1 + $0x870] ss:$12 sps:$4 sm:$0xff]  }
 0x166   :  { %v14227_v38 = vmax.bf16 %v452_v22, %v161_v44  ;;  %v14229_v12 = vmax.bf16 %v454_v19, %v175_v62  ;;  %17297 = vst [vmem:[#allocation2_spill] sm:$0xff] %v14233_v58  ;;  %v9607_v37 = vpop.f32.mrb[51].mxu1  ;;  %9862 = vmatpush3.bf16.msra.mxu1 %v11253_v35  ;;  %v1724_v10 = vsub.s32 2, %v14233_v58  ;;  %v1712_v19 = vld [vmem:[%s17087_s2] sm:$0x7] }
 0x167   :  { %v14238_v32 = vadd.f32 %v9607_v37, %v9606_v30  ;;  %6459 = vmatmul.mubr.bf16.gmra.mrb[12].mxu0 %v8809_v49  ;;  %9905 = vmatprep.subr.bf16.mxu1 %v11275_v36  ;;  %v11231_v37 = vld [vmem:[%s17084_s1 + $0x840] ss:$12 sps:$4 sm:$0xff]   ;;  %v11239_v49 = vld [vmem:[%s17084_s1 + $0x85c] ss:$12 sps:$4 sm:$0xff]   ;;  %v17298_v36 = vrot.slane %v12940_v59, 4 }
 0x168   :  { %7823 = vmatmul.mubr.bf16.gmra.mrb[156].mxu1 %v8836_v40  ;;  %6510 = vmatpush1.bf16.msra.mxu0 %v11219_v54  ;;  %v189_v54 = vld [vmem:[%s17085_s0 + $0x540] sm:$0xff] }
 0x169   :  { %6511 = vmatprep.subr.bf16.mxu0 %v11227_v25  ;;  %7830 = vmatprep.mubr.bf16.mxu1 %v8864_v4  ;;  %v405_v22 = vsel %vm249_vm0, %v391_v55, %v17298_v36  ;;  %v11237_v59 = vld [vmem:[%s17084_s1 + $0x858] ss:$12 sps:$4 sm:$0xff]  }
 0x16a   :  { %6468 = vmatprep.mubr.bf16.mxu0 %v8837_v2  ;;  %v456_v25 = vmax.bf16 %v405_v22, %v13685_v50  ;;  %v14273_v50 = vrot.slane %v1712_v19, %v1724_v10 }
 0x16b   :  { %v9609_v35 = vpop.f32.mrb[52].mxu1 }
 0x16c   :  { %6512 = vmatpush1.bf16.msra.mxu0 %v11225_v17  ;;  %v9610_v2 = vpop.f32.mrb[53].mxu1  ;;  %v14268_v55 = vmax.bf16 %v456_v25, %v189_v54  ;;  %v11245_v17 = vld [vmem:[%s17084_s1 + $0x874] ss:$12 sps:$4 sm:$0xff]   ;;  %v8890_v54 = vcombine.low %v11827_v9, %v11827_v9  ;;  %v11257_v25 = vld [vmem:[%s17084_s1 + $0x8a4] ss:$12 sps:$4 sm:$0xff]  }
 0x16d   :  { %6513 = vmatprep.subr.bf16.mxu0 %v11233_v13  ;;  %v14263_v44 = vadd.f32 %v9610_v2, %v9609_v35  ;;  %v9612_v62 = vpop.f32.mrb[54].mxu1  ;;  %v11251_v13 = vld [vmem:[%s17084_s1 + $0x88c] ss:$12 sps:$4 sm:$0xff]   ;;  %v11249_v9 = vld [vmem:[%s17084_s1 + $0x888] ss:$12 sps:$4 sm:$0xff]  }
 0x16e   :  { %v9613_v30 = vpop.f32.mrb[55].mxu1  ;;  %17299 = vst [vmem:[#allocation3_spill] sm:$0xff] %v14268_v55 }
 0x16f   :  { %6469 = vmatmul.mubr.bf16.gmra.mrb[16].mxu0 %v8836_v40  ;;  %v7441_v40 = vadd.f32 %v13967_v29, %v14273_v50  ;;  %v7444_v29 = vadd.f32 %v13983_v1, %v14273_v50  ;;  %v11255_v30 = vld [vmem:[%s17084_s1 + $0x8a0] ss:$12 sps:$4 sm:$0xff]  }
 0x170   :  { %7831 = vmatmul.mubr.bf16.gmra.mrb[160].mxu1 %v8863_v52  ;;  %6514 = vmatpush1.bf16.msra.mxu0 %v11231_v37 }
 0x171   :  { %6515 = vmatprep.subr.bf16.mxu0 %v11239_v49  ;;  %7838 = vmatprep.mubr.bf16.mxu1 %v8891_v21  ;;  %v11828_v49 = vld [vmem:[%s17085_s0 + $0x28] sm:$0xff] }
 0x172   :  { %6478 = vmatprep.mubr.bf16.mxu0 %v8864_v4  ;;  %v11829_v4 = vld [vmem:[%s17085_s0 + $0x94] sm:$0xff] }
 0x173   :  { %v9631_v28 = vpop.f32.mrb[56].mxu1  ;;  %v8731_v36 = vcombine.high %v11828_v49, %v11829_v4 }
 0x174   :  { %v9632_v35 = vpop.f32.mrb[57].mxu1  ;;  %6516 = vmatpush1.bf16.msra.mxu0 %v11237_v59  ;;  %v11261_v59 = vld [vmem:[%s17084_s1 + $0x8bc] ss:$12 sps:$4 sm:$0xff]  }
 0x175   :  { %v9633_v37 = vadd.f32 %v9632_v35, %v9631_v28  ;;  %v9634_v10 = vpop.f32.mrb[58].mxu1  ;;  %6517 = vmatprep.subr.bf16.mxu0 %v11245_v17  ;;  %v14307_v28 = vcombine.low %v11828_v49, %v11829_v4  ;;  %v11830_v35 = vld [vmem:[%s17085_s0 + $0x100] sm:$0xff]  ;;  %v7452_v49 = vadd.f32 %v14027_v46, %v14273_v50 }
 0x176   :  { %v9635_v22 = vpop.f32.mrb[59].mxu1  ;;  %v11265_v46 = vld [vmem:[%s17084_s1 + $0x8d4] ss:$12 sps:$4 sm:$0xff]  }
 0x177   :  { %v14294_v19 = vadd.f32 %v9633_v37, %v7441_v40  ;;  %v9636_v2 = vadd.f32 %v9635_v22, %v9634_v10  ;;  %6479 = vmatmul.mubr.bf16.gmra.mrb[20].mxu0 %v8863_v52  ;;  %v7449_v52 = vadd.f32 %v14015_v63, %v14273_v50  ;;  %v11259_v10 = vld [vmem:[%s17084_s1 + $0x8b8] ss:$12 sps:$4 sm:$0xff]   ;;  %v11276_v63 = vld [vmem:[%s17084_s1 + $0x908] ss:$12 sps:$4 sm:$0xff]  }
 0x178   :  { %7839 = vmatmul.mubr.bf16.gmra.mrb[164].mxu1 %v8890_v54  ;;  %6518 = vmatpush1.bf16.msra.mxu0 %v11243_v57 }
 0x179   :  { %v14299_v62 = vadd.f32 %v9636_v2, %v7444_v29  ;;  %6519 = vmatprep.subr.bf16.mxu0 %v11251_v13  ;;  %7878 = vmatprep.mubr.bf16.mxu1 %v8731_v36  ;;  %v11286_v2 = vld [vmem:[%s17084_s1 + $0x920] ss:$12 sps:$4 sm:$0xff]  }
 0x17a   :  { %6488 = vmatprep.mubr.bf16.mxu0 %v8891_v21  ;;  %v11831_v21 = vld [vmem:[%s17085_s0 + $0x16c] sm:$0xff] }
 0x17b   :  { %v9637_v1 = vpop.f32.mrb[60].mxu1  ;;  %v14317_v40 = vcombine.high %v11830_v35, %v11831_v21 }
 0x17c   :  { %v9638_v17 = vpop.f32.mrb[61].mxu1  ;;  %6520 = vmatpush1.bf16.msra.mxu0 %v11249_v9  ;;  %v11285_v9 = vld [vmem:[%s17084_s1 + $0x9e0] ss:$12 sps:$4 sm:$0xff]  }
 0x17d   :  { %v9639_v57 = vadd.f32 %v9638_v17, %v9637_v1  ;;  %v9640_v13 = vpop.f32.mrb[62].mxu1  ;;  %6521 = vmatprep.subr.bf16.mxu0 %v11257_v25  ;;  %v11295_v1 = vld [vmem:[%s17084_s1 + $0x9f8] ss:$12 sps:$4 sm:$0xff]   ;;  %v14351_v17 = vcombine.low %v11830_v35, %v11831_v21  ;;  %v11267_v35 = vld [vmem:[%s17084_s1 + $0x8e8] ss:$12 sps:$4 sm:$0xff]   ;;  %v7460_v21 = vadd.f32 %v14079_v27, %v14273_v50 }
 0x17e   :  { %v9641_v37 = vpop.f32.mrb[63].mxu1  ;;  %v11273_v27 = vld [vmem:[%s17084_s1 + $0x904] ss:$12 sps:$4 sm:$0xff]  }
 0x17f   :  { %v14327_v4 = vadd.f32 %v9639_v57, %v7449_v52  ;;  %v9642_v22 = vadd.f32 %v9641_v37, %v9640_v13  ;;  %6489 = vmatmul.mubr.bf16.gmra.mrb[24].mxu0 %v8890_v54  ;;  %v11263_v54 = vld [vmem:[%s17084_s1 + $0x8d0] ss:$12 sps:$4 sm:$0xff]   ;;  %v11833_v37 = vld [vmem:[%s17085_s0 + $0x244] sm:$0xff] }
 0x180   :  { %7879 = vmatmul.mubr.bf16.vlgmr.msra.gmra.mrb[168].mxu1 %v14307_v28  ;;  %6522 = vmatpush1.bf16.msra.mxu0 %v11255_v30  ;;  %v11269_v30 = vld [vmem:[%s17084_s1 + $0x8ec] ss:$12 sps:$4 sm:$0xff]  }
 0x181   :  { %v14333_v29 = vadd.f32 %v9642_v22, %v7452_v49  ;;  %6523 = vmatprep.subr.bf16.mxu0 %v11261_v59  ;;  %7886 = vmatprep.mubr.bf16.mxu1 %v14317_v40  ;;  %v11832_v13 = vld [vmem:[%s17085_s0 + $0x1d8] sm:$0xff] }
 0x182   :  { %6529 = vmatprep.mubr.bf16.mxu0 %v8731_v36  ;;  %9906 = vmatpush3.bf16.msra.mxu1 %v11276_v63  ;;  %v7457_v36 = vadd.f32 %v14067_v7, %v14273_v50  ;;  %v14361_v63 = vcombine.high %v11832_v13, %v11833_v37  ;;  %v11296_v7 = vld [vmem:[%s17084_s1 + $0x938] ss:$12 sps:$4 sm:$0xff]  }
 0x183   :  { %v9643_v25 = vpop.f32.mrb[64].mxu1  ;;  %9907 = vmatprep.subr.bf16.mxu1 %v11285_v9  ;;  %v11300_v9 = vld [vmem:[%s17084_s1 + $0xa10] ss:$12 sps:$4 sm:$0xff]  }
 0x184   :  { %v9644_v59 = vpop.f32.mrb[65].mxu1  ;;  %6524 = vmatpush1.bf16.msra.mxu0 %v11259_v10 }
 0x185   :  { %v9645_v52 = vadd.f32 %v9644_v59, %v9643_v25  ;;  %v9646_v57 = vpop.f32.mrb[66].mxu1  ;;  %6525 = vmatprep.subr.bf16.mxu0 %v11265_v46  ;;  %v11301_v25 = vld [vmem:[%s17084_s1 + $0x950] ss:$12 sps:$4 sm:$0xff]  }
 0x186   :  { %v9647_v49 = vpop.f32.mrb[67].mxu1  ;;  %9908 = vmatpush3.bf16.msra.mxu1 %v11286_v2  ;;  %v11271_v2 = vld [vmem:[%s17084_s1 + $0x900] ss:$12 sps:$4 sm:$0xff]  }
 0x187   :  { %v14371_v10 = vadd.f32 %v9645_v52, %v7457_v36  ;;  %v9648_v22 = vadd.f32 %v9647_v49, %v9646_v57  ;;  %9909 = vmatprep.subr.bf16.mxu1 %v11295_v1  ;;  %v14395_v36 = vcombine.low %v11832_v13, %v11833_v37  ;;  %v7465_v52 = vadd.f32 %v14121_v5, %v14273_v50  ;;  %v11277_v13 = vld [vmem:[%s17084_s1 + $0x918] ss:$12 sps:$4 sm:$0xff]   ;;  %v11308_v5 = vld [vmem:[%s17084_s1 + $0x968] ss:$12 sps:$4 sm:$0xff]  }
 0x188   :  { %7887 = vmatmul.mubr.bf16.gmra.mrb[172].mxu1 %v14351_v17  ;;  %6526 = vmatpush1.bf16.msra.mxu0 %v11263_v54  ;;  %v11279_v54 = vld [vmem:[%s17084_s1 + $0x91c] ss:$12 sps:$4 sm:$0xff]   ;;  %v7468_v37 = vadd.f32 %v14136_v14, %v14273_v50  ;;  %v11313_v14 = vld [vmem:[%s17084_s1 + $0x980] ss:$12 sps:$4 sm:$0xff]  }
 0x189   :  { %v14377_v46 = vadd.f32 %v9648_v22, %v7460_v21  ;;  %6527 = vmatprep.subr.bf16.mxu0 %v11269_v30  ;;  %7894 = vmatprep.mubr.bf16.mxu1 %v14361_v63  ;;  %v11307_v30 = vld [vmem:[%s17084_s1 + $0xa28] ss:$12 sps:$4 sm:$0xff]   ;;  %v11835_v21 = vld [vmem:[%s17085_s0 + $0x31c] sm:$0xff] }
 0x18a   :  { %9910 = vmatpush3.bf16.msra.mxu1 %v11296_v7  ;;  %v11834_v7 = vld [vmem:[%s17085_s0 + $0x2b0] sm:$0xff] }
 0x18b   :  { %v9649_v1 = vpop.f32.mrb[68].mxu1  ;;  %9911 = vmatprep.subr.bf16.mxu1 %v11300_v9  ;;  %v14405_v22 = vcombine.high %v11834_v7, %v11835_v21 }
 0x18c   :  { %v9650_v59 = vpop.f32.mrb[69].mxu1  ;;  %6528 = vmatpush1.bf16.msra.mxu0 %v11267_v35 }
 0x18d   :  { %v9651_v57 = vadd.f32 %v9650_v59, %v9649_v1  ;;  %v9652_v49 = vpop.f32.mrb[70].mxu1  ;;  %6598 = vmatprep.subr.bf16.mxu0 %v11273_v27  ;;  %v11283_v1 = vld [vmem:[%s17084_s1 + $0x934] ss:$12 sps:$4 sm:$0xff]  }
 0x18e   :  { %v9653_v9 = vpop.f32.mrb[71].mxu1  ;;  %9912 = vmatpush3.bf16.msra.mxu1 %v11301_v25  ;;  %v11312_v25 = vld [vmem:[%s17084_s1 + $0xa40] ss:$12 sps:$4 sm:$0xff]  }
 0x18f   :  { %v14415_v35 = vadd.f32 %v9651_v57, %v7465_v52  ;;  %v9654_v27 = vadd.f32 %v9653_v9, %v9652_v49  ;;  %6530 = vmatmul.mubr.bf16.vlgmr.msra.gmra.mrb[0].mxu0 %v14307_v28  ;;  %9913 = vmatprep.subr.bf16.mxu1 %v11307_v30  ;;  %v11281_v30 = vld [vmem:[%s17084_s1 + $0x930] ss:$12 sps:$4 sm:$0xff]   ;;  %v14438_v52 = vcombine.low %v11834_v7, %v11835_v21  ;;  %v11289_v9 = vld [vmem:[%s17084_s1 + $0x94c] ss:$12 sps:$4 sm:$0xff]  }
 0x190   :  { %7895 = vmatmul.mubr.bf16.gmra.mrb[176].mxu1 %v14395_v36  ;;  %6599 = vmatpush1.bf16.msra.mxu0 %v11271_v2  ;;  %v11319_v2 = vld [vmem:[%s17084_s1 + $0xa58] ss:$12 sps:$4 sm:$0xff]  }
 0x191   :  { %v14425_v59 = vadd.f32 %v9654_v27, %v7468_v37  ;;  %6600 = vmatprep.subr.bf16.mxu0 %v11279_v54  ;;  %7902 = vmatprep.mubr.bf16.mxu1 %v14405_v22  ;;  %v11320_v37 = vld [vmem:[%s17084_s1 + $0x998] ss:$12 sps:$4 sm:$0xff]   ;;  %v7476_v27 = vadd.f32 %v14189_v61, %v14273_v50  ;;  %v11291_v61 = vld [vmem:[%s17084_s1 + $0x960] ss:$12 sps:$4 sm:$0xff]  }
 0x192   :  { %6539 = vmatprep.mubr.bf16.mxu0 %v14317_v40  ;;  %9914 = vmatpush3.bf16.msra.mxu1 %v11308_v5  ;;  %v7473_v40 = vadd.f32 %v14174_v24, %v14273_v50  ;;  %v11836_v5 = vld [vmem:[%s17085_s0 + $0x388] sm:$0xff] }
 0x193   :  { %v9655_v28 = vpop.f32.mrb[72].mxu1  ;;  %9915 = vmatprep.subr.bf16.mxu1 %v11312_v25  ;;  %v11287_v24 = vld [vmem:[%s17084_s1 + $0x948] ss:$12 sps:$4 sm:$0xff]  }
 0x194   :  { %v9656_v54 = vpop.f32.mrb[73].mxu1  ;;  %6601 = vmatpush1.bf16.msra.mxu0 %v11277_v13  ;;  %v11837_v13 = vld [vmem:[%s17085_s0 + $0x3f4] sm:$0xff] }
 0x195   :  { %v9657_v57 = vadd.f32 %v9656_v54, %v9655_v28  ;;  %v9658_v49 = vpop.f32.mrb[74].mxu1  ;;  %6602 = vmatprep.subr.bf16.mxu0 %v11283_v1  ;;  %v14451_v7 = vcombine.high %v11836_v5, %v11837_v13  ;;  %v11293_v28 = vld [vmem:[%s17084_s1 + $0x964] ss:$12 sps:$4 sm:$0xff]  }
 0x196   :  { %v9659_v21 = vpop.f32.mrb[75].mxu1  ;;  %9916 = vmatpush3.bf16.msra.mxu1 %v11313_v14  ;;  %v11324_v14 = vld [vmem:[%s17084_s1 + $0xa70] ss:$12 sps:$4 sm:$0xff]  }
 0x197   :  { %v14461_v1 = vadd.f32 %v9657_v57, %v7473_v40  ;;  %v9660_v25 = vadd.f32 %v9659_v21, %v9658_v49  ;;  %6540 = vmatmul.mubr.bf16.gmra.mrb[4].mxu0 %v14351_v17  ;;  %9917 = vmatprep.subr.bf16.mxu1 %v11319_v2  ;;  %v11325_v17 = vld [vmem:[%s17084_s1 + $0x9b0] ss:$12 sps:$4 sm:$0xff]   ;;  %v11347_v40 = vld [vmem:[%s17084_s1 + $0xb48] ss:$12 sps:$4 sm:$0xff]   ;;  %v8838_v49 = vcombine.low %v11836_v5, %v11837_v13 }
 0x198   :  { %7903 = vmatmul.mubr.bf16.gmra.mrb[180].mxu1 %v14438_v52  ;;  %6603 = vmatpush1.bf16.msra.mxu0 %v11281_v30  ;;  %v11299_v30 = vld [vmem:[%s17084_s1 + $0x97c] ss:$12 sps:$4 sm:$0xff]   ;;  %v7484_v5 = vadd.f32 %v14238_v32, %v14273_v50 }
 0x199   :  { %v14471_v54 = vadd.f32 %v9660_v25, %v7476_v27  ;;  %6604 = vmatprep.subr.bf16.mxu0 %v11289_v9  ;;  %7910 = vmatprep.mubr.bf16.mxu1 %v14451_v7  ;;  %v11839_v27 = vld [vmem:[%s17085_s0 + $0x4cc] sm:$0xff] }
 0x19a   :  { %6549 = vmatprep.mubr.bf16.mxu0 %v14361_v63  ;;  %9918 = vmatpush3.bf16.msra.mxu1 %v11320_v37  ;;  %v7481_v63 = vadd.f32 %v14231_v34, %v14273_v50  ;;  %v11838_v37 = vld [vmem:[%s17085_s0 + $0x460] sm:$0xff] }
 0x19b   :  { %v9661_v2 = vpop.f32.mrb[76].mxu1  ;;  %9919 = vmatprep.subr.bf16.mxu1 %v11324_v14  ;;  %v8866_v25 = vcombine.high %v11838_v37, %v11839_v27 }
 0x19c   :  { %v9662_v57 = vpop.f32.mrb[77].mxu1  ;;  %6605 = vmatpush1.bf16.msra.mxu0 %v11287_v24  ;;  %v11297_v24 = vld [vmem:[%s17084_s1 + $0x978] ss:$12 sps:$4 sm:$0xff]  }
 0x19d   :  { %v9663_v9 = vadd.f32 %v9662_v57, %v9661_v2  ;;  %v9664_v21 = vpop.f32.mrb[78].mxu1  ;;  %6606 = vmatprep.subr.bf16.mxu0 %v11293_v28  ;;  %v11305_v28 = vld [vmem:[%s17084_s1 + $0x994] ss:$12 sps:$4 sm:$0xff]   ;;  %v11303_v2 = vld [vmem:[%s17084_s1 + $0x990] ss:$12 sps:$4 sm:$0xff]  }
 0x19e   :  { %v9665_v14 = vpop.f32.mrb[79].mxu1  ;;  %9920 = vmatpush3.bf16.msra.mxu1 %v11325_v17  ;;  %v11311_v57 = vld [vmem:[%s17084_s1 + $0x9ac] ss:$12 sps:$4 sm:$0xff]  }
 0x19f   :  { %v14497_v13 = vadd.f32 %v9663_v9, %v7481_v63  ;;  %v9666_v34 = vadd.f32 %v9665_v14, %v9664_v21  ;;  %6550 = vmatmul.mubr.bf16.gmra.mrb[8].mxu0 %v14395_v36  ;;  %9963 = vmatprep.subr.bf16.mxu1 %v11347_v40  ;;  %v8865_v36 = vcombine.low %v11838_v37, %v11839_v27  ;;  %v11309_v14 = vld [vmem:[%s17084_s1 + $0x9a8] ss:$12 sps:$4 sm:$0xff]   ;;  %v11317_v37 = vld [vmem:[%s17084_s1 + $0x9c4] ss:$12 sps:$4 sm:$0xff]  }
 0x1a0   :  { %7911 = vmatmul.mubr.bf16.gmra.mrb[184].mxu1 %v8838_v49  ;;  %6607 = vmatpush1.bf16.msra.mxu0 %v11291_v61  ;;  %v7489_v61 = vadd.f32 %v14263_v44, %v14273_v50  ;;  %v11315_v44 = vld [vmem:[%s17084_s1 + $0x9c0] ss:$12 sps:$4 sm:$0xff]   ;;  %v11323_v27 = vld [vmem:[%s17084_s1 + $0x9dc] ss:$12 sps:$4 sm:$0xff]  }
 0x1a1   :  { %v14506_v17 = vadd.f32 %v9666_v34, %v7484_v5  ;;  %6608 = vmatprep.subr.bf16.mxu0 %v11299_v30  ;;  %7918 = vmatprep.mubr.bf16.mxu1 %v8866_v25 }
 0x1a2   :  { %6559 = vmatprep.mubr.bf16.mxu0 %v14405_v22  ;;  %v11840_v22 = vld [vmem:[%s17085_s0 + $0x538] sm:$0xff] }
 0x1a3   :  { %v9667_v32 = vpop.f32.mrb[80].mxu1  ;;  %v8893_v9 = vcombine.high %v11840_v22, %v11840_v22 }
 0x1a4   :  { %v9668_v63 = vpop.f32.mrb[81].mxu1  ;;  %6609 = vmatpush1.bf16.msra.mxu0 %v11297_v24  ;;  %v14536_v24 = vcombine.low %v11840_v22, %v11840_v22 }
 0x1a5   :  { %v9669_v40 = vadd.f32 %v9668_v63, %v9667_v32  ;;  %6610 = vmatprep.subr.bf16.mxu0 %v11305_v28  ;;  %v9670_v30 = vpop.f32.mrb[82].mxu1  ;;  %v11841_v32 = vld [vmem:[%s17085_s0 + $0x30] sm:$0xff]  ;;  %v11321_v63 = vld [vmem:[%s17084_s1 + $0x9d8] ss:$12 sps:$4 sm:$0xff]  }
 0x1a6   :  { %v9671_v21 = vpop.f32.mrb[83].mxu1  ;;  %v11330_v30 = vld [vmem:[%s17084_s1 + $0x9f4] ss:$12 sps:$4 sm:$0xff]  }
 0x1a7   :  { %v14523_v5 = vadd.f32 %v9669_v40, %v7489_v61  ;;  %6560 = vmatmul.mubr.bf16.gmra.mrb[12].mxu0 %v14438_v52 }
 0x1a8   :  { %7919 = vmatmul.mubr.bf16.gmra.mrb[188].mxu1 %v8865_v36  ;;  %6611 = vmatpush1.bf16.msra.mxu0 %v11303_v2 }
 0x1a9   :  { %6612 = vmatprep.subr.bf16.mxu0 %v11311_v57  ;;  %7926 = vmatprep.mubr.bf16.mxu1 %v8893_v9 }
 0x1aa   :  { %6569 = vmatprep.mubr.bf16.mxu0 %v14451_v7  ;;  %v11842_v7 = vld [vmem:[%s17085_s0 + $0x9c] sm:$0xff] }
 0x1ab   :  { %v9689_v50 = vpop.f32.mrb[84].mxu1  ;;  %v14544_v2 = vcombine.high %v11841_v32, %v11842_v7 }
 0x1ac   :  { %v9690_v34 = vpop.f32.mrb[85].mxu1  ;;  %6613 = vmatpush1.bf16.msra.mxu0 %v11309_v14  ;;  %v11333_v14 = vld [vmem:[%s17084_s1 + $0xa0c] ss:$12 sps:$4 sm:$0xff]  }
 0x1ad   :  { %v9691_v52 = vadd.f32 %v9690_v34, %v9689_v50  ;;  %v9692_v28 = vpop.f32.mrb[86].mxu1  ;;  %6614 = vmatprep.subr.bf16.mxu0 %v11317_v37  ;;  %v14566_v37 = vcombine.low %v11841_v32, %v11842_v7  ;;  %v11843_v50 = vld [vmem:[%s17085_s0 + $0x108] sm:$0xff] }
 0x1ae   :  { %v9693_v57 = vpop.f32.mrb[87].mxu1 }
 0x1af   :  { %v14550_v61 = vadd.f32 %v9691_v52, %v14294_v19  ;;  %v9694_v40 = vadd.f32 %v9693_v57, %v9692_v28  ;;  %6570 = vmatmul.mubr.bf16.gmra.mrb[16].mxu0 %v8838_v49  ;;  %v11328_v19 = vld [vmem:[%s17084_s1 + $0x9f0] ss:$12 sps:$4 sm:$0xff]   ;;  %v11331_v52 = vld [vmem:[%s17084_s1 + $0xa08] ss:$12 sps:$4 sm:$0xff]   ;;  %v11357_v57 = vld [vmem:[%s17084_s1 + $0xb60] ss:$12 sps:$4 sm:$0xff]  }
 0x1b0   :  { %7927 = vmatmul.mubr.bf16.gmra.mrb[192].mxu1 %v14536_v24  ;;  %6615 = vmatpush1.bf16.msra.mxu0 %v11315_v44  ;;  %v11348_v28 = vld [vmem:[%s17084_s1 + $0xa88] ss:$12 sps:$4 sm:$0xff]  }
 0x1b1   :  { %v14557_v22 = vadd.f32 %v9694_v40, %v14299_v62  ;;  %6616 = vmatprep.subr.bf16.mxu0 %v11323_v27  ;;  %7966 = vmatprep.mubr.bf16.mxu1 %v14544_v2 }
 0x1b2   :  { %6579 = vmatprep.mubr.bf16.mxu0 %v8866_v25  ;;  %v11844_v25 = vld [vmem:[%s17085_s0 + $0x174] sm:$0xff] }
 0x1b3   :  { %v9695_v21 = vpop.f32.mrb[88].mxu1  ;;  %v14574_v27 = vcombine.high %v11843_v50, %v11844_v25 }
 0x1b4   :  { %v9696_v49 = vpop.f32.mrb[89].mxu1  ;;  %6617 = vmatpush1.bf16.msra.mxu0 %v11321_v63  ;;  %v11337_v63 = vld [vmem:[%s17084_s1 + $0xa24] ss:$12 sps:$4 sm:$0xff]  }
 0x1b5   :  { %v9697_v44 = vadd.f32 %v9696_v49, %v9695_v21  ;;  %v9698_v62 = vpop.f32.mrb[90].mxu1  ;;  %6618 = vmatprep.subr.bf16.mxu0 %v11330_v30 }
 0x1b6   :  { %v9699_v34 = vpop.f32.mrb[91].mxu1 }
 0x1b7   :  { %v14583_v32 = vadd.f32 %v9697_v44, %v14327_v4  ;;  %v9700_v7 = vadd.f32 %v9699_v34, %v9698_v62  ;;  %6580 = vmatmul.mubr.bf16.gmra.mrb[20].mxu0 %v8865_v36  ;;  %v11335_v4 = vld [vmem:[%s17084_s1 + $0xa20] ss:$12 sps:$4 sm:$0xff]  }
 0x1b8   :  { %7967 = vmatmul.mubr.bf16.vlgmr.msra.gmra.mrb[196].mxu1 %v14566_v37  ;;  %6619 = vmatpush1.bf16.msra.mxu0 %v11328_v19  ;;  %v11358_v36 = vld [vmem:[%s17084_s1 + $0xaa0] ss:$12 sps:$4 sm:$0xff]   ;;  %v11341_v19 = vld [vmem:[%s17084_s1 + $0xa3c] ss:$12 sps:$4 sm:$0xff]  }
 0x1b9   :  { %v14593_v40 = vadd.f32 %v9700_v7, %v14333_v29  ;;  %6620 = vmatprep.subr.bf16.mxu0 %v11333_v14  ;;  %7974 = vmatprep.mubr.bf16.mxu1 %v14574_v27  ;;  %v11367_v29 = vld [vmem:[%s17084_s1 + $0xb78] ss:$12 sps:$4 sm:$0xff]   ;;  %v14608_v14 = vcombine.low %v11843_v50, %v11844_v25  ;;  %v11846_v62 = vld [vmem:[%s17085_s0 + $0x24c] sm:$0xff] }
 0x1ba   :  { %6589 = vmatprep.mubr.bf16.mxu0 %v8893_v9  ;;  %9964 = vmatpush3.bf16.msra.mxu1 %v11348_v28  ;;  %v11845_v44 = vld [vmem:[%s17085_s0 + $0x1e0] sm:$0xff]  ;;  %v11372_v7 = vld [vmem:[%s17084_s1 + $0xb90] ss:$12 sps:$4 sm:$0xff]  }
 0x1bb   :  { %v9701_v30 = vpop.f32.mrb[92].mxu1  ;;  %9965 = vmatprep.subr.bf16.mxu1 %v11357_v57  ;;  %v14616_v34 = vcombine.high %v11845_v44, %v11846_v62  ;;  %v11368_v50 = vld [vmem:[%s17084_s1 + $0xab8] ss:$12 sps:$4 sm:$0xff]  }
 0x1bc   :  { %v9702_v21 = vpop.f32.mrb[93].mxu1  ;;  %6621 = vmatpush1.bf16.msra.mxu0 %v11331_v52  ;;  %v11339_v57 = vld [vmem:[%s17084_s1 + $0xa38] ss:$12 sps:$4 sm:$0xff]  }
 0x1bd   :  { %v9703_v9 = vadd.f32 %v9702_v21, %v9701_v30  ;;  %v9704_v49 = vpop.f32.mrb[94].mxu1  ;;  %6622 = vmatprep.subr.bf16.mxu0 %v11337_v63  ;;  %v11379_v30 = vld [vmem:[%s17084_s1 + $0xba8] ss:$12 sps:$4 sm:$0xff]  }
 0x1be   :  { %v9705_v28 = vpop.f32.mrb[95].mxu1  ;;  %9966 = vmatpush3.bf16.msra.mxu1 %v11358_v36 }
 0x1bf   :  { %v14622_v25 = vadd.f32 %v9703_v9, %v14371_v10  ;;  %v9706_v52 = vadd.f32 %v9705_v28, %v9704_v49  ;;  %6590 = vmatmul.mubr.bf16.gmra.mrb[24].mxu0 %v14536_v24  ;;  %9967 = vmatprep.subr.bf16.mxu1 %v11367_v29  ;;  %v11345_v10 = vld [vmem:[%s17084_s1 + $0xa54] ss:$12 sps:$4 sm:$0xff]   ;;  %v11343_v24 = vld [vmem:[%s17084_s1 + $0xa50] ss:$12 sps:$4 sm:$0xff]   ;;  %v14652_v29 = vcombine.low %v11845_v44, %v11846_v62  ;;  %v11848_v49 = vld [vmem:[%s17085_s0 + $0x324] sm:$0xff] }
 0x1c0   :  { %7975 = vmatmul.mubr.bf16.gmra.mrb[200].mxu1 %v14608_v14  ;;  %6623 = vmatpush1.bf16.msra.mxu0 %v11335_v4  ;;  %v11373_v4 = vld [vmem:[%s17084_s1 + $0xad0] ss:$12 sps:$4 sm:$0xff]   ;;  %v11380_v44 = vld [vmem:[%s17084_s1 + $0xae8] ss:$12 sps:$4 sm:$0xff]  }
 0x1c1   :  { %v14636_v63 = vadd.f32 %v9706_v52, %v14377_v46  ;;  %6624 = vmatprep.subr.bf16.mxu0 %v11341_v19  ;;  %7982 = vmatprep.mubr.bf16.mxu1 %v14616_v34  ;;  %v11351_v46 = vld [vmem:[%s17084_s1 + $0xa6c] ss:$12 sps:$4 sm:$0xff]   ;;  %v11349_v52 = vld [vmem:[%s17084_s1 + $0xa68] ss:$12 sps:$4 sm:$0xff]  }
 0x1c2   :  { %6630 = vmatprep.mubr.bf16.mxu0 %v14544_v2  ;;  %9968 = vmatpush3.bf16.msra.mxu1 %v11368_v50  ;;  %v11847_v9 = vld [vmem:[%s17085_s0 + $0x2b8] sm:$0xff] }
 0x1c3   :  { %v9707_v36 = vpop.f32.mrb[96].mxu1  ;;  %9969 = vmatprep.subr.bf16.mxu1 %v11372_v7  ;;  %v14660_v28 = vcombine.high %v11847_v9, %v11848_v49 }
 0x1c4   :  { %v9708_v19 = vpop.f32.mrb[97].mxu1  ;;  %6625 = vmatpush1.bf16.msra.mxu0 %v11339_v57  ;;  %v11355_v57 = vld [vmem:[%s17084_s1 + $0xa84] ss:$12 sps:$4 sm:$0xff]  }
 0x1c5   :  { %v9709_v2 = vadd.f32 %v9708_v19, %v9707_v36  ;;  %v9710_v21 = vpop.f32.mrb[98].mxu1  ;;  %6626 = vmatprep.subr.bf16.mxu0 %v11345_v10  ;;  %v11384_v10 = vld [vmem:[%s17084_s1 + $0xbc0] ss:$12 sps:$4 sm:$0xff]   ;;  %v14694_v19 = vcombine.low %v11847_v9, %v11848_v49  ;;  %v11392_v9 = vld [vmem:[%s17084_s1 + $0xb18] ss:$12 sps:$4 sm:$0xff]  }
 0x1c6   :  { %v9711_v50 = vpop.f32.mrb[99].mxu1  ;;  %9970 = vmatpush3.bf16.msra.mxu1 %v11373_v4  ;;  %v11385_v36 = vld [vmem:[%s17084_s1 + $0xb00] ss:$12 sps:$4 sm:$0xff]  }
 0x1c7   :  { %v14669_v62 = vadd.f32 %v9709_v2, %v14415_v35  ;;  %v9712_v7 = vadd.f32 %v9711_v50, %v9710_v21  ;;  %9971 = vmatprep.subr.bf16.mxu1 %v11379_v30  ;;  %v11353_v35 = vld [vmem:[%s17084_s1 + $0xa80] ss:$12 sps:$4 sm:$0xff]   ;;  %v11849_v50 = vld [vmem:[%s17085_s0 + $0x390] sm:$0xff] }
 0x1c8   :  { %7983 = vmatmul.mubr.bf16.gmra.mrb[204].mxu1 %v14652_v29  ;;  %6627 = vmatpush1.bf16.msra.mxu0 %v11343_v24  ;;  %v11361_v24 = vld [vmem:[%s17084_s1 + $0xa9c] ss:$12 sps:$4 sm:$0xff]  }
 0x1c9   :  { %v14679_v4 = vadd.f32 %v9712_v7, %v14425_v59  ;;  %6628 = vmatprep.subr.bf16.mxu0 %v11351_v46  ;;  %7990 = vmatprep.mubr.bf16.mxu1 %v14660_v28  ;;  %v11391_v59 = vld [vmem:[%s17084_s1 + $0xbd8] ss:$12 sps:$4 sm:$0xff]  }
 0x1ca   :  { %9972 = vmatpush3.bf16.msra.mxu1 %v11380_v44  ;;  %v11850_v44 = vld [vmem:[%s17085_s0 + $0x3fc] sm:$0xff] }
 0x1cb   :  { %v9713_v30 = vpop.f32.mrb[100].mxu1  ;;  %9973 = vmatprep.subr.bf16.mxu1 %v11384_v10  ;;  %v14702_v7 = vcombine.high %v11849_v50, %v11850_v44 }
 0x1cc   :  { %v9714_v46 = vpop.f32.mrb[101].mxu1  ;;  %6629 = vmatpush1.bf16.msra.mxu0 %v11349_v52  ;;  %v11359_v52 = vld [vmem:[%s17084_s1 + $0xa98] ss:$12 sps:$4 sm:$0xff]  }
 0x1cd   :  { %v9715_v2 = vadd.f32 %v9714_v46, %v9713_v30  ;;  %v9716_v21 = vpop.f32.mrb[102].mxu1  ;;  %6699 = vmatprep.subr.bf16.mxu0 %v11355_v57  ;;  %v11365_v30 = vld [vmem:[%s17084_s1 + $0xab4] ss:$12 sps:$4 sm:$0xff]   ;;  %v11396_v46 = vld [vmem:[%s17084_s1 + $0xbf0] ss:$12 sps:$4 sm:$0xff]  }
 0x1ce   :  { %v9717_v10 = vpop.f32.mrb[103].mxu1  ;;  %9974 = vmatpush3.bf16.msra.mxu1 %v11385_v36 }
 0x1cf   :  { %v14711_v49 = vadd.f32 %v9715_v2, %v14461_v1  ;;  %v9718_v57 = vadd.f32 %v9717_v10, %v9716_v21  ;;  %6631 = vmatmul.mubr.bf16.vlgmr.msra.gmra.mrb[0].mxu0 %v14566_v37  ;;  %9975 = vmatprep.subr.bf16.mxu1 %v11391_v59  ;;  %v11363_v1 = vld [vmem:[%s17084_s1 + $0xab0] ss:$12 sps:$4 sm:$0xff]   ;;  %v14738_v2 = vcombine.low %v11849_v50, %v11850_v44  ;;  %v11851_v10 = vld [vmem:[%s17085_s0 + $0x468] sm:$0xff] }
 0x1d0   :  { %7991 = vmatmul.mubr.bf16.gmra.mrb[208].mxu1 %v14694_v19  ;;  %6700 = vmatpush1.bf16.msra.mxu0 %v11353_v35  ;;  %v11397_v37 = vld [vmem:[%s17084_s1 + $0xb30] ss:$12 sps:$4 sm:$0xff]   ;;  %v11419_v35 = vld [vmem:[%s17084_s1 + $0xcc8] ss:$12 sps:$4 sm:$0xff]  }
 0x1d1   :  { %v14722_v36 = vadd.f32 %v9718_v57, %v14471_v54  ;;  %6701 = vmatprep.subr.bf16.mxu0 %v11361_v24  ;;  %7998 = vmatprep.mubr.bf16.mxu1 %v14702_v7  ;;  %v11371_v54 = vld [vmem:[%s17084_s1 + $0xacc] ss:$12 sps:$4 sm:$0xff]   ;;  %v11369_v44 = vld [vmem:[%s17084_s1 + $0xac8] ss:$12 sps:$4 sm:$0xff]  }
 0x1d2   :  { %6640 = vmatprep.mubr.bf16.mxu0 %v14574_v27  ;;  %9976 = vmatpush3.bf16.msra.mxu1 %v11392_v9  ;;  %v11852_v9 = vld [vmem:[%s17085_s0 + $0x4d4] sm:$0xff] }
 0x1d3   :  { %v9719_v59 = vpop.f32.mrb[104].mxu1  ;;  %9977 = vmatprep.subr.bf16.mxu1 %v11396_v46  ;;  %v14746_v57 = vcombine.high %v11851_v10, %v11852_v9 }
 0x1d4   :  { %v9720_v24 = vpop.f32.mrb[105].mxu1  ;;  %6702 = vmatpush1.bf16.msra.mxu0 %v11359_v52  ;;  %v11377_v52 = vld [vmem:[%s17084_s1 + $0xae4] ss:$12 sps:$4 sm:$0xff]  }
 0x1d5   :  { %v9721_v27 = vadd.f32 %v9720_v24, %v9719_v59  ;;  %v9722_v21 = vpop.f32.mrb[106].mxu1  ;;  %6703 = vmatprep.subr.bf16.mxu0 %v11365_v30 }
 0x1d6   :  { %v9723_v46 = vpop.f32.mrb[107].mxu1  ;;  %9978 = vmatpush3.bf16.msra.mxu1 %v11397_v37  ;;  %v11375_v37 = vld [vmem:[%s17084_s1 + $0xae0] ss:$12 sps:$4 sm:$0xff]  }
 0x1d7   :  { %v14749_v0 = vadd.f32 %v9721_v27, %v14497_v13  ;;  %v9724_v50 = vadd.f32 %v9723_v46, %v9722_v21  ;;  %6641 = vmatmul.mubr.bf16.gmra.mrb[4].mxu0 %v14608_v14  ;;  %10021 = vmatprep.subr.bf16.mxu1 %v11419_v35  ;;  %v14767_v14 = vcombine.low %v11851_v10, %v11852_v9  ;;  %v11381_v27 = vld [vmem:[%s17084_s1 + $0xaf8] ss:$12 sps:$4 sm:$0xff]   ;;  %v11389_v10 = vld [vmem:[%s17084_s1 + $0xb14] ss:$12 sps:$4 sm:$0xff]  }
 0x1d8   :  { %7999 = vmatmul.mubr.bf16.gmra.mrb[212].mxu1 %v14738_v2  ;;  %6704 = vmatpush1.bf16.msra.mxu0 %v11363_v1  ;;  %v11383_v1 = vld [vmem:[%s17084_s1 + $0xafc] ss:$12 sps:$4 sm:$0xff]  }
 0x1d9   :  { %v14760_v30 = vadd.f32 %v9724_v50, %v14506_v17  ;;  %6705 = vmatprep.subr.bf16.mxu0 %v11371_v54  ;;  %8006 = vmatprep.mubr.bf16.mxu1 %v14746_v57 }
 0x1da   :  { %6650 = vmatprep.mubr.bf16.mxu0 %v14616_v34  ;;  %v11853_v34 = vld [vmem:[%s17085_s0 + $0x540] sm:$0xff] }
 0x1db   :  { %v9725_v13 = vpop.f32.mrb[108].mxu1  ;;  %v14775_v35 = vcombine.high %v11853_v34, %v11853_v34  ;;  %v14793_v50 = vcombine.low %v11853_v34, %v11853_v34  ;;  %v11401_v34 = vld [vmem:[%s17084_s1 + $0xb44] ss:$12 sps:$4 sm:$0xff]  }
 0x1dc   :  { %v9726_v59 = vpop.f32.mrb[109].mxu1  ;;  %6706 = vmatpush1.bf16.msra.mxu0 %v11369_v44 }
 0x1dd   :  { %v9727_v17 = vadd.f32 %v9726_v59, %v9725_v13  ;;  %6707 = vmatprep.subr.bf16.mxu0 %v11377_v52  ;;  %v9728_v54 = vpop.f32.mrb[110].mxu1  ;;  %v11855_v13 = vld [vmem:[%s17085_s0 + $0xa4] sm:$0xff] }
 0x1de   :  { %v9729_v24 = vpop.f32.mrb[111].mxu1 }
 0x1df   :  { %v14781_v21 = vadd.f32 %v9727_v17, %v14523_v5  ;;  %6651 = vmatmul.mubr.bf16.gmra.mrb[8].mxu0 %v14652_v29  ;;  %v11387_v5 = vld [vmem:[%s17084_s1 + $0xb10] ss:$12 sps:$4 sm:$0xff]   ;;  %v11395_v29 = vld [vmem:[%s17084_s1 + $0xb2c] ss:$12 sps:$4 sm:$0xff]  }
 0x1e0   :  { %8007 = vmatmul.mubr.bf16.gmra.mrb[216].mxu1 %v14767_v14  ;;  %6708 = vmatpush1.bf16.msra.mxu0 %v11375_v37 }
 0x1e1   :  { %6709 = vmatprep.subr.bf16.mxu0 %v11383_v1  ;;  %8014 = vmatprep.mubr.bf16.mxu1 %v14775_v35  ;;  %v11393_v1 = vld [vmem:[%s17084_s1 + $0xb28] ss:$12 sps:$4 sm:$0xff]  }
 0x1e2   :  { %6660 = vmatprep.mubr.bf16.mxu0 %v14660_v28  ;;  %v11854_v28 = vld [vmem:[%s17085_s0 + $0x38] sm:$0xff] }
 0x1e3   :  { %v9747_v9 = vpop.f32.mrb[112].mxu1  ;;  %v14804_v37 = vcombine.high %v11854_v28, %v11855_v13 }
 0x1e4   :  { %v9748_v46 = vpop.f32.mrb[113].mxu1  ;;  %6710 = vmatpush1.bf16.msra.mxu0 %v11381_v27  ;;  %v11399_v27 = vld [vmem:[%s17084_s1 + $0xb40] ss:$12 sps:$4 sm:$0xff]  }
 0x1e5   :  { %v9749_v44 = vadd.f32 %v9748_v46, %v9747_v9  ;;  %v9750_v52 = vpop.f32.mrb[114].mxu1  ;;  %6711 = vmatprep.subr.bf16.mxu0 %v11389_v10  ;;  %v14825_v9 = vcombine.low %v11854_v28, %v11855_v13  ;;  %v11857_v46 = vld [vmem:[%s17085_s0 + $0x17c] sm:$0xff]  ;;  %v11420_v28 = vld [vmem:[%s17084_s1 + $0xc08] ss:$12 sps:$4 sm:$0xff]  }
 0x1e6   :  { %v9751_v59 = vpop.f32.mrb[115].mxu1 }
 0x1e7   :  { %v14810_v17 = vadd.f32 %v9749_v44, %v14550_v61  ;;  %v9752_v54 = vadd.f32 %v9751_v59, %v9750_v52  ;;  %6661 = vmatmul.mubr.bf16.gmra.mrb[12].mxu0 %v14694_v19  ;;  %v11405_v19 = vld [vmem:[%s17084_s1 + $0xb5c] ss:$12 sps:$4 sm:$0xff]   ;;  %v11403_v52 = vld [vmem:[%s17084_s1 + $0xb58] ss:$12 sps:$4 sm:$0xff]  }
 0x1e8   :  { %8015 = vmatmul.mubr.bf16.gmra.mrb[220].mxu1 %v14793_v50  ;;  %6712 = vmatpush1.bf16.msra.mxu0 %v11387_v5 }
 0x1e9   :  { %v14818_v24 = vadd.f32 %v9752_v54, %v14557_v22  ;;  %6713 = vmatprep.subr.bf16.mxu0 %v11395_v29  ;;  %8054 = vmatprep.mubr.bf16.mxu1 %v14804_v37 }
 0x1ea   :  { %6670 = vmatprep.mubr.bf16.mxu0 %v14702_v7  ;;  %v11856_v7 = vld [vmem:[%s17085_s0 + $0x110] sm:$0xff] }
 0x1eb   :  { %v9753_v61 = vpop.f32.mrb[116].mxu1  ;;  %v14836_v29 = vcombine.high %v11856_v7, %v11857_v46 }
 0x1ec   :  { %v9754_v10 = vpop.f32.mrb[117].mxu1  ;;  %6714 = vmatpush1.bf16.msra.mxu0 %v11393_v1  ;;  %v11429_v1 = vld [vmem:[%s17084_s1 + $0xce0] ss:$12 sps:$4 sm:$0xff]  }
 0x1ed   :  { %v9755_v22 = vadd.f32 %v9754_v10, %v9753_v61  ;;  %v9756_v5 = vpop.f32.mrb[118].mxu1  ;;  %6715 = vmatprep.subr.bf16.mxu0 %v11401_v34  ;;  %v11439_v61 = vld [vmem:[%s17084_s1 + $0xcf8] ss:$12 sps:$4 sm:$0xff]   ;;  %v14869_v10 = vcombine.low %v11856_v7, %v11857_v46  ;;  %v11411_v7 = vld [vmem:[%s17084_s1 + $0xb88] ss:$12 sps:$4 sm:$0xff]  }
 0x1ee   :  { %v9757_v44 = vpop.f32.mrb[119].mxu1  ;;  %v11440_v46 = vld [vmem:[%s17084_s1 + $0xc38] ss:$12 sps:$4 sm:$0xff]  }
 0x1ef   :  { %v14845_v13 = vadd.f32 %v9755_v22, %v14583_v32  ;;  %v9758_v59 = vadd.f32 %v9757_v44, %v9756_v5  ;;  %6671 = vmatmul.mubr.bf16.gmra.mrb[16].mxu0 %v14738_v2  ;;  %v11409_v32 = vld [vmem:[%s17084_s1 + $0xb74] ss:$12 sps:$4 sm:$0xff]   ;;  %v11858_v5 = vld [vmem:[%s17085_s0 + $0x1e8] sm:$0xff] }
 0x1f0   :  { %8055 = vmatmul.mubr.bf16.vlgmr.msra.gmra.mrb[224].mxu1 %v14825_v9  ;;  %6716 = vmatpush1.bf16.msra.mxu0 %v11399_v27  ;;  %v11430_v2 = vld [vmem:[%s17084_s1 + $0xc20] ss:$12 sps:$4 sm:$0xff]   ;;  %v11859_v44 = vld [vmem:[%s17085_s0 + $0x254] sm:$0xff] }
 0x1f1   :  { %v14853_v54 = vadd.f32 %v9758_v59, %v14593_v40  ;;  %6717 = vmatprep.subr.bf16.mxu0 %v11405_v19  ;;  %8062 = vmatprep.mubr.bf16.mxu1 %v14836_v29  ;;  %v11407_v40 = vld [vmem:[%s17084_s1 + $0xb70] ss:$12 sps:$4 sm:$0xff]  }
 0x1f2   :  { %6680 = vmatprep.mubr.bf16.mxu0 %v14746_v57  ;;  %10022 = vmatpush3.bf16.msra.mxu1 %v11420_v28  ;;  %v11413_v57 = vld [vmem:[%s17084_s1 + $0xb8c] ss:$12 sps:$4 sm:$0xff]   ;;  %v14880_v28 = vcombine.high %v11858_v5, %v11859_v44 }
 0x1f3   :  { %v9759_v34 = vpop.f32.mrb[120].mxu1  ;;  %10023 = vmatprep.subr.bf16.mxu1 %v11429_v1 }
 0x1f4   :  { %v9760_v27 = vpop.f32.mrb[121].mxu1  ;;  %6718 = vmatpush1.bf16.msra.mxu0 %v11403_v52 }
 0x1f5   :  { %v9761_v19 = vadd.f32 %v9760_v27, %v9759_v34  ;;  %v9762_v22 = vpop.f32.mrb[122].mxu1  ;;  %6719 = vmatprep.subr.bf16.mxu0 %v11409_v32  ;;  %v11444_v32 = vld [vmem:[%s17084_s1 + $0xd10] ss:$12 sps:$4 sm:$0xff]   ;;  %v14913_v27 = vcombine.low %v11858_v5, %v11859_v44  ;;  %v11452_v5 = vld [vmem:[%s17084_s1 + $0xc68] ss:$12 sps:$4 sm:$0xff]  }
 0x1f6   :  { %v9763_v52 = vpop.f32.mrb[123].mxu1  ;;  %10024 = vmatpush3.bf16.msra.mxu1 %v11430_v2  ;;  %v11445_v34 = vld [vmem:[%s17084_s1 + $0xc50] ss:$12 sps:$4 sm:$0xff]  }
 0x1f7   :  { %v14889_v59 = vadd.f32 %v9761_v19, %v14622_v25  ;;  %v9764_v1 = vadd.f32 %v9763_v52, %v9762_v22  ;;  %6681 = vmatmul.mubr.bf16.gmra.mrb[20].mxu0 %v14767_v14  ;;  %10025 = vmatprep.subr.bf16.mxu1 %v11439_v61  ;;  %v11417_v25 = vld [vmem:[%s17084_s1 + $0xba4] ss:$12 sps:$4 sm:$0xff]   ;;  %v11415_v14 = vld [vmem:[%s17084_s1 + $0xba0] ss:$12 sps:$4 sm:$0xff]  }
 0x1f8   :  { %8063 = vmatmul.mubr.bf16.gmra.mrb[228].mxu1 %v14869_v10  ;;  %6720 = vmatpush1.bf16.msra.mxu0 %v11407_v40  ;;  %v11451_v40 = vld [vmem:[%s17084_s1 + $0xd28] ss:$12 sps:$4 sm:$0xff]   ;;  %v11860_v22 = vld [vmem:[%s17085_s0 + $0x2c0] sm:$0xff]  ;;  %v11861_v52 = vld [vmem:[%s17085_s0 + $0x32c] sm:$0xff] }
 0x1f9   :  { %v14897_v2 = vadd.f32 %v9764_v1, %v14636_v63  ;;  %6721 = vmatprep.subr.bf16.mxu0 %v11413_v57  ;;  %8070 = vmatprep.mubr.bf16.mxu1 %v14880_v28  ;;  %v11423_v57 = vld [vmem:[%s17084_s1 + $0xbbc] ss:$12 sps:$4 sm:$0xff]  }
 0x1fa   :  { %6690 = vmatprep.mubr.bf16.mxu0 %v14775_v35  ;;  %10026 = vmatpush3.bf16.msra.mxu1 %v11440_v46  ;;  %v14924_v46 = vcombine.high %v11860_v22, %v11861_v52 }
 0x1fb   :  { %v9765_v63 = vpop.f32.mrb[124].mxu1  ;;  %10027 = vmatprep.subr.bf16.mxu1 %v11444_v32  ;;  %v11421_v32 = vld [vmem:[%s17084_s1 + $0xbb8] ss:$12 sps:$4 sm:$0xff]  }
 0x1fc   :  { %v9766_v61 = vpop.f32.mrb[125].mxu1  ;;  %6722 = vmatpush1.bf16.msra.mxu0 %v11411_v7 }
 0x1fd   :  { %v9767_v35 = vadd.f32 %v9766_v61, %v9765_v63  ;;  %v9768_v19 = vpop.f32.mrb[126].mxu1  ;;  %6723 = vmatprep.subr.bf16.mxu0 %v11417_v25  ;;  %v11456_v25 = vld [vmem:[%s17084_s1 + $0xd40] ss:$12 sps:$4 sm:$0xff]   ;;  %v14957_v61 = vcombine.low %v11860_v22, %v11861_v52  ;;  %v11464_v22 = vld [vmem:[%s17084_s1 + $0xc98] ss:$12 sps:$4 sm:$0xff]  }
 0x1fe   :  { %v9769_v7 = vpop.f32.mrb[127].mxu1  ;;  %10028 = vmatpush3.bf16.msra.mxu1 %v11445_v34 }
 0x1ff   :  { %v14930_v44 = vadd.f32 %v9767_v35, %v14669_v62  ;;  %v9770_v1 = vadd.f32 %v9769_v7, %v9768_v19  ;;  %6691 = vmatmul.mubr.bf16.gmra.mrb[24].mxu0 %v14793_v50  ;;  %10029 = vmatprep.subr.bf16.mxu1 %v11451_v40  ;;  %v11427_v62 = vld [vmem:[%s17084_s1 + $0xbd4] ss:$12 sps:$4 sm:$0xff]   ;;  %v11425_v40 = vld [vmem:[%s17084_s1 + $0xbd0] ss:$12 sps:$4 sm:$0xff]   ;;  %v11433_v35 = vld [vmem:[%s17084_s1 + $0xbec] ss:$12 sps:$4 sm:$0xff]  }
 0x200   :  { %8071 = vmatmul.mubr.bf16.gmra.mrb[232].mxu1 %v14913_v27  ;;  %6724 = vmatpush1.bf16.msra.mxu0 %v11415_v14  ;;  %v11457_v50 = vld [vmem:[%s17084_s1 + $0xc80] ss:$12 sps:$4 sm:$0xff]   ;;  %v11862_v19 = vld [vmem:[%s17085_s0 + $0x398] sm:$0xff]  ;;  %v11863_v7 = vld [vmem:[%s17085_s0 + $0x404] sm:$0xff] }
 0x201   :  { %v14941_v34 = vadd.f32 %v9770_v1, %v14679_v4  ;;  %6725 = vmatprep.subr.bf16.mxu0 %v11423_v57  ;;  %8078 = vmatprep.mubr.bf16.mxu1 %v14924_v46  ;;  %v11463_v4 = vld [vmem:[%s17084_s1 + $0xd58] ss:$12 sps:$4 sm:$0xff]  }
 0x202   :  { %6731 = vmatprep.mubr.bf16.mxu0 %v14804_v37  ;;  %10030 = vmatpush3.bf16.msra.mxu1 %v11452_v5  ;;  %v14968_v5 = vcombine.high %v11862_v19, %v11863_v7 }
 0x203   :  { %v9771_v63 = vpop.f32.mrb[128].mxu1  ;;  %10031 = vmatprep.subr.bf16.mxu1 %v11456_v25  ;;  %v11468_v25 = vld [vmem:[%s17084_s1 + $0xd70] ss:$12 sps:$4 sm:$0xff]  }
 0x204   :  { %v9772_v14 = vpop.f32.mrb[129].mxu1  ;;  %6726 = vmatpush1.bf16.msra.mxu0 %v11421_v32 }
 0x205   :  { %v9773_v37 = vadd.f32 %v9772_v14, %v9771_v63  ;;  %v9774_v57 = vpop.f32.mrb[130].mxu1  ;;  %6727 = vmatprep.subr.bf16.mxu0 %v11427_v62  ;;  %v11431_v62 = vld [vmem:[%s17084_s1 + $0xbe8] ss:$12 sps:$4 sm:$0xff]   ;;  %v11469_v63 = vld [vmem:[%s17084_s1 + $0xcb0] ss:$12 sps:$4 sm:$0xff]  }
 0x206   :  { %v9775_v1 = vpop.f32.mrb[131].mxu1  ;;  %10032 = vmatpush3.bf16.msra.mxu1 %v11457_v50  ;;  %v11489_v14 = vld [vmem:[%s17084_s1 + $0xe48] ss:$12 sps:$4 sm:$0xff]  }
 0x207   :  { %v14974_v52 = vadd.f32 %v9773_v37, %v14711_v49  ;;  %v9776_v32 = vadd.f32 %v9775_v1, %v9774_v57  ;;  %10033 = vmatprep.subr.bf16.mxu1 %v11463_v4  ;;  %v11437_v49 = vld [vmem:[%s17084_s1 + $0xc04] ss:$12 sps:$4 sm:$0xff]   ;;  %v14999_v37 = vcombine.low %v11862_v19, %v11863_v7  ;;  %v11443_v1 = vld [vmem:[%s17084_s1 + $0xc1c] ss:$12 sps:$4 sm:$0xff]  }
 0x208   :  { %8079 = vmatmul.mubr.bf16.gmra.mrb[236].mxu1 %v14957_v61  ;;  %6728 = vmatpush1.bf16.msra.mxu0 %v11425_v40  ;;  %v11435_v40 = vld [vmem:[%s17084_s1 + $0xc00] ss:$12 sps:$4 sm:$0xff]  }
 0x209   :  { %v14984_v50 = vadd.f32 %v9776_v32, %v14722_v36  ;;  %6729 = vmatprep.subr.bf16.mxu0 %v11433_v35  ;;  %8086 = vmatprep.mubr.bf16.mxu1 %v14968_v5  ;;  %v11865_v32 = vld [vmem:[%s17085_s0 + $0x4dc] sm:$0xff] }
 0x20a   :  { %10034 = vmatpush3.bf16.msra.mxu1 %v11464_v22  ;;  %v11864_v22 = vld [vmem:[%s17085_s0 + $0x470] sm:$0xff] }
 0x20b   :  { %v9777_v4 = vpop.f32.mrb[132].mxu1  ;;  %10035 = vmatprep.subr.bf16.mxu1 %v11468_v25  ;;  %v15010_v25 = vcombine.high %v11864_v22, %v11865_v32 }
 0x20c   :  { %v9778_v36 = vpop.f32.mrb[133].mxu1  ;;  %6730 = vmatpush1.bf16.msra.mxu0 %v11431_v62 }
 0x20d   :  { %v9779_v57 = vadd.f32 %v9778_v36, %v9777_v4  ;;  %v9780_v35 = vpop.f32.mrb[134].mxu1  ;;  %6800 = vmatprep.subr.bf16.mxu0 %v11437_v49  ;;  %v11441_v49 = vld [vmem:[%s17084_s1 + $0xc18] ss:$12 sps:$4 sm:$0xff]   ;;  %v15031_v36 = vcombine.low %v11864_v22, %v11865_v32  ;;  %v11453_v22 = vld [vmem:[%s17084_s1 + $0xc48] ss:$12 sps:$4 sm:$0xff]  }
 0x20e   :  { %v9781_v62 = vpop.f32.mrb[135].mxu1  ;;  %10036 = vmatpush3.bf16.msra.mxu1 %v11469_v63  ;;  %v11461_v32 = vld [vmem:[%s17084_s1 + $0xc64] ss:$12 sps:$4 sm:$0xff]  }
 0x20f   :  { %v15013_v19 = vadd.f32 %v9779_v57, %v14749_v0  ;;  %v9782_v7 = vadd.f32 %v9781_v62, %v9780_v35  ;;  %6732 = vmatmul.mubr.bf16.vlgmr.msra.gmra.mrb[0].mxu0 %v14825_v9  ;;  %10079 = vmatprep.subr.bf16.mxu1 %v11489_v14  ;;  %v11449_v0 = vld [vmem:[%s17084_s1 + $0xc34] ss:$12 sps:$4 sm:$0xff]   ;;  %v11447_v14 = vld [vmem:[%s17084_s1 + $0xc30] ss:$12 sps:$4 sm:$0xff]   ;;  %v11455_v57 = vld [vmem:[%s17084_s1 + $0xc4c] ss:$12 sps:$4 sm:$0xff]  }
 0x210   :  { %8087 = vmatmul.mubr.bf16.gmra.mrb[240].mxu1 %v14999_v37  ;;  %6801 = vmatpush1.bf16.msra.mxu0 %v11435_v40 }
 0x211   :  { %v15021_v4 = vadd.f32 %v9782_v7, %v14760_v30  ;;  %6802 = vmatprep.subr.bf16.mxu0 %v11443_v1  ;;  %8094 = vmatprep.mubr.bf16.mxu1 %v15010_v25 }
 0x212   :  { %6741 = vmatprep.mubr.bf16.mxu0 %v14836_v29  ;;  %v11866_v29 = vld [vmem:[%s17085_s0 + $0x548] sm:$0xff] }
 0x213   :  { %v9783_v9 = vpop.f32.mrb[136].mxu1  ;;  %v15039_v35 = vcombine.high %v11866_v29, %v11866_v29 }
 0x214   :  { %v9784_v63 = vpop.f32.mrb[137].mxu1  ;;  %6803 = vmatpush1.bf16.msra.mxu0 %v11441_v49  ;;  %v15057_v49 = vcombine.low %v11866_v29, %v11866_v29 }
 0x215   :  { %v9785_v30 = vadd.f32 %v9784_v63, %v9783_v9  ;;  %6804 = vmatprep.subr.bf16.mxu0 %v11449_v0  ;;  %v9786_v40 = vpop.f32.mrb[138].mxu1  ;;  %v11467_v63 = vld [vmem:[%s17084_s1 + $0xc7c] ss:$12 sps:$4 sm:$0xff]  }
 0x216   :  { %v9787_v1 = vpop.f32.mrb[139].mxu1 }
 0x217   :  { %6742 = vmatmul.mubr.bf16.gmra.mrb[4].mxu0 %v14869_v10  ;;  %v15043_v62 = vadd.f32 %v9785_v30, %v14781_v21  ;;  %v11459_v21 = vld [vmem:[%s17084_s1 + $0xc60] ss:$12 sps:$4 sm:$0xff]   ;;  %v11465_v1 = vld [vmem:[%s17084_s1 + $0xc78] ss:$12 sps:$4 sm:$0xff]  }
 0x218   :  { %8095 = vmatmul.mubr.bf16.gmra.mrb[244].mxu1 %v15031_v36  ;;  %6805 = vmatpush1.bf16.msra.mxu0 %v11447_v14  ;;  %v11868_v14 = vld [vmem:[%s17085_s0 + $0xac] sm:$0xff] }
 0x219   :  { %6806 = vmatprep.subr.bf16.mxu0 %v11455_v57  ;;  %8102 = vmatprep.mubr.bf16.mxu1 %v15039_v35 }
 0x21a   :  { %6751 = vmatprep.mubr.bf16.mxu0 %v14880_v28  ;;  %v11867_v28 = vld [vmem:[%s17085_s0 + $0x40] sm:$0xff] }
 0x21b   :  { %v9805_v10 = vpop.f32.mrb[140].mxu1  ;;  %v15068_v30 = vcombine.high %v11867_v28, %v11868_v14 }
 0x21c   :  { %v9806_v7 = vpop.f32.mrb[141].mxu1  ;;  %6807 = vmatpush1.bf16.msra.mxu0 %v11453_v22  ;;  %v11473_v22 = vld [vmem:[%s17084_s1 + $0xc94] ss:$12 sps:$4 sm:$0xff]  }
 0x21d   :  { %v9807_v0 = vadd.f32 %v9806_v7, %v9805_v10  ;;  %v9808_v9 = vpop.f32.mrb[142].mxu1  ;;  %6808 = vmatprep.subr.bf16.mxu0 %v11461_v32  ;;  %v11471_v10 = vld [vmem:[%s17084_s1 + $0xc90] ss:$12 sps:$4 sm:$0xff]   ;;  %v15089_v7 = vcombine.low %v11867_v28, %v11868_v14  ;;  %v11490_v28 = vld [vmem:[%s17084_s1 + $0xd88] ss:$12 sps:$4 sm:$0xff]  }
 0x21e   :  { %v9809_v40 = vpop.f32.mrb[143].mxu1 }
 0x21f   :  { %v9810_v57 = vadd.f32 %v9809_v40, %v9808_v9  ;;  %6752 = vmatmul.mubr.bf16.gmra.mrb[8].mxu0 %v14913_v27  ;;  %v15072_v29 = vadd.f32 %v9807_v0, %v14810_v17  ;;  %v11477_v9 = vld [vmem:[%s17084_s1 + $0xcac] ss:$12 sps:$4 sm:$0xff]  }
 0x220   :  { %8103 = vmatmul.mubr.bf16.gmra.mrb[248].mxu1 %v15057_v49  ;;  %6809 = vmatpush1.bf16.msra.mxu0 %v11459_v21 }
 0x221   :  { %6810 = vmatprep.subr.bf16.mxu0 %v11467_v63  ;;  %8142 = vmatprep.mubr.bf16.mxu1 %v15068_v30  ;;  %v15083_v32 = vadd.f32 %v9810_v57, %v14818_v24  ;;  %v11869_v24 = vld [vmem:[%s17085_s0 + $0x118] sm:$0xff]  ;;  %v11498_v57 = vld [vmem:[%s17084_s1 + $0xe60] ss:$12 sps:$4 sm:$0xff]  }
 0x222   :  { %6761 = vmatprep.mubr.bf16.mxu0 %v14924_v46  ;;  %v11870_v46 = vld [vmem:[%s17085_s0 + $0x184] sm:$0xff] }
 0x223   :  { %v9811_v17 = vpop.f32.mrb[144].mxu1  ;;  %v15100_v63 = vcombine.high %v11869_v24, %v11870_v46 }
 0x224   :  { %v9812_v27 = vpop.f32.mrb[145].mxu1  ;;  %6811 = vmatpush1.bf16.msra.mxu0 %v11465_v1 }
 0x225   :  { %v9813_v21 = vadd.f32 %v9812_v27, %v9811_v17  ;;  %v9814_v0 = vpop.f32.mrb[146].mxu1  ;;  %6812 = vmatprep.subr.bf16.mxu0 %v11473_v22  ;;  %v11475_v22 = vld [vmem:[%s17084_s1 + $0xca8] ss:$12 sps:$4 sm:$0xff]  }
 0x226   :  { %v9815_v40 = vpop.f32.mrb[147].mxu1 }
 0x227   :  { %v9816_v14 = vadd.f32 %v9815_v40, %v9814_v0  ;;  %6762 = vmatmul.mubr.bf16.gmra.mrb[12].mxu0 %v14957_v61  ;;  %v15110_v1 = vadd.f32 %v9813_v21, %v14845_v13  ;;  %v11481_v61 = vld [vmem:[%s17084_s1 + $0xcc4] ss:$12 sps:$4 sm:$0xff]   ;;  %v11499_v13 = vld [vmem:[%s17084_s1 + $0xda0] ss:$12 sps:$4 sm:$0xff]   ;;  %v15130_v21 = vcombine.low %v11869_v24, %v11870_v46  ;;  %v11484_v40 = vld [vmem:[%s17084_s1 + $0xcdc] ss:$12 sps:$4 sm:$0xff]  }
 0x228   :  { %8143 = vmatmul.mubr.bf16.vlgmr.msra.gmra.mrb[252].mxu1 %v15089_v7  ;;  %6813 = vmatpush1.bf16.msra.mxu0 %v11471_v10  ;;  %v11507_v10 = vld [vmem:[%s17084_s1 + $0xe78] ss:$12 sps:$4 sm:$0xff]   ;;  %v11872_v24 = vld [vmem:[%s17085_s0 + $0x25c] sm:$0xff] }
 0x229   :  { %6814 = vmatprep.subr.bf16.mxu0 %v11477_v9  ;;  %8150 = vmatprep.mubr.bf16.mxu1 %v15100_v63  ;;  %v15121_v17 = vadd.f32 %v9816_v14, %v14853_v54  ;;  %v11479_v54 = vld [vmem:[%s17084_s1 + $0xcc0] ss:$12 sps:$4 sm:$0xff]  }
 0x22a   :  { %6771 = vmatprep.mubr.bf16.mxu0 %v14968_v5  ;;  %10080 = vmatpush3.bf16.msra.mxu1 %v11490_v28  ;;  %v11871_v28 = vld [vmem:[%s17085_s0 + $0x1f0] sm:$0xff] }
 0x22b   :  { %v9817_v27 = vpop.f32.mrb[148].mxu1  ;;  %10081 = vmatprep.subr.bf16.mxu1 %v11498_v57  ;;  %v15144_v46 = vcombine.high %v11871_v28, %v11872_v24  ;;  %v11508_v57 = vld [vmem:[%s17084_s1 + $0xdb8] ss:$12 sps:$4 sm:$0xff]  }
 0x22c   :  { %v9818_v0 = vpop.f32.mrb[149].mxu1  ;;  %6815 = vmatpush1.bf16.msra.mxu0 %v11475_v22 }
 0x22d   :  { %v9819_v5 = vadd.f32 %v9818_v0, %v9817_v27  ;;  %v9820_v9 = vpop.f32.mrb[150].mxu1  ;;  %6816 = vmatprep.subr.bf16.mxu0 %v11481_v61  ;;  %v11512_v61 = vld [vmem:[%s17084_s1 + $0xe90] ss:$12 sps:$4 sm:$0xff]  }
 0x22e   :  { %v9821_v14 = vpop.f32.mrb[151].mxu1  ;;  %10082 = vmatpush3.bf16.msra.mxu1 %v11499_v13  ;;  %v11482_v13 = vld [vmem:[%s17084_s1 + $0xcd8] ss:$12 sps:$4 sm:$0xff]  }
 0x22f   :  { %v9822_v22 = vadd.f32 %v9821_v14, %v9820_v9  ;;  %6772 = vmatmul.mubr.bf16.gmra.mrb[16].mxu0 %v14999_v37  ;;  %10083 = vmatprep.subr.bf16.mxu1 %v11507_v10  ;;  %v15154_v27 = vadd.f32 %v9819_v5, %v14889_v59  ;;  %v11488_v37 = vld [vmem:[%s17084_s1 + $0xcf4] ss:$12 sps:$4 sm:$0xff]   ;;  %v11513_v59 = vld [vmem:[%s17084_s1 + $0xdd0] ss:$12 sps:$4 sm:$0xff]   ;;  %v15174_v5 = vcombine.low %v11871_v28, %v11872_v24  ;;  %v11493_v14 = vld [vmem:[%s17084_s1 + $0xd0c] ss:$12 sps:$4 sm:$0xff]  }
 0x230   :  { %8151 = vmatmul.mubr.bf16.gmra.mrb[0].mxu1 %v15130_v21  ;;  %6817 = vmatpush1.bf16.msra.mxu0 %v11479_v54  ;;  %v11518_v54 = vld [vmem:[%s17084_s1 + $0xea8] ss:$12 sps:$4 sm:$0xff]  }
 0x231   :  { %6818 = vmatprep.subr.bf16.mxu0 %v11484_v40  ;;  %8158 = vmatprep.mubr.bf16.mxu1 %v15144_v46  ;;  %v15165_v10 = vadd.f32 %v9822_v22, %v14897_v2  ;;  %v11486_v2 = vld [vmem:[%s17084_s1 + $0xcf0] ss:$12 sps:$4 sm:$0xff]   ;;  %v11874_v28 = vld [vmem:[%s17085_s0 + $0x334] sm:$0xff] }
 0x232   :  { %6781 = vmatprep.mubr.bf16.mxu0 %v15010_v25  ;;  %10084 = vmatpush3.bf16.msra.mxu1 %v11508_v57  ;;  %v11873_v57 = vld [vmem:[%s17085_s0 + $0x2c8] sm:$0xff] }
 0x233   :  { %v9823_v0 = vpop.f32.mrb[152].mxu1  ;;  %10085 = vmatprep.subr.bf16.mxu1 %v11512_v61  ;;  %v15188_v24 = vcombine.high %v11873_v57, %v11874_v28  ;;  %v11519_v61 = vld [vmem:[%s17084_s1 + $0xde8] ss:$12 sps:$4 sm:$0xff]  }
 0x234   :  { %v9824_v9 = vpop.f32.mrb[153].mxu1  ;;  %6819 = vmatpush1.bf16.msra.mxu0 %v11482_v13 }
 0x235   :  { %v9825_v25 = vadd.f32 %v9824_v9, %v9823_v0  ;;  %v9826_v40 = vpop.f32.mrb[154].mxu1  ;;  %6820 = vmatprep.subr.bf16.mxu0 %v11488_v37  ;;  %v11523_v37 = vld [vmem:[%s17084_s1 + $0xec0] ss:$12 sps:$4 sm:$0xff]  }
 0x236   :  { %v9827_v22 = vpop.f32.mrb[155].mxu1  ;;  %10086 = vmatpush3.bf16.msra.mxu1 %v11513_v59  ;;  %v11491_v59 = vld [vmem:[%s17084_s1 + $0xd08] ss:$12 sps:$4 sm:$0xff]  }
 0x237   :  { %v9828_v13 = vadd.f32 %v9827_v22, %v9826_v40  ;;  %6782 = vmatmul.mubr.bf16.gmra.mrb[20].mxu0 %v15031_v36  ;;  %10087 = vmatprep.subr.bf16.mxu1 %v11518_v54  ;;  %v15198_v0 = vadd.f32 %v9825_v25, %v14930_v44  ;;  %v11497_v36 = vld [vmem:[%s17084_s1 + $0xd24] ss:$12 sps:$4 sm:$0xff]   ;;  %v11524_v44 = vld [vmem:[%s17084_s1 + $0xe00] ss:$12 sps:$4 sm:$0xff]   ;;  %v15218_v25 = vcombine.low %v11873_v57, %v11874_v28  ;;  %v11502_v22 = vld [vmem:[%s17084_s1 + $0xd3c] ss:$12 sps:$4 sm:$0xff]  }
 0x238   :  { %8159 = vmatmul.mubr.bf16.gmra.mrb[4].mxu1 %v15174_v5  ;;  %6821 = vmatpush1.bf16.msra.mxu0 %v11486_v2  ;;  %v11529_v2 = vld [vmem:[%s17084_s1 + $0xed8] ss:$12 sps:$4 sm:$0xff]   ;;  %v11876_v57 = vld [vmem:[%s17085_s0 + $0x40c] sm:$0xff] }
 0x239   :  { %6822 = vmatprep.subr.bf16.mxu0 %v11493_v14  ;;  %8166 = vmatprep.mubr.bf16.mxu1 %v15188_v24  ;;  %v15209_v54 = vadd.f32 %v9828_v13, %v14941_v34  ;;  %v11495_v34 = vld [vmem:[%s17084_s1 + $0xd20] ss:$12 sps:$4 sm:$0xff]  }
 0x23a   :  { %6791 = vmatprep.mubr.bf16.mxu0 %v15039_v35  ;;  %10088 = vmatpush3.bf16.msra.mxu1 %v11519_v61  ;;  %v11875_v61 = vld [vmem:[%s17085_s0 + $0x3a0] sm:$0xff] }
 0x23b   :  { %v9829_v9 = vpop.f32.mrb[156].mxu1  ;;  %10089 = vmatprep.subr.bf16.mxu1 %v11523_v37  ;;  %v15232_v28 = vcombine.high %v11875_v61, %v11876_v57  ;;  %v11530_v37 = vld [vmem:[%s17084_s1 + $0xe18] ss:$12 sps:$4 sm:$0xff]  }
 0x23c   :  { %v9830_v40 = vpop.f32.mrb[157].mxu1  ;;  %6823 = vmatpush1.bf16.msra.mxu0 %v11491_v59 }
 0x23d   :  { %v9831_v35 = vadd.f32 %v9830_v40, %v9829_v9  ;;  %v9832_v14 = vpop.f32.mrb[158].mxu1  ;;  %6824 = vmatprep.subr.bf16.mxu0 %v11497_v36  ;;  %v11534_v36 = vld [vmem:[%s17084_s1 + $0xef0] ss:$12 sps:$4 sm:$0xff]  }
 0x23e   :  { %v9833_v13 = vpop.f32.mrb[159].mxu1  ;;  %10090 = vmatpush3.bf16.msra.mxu1 %v11524_v44  ;;  %v11500_v44 = vld [vmem:[%s17084_s1 + $0xd38] ss:$12 sps:$4 sm:$0xff]  }
 0x23f   :  { %v9834_v59 = vadd.f32 %v9833_v13, %v9832_v14  ;;  %6792 = vmatmul.mubr.bf16.gmra.mrb[24].mxu0 %v15057_v49  ;;  %10091 = vmatprep.subr.bf16.mxu1 %v11529_v2  ;;  %v15242_v9 = vadd.f32 %v9831_v35, %v14974_v52  ;;  %v11506_v49 = vld [vmem:[%s17084_s1 + $0xd54] ss:$12 sps:$4 sm:$0xff]   ;;  %v11535_v52 = vld [vmem:[%s17084_s1 + $0xe30] ss:$12 sps:$4 sm:$0xff]   ;;  %v15262_v35 = vcombine.low %v11875_v61, %v11876_v57  ;;  %v11511_v13 = vld [vmem:[%s17084_s1 + $0xd6c] ss:$12 sps:$4 sm:$0xff]  }
 0x240   :  { %8167 = vmatmul.mubr.bf16.gmra.mrb[8].mxu1 %v15218_v25  ;;  %6825 = vmatpush1.bf16.msra.mxu0 %v11495_v34  ;;  %v11557_v34 = vld [vmem:[%s17084_s1 + $0xfc8] ss:$12 sps:$4 sm:$0xff]  }
 0x241   :  { %6826 = vmatprep.subr.bf16.mxu0 %v11502_v22  ;;  %8174 = vmatprep.mubr.bf16.mxu1 %v15232_v28  ;;  %v15253_v2 = vadd.f32 %v9834_v59, %v14984_v50  ;;  %v11504_v50 = vld [vmem:[%s17084_s1 + $0xd50] ss:$12 sps:$4 sm:$0xff]   ;;  %v11878_v61 = vld [vmem:[%s17085_s0 + $0x4e4] sm:$0xff] }
 0x242   :  { %6832 = vmatprep.mubr.bf16.mxu0 %v15068_v30  ;;  %10092 = vmatpush3.bf16.msra.mxu1 %v11530_v37  ;;  %v11877_v37 = vld [vmem:[%s17085_s0 + $0x478] sm:$0xff] }
 0x243   :  { %v9835_v40 = vpop.f32.mrb[160].mxu1  ;;  %10093 = vmatprep.subr.bf16.mxu1 %v11534_v36  ;;  %v15276_v57 = vcombine.high %v11877_v37, %v11878_v61 }
 0x244   :  { %v9836_v14 = vpop.f32.mrb[161].mxu1  ;;  %6827 = vmatpush1.bf16.msra.mxu0 %v11500_v44 }
 0x245   :  { %v9837_v30 = vadd.f32 %v9836_v14, %v9835_v40  ;;  %v9838_v22 = vpop.f32.mrb[162].mxu1  ;;  %6828 = vmatprep.subr.bf16.mxu0 %v11506_v49  ;;  %v11509_v49 = vld [vmem:[%s17084_s1 + $0xd68] ss:$12 sps:$4 sm:$0xff]   ;;  %v11517_v40 = vld [vmem:[%s17084_s1 + $0xd84] ss:$12 sps:$4 sm:$0xff]  }
 0x246   :  { %v9839_v59 = vpop.f32.mrb[163].mxu1  ;;  %10094 = vmatpush3.bf16.msra.mxu1 %v11535_v52 }
 0x247   :  { %v9840_v36 = vadd.f32 %v9839_v59, %v9838_v22  ;;  %10137 = vmatprep.subr.bf16.mxu1 %v11557_v34  ;;  %v15279_v44 = vadd.f32 %v9837_v30, %v15013_v19  ;;  %v15292_v19 = vcombine.low %v11877_v37, %v11878_v61 }
 0x248   :  { %8175 = vmatmul.mubr.bf16.gmra.mrb[12].mxu1 %v15262_v35  ;;  %6829 = vmatpush1.bf16.msra.mxu0 %v11504_v50  ;;  %v11515_v50 = vld [vmem:[%s17084_s1 + $0xd80] ss:$12 sps:$4 sm:$0xff]  }
 0x249   :  { %6830 = vmatprep.subr.bf16.mxu0 %v11511_v13  ;;  %8182 = vmatprep.mubr.bf16.mxu1 %v15276_v57  ;;  %v15290_v52 = vadd.f32 %v9840_v36, %v15021_v4  ;;  %v11522_v13 = vld [vmem:[%s17084_s1 + $0xd9c] ss:$12 sps:$4 sm:$0xff]   ;;  %v11879_v4 = vld [vmem:[%s17085_s0 + $0x550] sm:$0xff]  ;;  %v11520_v36 = vld [vmem:[%s17084_s1 + $0xd98] ss:$12 sps:$4 sm:$0xff]  }
 0x24a   :  { %v15303_v59 = vcombine.high %v11879_v4, %v11879_v4 }
 0x24b   :  { %v9841_v34 = vpop.f32.mrb[164].mxu1 }
 0x24c   :  { %v9842_v14 = vpop.f32.mrb[165].mxu1  ;;  %6831 = vmatpush1.bf16.msra.mxu0 %v11509_v49  ;;  %v11528_v49 = vld [vmem:[%s17084_s1 + $0xdb4] ss:$12 sps:$4 sm:$0xff]  }
 0x24d   :  { %v9843_v30 = vadd.f32 %v9842_v14, %v9841_v34  ;;  %6901 = vmatprep.subr.bf16.mxu0 %v11517_v40  ;;  %v9844_v22 = vpop.f32.mrb[166].mxu1  ;;  %v15328_v34 = vcombine.low %v11879_v4, %v11879_v4 }
 0x24e   :  { %v9845_v37 = vpop.f32.mrb[167].mxu1 }
 0x24f   :  { %v15306_v61 = vadd.f32 %v9843_v30, %v15043_v62  ;;  %6833 = vmatmul.mubr.bf16.vlgmr.msra.gmra.mrb[0].mxu0 %v15089_v7  ;;  %v15320_v62 = vld [vmem:[%s17085_s0 + $0x48] sm:$0xff]  ;;  %v15325_v7 = vld [vmem:[%s17085_s0 + $0xb4] sm:$0xff] }
 0x250   :  { %8183 = vmatmul.mubr.bf16.gmra.mrb[16].mxu1 %v15292_v19  ;;  %6902 = vmatpush1.bf16.msra.mxu0 %v11515_v50  ;;  %v11526_v50 = vld [vmem:[%s17084_s1 + $0xdb0] ss:$12 sps:$4 sm:$0xff]   ;;  %v15338_v37 = vcombine.high %v15320_v62, %v15325_v7 }
 0x251   :  { %6903 = vmatprep.subr.bf16.mxu0 %v11522_v13  ;;  %8190 = vmatprep.mubr.bf16.mxu1 %v15303_v59  ;;  %v11533_v13 = vld [vmem:[%s17084_s1 + $0xdcc] ss:$12 sps:$4 sm:$0xff]  }
 0x252   :  { %6842 = vmatprep.mubr.bf16.mxu0 %v15100_v63 }
 0x253   :  { %v9863_v40 = vpop.f32.mrb[168].mxu1 }
 0x254   :  { %v9864_v14 = vpop.f32.mrb[169].mxu1  ;;  %6904 = vmatpush1.bf16.msra.mxu0 %v11520_v36 }
 0x255   :  { %v9865_v30 = vadd.f32 %v9864_v14, %v9863_v40  ;;  %v9866_v22 = vpop.f32.mrb[170].mxu1  ;;  %6905 = vmatprep.subr.bf16.mxu0 %v11528_v49  ;;  %v11531_v49 = vld [vmem:[%s17084_s1 + $0xdc8] ss:$12 sps:$4 sm:$0xff]   ;;  %v15363_v14 = vld [vmem:[%s17085_s0 + $0x18c] sm:$0xff] }
 0x256   :  { %v9867_v63 = vpop.f32.mrb[171].mxu1 }
 0x257   :  { %v15341_v4 = vadd.f32 %v9865_v30, %v15072_v29  ;;  %v9868_v36 = vadd.f32 %v9867_v63, %v9866_v22  ;;  %6843 = vmatmul.mubr.bf16.gmra.mrb[4].mxu0 %v15130_v21  ;;  %v11540_v29 = vld [vmem:[%s17084_s1 + $0xde4] ss:$12 sps:$4 sm:$0xff]   ;;  %v15368_v30 = vcombine.low %v15320_v62, %v15325_v7  ;;  %v11538_v22 = vld [vmem:[%s17084_s1 + $0xde0] ss:$12 sps:$4 sm:$0xff]  }
 0x258   :  { %8191 = vmatmul.mubr.bf16.gmra.mrb[20].mxu1 %v15328_v34  ;;  %6906 = vmatpush1.bf16.msra.mxu0 %v11526_v50  ;;  %v15358_v21 = vld [vmem:[%s17085_s0 + $0x120] sm:$0xff] }
 0x259   :  { %v15349_v40 = vadd.f32 %v9868_v36, %v15083_v32  ;;  %6907 = vmatprep.subr.bf16.mxu0 %v11533_v13  ;;  %8230 = vmatprep.mubr.bf16.mxu1 %v15338_v37  ;;  %v11543_v36 = vld [vmem:[%s17084_s1 + $0xdfc] ss:$12 sps:$4 sm:$0xff]  }
 0x25a   :  { %6852 = vmatprep.mubr.bf16.mxu0 %v15144_v46  ;;  %v15378_v46 = vcombine.high %v15358_v21, %v15363_v14 }
 0x25b   :  { %v9869_v32 = vpop.f32.mrb[172].mxu1 }
 0x25c   :  { %v9870_v50 = vpop.f32.mrb[173].mxu1  ;;  %6908 = vmatpush1.bf16.msra.mxu0 %v11531_v49 }
 0x25d   :  { %v9871_v13 = vadd.f32 %v9870_v50, %v9869_v32  ;;  %v9872_v63 = vpop.f32.mrb[174].mxu1  ;;  %6909 = vmatprep.subr.bf16.mxu0 %v11540_v29  ;;  %v11567_v29 = vld [vmem:[%s17084_s1 + $0xfe0] ss:$12 sps:$4 sm:$0xff]   ;;  %v11541_v32 = vld [vmem:[%s17084_s1 + $0xdf8] ss:$12 sps:$4 sm:$0xff]  }
 0x25e   :  { %v9873_v49 = vpop.f32.mrb[175].mxu1 }
 0x25f   :  { %v15384_v48 = vadd.f32 %v9871_v13, %v15110_v1  ;;  %v9874_v23 = vadd.f32 %v9873_v49, %v9872_v63  ;;  %6853 = vmatmul.mubr.bf16.gmra.mrb[8].mxu0 %v15174_v5  ;;  %v11548_v1 = vld [vmem:[%s17084_s1 + $0xe14] ss:$12 sps:$4 sm:$0xff]   ;;  %v15404_v5 = vld [vmem:[%s17085_s0 + $0x1f8] sm:$0xff] }
 0x260   :  { %8231 = vmatmul.mubr.bf16.vlgmr.msra.gmra.mrb[24].mxu1 %v15368_v30  ;;  %6910 = vmatpush1.bf16.msra.mxu0 %v11538_v22  ;;  %v15409_v22 = vld [vmem:[%s17085_s0 + $0x264] sm:$0xff] }
 0x261   :  { %v15395_v50 = vadd.f32 %v9874_v23, %v15121_v17  ;;  %6911 = vmatprep.subr.bf16.mxu0 %v11543_v36  ;;  %8238 = vmatprep.mubr.bf16.mxu1 %v15378_v46  ;;  %v11568_v23 = vld [vmem:[%s17084_s1 + $0xf20] ss:$12 sps:$4 sm:$0xff]   ;;  %v11577_v13 = vld [vmem:[%s17084_s1 + $0xff8] ss:$12 sps:$4 sm:$0xff]   ;;  %v15420_v36 = vcombine.low %v15358_v21, %v15363_v14  ;;  %v15430_v42 = vcombine.high %v15404_v5, %v15409_v22 }
 0x262   :  { %6862 = vmatprep.mubr.bf16.mxu0 %v15188_v24  ;;  %10138 = vmatpush3.bf16.msra.mxu1 %v11558_v43  ;;  %v11546_v43 = vld [vmem:[%s17084_s1 + $0xe10] ss:$12 sps:$4 sm:$0xff]  }
 0x263   :  { %v9875_v17 = vpop.f32.mrb[176].mxu1  ;;  %10139 = vmatprep.subr.bf16.mxu1 %v11567_v29  ;;  %v11551_v29 = vld [vmem:[%s17084_s1 + $0xe2c] ss:$12 sps:$4 sm:$0xff]  }
 0x264   :  { %v9876_v63 = vpop.f32.mrb[177].mxu1  ;;  %6912 = vmatpush1.bf16.msra.mxu0 %v11541_v32 }
 0x265   :  { %v9877_v24 = vadd.f32 %v9876_v63, %v9875_v17  ;;  %v9878_v49 = vpop.f32.mrb[178].mxu1  ;;  %6913 = vmatprep.subr.bf16.mxu0 %v11548_v1  ;;  %v11582_v1 = vld [vmem:[%s17084_s1 + $0x1010] ss:$12 sps:$4 sm:$0xff]  }
 0x266   :  { %v9879_v32 = vpop.f32.mrb[179].mxu1  ;;  %10140 = vmatpush3.bf16.msra.mxu1 %v11568_v23  ;;  %v11549_v23 = vld [vmem:[%s17084_s1 + $0xe28] ss:$12 sps:$4 sm:$0xff]  }
 0x267   :  { %v15436_v20 = vadd.f32 %v9877_v24, %v15154_v27  ;;  %v9880_v17 = vadd.f32 %v9879_v32, %v9878_v49  ;;  %6863 = vmatmul.mubr.bf16.gmra.mrb[12].mxu0 %v15218_v25  ;;  %10141 = vmatprep.subr.bf16.mxu1 %v11577_v13  ;;  %v11556_v27 = vld [vmem:[%s17084_s1 + $0xe44] ss:$12 sps:$4 sm:$0xff]   ;;  %v15461_v13 = vld [vmem:[%s17085_s0 + $0x33c] sm:$0xff]  ;;  %v11589_v24 = vld [vmem:[%s17084_s1 + $0x1028] ss:$12 sps:$4 sm:$0xff]  }
 0x268   :  { %8239 = vmatmul.mubr.bf16.gmra.mrb[28].mxu1 %v15420_v36  ;;  %6914 = vmatpush1.bf16.msra.mxu0 %v11546_v43  ;;  %v15456_v25 = vld [vmem:[%s17085_s0 + $0x2d0] sm:$0xff] }
 0x269   :  { %v15447_v63 = vadd.f32 %v9880_v17, %v15165_v10  ;;  %6915 = vmatprep.subr.bf16.mxu0 %v11551_v29  ;;  %8246 = vmatprep.mubr.bf16.mxu1 %v15430_v42  ;;  %v11583_v10 = vld [vmem:[%s17084_s1 + $0xf50] ss:$12 sps:$4 sm:$0xff]   ;;  %v15472_v29 = vcombine.low %v15404_v5, %v15409_v22 }
 0x26a   :  { %6872 = vmatprep.mubr.bf16.mxu0 %v15232_v28  ;;  %10142 = vmatpush3.bf16.msra.mxu1 %v11578_v3  ;;  %v11554_v3 = vld [vmem:[%s17084_s1 + $0xe40] ss:$12 sps:$4 sm:$0xff]   ;;  %v11561_v17 = vld [vmem:[%s17084_s1 + $0xe5c] ss:$12 sps:$4 sm:$0xff]  }
 0x26b   :  { %v9881_v43 = vpop.f32.mrb[180].mxu1  ;;  %10143 = vmatprep.subr.bf16.mxu1 %v11582_v1  ;;  %v15482_v1 = vcombine.high %v15456_v25, %v15461_v13 }
 0x26c   :  { %v9882_v49 = vpop.f32.mrb[181].mxu1  ;;  %6916 = vmatpush1.bf16.msra.mxu0 %v11549_v23 }
 0x26d   :  { %v9883_v28 = vadd.f32 %v9882_v49, %v9881_v43  ;;  %v9884_v32 = vpop.f32.mrb[182].mxu1  ;;  %6917 = vmatprep.subr.bf16.mxu0 %v11556_v27  ;;  %v11594_v27 = vld [vmem:[%s17084_s1 + $0x1040] ss:$12 sps:$4 sm:$0xff]  }
 0x26e   :  { %v9885_v23 = vpop.f32.mrb[183].mxu1  ;;  %10144 = vmatpush3.bf16.msra.mxu1 %v11583_v10  ;;  %v11559_v10 = vld [vmem:[%s17084_s1 + $0xe58] ss:$12 sps:$4 sm:$0xff]  }
 0x26f   :  { %v15488_v39 = vadd.f32 %v9883_v28, %v15198_v0  ;;  %v9886_v43 = vadd.f32 %v9885_v23, %v9884_v32  ;;  %6873 = vmatmul.mubr.bf16.gmra.mrb[16].mxu0 %v15262_v35  ;;  %10145 = vmatprep.subr.bf16.mxu1 %v11589_v24  ;;  %v11566_v0 = vld [vmem:[%s17084_s1 + $0xe74] ss:$12 sps:$4 sm:$0xff]   ;;  %v15508_v35 = vld [vmem:[%s17085_s0 + $0x3a8] sm:$0xff]  ;;  %v11601_v28 = vld [vmem:[%s17084_s1 + $0x1058] ss:$12 sps:$4 sm:$0xff]  }
 0x270   :  { %8247 = vmatmul.mubr.bf16.gmra.mrb[32].mxu1 %v15472_v29  ;;  %6918 = vmatpush1.bf16.msra.mxu0 %v11554_v3  ;;  %v15513_v24 = vld [vmem:[%s17085_s0 + $0x414] sm:$0xff] }
 0x271   :  { %v15499_v49 = vadd.f32 %v9886_v43, %v15209_v54  ;;  %6919 = vmatprep.subr.bf16.mxu0 %v11561_v17  ;;  %8254 = vmatprep.mubr.bf16.mxu1 %v15482_v1  ;;  %v11595_v54 = vld [vmem:[%s17084_s1 + $0xf80] ss:$12 sps:$4 sm:$0xff]   ;;  %v15524_v17 = vcombine.low %v15456_v25, %v15461_v13 }
 0x272   :  { %6882 = vmatprep.mubr.bf16.mxu0 %v15276_v57  ;;  %10146 = vmatpush3.bf16.msra.mxu1 %v11590_v33  ;;  %v11564_v33 = vld [vmem:[%s17084_s1 + $0xe70] ss:$12 sps:$4 sm:$0xff]   ;;  %v11571_v43 = vld [vmem:[%s17084_s1 + $0xe8c] ss:$12 sps:$4 sm:$0xff]  }
 0x273   :  { %v9887_v3 = vpop.f32.mrb[184].mxu1  ;;  %10147 = vmatprep.subr.bf16.mxu1 %v11594_v27  ;;  %v15534_v27 = vcombine.high %v15508_v35, %v15513_v24 }
 0x274   :  { %v9888_v32 = vpop.f32.mrb[185].mxu1  ;;  %6920 = vmatpush1.bf16.msra.mxu0 %v11559_v10 }
 0x275   :  { %v9889_v57 = vadd.f32 %v9888_v32, %v9887_v3  ;;  %v9890_v23 = vpop.f32.mrb[186].mxu1  ;;  %6921 = vmatprep.subr.bf16.mxu0 %v11566_v0  ;;  %v11606_v0 = vld [vmem:[%s17084_s1 + $0x1070] ss:$12 sps:$4 sm:$0xff]  }
 0x276   :  { %v9891_v10 = vpop.f32.mrb[187].mxu1  ;;  %10148 = vmatpush3.bf16.msra.mxu1 %v11595_v54  ;;  %v11569_v54 = vld [vmem:[%s17084_s1 + $0xe88] ss:$12 sps:$4 sm:$0xff]  }
 0x277   :  { %v15540_v53 = vadd.f32 %v9889_v57, %v15242_v9  ;;  %v9892_v3 = vadd.f32 %v9891_v10, %v9890_v23  ;;  %6883 = vmatmul.mubr.bf16.gmra.mrb[20].mxu0 %v15292_v19  ;;  %10149 = vmatprep.subr.bf16.mxu1 %v11601_v28  ;;  %v11576_v9 = vld [vmem:[%s17084_s1 + $0xea4] ss:$12 sps:$4 sm:$0xff]   ;;  %v11626_v57 = vld [vmem:[%s17084_s1 + $0x1148] ss:$12 sps:$4 sm:$0xff]  }
 0x278   :  { %8255 = vmatmul.mubr.bf16.gmra.mrb[36].mxu1 %v15524_v17  ;;  %6922 = vmatpush1.bf16.msra.mxu0 %v11564_v33  ;;  %v15560_v19 = vld [vmem:[%s17085_s0 + $0x480] sm:$0xff]  ;;  %v15565_v28 = vld [vmem:[%s17085_s0 + $0x4ec] sm:$0xff] }
 0x279   :  { %v15551_v32 = vadd.f32 %v9892_v3, %v15253_v2  ;;  %6923 = vmatprep.subr.bf16.mxu0 %v11571_v43  ;;  %8262 = vmatprep.mubr.bf16.mxu1 %v15534_v27  ;;  %v11607_v2 = vld [vmem:[%s17084_s1 + $0xfb0] ss:$12 sps:$4 sm:$0xff]   ;;  %v15576_v43 = vcombine.low %v15508_v35, %v15513_v24  ;;  %v11881_v3 = vld [vmem:[%s17085_s0 + $0xa4] sm:$0xff]  ;;  %v15592_v51 = vcombine.high %v15560_v19, %v15565_v28 }
 0x27a   :  { %6892 = vmatprep.mubr.bf16.mxu0 %v15303_v59  ;;  %10150 = vmatpush3.bf16.msra.mxu1 %v11602_v16  ;;  %v11574_v16 = vld [vmem:[%s17084_s1 + $0xea0] ss:$12 sps:$4 sm:$0xff]   ;;  %v11880_v59 = vld [vmem:[%s17085_s0 + $0x38] sm:$0xff] }
 0x27b   :  { %17300 = vst [vmem:[#allocation9_spill] sm:$0xff] %v15551_v32  ;;  %v9893_v33 = vpop.f32.mrb[188].mxu1  ;;  %10151 = vmatprep.subr.bf16.mxu1 %v11606_v0  ;;  %v510_v10 = vrot.slane %v11880_v59, 4  ;;  %v512_v0 = vrot.slane %v11881_v3, 4  ;;  %17301 = vst [vmem:[#allocation11_spill] sm:$0xff] %v15592_v51 }
 0x27c   :  { %v9894_v23 = vpop.f32.mrb[189].mxu1  ;;  %6924 = vmatpush1.bf16.msra.mxu0 %v11569_v54 }
 0x27d   :  { %v9895_v26 = vadd.f32 %v9894_v23, %v9893_v33  ;;  %v9896_v54 = vpop.f32.mrb[190].mxu1  ;;  %6925 = vmatprep.subr.bf16.mxu0 %v11576_v9  ;;  %v11882_v9 = vld [vmem:[%s17085_s0 + $0x110] sm:$0xff]  ;;  %v11579_v23 = vld [vmem:[%s17084_s1 + $0xeb8] ss:$12 sps:$4 sm:$0xff]  }
 0x27e   :  { %v9897_v58 = vpop.f32.mrb[191].mxu1  ;;  %10152 = vmatpush3.bf16.msra.mxu1 %v11607_v2  ;;  %v514_v33 = vrot.slane %v11882_v9, 4  ;;  %v17303_v2 = vld [vmem:[#allocation4_spill] sm:$0xff] }
 0x27f   :  { %v15595_v59 = vadd.f32 %v9895_v26, %v15279_v44  ;;  %v9898_v55 = vadd.f32 %v9897_v58, %v9896_v54  ;;  %6893 = vmatmul.mubr.bf16.gmra.mrb[24].mxu0 %v15328_v34  ;;  %10195 = vmatprep.subr.bf16.mxu1 %v11626_v57  ;;  %v17304_v3 = vrot.slane %v17303_v2, 4  ;;  %v17305_v58 = vld [vmem:[#allocation6_spill] sm:$0xff] }
 0x280   :  { %8263 = vmatmul.mubr.bf16.gmra.mrb[40].mxu1 %v15576_v43  ;;  %6926 = vmatpush1.bf16.msra.mxu0 %v11574_v16  ;;  %v17306_v44 = vrot.slane %v17305_v58, 4  ;;  %v11588_v16 = vld [vmem:[%s17084_s1 + $0xed4] ss:$12 sps:$4 sm:$0xff]  }
 0x281   :  { %17302 = vst [vmem:[#allocation17_spill] sm:$0xff] %v15595_v59  ;;  %v536_v26 = vsel %vm249_vm0, %v510_v10, %v17304_v3  ;;  %v15612_v57 = vadd.f32 %v9898_v55, %v15290_v52  ;;  %6927 = vmatprep.subr.bf16.mxu0 %v11581_v6  ;;  %8270 = vmatprep.mubr.bf16.mxu1 %v15592_v51  ;;  %v11883_v54 = vld [vmem:[%s17085_s0 + $0x17c] sm:$0xff] }
 0x282   :  { %v537_v34 = vsel %vm249_vm0, %v512_v0, %v17306_v44  ;;  %v516_v9 = vrot.slane %v11883_v54, 4  ;;  %v15624_v10 = vld [vmem:[%s17085_s0 + $0x558] sm:$0xff]  ;;  %6933 = vmatprep.mubr.bf16.mxu0 %v15338_v37  ;;  %v575_v6 = vmax.bf16 %v536_v26, %v13985_v41  ;;  %v17308_v0 = vld [vmem:[#allocation12_spill] sm:$0xff]  ;;  %v15634_v44 = vcombine.low %v15560_v19, %v15565_v28  ;;  %v27_v41 = vld [vmem:[%s17085_s0 + $0x60] sm:$0xff] }
 0x283   :  { %17307 = vst [vmem:[#allocation19_spill] sm:$0xff] %v15612_v57  ;;  %v9899_v55 = vpop.f32.mrb[192].mxu1  ;;  %v577_v52 = vmax.bf16 %v537_v34, %v13987_v56  ;;  %v17309_v2 = vrot.slane %v17308_v0, 4  ;;  %v11586_v54 = vld [vmem:[%s17084_s1 + $0xed0] ss:$12 sps:$4 sm:$0xff]   ;;  %v15650_v26 = vcombine.high %v15624_v10, %v15624_v10 }
 0x284   :  { %v9900_v58 = vpop.f32.mrb[193].mxu1  ;;  %6928 = vmatpush1.bf16.msra.mxu0 %v11579_v23  ;;  %17310 = vst [vmem:[#allocation24_spill] sm:$0xff] %v15634_v44  ;;  %v41_v56 = vld [vmem:[%s17085_s0 + $0xcc] sm:$0xff]  ;;  %v17313_v0 = vld [vmem:[#allocation13_spill] sm:$0xff] }
 0x285   :  { %v538_v3 = vsel %vm249_vm0, %v514_v33, %v17309_v2  ;;  %v9901_v37 = vadd.f32 %v9900_v58, %v9899_v55  ;;  %6929 = vmatprep.subr.bf16.mxu0 %v11588_v16  ;;  %v9902_v33 = vpop.f32.mrb[194].mxu1  ;;  %v11593_v23 = vld [vmem:[%s17084_s1 + $0xeec] ss:$12 sps:$4 sm:$0xff]   ;;  %17311 = vst [vmem:[#allocation26_spill] sm:$0xff] %v15650_v26  ;;  %v15652_v34 = vcombine.high %v27_v41, %v41_v56  ;;  %v17314_v2 = vrot.slane %v17313_v0, 4 }
 0x286   :  { %v9903_v59 = vpop.f32.mrb[195].mxu1  ;;  %v15657_v51 = vcombine.low %v27_v41, %v41_v56  ;;  %v579_v16 = vmax.bf16 %v538_v3, %v14023_v47  ;;  %v601_v58 = vmax.bf16 %v575_v6, %v15320_v62  ;;  %v603_v33 = vmax.bf16 %v577_v52, %v15325_v7  ;;  %v11885_v62 = vld [vmem:[%s17085_s0 + $0x50] sm:$0xff] }
 0x287   :  { %17312 = vst [vmem:[#allocation32_spill] sm:$0xff] %v15652_v34  ;;  %v539_v57 = vsel %vm249_vm0, %v516_v9, %v17314_v2  ;;  %v15661_v55 = vadd.f32 %v9901_v37, %v15306_v61  ;;  %v11884_v34 = vld [vmem:[%s17085_s0 + $0x1e8] sm:$0xff]  ;;  %v11600_v61 = vld [vmem:[%s17084_s1 + $0xf04] ss:$12 sps:$4 sm:$0xff]   ;;  %v653_v7 = vrot.slane %v11885_v62, 4  ;;  %v11886_v9 = vld [vmem:[%s17085_s0 + $0xbc] sm:$0xff] }
 0x288   :  { %17315 = vst [vmem:[#allocation35_spill] sm:$0xff] %v15657_v51  ;;  %v518_v32 = vrot.slane %v11884_v34, 4  ;;  %8271 = vmatmul.mubr.bf16.gmra.mrb[44].mxu1 %v15634_v44  ;;  %6930 = vmatpush1.bf16.msra.mxu0 %v11586_v54  ;;  %v11591_v59 = vld [vmem:[%s17084_s1 + $0xee8] ss:$12 sps:$4 sm:$0xff]   ;;  %v581_v47 = vmax.bf16 %v539_v57, %v14025_v60  ;;  %v655_v6 = vrot.slane %v11886_v9, 4  ;;  %v15687_v52 = vmax.bf16 %v579_v16, %v15358_v21  ;;  %v17319_v34 = vld [vmem:[#allocation10_spill] sm:$0xff] }
 0x289   :  { %17316 = vst [vmem:[#allocation39_spill] sm:$0xff] %v15661_v55  ;;  %6931 = vmatprep.subr.bf16.mxu0 %v11593_v23  ;;  %8278 = vmatprep.mubr.bf16.mxu1 %v15650_v26  ;;  %v11887_v60 = vld [vmem:[%s17085_s0 + $0x254] sm:$0xff]  ;;  %v17320_v0 = vrot.slane %v17319_v34, 4  ;;  %v17321_v51 = vld [vmem:[#allocation18_spill] sm:$0xff] }
 0x28a   :  { %v520_v57 = vrot.slane %v11887_v60, 4  ;;  %v17317_v54 = vld [vmem:[#allocation8_spill] sm:$0xff]  ;;  %v17322_v55 = vrot.slane %v17321_v51, 4  ;;  %v15700_v60 = vcombine.low %v15624_v10, %v15624_v10  ;;  %v11598_v21 = vld [vmem:[%s17084_s1 + $0xf00] ss:$12 sps:$4 sm:$0xff]   ;;  %v15713_v51 = vld [vmem:[%s17085_s0 + $0x1a4] sm:$0xff] }
 0x28b   :  { %v9921_v3 = vpop.f32.mrb[196].mxu1  ;;  %v17318_v37 = vrot.slane %v17317_v54, 4  ;;  %v680_v2 = vsel %vm249_vm0, %v655_v6, %v17320_v0  ;;  %v15708_v6 = vld [vmem:[%s17085_s0 + $0x138] sm:$0xff] }
 0x28c   :  { %v540_v26 = vsel %vm249_vm0, %v518_v32, %v17322_v55  ;;  %v9922_v44 = vpop.f32.mrb[197].mxu1  ;;  %6932 = vmatpush1.bf16.msra.mxu0 %v11591_v59  ;;  %v15716_v32 = vmax.bf16 %v581_v47, %v15363_v14  ;;  %v15725_v54 = vcombine.high %v15708_v6, %v15713_v51 }
 0x28d   :  { %v679_v23 = vsel %vm249_vm0, %v653_v7, %v17318_v37  ;;  %v720_v7 = vmax.bf16 %v680_v2, %v603_v33  ;;  %v9923_v55 = vadd.f32 %v9922_v44, %v9921_v3  ;;  %v9924_v59 = vpop.f32.mrb[198].mxu1  ;;  %7002 = vmatprep.subr.bf16.mxu0 %v11600_v61  ;;  %v15721_v33 = vcombine.high %v11885_v62, %v11886_v9  ;;  %v17324_v37 = vld [vmem:[#allocation20_spill] sm:$0xff]  ;;  %v11888_v3 = vld [vmem:[%s17085_s0 + $0x2c0] sm:$0xff] }
 0x28e   :  { %v718_v16 = vmax.bf16 %v679_v23, %v601_v58  ;;  %v11605_v58 = vld [vmem:[%s17084_s1 + $0xf1c] ss:$12 sps:$4 sm:$0xff]   ;;  %17323 = vst [vmem:[#allocation42_spill] sm:$0xff] %v15725_v54  ;;  %v17325_v23 = vrot.slane %v17324_v37, 4  ;;  %v9925_v0 = vpop.f32.mrb[199].mxu1  ;;  %v15732_v44 = vcombine.low %v15708_v6, %v15713_v51  ;;  %v583_v61 = vmax.bf16 %v540_v26, %v14075_v11 }
 0x28f   :  { %v746_v47 = vmax.bf16 %v720_v7, %v41_v56  ;;  %v522_v2 = vrot.slane %v11888_v3, 4  ;;  %v15739_v54 = vadd.f32 %v9923_v55, %v15341_v4  ;;  %v9926_v37 = vadd.f32 %v9925_v0, %v9924_v59  ;;  %6934 = vmatmul.mubr.bf16.vlgmr.msra.gmra.mrb[0].mxu0 %v15368_v30  ;;  %v11611_v4 = vld [vmem:[%s17084_s1 + $0xf34] ss:$12 sps:$4 sm:$0xff]   ;;  %v15757_v30 = vld [vmem:[%s17085_s0 + $0x128] sm:$0xff] }
 0x290   :  { %v541_v34 = vsel %vm249_vm0, %v520_v57, %v17325_v23  ;;  %v744_v14 = vmax.bf16 %v718_v16, %v27_v41  ;;  %8279 = vmatmul.mubr.bf16.gmra.mrb[48].mxu1 %v15700_v60  ;;  %7003 = vmatpush1.bf16.msra.mxu0 %v11598_v21  ;;  %v11603_v41 = vld [vmem:[%s17084_s1 + $0xf18] ss:$12 sps:$4 sm:$0xff]   ;;  %v657_v21 = vrot.slane %v15757_v30, 4  ;;  %v11891_v55 = vld [vmem:[%s17085_s0 + $0x32c] sm:$0xff] }
 0x291   :  { %v773_v26 = vunpack.c.l.bf16 %v746_v47  ;;  %v774_v57 = vunpack.c.h.bf16 %v746_v47  ;;  %v585_v16 = vmax.bf16 %v541_v34, %v14077_v31  ;;  %v15748_v7 = vadd.f32 %v9926_v37, %v15349_v40  ;;  %7004 = vmatprep.subr.bf16.mxu0 %v11605_v58  ;;  %8318 = vmatprep.mubr.bf16.mxu1 %v15721_v33  ;;  %v15763_v31 = vld [vmem:[%s17085_s0 + $0x194] sm:$0xff] }
 0x292   :  { %v770_v56 = vunpack.c.l.bf16 %v744_v14  ;;  %v771_v11 = vunpack.c.h.bf16 %v744_v14  ;;  %v659_v40 = vrot.slane %v15763_v31, 4  ;;  %v524_v59 = vrot.slane %v11891_v55, 4  ;;  %6943 = vmatprep.mubr.bf16.mxu0 %v15378_v46  ;;  %v17326_v46 = vld [vmem:[#allocation15_spill] sm:$0xff]  ;;  %v17328_v14 = vld [vmem:[#allocation16_spill] sm:$0xff] }
 0x293   :  { %812 = vst [vmem:[%s17086_s3 + $0x30] sm:$0xff] %v773_v26  ;;  %813 = vst [vmem:[%s17086_s3 + $0x38] sm:$0xff] %v774_v57  ;;  %v15782_v58 = vcombine.low %v11885_v62, %v11886_v9  ;;  %v9927_v23 = vpop.f32.mrb[200].mxu1  ;;  %v17327_v34 = vrot.slane %v17326_v46, 4  ;;  %v17329_v47 = vrot.slane %v17328_v14, 4  ;;  %v15791_v37 = vmax.bf16 %v583_v61, %v15404_v5  ;;  %v15809_v5 = vld [vmem:[%s17085_s0 + $0x27c] sm:$0xff] }
 0x294   :  { %809 = vst [vmem:[%s17086_s3] sm:$0xff] %v770_v56  ;;  %810 = vst [vmem:[%s17086_s3 + $0x8] sm:$0xff] %v771_v11  ;;  %v17330_v56 = vld [vmem:[#allocation25_spill] sm:$0xff]  ;;  %v9928_v55 = vpop.f32.mrb[201].mxu1  ;;  %7005 = vmatpush1.bf16.msra.mxu0 %v11603_v41  ;;  %v15812_v61 = vmax.bf16 %v585_v16, %v15409_v22  ;;  %v17332_v46 = vld [vmem:[#allocation28_spill] sm:$0xff] }
 0x295   :  { %v681_v0 = vsel %vm249_vm0, %v657_v21, %v17327_v34  ;;  %v682_v3 = vsel %vm249_vm0, %v659_v40, %v17329_v47  ;;  %v17331_v11 = vrot.slane %v17330_v56, 4  ;;  %v11609_v62 = vld [vmem:[%s17084_s1 + $0xf30] ss:$12 sps:$4 sm:$0xff]   ;;  %v9930_v41 = vpop.f32.mrb[202].mxu1  ;;  %7006 = vmatprep.subr.bf16.mxu0 %v11611_v4  ;;  %v17333_v34 = vrot.slane %v17332_v46, 4 }
 0x296   :  { %v722_v9 = vmax.bf16 %v681_v0, %v15687_v52  ;;  %v724_v57 = vmax.bf16 %v682_v3, %v15716_v32  ;;  %v15804_v21 = vld [vmem:[%s17085_s0 + $0x210] sm:$0xff]  ;;  %v11614_v52 = vld [vmem:[%s17084_s1 + $0xf4c] ss:$12 sps:$4 sm:$0xff]   ;;  %v15819_v32 = vcombine.high %v15757_v30, %v15763_v31  ;;  %v9931_v16 = vpop.f32.mrb[203].mxu1 }
 0x297   :  { %v542_v26 = vsel %vm249_vm0, %v522_v2, %v17331_v11  ;;  %v9929_v2 = vadd.f32 %v9928_v55, %v9927_v23  ;;  %v15823_v40 = vcombine.high %v15804_v21, %v15809_v5  ;;  %v543_v22 = vsel %vm249_vm0, %v524_v59, %v17333_v34  ;;  %v11627_v4 = vld [vmem:[%s17084_s1 + $0x1088] ss:$12 sps:$4 sm:$0xff]   ;;  %v11892_v3 = vld [vmem:[%s17085_s0 + $0x398] sm:$0xff]  ;;  %6944 = vmatmul.mubr.bf16.gmra.mrb[4].mxu0 %v15420_v36  ;;  %v11618_v36 = vld [vmem:[%s17084_s1 + $0xf64] ss:$12 sps:$4 sm:$0xff]  }
 0x298   :  { %v748_v23 = vmax.bf16 %v722_v9, %v15708_v6  ;;  %v750_v0 = vmax.bf16 %v724_v57, %v15713_v51  ;;  %v15835_v14 = vcombine.low %v15804_v21, %v15809_v5  ;;  %v587_v47 = vmax.bf16 %v542_v26, %v14129_v45  ;;  %v11635_v6 = vld [vmem:[%s17084_s1 + $0x1160] ss:$12 sps:$4 sm:$0xff]   ;;  %8319 = vmatmul.mubr.bf16.vlgmr.msra.gmra.mrb[52].mxu1 %v15782_v58  ;;  %v11612_v45 = vld [vmem:[%s17084_s1 + $0xf48] ss:$12 sps:$4 sm:$0xff]  }
 0x299   :  { %v526_v59 = vrot.slane %v11892_v3, 4  ;;  %v15842_v56 = vadd.f32 %v9929_v2, %v15384_v48  ;;  %v9932_v11 = vadd.f32 %v9931_v16, %v9930_v41  ;;  %7007 = vmatpush1.bf16.msra.mxu0 %v11609_v62  ;;  %v589_v48 = vmax.bf16 %v543_v22, %v14131_v15  ;;  %8326 = vmatprep.mubr.bf16.mxu1 %v15819_v32  ;;  %v15863_v62 = vld [vmem:[%s17085_s0 + $0x200] sm:$0xff]  ;;  %v15869_v15 = vld [vmem:[%s17085_s0 + $0x26c] sm:$0xff] }
 0x29a   :  { %v776_v51 = vunpack.c.l.bf16 %v748_v23  ;;  %v777_v26 = vunpack.c.h.bf16 %v748_v23  ;;  %v779_v55 = vunpack.c.l.bf16 %v750_v0  ;;  %v780_v9 = vunpack.c.h.bf16 %v750_v0  ;;  %7008 = vmatprep.subr.bf16.mxu0 %v11614_v52  ;;  %v11895_v41 = vld [vmem:[%s17085_s0 + $0x404] sm:$0xff]  ;;  %6953 = vmatprep.mubr.bf16.mxu0 %v15430_v42  ;;  %v11636_v46 = vld [vmem:[%s17084_s1 + $0x10a0] ss:$12 sps:$4 sm:$0xff]  }
 0x29b   :  { %v15854_v57 = vadd.f32 %v9932_v11, %v15395_v50  ;;  %v661_v2 = vrot.slane %v15863_v62, 4  ;;  %v663_v50 = vrot.slane %v15869_v15, 4  ;;  %v528_v52 = vrot.slane %v11895_v41, 4  ;;  %10196 = vmatpush3.bf16.msra.mxu1 %v11627_v4  ;;  %v9933_v34 = vpop.f32.mrb[204].mxu1  ;;  %v11644_v22 = vld [vmem:[%s17084_s1 + $0x1178] ss:$12 sps:$4 sm:$0xff]  }
 0x29c   :  { %815 = vst [vmem:[%s17086_s3 + $0x60] sm:$0xff] %v776_v51  ;;  %816 = vst [vmem:[%s17086_s3 + $0x68] sm:$0xff] %v777_v26  ;;  %v15893_v42 = vcombine.low %v15757_v30, %v15763_v31  ;;  %10197 = vmatprep.subr.bf16.mxu1 %v11635_v6  ;;  %v17334_v16 = vld [vmem:[#allocation22_spill] sm:$0xff]  ;;  %v17336_v0 = vld [vmem:[#allocation23_spill] sm:$0xff]  ;;  %v15905_v51 = vmax.bf16 %v587_v47, %v15456_v25  ;;  %v9934_v6 = vpop.f32.mrb[205].mxu1  ;;  %v15926_v47 = vmax.bf16 %v589_v48, %v15461_v13 }
 0x29d   :  { %818 = vst [vmem:[%s17086_s3 + $0x90] sm:$0xff] %v779_v55  ;;  %819 = vst [vmem:[%s17086_s3 + $0x98] sm:$0xff] %v780_v9  ;;  %v17335_v4 = vrot.slane %v17334_v16, 4  ;;  %v17337_v3 = vrot.slane %v17336_v0, 4  ;;  %v17338_v26 = vld [vmem:[#allocation33_spill] sm:$0xff]  ;;  %7009 = vmatpush1.bf16.msra.mxu0 %v11612_v45  ;;  %v9936_v45 = vpop.f32.mrb[206].mxu1 }
 0x29e   :  { %v17339_v30 = vrot.slane %v17338_v26, 4  ;;  %v11616_v55 = vld [vmem:[%s17084_s1 + $0xf60] ss:$12 sps:$4 sm:$0xff]   ;;  %v15923_v25 = vld [vmem:[%s17085_s0 + $0x354] sm:$0xff]  ;;  %7010 = vmatprep.subr.bf16.mxu0 %v11618_v36  ;;  %v9937_v48 = vpop.f32.mrb[207].mxu1 }
 0x29f   :  { %v683_v23 = vsel %vm249_vm0, %v661_v2, %v17335_v4  ;;  %v684_v11 = vsel %vm249_vm0, %v663_v50, %v17337_v3  ;;  %v15918_v50 = vld [vmem:[%s17085_s0 + $0x2e8] sm:$0xff]  ;;  %v17340_v16 = vld [vmem:[#allocation36_spill] sm:$0xff]  ;;  %10198 = vmatpush3.bf16.msra.mxu1 %v11636_v46  ;;  %v11645_v36 = vld [vmem:[%s17084_s1 + $0x10b8] ss:$12 sps:$4 sm:$0xff]   ;;  %v9938_v26 = vadd.f32 %v9937_v48, %v9936_v45  ;;  %6954 = vmatmul.mubr.bf16.gmra.mrb[8].mxu0 %v15472_v29 }
 0x2a0   :  { %v544_v31 = vsel %vm249_vm0, %v526_v59, %v17339_v30  ;;  %v726_v9 = vmax.bf16 %v683_v23, %v15791_v37  ;;  %v728_v2 = vmax.bf16 %v684_v11, %v15812_v61  ;;  %v9935_v59 = vadd.f32 %v9934_v6, %v9933_v34  ;;  %v11621_v37 = vld [vmem:[%s17084_s1 + $0xf7c] ss:$12 sps:$4 sm:$0xff]   ;;  %10199 = vmatprep.subr.bf16.mxu1 %v11644_v22  ;;  %v11625_v22 = vld [vmem:[%s17084_s1 + $0xf94] ss:$12 sps:$4 sm:$0xff]  }
 0x2a1   :  { %v15933_v61 = vcombine.high %v15863_v62, %v15869_v15  ;;  %v15937_v41 = vcombine.high %v15918_v50, %v15923_v25  ;;  %v17341_v4 = vrot.slane %v17340_v16, 4  ;;  %v15949_v0 = vcombine.low %v15918_v50, %v15923_v25  ;;  %8327 = vmatmul.mubr.bf16.gmra.mrb[56].mxu1 %v15893_v42  ;;  %7011 = vmatpush1.bf16.msra.mxu0 %v11616_v55  ;;  %v15977_v55 = vld [vmem:[%s17085_s0 + $0x2d8] sm:$0xff]  ;;  %v11655_v16 = vld [vmem:[%s17084_s1 + $0x11a8] ss:$12 sps:$4 sm:$0xff]  }
 0x2a2   :  { %v752_v34 = vmax.bf16 %v726_v9, %v15804_v21  ;;  %v754_v23 = vmax.bf16 %v728_v2, %v15809_v5  ;;  %v591_v3 = vmax.bf16 %v544_v31, %v14182_v8  ;;  %v15956_v46 = vadd.f32 %v9935_v59, %v15436_v20  ;;  %v11649_v21 = vld [vmem:[%s17084_s1 + $0x1190] ss:$12 sps:$4 sm:$0xff]   ;;  %v11619_v8 = vld [vmem:[%s17084_s1 + $0xf78] ss:$12 sps:$4 sm:$0xff]   ;;  %7012 = vmatprep.subr.bf16.mxu0 %v11621_v37 }
 0x2a3   :  { %v545_v13 = vsel %vm249_vm0, %v528_v52, %v17341_v4  ;;  %v11896_v52 = vld [vmem:[%s17085_s0 + $0x470] sm:$0xff]  ;;  %v15968_v29 = vadd.f32 %v9938_v26, %v15447_v63  ;;  %8334 = vmatprep.mubr.bf16.mxu1 %v15933_v61  ;;  %v665_v9 = vrot.slane %v15977_v55, 4  ;;  %v11899_v2 = vld [vmem:[%s17085_s0 + $0x4dc] sm:$0xff]  ;;  %6963 = vmatprep.mubr.bf16.mxu0 %v15482_v1  ;;  %v16007_v1 = vcombine.low %v15863_v62, %v15869_v15  ;;  %v9939_v37 = vpop.f32.mrb[208].mxu1  ;;  %v17342_v4 = vld [vmem:[#allocation27_spill] sm:$0xff] }
 0x2a4   :  { %v530_v11 = vrot.slane %v11896_v52, 4  ;;  %v782_v5 = vunpack.c.l.bf16 %v752_v34  ;;  %v783_v30 = vunpack.c.h.bf16 %v752_v34  ;;  %v785_v31 = vunpack.c.l.bf16 %v754_v23  ;;  %10200 = vmatpush3.bf16.msra.mxu1 %v11645_v36  ;;  %v11650_v45 = vld [vmem:[%s17084_s1 + $0x10d0] ss:$12 sps:$4 sm:$0xff]   ;;  %v17344_v36 = vld [vmem:[#allocation31_spill] sm:$0xff] }
 0x2a5   :  { %v786_v20 = vunpack.c.h.bf16 %v754_v23  ;;  %v593_v6 = vmax.bf16 %v545_v13, %v14184_v18  ;;  %v15983_v18 = vld [vmem:[%s17085_s0 + $0x344] sm:$0xff]  ;;  %v532_v59 = vrot.slane %v11899_v2, 4  ;;  %10201 = vmatprep.subr.bf16.mxu1 %v11649_v21  ;;  %v17343_v13 = vrot.slane %v17342_v4, 4  ;;  %v17346_v26 = vld [vmem:[#allocation40_spill] sm:$0xff]  ;;  %v9940_v21 = vpop.f32.mrb[209].mxu1  ;;  %7013 = vmatpush1.bf16.msra.mxu0 %v11619_v8 }
 0x2a6   :  { %v667_v63 = vrot.slane %v15983_v18, 4  ;;  %821 = vst [vmem:[%s17086_s3 + $0xc0] sm:$0xff] %v782_v5  ;;  %822 = vst [vmem:[%s17086_s3 + $0xc8] sm:$0xff] %v783_v30  ;;  %v17345_v34 = vrot.slane %v17344_v36, 4  ;;  %v16019_v52 = vmax.bf16 %v591_v3, %v15508_v35  ;;  %v17347_v62 = vrot.slane %v17346_v26, 4  ;;  %v16037_v35 = vld [vmem:[%s17085_s0 + $0x42c] sm:$0xff]  ;;  %7014 = vmatprep.subr.bf16.mxu0 %v11625_v22 }
 0x2a7   :  { %824 = vst [vmem:[%s17086_s3 + $0xf0] sm:$0xff] %v785_v31  ;;  %825 = vst [vmem:[%s17086_s3 + $0xf8] sm:$0xff] %v786_v20  ;;  %v685_v48 = vsel %vm249_vm0, %v665_v9, %v17343_v13  ;;  %v11623_v5 = vld [vmem:[%s17084_s1 + $0xf90] ss:$12 sps:$4 sm:$0xff]   ;;  %v16032_v20 = vld [vmem:[%s17085_s0 + $0x3c0] sm:$0xff]  ;;  %v16040_v3 = vmax.bf16 %v593_v6, %v15513_v24  ;;  %v9942_v8 = vpop.f32.mrb[210].mxu1  ;;  %6964 = vmatmul.mubr.bf16.gmra.mrb[12].mxu0 %v15524_v17 }
 0x2a8   :  { %v686_v23 = vsel %vm249_vm0, %v667_v63, %v17345_v34  ;;  %v546_v15 = vsel %vm249_vm0, %v530_v11, %v17347_v62  ;;  %v730_v30 = vmax.bf16 %v685_v48, %v15905_v51  ;;  %v9941_v11 = vadd.f32 %v9940_v21, %v9939_v37  ;;  %v11630_v51 = vld [vmem:[%s17084_s1 + $0xfac] ss:$12 sps:$4 sm:$0xff]   ;;  %v9943_v6 = vpop.f32.mrb[211].mxu1  ;;  %10202 = vmatpush3.bf16.msra.mxu1 %v11650_v45  ;;  %v11656_v22 = vld [vmem:[%s17084_s1 + $0x10e8] ss:$12 sps:$4 sm:$0xff]  }
 0x2a9   :  { %v732_v31 = vmax.bf16 %v686_v23, %v15926_v47  ;;  %v16047_v47 = vcombine.high %v15977_v55, %v15983_v18  ;;  %v16051_v9 = vcombine.high %v16032_v20, %v16037_v35  ;;  %v17348_v63 = vld [vmem:[#allocation43_spill] sm:$0xff]  ;;  %v16063_v13 = vcombine.low %v16032_v20, %v16037_v35  ;;  %10203 = vmatprep.subr.bf16.mxu1 %v11655_v16  ;;  %v11634_v16 = vld [vmem:[%s17084_s1 + $0xfc4] ss:$12 sps:$4 sm:$0xff]  }
 0x2aa   :  { %v17349_v2 = vrot.slane %v17348_v63, 4  ;;  %v756_v37 = vmax.bf16 %v730_v30, %v15918_v50  ;;  %v595_v48 = vmax.bf16 %v546_v15, %v14227_v38  ;;  %v16067_v36 = vadd.f32 %v9941_v11, %v15488_v39  ;;  %v11660_v45 = vld [vmem:[%s17084_s1 + $0x11c0] ss:$12 sps:$4 sm:$0xff]   ;;  %8335 = vmatmul.mubr.bf16.gmra.mrb[60].mxu1 %v16007_v1  ;;  %7015 = vmatpush1.bf16.msra.mxu0 %v11623_v5  ;;  %v11628_v50 = vld [vmem:[%s17084_s1 + $0xfa8] ss:$12 sps:$4 sm:$0xff]  }
 0x2ab   :  { %v758_v4 = vmax.bf16 %v732_v31, %v15923_v25  ;;  %7016 = vmatprep.subr.bf16.mxu0 %v11630_v51  ;;  %8342 = vmatprep.mubr.bf16.mxu1 %v16047_v47  ;;  %v16088_v26 = vld [vmem:[%s17085_s0 + $0x3b0] sm:$0xff]  ;;  %v11902_v15 = vld [vmem:[%s17085_s0 + $0x548] sm:$0xff]  ;;  %v11666_v30 = vld [vmem:[%s17084_s1 + $0x11d8] ss:$12 sps:$4 sm:$0xff]  }
 0x2ac   :  { %v547_v24 = vsel %vm249_vm0, %v532_v59, %v17349_v2  ;;  %v9944_v59 = vadd.f32 %v9943_v6, %v9942_v8  ;;  %v788_v25 = vunpack.c.l.bf16 %v756_v37  ;;  %v789_v38 = vunpack.c.h.bf16 %v756_v37  ;;  %6973 = vmatprep.mubr.bf16.mxu0 %v15534_v27  ;;  %10204 = vmatpush3.bf16.msra.mxu1 %v11656_v22  ;;  %v11661_v5 = vld [vmem:[%s17084_s1 + $0x1100] ss:$12 sps:$4 sm:$0xff]   ;;  %v9945_v27 = vpop.f32.mrb[212].mxu1 }
 0x2ad   :  { %v791_v34 = vunpack.c.l.bf16 %v758_v4  ;;  %v792_v39 = vunpack.c.h.bf16 %v758_v4  ;;  %v597_v23 = vmax.bf16 %v547_v24, %v14229_v12  ;;  %v669_v62 = vrot.slane %v16088_v26, 4  ;;  %v16094_v12 = vld [vmem:[%s17085_s0 + $0x41c] sm:$0xff]  ;;  %10205 = vmatprep.subr.bf16.mxu1 %v11660_v45  ;;  %v9946_v22 = vpop.f32.mrb[213].mxu1 }
 0x2ae   :  { %v16079_v17 = vadd.f32 %v9944_v59, %v15499_v49  ;;  %v671_v49 = vrot.slane %v16094_v12, 4  ;;  %v534_v21 = vrot.slane %v11902_v15, 4  ;;  %827 = vst [vmem:[%s17086_s3 + $0x120] sm:$0xff] %v788_v25  ;;  %828 = vst [vmem:[%s17086_s3 + $0x128] sm:$0xff] %v789_v38  ;;  %v17350_v31 = vld [vmem:[#allocation34_spill] sm:$0xff]  ;;  %v16127_v24 = vcombine.low %v15977_v55, %v15983_v18  ;;  %7017 = vmatpush1.bf16.msra.mxu0 %v11628_v50  ;;  %v167_v45 = vld [vmem:[%s17085_s0 + $0x498] sm:$0xff] }
 0x2af   :  { %830 = vst [vmem:[%s17086_s3 + $0x150] sm:$0xff] %v791_v34  ;;  %831 = vst [vmem:[%s17086_s3 + $0x158] sm:$0xff] %v792_v39  ;;  %v17351_v11 = vrot.slane %v17350_v31, 4  ;;  %v17352_v51 = vld [vmem:[#allocation38_spill] sm:$0xff]  ;;  %v621_v6 = vmax.bf16 %v595_v48, %v15560_v19  ;;  %v623_v19 = vmax.bf16 %v597_v23, %v15565_v28  ;;  %v9947_v18 = vadd.f32 %v9946_v22, %v9945_v27  ;;  %v9948_v48 = vpop.f32.mrb[214].mxu1 }
 0x2b0   :  { %v17353_v63 = vrot.slane %v17352_v51, 4  ;;  %v11632_v37 = vld [vmem:[%s17084_s1 + $0xfc0] ss:$12 sps:$4 sm:$0xff]   ;;  %v181_v55 = vld [vmem:[%s17085_s0 + $0x504] sm:$0xff]  ;;  %7018 = vmatprep.subr.bf16.mxu0 %v11634_v16  ;;  %v9949_v39 = vpop.f32.mrb[215].mxu1  ;;  %10206 = vmatpush3.bf16.msra.mxu1 %v11661_v5 }
 0x2b1   :  { %v687_v8 = vsel %vm249_vm0, %v669_v62, %v17351_v11  ;;  %v11639_v50 = vld [vmem:[%s17084_s1 + $0xfdc] ss:$12 sps:$4 sm:$0xff]   ;;  %v17354_v25 = vld [vmem:[#allocation46_spill] sm:$0xff]  ;;  %v16161_v62 = vcombine.low %v167_v45, %v181_v55  ;;  %v9950_v15 = vadd.f32 %v9949_v39, %v9948_v48  ;;  %6974 = vmatmul.mubr.bf16.gmra.mrb[16].mxu0 %v15576_v43  ;;  %10207 = vmatprep.subr.bf16.mxu1 %v11666_v30 }
 0x2b2   :  { %v688_v2 = vsel %vm249_vm0, %v671_v49, %v17353_v63  ;;  %v734_v4 = vmax.bf16 %v687_v8, %v16019_v52  ;;  %v16147_v52 = vcombine.high %v16088_v26, %v16094_v12  ;;  %v17355_v38 = vrot.slane %v17354_v25, 4  ;;  %v11667_v28 = vld [vmem:[%s17084_s1 + $0x1118] ss:$12 sps:$4 sm:$0xff]   ;;  %v16173_v5 = vld [vmem:[%s17085_s0 + $0x488] sm:$0xff]  ;;  %8343 = vmatmul.mubr.bf16.gmra.mrb[64].mxu1 %v16127_v24  ;;  %7019 = vmatpush1.bf16.msra.mxu0 %v11632_v37  ;;  %v11643_v63 = vld [vmem:[%s17084_s1 + $0xff4] ss:$12 sps:$4 sm:$0xff]  }
 0x2b3   :  { %v736_v59 = vmax.bf16 %v688_v2, %v16040_v3  ;;  %v16149_v3 = vcombine.high %v167_v45, %v181_v55  ;;  %v16164_v49 = vadd.f32 %v9947_v18, %v15540_v53  ;;  %v16179_v53 = vld [vmem:[%s17085_s0 + $0x4f4] sm:$0xff]  ;;  %7020 = vmatprep.subr.bf16.mxu0 %v11639_v50  ;;  %v17361_v48 = vld [vmem:[#allocation11_spill] sm:$0xff]  ;;  %v11672_v50 = vld [vmem:[%s17084_s1 + $0x1130] ss:$12 sps:$4 sm:$0xff]   ;;  %v9951_v39 = vpop.f32.mrb[216].mxu1 }
 0x2b4   :  { %v16154_v34 = vsel %vm249_vm0, %v534_v21, %v17355_v38  ;;  %v760_v23 = vmax.bf16 %v734_v4, %v16032_v20  ;;  %v11671_v21 = vld [vmem:[%s17084_s1 + $0x11f0] ss:$12 sps:$4 sm:$0xff]   ;;  %v673_v20 = vrot.slane %v16173_v5, 4  ;;  %v11637_v43 = vld [vmem:[%s17084_s1 + $0xfd8] ss:$12 sps:$4 sm:$0xff]   ;;  %8350 = vmatprep.mubr.bf16.mxu1 %v16147_v52  ;;  %6983 = vmatprep.mubr.bf16.mxu0 %v17361_v48 }
 0x2b5   :  { %v762_v16 = vmax.bf16 %v736_v59, %v16037_v35  ;;  %v675_v35 = vrot.slane %v16179_v53, 4  ;;  %v17356_v8 = vld [vmem:[#allocation9_spill] sm:$0xff]  ;;  %10208 = vmatpush3.bf16.msra.mxu1 %v11667_v28  ;;  %v11691_v28 = vld [vmem:[%s17084_s1 + $0x12c8] ss:$12 sps:$4 sm:$0xff]   ;;  %v17366_v48 = vld [vmem:[#allocation26_spill] sm:$0xff] }
 0x2b6   :  { %v794_v27 = vunpack.c.l.bf16 %v760_v23  ;;  %v795_v30 = vunpack.c.h.bf16 %v760_v23  ;;  %v16187_v51 = vadd.f32 %v9950_v15, %v17356_v8  ;;  %v17357_v2 = vld [vmem:[#allocation41_spill] sm:$0xff]  ;;  %10209 = vmatprep.subr.bf16.mxu1 %v11671_v21  ;;  %v16220_v23 = vcombine.low %v16088_v26, %v16094_v12  ;;  %7021 = vmatpush1.bf16.msra.mxu0 %v11637_v43 }
 0x2b7   :  { %v797_v31 = vunpack.c.l.bf16 %v762_v16  ;;  %v798_v11 = vunpack.c.h.bf16 %v762_v16  ;;  %v17358_v22 = vrot.slane %v17357_v2, 4  ;;  %v17359_v4 = vld [vmem:[#allocation45_spill] sm:$0xff]  ;;  %v17362_v16 = vld [vmem:[#allocation3_spill] sm:$0xff]  ;;  %7022 = vmatprep.subr.bf16.mxu0 %v11643_v63  ;;  %v16232_v26 = vcombine.high %v16173_v5, %v16179_v53  ;;  %v17364_v2 = vld [vmem:[#allocation24_spill] sm:$0xff] }
 0x2b8   :  { %v17360_v59 = vrot.slane %v17359_v4, 4  ;;  %833 = vst [vmem:[%s17086_s3 + $0x180] sm:$0xff] %v794_v27  ;;  %834 = vst [vmem:[%s17086_s3 + $0x188] sm:$0xff] %v795_v30  ;;  %v599_v15 = vmax.bf16 %v16154_v34, %v17362_v16  ;;  %v11648_v30 = vld [vmem:[%s17084_s1 + $0x100c] ss:$12 sps:$4 sm:$0xff]  }
 0x2b9   :  { %v689_v37 = vsel %vm249_vm0, %v673_v20, %v17358_v22  ;;  %836 = vst [vmem:[%s17086_s3 + $0x1b0] sm:$0xff] %v797_v31  ;;  %837 = vst [vmem:[%s17086_s3 + $0x1b8] sm:$0xff] %v798_v11  ;;  %v9952_v20 = vpop.f32.mrb[217].mxu1  ;;  %10210 = vmatpush3.bf16.msra.mxu1 %v11672_v50  ;;  %v17363_v8 = vld [vmem:[#allocation17_spill] sm:$0xff]  ;;  %6984 = vmatmul.mubr.bf16.gmra.mrb[20].mxu0 %v17364_v2  ;;  %v11646_v22 = vld [vmem:[%s17084_s1 + $0x1008] ss:$12 sps:$4 sm:$0xff]  }
 0x2ba   :  { %v690_v18 = vsel %vm249_vm0, %v675_v35, %v17360_v59  ;;  %v738_v25 = vmax.bf16 %v689_v37, %v621_v6  ;;  %v11641_v6 = vld [vmem:[%s17084_s1 + $0xff0] ss:$12 sps:$4 sm:$0xff]   ;;  %v9953_v21 = vadd.f32 %v9952_v20, %v9951_v39  ;;  %v9954_v27 = vpop.f32.mrb[218].mxu1  ;;  %10253 = vmatprep.subr.bf16.mxu1 %v11691_v28  ;;  %v625_v63 = vmax.bf16 %v599_v15, %v15624_v10  ;;  %v17365_v10 = vld [vmem:[#allocation19_spill] sm:$0xff]  ;;  %v11905_v59 = vld [vmem:[%s17085_s0 + $0x560] sm:$0xff] }
 0x2bb   :  { %v740_v38 = vmax.bf16 %v690_v18, %v623_v19  ;;  %v9955_v12 = vpop.f32.mrb[219].mxu1  ;;  %8351 = vmatmul.mubr.bf16.gmra.mrb[68].mxu1 %v16220_v23  ;;  %7023 = vmatpush1.bf16.msra.mxu0 %v11641_v6  ;;  %v11654_v4 = vld [vmem:[%s17084_s1 + $0x1024] ss:$12 sps:$4 sm:$0xff]   ;;  %v677_v18 = vrot.slane %v11905_v59, 4  ;;  %v16271_v28 = vcombine.low %v16173_v5, %v16179_v53  ;;  %v11652_v15 = vld [vmem:[%s17084_s1 + $0x1020] ss:$12 sps:$4 sm:$0xff]  }
 0x2bc   :  { %v764_v19 = vmax.bf16 %v738_v25, %v167_v45  ;;  %v16235_v45 = vadd.f32 %v9953_v21, %v17363_v8  ;;  %7024 = vmatprep.subr.bf16.mxu0 %v11648_v30  ;;  %8358 = vmatprep.mubr.bf16.mxu1 %v16232_v26  ;;  %v9957_v50 = vpop.f32.mrb[220].mxu1  ;;  %v17367_v25 = vld [vmem:[#allocation48_spill] sm:$0xff]  ;;  %v16279_v21 = vcombine.high %v11905_v59, %v11905_v59  ;;  %v17369_v30 = vld [vmem:[#allocation39_spill] sm:$0xff] }
 0x2bd   :  { %v766_v35 = vmax.bf16 %v740_v38, %v181_v55  ;;  %v9956_v55 = vadd.f32 %v9955_v12, %v9954_v27  ;;  %6993 = vmatprep.mubr.bf16.mxu0 %v17366_v48  ;;  %v17368_v38 = vrot.slane %v17367_v25, 4  ;;  %v9958_v16 = vpop.f32.mrb[221].mxu1  ;;  %v16284_v5 = vld [vmem:[%s17085_s0 + $0x570] sm:$0xff]  ;;  %v16306_v8 = vcombine.low %v11905_v59, %v11905_v59 }
 0x2be   :  { %v800_v34 = vunpack.c.l.bf16 %v764_v19  ;;  %v801_v43 = vunpack.c.h.bf16 %v764_v19  ;;  %v9959_v6 = vadd.f32 %v9958_v16, %v9957_v50  ;;  %v9960_v19 = vpop.f32.mrb[222].mxu1  ;;  %v11663_v2 = vld [vmem:[%s17084_s1 + $0x1050] ss:$12 sps:$4 sm:$0xff]   ;;  %v11668_v25 = vld [vmem:[%s17084_s1 + $0x1068] ss:$12 sps:$4 sm:$0xff]  }
 0x2bf   :  { %v803_v31 = vunpack.c.l.bf16 %v766_v35  ;;  %v804_v11 = vunpack.c.h.bf16 %v766_v35  ;;  %v16256_v37 = vadd.f32 %v9956_v55, %v17365_v10  ;;  %v691_v39 = vsel %vm249_vm0, %v677_v18, %v17368_v38  ;;  %7025 = vmatpush1.bf16.msra.mxu0 %v11646_v22  ;;  %v11659_v35 = vld [vmem:[%s17084_s1 + $0x103c] ss:$12 sps:$4 sm:$0xff]   ;;  %v9961_v53 = vpop.f32.mrb[223].mxu1 }
 0x2c0   :  { %839 = vst [vmem:[%s17086_s3 + $0x1e0] sm:$0xff] %v800_v34  ;;  %840 = vst [vmem:[%s17086_s3 + $0x1e8] sm:$0xff] %v801_v43  ;;  %v742_v20 = vmax.bf16 %v691_v39, %v625_v63  ;;  %7026 = vmatprep.subr.bf16.mxu0 %v11654_v4  ;;  %v16288_v12 = vadd.f32 %v9959_v6, %v17369_v30  ;;  %v11657_v34 = vld [vmem:[%s17084_s1 + $0x1038] ss:$12 sps:$4 sm:$0xff]   ;;  %v11909_v53 = vld [vmem:[%s17085_s0 + $0x19c] sm:$0xff] }
 0x2c1   :  { %842 = vst [vmem:[%s17086_s3 + $0x210] sm:$0xff] %v803_v31  ;;  %843 = vst [vmem:[%s17086_s3 + $0x218] sm:$0xff] %v804_v11  ;;  %6994 = vmatmul.mubr.bf16.gmra.mrb[24].mxu0 %v15700_v60  ;;  %v11665_v11 = vld [vmem:[%s17084_s1 + $0x1054] ss:$12 sps:$4 sm:$0xff]   ;;  %v11906_v10 = vld [vmem:[%s17085_s0 + $0x58] sm:$0xff] }
 0x2c2   :  { %v768_v27 = vmax.bf16 %v742_v20, %v16284_v5  ;;  %7034 = vmatprep.mubr.bf16.mxu0 %v15721_v33  ;;  %v11670_v33 = vld [vmem:[%s17084_s1 + $0x106c] ss:$12 sps:$4 sm:$0xff]   ;;  %v11907_v4 = vld [vmem:[%s17085_s0 + $0xc4] sm:$0xff] }
 0x2c3   :  { %8359 = vmatmul.mubr.bf16.gmra.mrb[72].mxu1 %v16271_v28  ;;  %7027 = vmatpush1.bf16.msra.mxu0 %v11652_v15  ;;  %v9979_v60 = vpop.f32.mrb[224].mxu1  ;;  %v16320_v59 = vcombine.high %v11906_v10, %v11907_v4  ;;  %v11676_v39 = vld [vmem:[%s17084_s1 + $0x1084] ss:$12 sps:$4 sm:$0xff]   ;;  %v16336_v16 = vcombine.low %v11906_v10, %v11907_v4  ;;  %v11674_v20 = vld [vmem:[%s17084_s1 + $0x1080] ss:$12 sps:$4 sm:$0xff]  }
 0x2c4   :  { %v806_v43 = vunpack.c.l.bf16 %v768_v27  ;;  %v807_v31 = vunpack.c.h.bf16 %v768_v27  ;;  %7028 = vmatprep.subr.bf16.mxu0 %v11659_v35  ;;  %8366 = vmatprep.mubr.bf16.mxu1 %v16279_v21  ;;  %v9980_v55 = vpop.f32.mrb[225].mxu1  ;;  %v11908_v35 = vld [vmem:[%s17085_s0 + $0x130] sm:$0xff]  ;;  %v11686_v4 = vld [vmem:[%s17084_s1 + $0x10cc] ss:$12 sps:$4 sm:$0xff]  }
 0x2c5   :  { %v9981_v63 = vadd.f32 %v9980_v55, %v9979_v60  ;;  %v9982_v22 = vpop.f32.mrb[226].mxu1  ;;  %v16350_v27 = vcombine.high %v11908_v35, %v11909_v53  ;;  %v11677_v60 = vld [vmem:[%s17084_s1 + $0x1098] ss:$12 sps:$4 sm:$0xff]  }
 0x2c6   :  { %845 = vst [vmem:[%s17086_s3 + $0x240] sm:$0xff] %v806_v43  ;;  %846 = vst [vmem:[%s17086_s3 + $0x248] sm:$0xff] %v807_v31  ;;  %v9983_v18 = vpop.f32.mrb[227].mxu1 }
 0x2c7   :  { %7029 = vmatpush1.bf16.msra.mxu0 %v11657_v34  ;;  %v16323_v48 = vadd.f32 %v9981_v63, %v15739_v54  ;;  %v9984_v50 = vadd.f32 %v9983_v18, %v9982_v22  ;;  %v11692_v34 = vld [vmem:[%s17084_s1 + $0x1208] ss:$12 sps:$4 sm:$0xff]   ;;  %v16380_v63 = vcombine.low %v11908_v35, %v11909_v53 }
 0x2c8   :  { %7030 = vmatprep.subr.bf16.mxu0 %v11665_v11  ;;  %v11700_v11 = vld [vmem:[%s17084_s1 + $0x12e0] ss:$12 sps:$4 sm:$0xff]  }
 0x2c9   :  { %v16330_v38 = vadd.f32 %v9984_v50, %v15748_v7  ;;  %v11679_v7 = vld [vmem:[%s17084_s1 + $0x109c] ss:$12 sps:$4 sm:$0xff]   ;;  %v11911_v50 = vld [vmem:[%s17085_s0 + $0x274] sm:$0xff] }
 0x2ca   :  { %v11910_v18 = vld [vmem:[%s17085_s0 + $0x208] sm:$0xff] }
 0x2cb   :  { %8367 = vmatmul.mubr.bf16.gmra.mrb[76].mxu1 %v16306_v8  ;;  %7031 = vmatpush1.bf16.msra.mxu0 %v11663_v2  ;;  %v9985_v54 = vpop.f32.mrb[228].mxu1  ;;  %v16424_v53 = vcombine.low %v11910_v18, %v11911_v50 }
 0x2cc   :  { %7032 = vmatprep.subr.bf16.mxu0 %v11670_v33  ;;  %8406 = vmatprep.mubr.bf16.mxu1 %v16320_v59  ;;  %v9986_v15 = vpop.f32.mrb[229].mxu1  ;;  %v11681_v33 = vld [vmem:[%s17084_s1 + $0x10b0] ss:$12 sps:$4 sm:$0xff]  }
 0x2cd   :  { %v9987_v6 = vadd.f32 %v9986_v15, %v9985_v54  ;;  %v9988_v19 = vpop.f32.mrb[230].mxu1  ;;  %v11710_v54 = vld [vmem:[%s17084_s1 + $0x1238] ss:$12 sps:$4 sm:$0xff]  }
 0x2ce   :  { %v9989_v30 = vpop.f32.mrb[231].mxu1 }
 0x2cf   :  { %7033 = vmatpush1.bf16.msra.mxu0 %v11668_v25  ;;  %v16356_v43 = vadd.f32 %v9987_v6, %v15842_v56  ;;  %v9990_v31 = vadd.f32 %v9989_v30, %v9988_v19  ;;  %v11701_v56 = vld [vmem:[%s17084_s1 + $0x1220] ss:$12 sps:$4 sm:$0xff]   ;;  %v16394_v25 = vcombine.high %v11910_v18, %v11911_v50  ;;  %v11714_v6 = vld [vmem:[%s17084_s1 + $0x1310] ss:$12 sps:$4 sm:$0xff]   ;;  %v11684_v19 = vld [vmem:[%s17084_s1 + $0x10c8] ss:$12 sps:$4 sm:$0xff]  }
 0x2d0   :  { %7103 = vmatprep.subr.bf16.mxu0 %v11676_v39 }
 0x2d1   :  { %v16367_v55 = vadd.f32 %v9990_v31, %v15854_v57  ;;  %v11709_v57 = vld [vmem:[%s17084_s1 + $0x12f8] ss:$12 sps:$4 sm:$0xff]  }
 0x2d2   :  { %7035 = vmatmul.mubr.bf16.vlgmr.msra.gmra.mrb[0].mxu0 %v15782_v58  ;;  %v11683_v58 = vld [vmem:[%s17084_s1 + $0x10b4] ss:$12 sps:$4 sm:$0xff]  }
 0x2d3   :  { %8407 = vmatmul.mubr.bf16.vlgmr.msra.gmra.mrb[80].mxu1 %v16336_v16  ;;  %7104 = vmatpush1.bf16.msra.mxu0 %v11674_v20  ;;  %v9991_v2 = vpop.f32.mrb[232].mxu1 }
 0x2d4   :  { %7105 = vmatprep.subr.bf16.mxu0 %v11679_v7  ;;  %8414 = vmatprep.mubr.bf16.mxu1 %v16350_v27  ;;  %v9992_v22 = vpop.f32.mrb[233].mxu1 }
 0x2d5   :  { %7044 = vmatprep.mubr.bf16.mxu0 %v15819_v32  ;;  %10254 = vmatpush3.bf16.msra.mxu1 %v11692_v34  ;;  %v9993_v32 = vadd.f32 %v9992_v22, %v9991_v2  ;;  %v9994_v10 = vpop.f32.mrb[234].mxu1  ;;  %v11688_v34 = vld [vmem:[%s17084_s1 + $0x10e0] ss:$12 sps:$4 sm:$0xff]  }
 0x2d6   :  { %10255 = vmatprep.subr.bf16.mxu1 %v11700_v11  ;;  %v9995_v39 = vpop.f32.mrb[235].mxu1  ;;  %v11695_v11 = vld [vmem:[%s17084_s1 + $0x10fc] ss:$12 sps:$4 sm:$0xff]  }
 0x2d7   :  { %7106 = vmatpush1.bf16.msra.mxu0 %v11677_v60  ;;  %v16400_v15 = vadd.f32 %v9993_v32, %v15956_v46  ;;  %v9996_v20 = vadd.f32 %v9995_v39, %v9994_v10  ;;  %v11715_v46 = vld [vmem:[%s17084_s1 + $0x1250] ss:$12 sps:$4 sm:$0xff]   ;;  %v11912_v60 = vld [vmem:[%s17085_s0 + $0x2e0] sm:$0xff] }
 0x2d8   :  { %7107 = vmatprep.subr.bf16.mxu0 %v11683_v58  ;;  %v11913_v58 = vld [vmem:[%s17085_s0 + $0x34c] sm:$0xff]  ;;  %v11693_v10 = vld [vmem:[%s17084_s1 + $0x10f8] ss:$12 sps:$4 sm:$0xff]  }
 0x2d9   :  { %10256 = vmatpush3.bf16.msra.mxu1 %v11701_v56  ;;  %v16411_v7 = vadd.f32 %v9996_v20, %v15968_v29  ;;  %v11720_v29 = vld [vmem:[%s17084_s1 + $0x1328] ss:$12 sps:$4 sm:$0xff]   ;;  %v16438_v56 = vcombine.high %v11912_v60, %v11913_v58  ;;  %v11725_v32 = vld [vmem:[%s17084_s1 + $0x1340] ss:$12 sps:$4 sm:$0xff]   ;;  %v16468_v50 = vcombine.low %v11912_v60, %v11913_v58 }
 0x2da   :  { %7045 = vmatmul.mubr.bf16.gmra.mrb[4].mxu0 %v15893_v42  ;;  %10257 = vmatprep.subr.bf16.mxu1 %v11709_v57  ;;  %v11690_v42 = vld [vmem:[%s17084_s1 + $0x10e4] ss:$12 sps:$4 sm:$0xff]   ;;  %v11721_v57 = vld [vmem:[%s17084_s1 + $0x1268] ss:$12 sps:$4 sm:$0xff]  }
 0x2db   :  { %8415 = vmatmul.mubr.bf16.gmra.mrb[84].mxu1 %v16380_v63  ;;  %7108 = vmatpush1.bf16.msra.mxu0 %v11681_v33  ;;  %v9997_v35 = vpop.f32.mrb[236].mxu1 }
 0x2dc   :  { %7109 = vmatprep.subr.bf16.mxu0 %v11686_v4  ;;  %8422 = vmatprep.mubr.bf16.mxu1 %v16394_v25  ;;  %v9998_v30 = vpop.f32.mrb[237].mxu1 }
 0x2dd   :  { %7054 = vmatprep.mubr.bf16.mxu0 %v15933_v61  ;;  %10258 = vmatpush3.bf16.msra.mxu1 %v11710_v54  ;;  %v9999_v61 = vadd.f32 %v9998_v30, %v9997_v35  ;;  %v10000_v31 = vpop.f32.mrb[238].mxu1  ;;  %v11697_v54 = vld [vmem:[%s17084_s1 + $0x1110] ss:$12 sps:$4 sm:$0xff]  }
 0x2de   :  { %10259 = vmatprep.subr.bf16.mxu1 %v11714_v6  ;;  %v10001_v2 = vpop.f32.mrb[239].mxu1  ;;  %v11704_v6 = vld [vmem:[%s17084_s1 + $0x112c] ss:$12 sps:$4 sm:$0xff]  }
 0x2df   :  { %7110 = vmatpush1.bf16.msra.mxu0 %v11684_v19  ;;  %v16444_v22 = vadd.f32 %v9999_v61, %v16067_v36  ;;  %v10002_v33 = vadd.f32 %v10001_v2, %v10000_v31  ;;  %v11726_v36 = vld [vmem:[%s17084_s1 + $0x1280] ss:$12 sps:$4 sm:$0xff]   ;;  %v11914_v19 = vld [vmem:[%s17085_s0 + $0x3b8] sm:$0xff]  ;;  %v11702_v31 = vld [vmem:[%s17084_s1 + $0x1128] ss:$12 sps:$4 sm:$0xff]  }
 0x2e0   :  { %7111 = vmatprep.subr.bf16.mxu0 %v11690_v42  ;;  %v11915_v42 = vld [vmem:[%s17085_s0 + $0x424] sm:$0xff]  ;;  %v11736_v61 = vld [vmem:[%s17084_s1 + $0x1370] ss:$12 sps:$4 sm:$0xff]   ;;  %v11706_v2 = vld [vmem:[%s17084_s1 + $0x1140] ss:$12 sps:$4 sm:$0xff]  }
 0x2e1   :  { %10260 = vmatpush3.bf16.msra.mxu1 %v11715_v46  ;;  %v16455_v4 = vadd.f32 %v10002_v33, %v16079_v17  ;;  %v11731_v17 = vld [vmem:[%s17084_s1 + $0x1358] ss:$12 sps:$4 sm:$0xff]   ;;  %v16482_v46 = vcombine.high %v11914_v19, %v11915_v42  ;;  %v16509_v58 = vcombine.low %v11914_v19, %v11915_v42  ;;  %v11717_v19 = vld [vmem:[%s17084_s1 + $0x1170] ss:$12 sps:$4 sm:$0xff]  }
 0x2e2   :  { %7055 = vmatmul.mubr.bf16.gmra.mrb[8].mxu0 %v16007_v1  ;;  %10261 = vmatprep.subr.bf16.mxu1 %v11720_v29  ;;  %v11699_v1 = vld [vmem:[%s17084_s1 + $0x1114] ss:$12 sps:$4 sm:$0xff]   ;;  %v11732_v29 = vld [vmem:[%s17084_s1 + $0x1298] ss:$12 sps:$4 sm:$0xff]  }
 0x2e3   :  { %8423 = vmatmul.mubr.bf16.gmra.mrb[88].mxu1 %v16424_v53  ;;  %7112 = vmatpush1.bf16.msra.mxu0 %v11688_v34  ;;  %v10003_v18 = vpop.f32.mrb[240].mxu1 }
 0x2e4   :  { %7113 = vmatprep.subr.bf16.mxu0 %v11695_v11  ;;  %8430 = vmatprep.mubr.bf16.mxu1 %v16438_v56  ;;  %v10004_v39 = vpop.f32.mrb[241].mxu1 }
 0x2e5   :  { %7064 = vmatprep.mubr.bf16.mxu0 %v16047_v47  ;;  %10262 = vmatpush3.bf16.msra.mxu1 %v11721_v57  ;;  %v10005_v47 = vadd.f32 %v10004_v39, %v10003_v18  ;;  %v10006_v20 = vpop.f32.mrb[242].mxu1  ;;  %v11921_v39 = vmov 0.0  }
 0x2e6   :  { %10263 = vmatprep.subr.bf16.mxu1 %v11725_v32  ;;  %v10007_v35 = vpop.f32.mrb[243].mxu1  ;;  %v11916_v32 = vld [vmem:[%s17085_s0 + $0x490] sm:$0xff] }
 0x2e7   :  { %7114 = vmatpush1.bf16.msra.mxu0 %v11693_v10  ;;  %v16488_v30 = vadd.f32 %v10005_v47, %v16164_v49  ;;  %v10008_v34 = vadd.f32 %v10007_v35, %v10006_v20  ;;  %v11737_v49 = vld [vmem:[%s17084_s1 + $0x12b0] ss:$12 sps:$4 sm:$0xff]   ;;  %v11724_v35 = vld [vmem:[%s17084_s1 + $0x118c] ss:$12 sps:$4 sm:$0xff]  }
 0x2e8   :  { %7115 = vmatprep.subr.bf16.mxu0 %v11699_v1  ;;  %v11917_v10 = vld [vmem:[%s17085_s0 + $0x4fc] sm:$0xff] }
 0x2e9   :  { %10264 = vmatpush3.bf16.msra.mxu1 %v11726_v36  ;;  %v16499_v11 = vadd.f32 %v10008_v34, %v16187_v51  ;;  %v16523_v1 = vcombine.high %v11916_v32, %v11917_v10  ;;  %v16542_v20 = vcombine.low %v11916_v32, %v11917_v10  ;;  %v11733_v32 = vld [vmem:[%s17084_s1 + $0x11b8] ss:$12 sps:$4 sm:$0xff]  }
 0x2ea   :  { %7065 = vmatmul.mubr.bf16.gmra.mrb[12].mxu0 %v16127_v24  ;;  %10265 = vmatprep.subr.bf16.mxu1 %v11731_v17  ;;  %v11708_v24 = vld [vmem:[%s17084_s1 + $0x1144] ss:$12 sps:$4 sm:$0xff]  }
 0x2eb   :  { %8431 = vmatmul.mubr.bf16.gmra.mrb[92].mxu1 %v16468_v50  ;;  %7116 = vmatpush1.bf16.msra.mxu0 %v11697_v54  ;;  %v10009_v60 = vpop.f32.mrb[244].mxu1  ;;  %v11711_v54 = vld [vmem:[%s17084_s1 + $0x1158] ss:$12 sps:$4 sm:$0xff]  }
 0x2ec   :  { %7117 = vmatprep.subr.bf16.mxu0 %v11704_v6  ;;  %8438 = vmatprep.mubr.bf16.mxu1 %v16482_v46  ;;  %v10010_v51 = vpop.f32.mrb[245].mxu1 }
 0x2ed   :  { %7074 = vmatprep.mubr.bf16.mxu0 %v16147_v52  ;;  %10266 = vmatpush3.bf16.msra.mxu1 %v11732_v29  ;;  %v10011_v57 = vadd.f32 %v10010_v51, %v10009_v60  ;;  %v10012_v33 = vpop.f32.mrb[246].mxu1  ;;  %v11713_v52 = vld [vmem:[%s17084_s1 + $0x115c] ss:$12 sps:$4 sm:$0xff]   ;;  %v11728_v60 = vld [vmem:[%s17084_s1 + $0x11a0] ss:$12 sps:$4 sm:$0xff]  }
 0x2ee   :  { %10267 = vmatprep.subr.bf16.mxu1 %v11736_v61  ;;  %v10013_v36 = vpop.f32.mrb[247].mxu1 }
 0x2ef   :  { %7118 = vmatpush1.bf16.msra.mxu0 %v11702_v31  ;;  %v16526_v18 = vadd.f32 %v10011_v57, %v16235_v45  ;;  %v10014_v17 = vadd.f32 %v10013_v36, %v10012_v33  ;;  %v11722_v31 = vld [vmem:[%s17084_s1 + $0x1188] ss:$12 sps:$4 sm:$0xff]  }
 0x2f0   :  { %7119 = vmatprep.subr.bf16.mxu0 %v11708_v24  ;;  %v11730_v24 = vld [vmem:[%s17084_s1 + $0x11a4] ss:$12 sps:$4 sm:$0xff]   ;;  %v11735_v57 = vld [vmem:[%s17084_s1 + $0x11bc] ss:$12 sps:$4 sm:$0xff]  }
 0x2f1   :  { %10268 = vmatpush3.bf16.msra.mxu1 %v11737_v49  ;;  %v16535_v47 = vadd.f32 %v10014_v17, %v16256_v37  ;;  %v17370_v36 = vld [vmem:[#allocation32_spill] sm:$0xff] }
 0x2f2   :  { %7075 = vmatmul.mubr.bf16.gmra.mrb[16].mxu0 %v16220_v23  ;;  %10326 = vmatprep.subr.bf16.mxu1 %v11921_v39  ;;  %v11719_v23 = vld [vmem:[%s17084_s1 + $0x1174] ss:$12 sps:$4 sm:$0xff]  }
 0x2f3   :  { %8439 = vmatmul.mubr.bf16.gmra.mrb[96].mxu1 %v16509_v58  ;;  %7120 = vmatpush1.bf16.msra.mxu0 %v11706_v2  ;;  %v10015_v45 = vpop.f32.mrb[248].mxu1 }
 0x2f4   :  { %7121 = vmatprep.subr.bf16.mxu0 %v11713_v52  ;;  %8446 = vmatprep.mubr.bf16.mxu1 %v16523_v1  ;;  %v10016_v6 = vpop.f32.mrb[249].mxu1 }
 0x2f5   :  { %7084 = vmatprep.mubr.bf16.mxu0 %v16232_v26  ;;  %v10017_v37 = vadd.f32 %v10016_v6, %v10015_v45  ;;  %v10018_v42 = vpop.f32.mrb[250].mxu1  ;;  %v11918_v26 = vld [vmem:[%s17085_s0 + $0x568] sm:$0xff] }
 0x2f6   :  { %v16553_v29 = vcombine.high %v11918_v26, %v11918_v26  ;;  %v10019_v34 = vpop.f32.mrb[251].mxu1  ;;  %v16568_v49 = vcombine.low %v11918_v26, %v11918_v26  ;;  %v17371_v42 = vld [vmem:[#allocation35_spill] sm:$0xff] }
 0x2f7   :  { %7122 = vmatpush1.bf16.msra.mxu0 %v11711_v54  ;;  %v16556_v61 = vadd.f32 %v10017_v37, %v16288_v12  ;;  %v11740_v54 = vld [vmem:[%s17084_s1 + $0x11d0] ss:$12 sps:$4 sm:$0xff]   ;;  %v17372_v34 = vld [vmem:[#allocation42_spill] sm:$0xff] }
 0x2f8   :  { %7123 = vmatprep.subr.bf16.mxu0 %v11719_v23 }
 0x2fa   :  { %7085 = vmatmul.mubr.bf16.gmra.mrb[20].mxu0 %v16271_v28 }
 0x2fb   :  { %8447 = vmatmul.mubr.bf16.gmra.mrb[100].mxu1 %v16542_v20  ;;  %7124 = vmatpush1.bf16.msra.mxu0 %v11717_v19  ;;  %v10037_v12 = vpop.f32.mrb[252].mxu1  ;;  %v11759_v19 = vld [vmem:[%s17084_s1 + $0x1388] ss:$12 sps:$4 sm:$0xff]  }
 0x2fc   :  { %7125 = vmatprep.subr.bf16.mxu0 %v11724_v35  ;;  %8454 = vmatprep.mubr.bf16.mxu1 %v16553_v29  ;;  %v10038_v28 = vpop.f32.mrb[253].mxu1  ;;  %v11743_v35 = vld [vmem:[%s17084_s1 + $0x11e8] ss:$12 sps:$4 sm:$0xff]  }
 0x2fd   :  { %7094 = vmatprep.mubr.bf16.mxu0 %v16279_v21  ;;  %v10039_v51 = vadd.f32 %v10038_v28, %v10037_v12  ;;  %v10040_v2 = vpop.f32.mrb[254].mxu1 }
 0x2fe   :  { %v10041_v33 = vpop.f32.mrb[255].mxu1 }
 0x2ff   :  { %7126 = vmatpush1.bf16.msra.mxu0 %v11722_v31  ;;  %v16577_v52 = vadd.f32 %v10039_v51, %v16323_v48  ;;  %v10042_v21 = vadd.f32 %v10041_v33, %v10040_v2  ;;  %v11742_v48 = vld [vmem:[%s17084_s1 + $0x11d4] ss:$12 sps:$4 sm:$0xff]   ;;  %v11750_v31 = vld [vmem:[%s17084_s1 + $0x1204] ss:$12 sps:$4 sm:$0xff]   ;;  %v11753_v51 = vld [vmem:[%s17084_s1 + $0x121c] ss:$12 sps:$4 sm:$0xff]  }
 0x300   :  { %7127 = vmatprep.subr.bf16.mxu0 %v11730_v24 }
 0x301   :  { %v16585_v10 = vadd.f32 %v10042_v21, %v16330_v38  ;;  %v11745_v38 = vld [vmem:[%s17084_s1 + $0x11ec] ss:$12 sps:$4 sm:$0xff]  }
 0x302   :  { %7095 = vmatmul.mubr.bf16.gmra.mrb[24].mxu0 %v16306_v8 }
 0x303   :  { %8455 = vmatmul.mubr.bf16.gmra.mrb[104].mxu1 %v16568_v49  ;;  %7128 = vmatpush1.bf16.msra.mxu0 %v11728_v60  ;;  %v10043_v8 = vpop.f32.mrb[0].mxu1 }
 0x304   :  { %7129 = vmatprep.subr.bf16.mxu0 %v11735_v57  ;;  %8494 = vmatprep.mubr.bf16.mxu1 %v17370_v36  ;;  %v10044_v17 = vpop.f32.mrb[1].mxu1  ;;  %v11777_v57 = vld [vmem:[%s17084_s1 + $0x13b8] ss:$12 sps:$4 sm:$0xff]  }
 0x305   :  { %7135 = vmatprep.mubr.bf16.mxu0 %v16320_v59  ;;  %v10045_v23 = vadd.f32 %v10044_v17, %v10043_v8  ;;  %v10046_v45 = vpop.f32.mrb[2].mxu1 }
 0x306   :  { %v10047_v6 = vpop.f32.mrb[3].mxu1 }
 0x307   :  { %7130 = vmatpush1.bf16.msra.mxu0 %v11733_v32  ;;  %v16602_v59 = vadd.f32 %v10045_v23, %v16356_v43  ;;  %v10048_v37 = vadd.f32 %v10047_v6, %v10046_v45  ;;  %v11768_v43 = vld [vmem:[%s17084_s1 + $0x13a0] ss:$12 sps:$4 sm:$0xff]   ;;  %v11751_v32 = vld [vmem:[%s17084_s1 + $0x1218] ss:$12 sps:$4 sm:$0xff]  }
 0x308   :  { %7131 = vmatprep.subr.bf16.mxu0 %v11742_v48 }
 0x309   :  { %v16609_v26 = vadd.f32 %v10048_v37, %v16367_v55  ;;  %v11748_v55 = vld [vmem:[%s17084_s1 + $0x1200] ss:$12 sps:$4 sm:$0xff]   ;;  %v11760_v37 = vld [vmem:[%s17084_s1 + $0x1248] ss:$12 sps:$4 sm:$0xff]  }
 0x30b   :  { %8495 = vmatmul.mubr.bf16.vlgmr.msra.gmra.mrb[108].mxu1 %v17371_v42  ;;  %7132 = vmatpush1.bf16.msra.mxu0 %v11740_v54  ;;  %v10049_v24 = vpop.f32.mrb[4].mxu1 }
 0x30c   :  { %7133 = vmatprep.subr.bf16.mxu0 %v11745_v38  ;;  %8502 = vmatprep.mubr.bf16.mxu1 %v17372_v34  ;;  %v10050_v12 = vpop.f32.mrb[5].mxu1  ;;  %v11787_v38 = vld [vmem:[%s17084_s1 + $0x13e8] ss:$12 sps:$4 sm:$0xff]  }
 0x30d   :  { %10327 = vmatpush3.bf16.msra.mxu1 %v11759_v19  ;;  %v10051_v28 = vadd.f32 %v10050_v12, %v10049_v24  ;;  %v10052_v60 = vpop.f32.mrb[6].mxu1 }
 0x30e   :  { %10328 = vmatprep.subr.bf16.mxu1 %v11921_v39  ;;  %v10053_v2 = vpop.f32.mrb[7].mxu1 }
 0x30f   :  { %7134 = vmatpush1.bf16.msra.mxu0 %v11743_v35  ;;  %v16629_v33 = vadd.f32 %v10051_v28, %v16400_v15  ;;  %v10054_v21 = vadd.f32 %v10053_v2, %v10052_v60  ;;  %v11758_v15 = vld [vmem:[%s17084_s1 + $0x1234] ss:$12 sps:$4 sm:$0xff]   ;;  %v11797_v28 = vld [vmem:[%s17084_s1 + $0x1418] ss:$12 sps:$4 sm:$0xff]  }
 0x310   :  { %7204 = vmatprep.subr.bf16.mxu0 %v11750_v31  ;;  %v11769_v2 = vld [vmem:[%s17084_s1 + $0x1278] ss:$12 sps:$4 sm:$0xff]  }
 0x311   :  { %10329 = vmatpush3.bf16.msra.mxu1 %v11768_v43  ;;  %v16638_v48 = vadd.f32 %v10054_v21, %v16411_v7  ;;  %v11756_v7 = vld [vmem:[%s17084_s1 + $0x1230] ss:$12 sps:$4 sm:$0xff]  }
 0x312   :  { %7136 = vmatmul.mubr.bf16.vlgmr.msra.gmra.mrb[0].mxu0 %v16336_v16  ;;  %10330 = vmatprep.subr.bf16.mxu1 %v11921_v39  ;;  %v11781_v16 = vld [vmem:[%s17084_s1 + $0x13d0] ss:$12 sps:$4 sm:$0xff]  }
 0x313   :  { %8503 = vmatmul.mubr.bf16.gmra.mrb[112].mxu1 %v15732_v44  ;;  %7205 = vmatpush1.bf16.msra.mxu0 %v11748_v55  ;;  %v10055_v8 = vpop.f32.mrb[8].mxu1 }
 0x314   :  { %7206 = vmatprep.subr.bf16.mxu0 %v11753_v51  ;;  %8510 = vmatprep.mubr.bf16.mxu1 %v15823_v40  ;;  %v10056_v17 = vpop.f32.mrb[9].mxu1 }
 0x315   :  { %7145 = vmatprep.mubr.bf16.mxu0 %v16350_v27  ;;  %10331 = vmatpush3.bf16.msra.mxu1 %v11777_v57  ;;  %v10057_v54 = vadd.f32 %v10056_v17, %v10055_v8  ;;  %v10058_v23 = vpop.f32.mrb[10].mxu1  ;;  %v11762_v27 = vld [vmem:[%s17084_s1 + $0x124c] ss:$12 sps:$4 sm:$0xff]  }
 0x316   :  { %10332 = vmatprep.subr.bf16.mxu1 %v11921_v39  ;;  %v10059_v45 = vpop.f32.mrb[11].mxu1 }
 0x317   :  { %7207 = vmatpush1.bf16.msra.mxu0 %v11751_v32  ;;  %v16659_v6 = vadd.f32 %v10057_v54, %v16444_v22  ;;  %v10060_v19 = vadd.f32 %v10059_v45, %v10058_v23  ;;  %v11767_v22 = vld [vmem:[%s17084_s1 + $0x1264] ss:$12 sps:$4 sm:$0xff]   ;;  %v11778_v54 = vld [vmem:[%s17084_s1 + $0x12a8] ss:$12 sps:$4 sm:$0xff]   ;;  %v11784_v45 = vld [vmem:[%s17084_s1 + $0x12c0] ss:$12 sps:$4 sm:$0xff]  }
 0x318   :  { %7208 = vmatprep.subr.bf16.mxu0 %v11758_v15 }
 0x319   :  { %10333 = vmatpush3.bf16.msra.mxu1 %v11781_v16  ;;  %v16668_v35 = vadd.f32 %v10060_v19, %v16455_v4  ;;  %v11765_v4 = vld [vmem:[%s17084_s1 + $0x1260] ss:$12 sps:$4 sm:$0xff]   ;;  %v11790_v19 = vld [vmem:[%s17084_s1 + $0x12dc] ss:$12 sps:$4 sm:$0xff]  }
 0x31a   :  { %7146 = vmatmul.mubr.bf16.gmra.mrb[4].mxu0 %v16380_v63  ;;  %10334 = vmatprep.subr.bf16.mxu1 %v11921_v39  ;;  %v11791_v63 = vld [vmem:[%s17084_s1 + $0x1400] ss:$12 sps:$4 sm:$0xff]  }
 0x31b   :  { %8511 = vmatmul.mubr.bf16.gmra.mrb[116].mxu1 %v15835_v14  ;;  %7209 = vmatpush1.bf16.msra.mxu0 %v11756_v7  ;;  %v10061_v31 = vpop.f32.mrb[12].mxu1 }
 0x31c   :  { %7210 = vmatprep.subr.bf16.mxu0 %v11762_v27  ;;  %8518 = vmatprep.mubr.bf16.mxu1 %v15937_v41  ;;  %v10062_v43 = vpop.f32.mrb[13].mxu1 }
 0x31d   :  { %7155 = vmatprep.mubr.bf16.mxu0 %v16394_v25  ;;  %10335 = vmatpush3.bf16.msra.mxu1 %v11787_v38  ;;  %v10063_v24 = vadd.f32 %v10062_v43, %v10061_v31  ;;  %v10064_v12 = vpop.f32.mrb[14].mxu1  ;;  %v11771_v25 = vld [vmem:[%s17084_s1 + $0x127c] ss:$12 sps:$4 sm:$0xff]   ;;  %v11796_v31 = vld [vmem:[%s17084_s1 + $0x12f4] ss:$12 sps:$4 sm:$0xff]  }
 0x31e   :  { %10336 = vmatprep.subr.bf16.mxu1 %v11921_v39  ;;  %v10065_v55 = vpop.f32.mrb[15].mxu1 }
 0x31f   :  { %7211 = vmatpush1.bf16.msra.mxu0 %v11760_v37  ;;  %v16689_v60 = vadd.f32 %v10063_v24, %v16488_v30  ;;  %v10066_v51 = vadd.f32 %v10065_v55, %v10064_v12  ;;  %v11776_v30 = vld [vmem:[%s17084_s1 + $0x1294] ss:$12 sps:$4 sm:$0xff]   ;;  %v16739_v37 = vcombine.high %v16284_v5, %v16284_v5 }
 0x320   :  { %7212 = vmatprep.subr.bf16.mxu0 %v11767_v22 }
 0x321   :  { %10337 = vmatpush3.bf16.msra.mxu1 %v11791_v63  ;;  %v16698_v57 = vadd.f32 %v10066_v51, %v16499_v11  ;;  %v11774_v11 = vld [vmem:[%s17084_s1 + $0x1290] ss:$12 sps:$4 sm:$0xff]   ;;  %v11788_v63 = vld [vmem:[%s17084_s1 + $0x12d8] ss:$12 sps:$4 sm:$0xff]  }
 0x322   :  { %7156 = vmatmul.mubr.bf16.gmra.mrb[8].mxu0 %v16424_v53  ;;  %10338 = vmatprep.subr.bf16.mxu1 %v11921_v39  ;;  %v11801_v53 = vld [vmem:[%s17084_s1 + $0x1430] ss:$12 sps:$4 sm:$0xff]  }
 0x323   :  { %8519 = vmatmul.mubr.bf16.gmra.mrb[120].mxu1 %v15949_v0  ;;  %7213 = vmatpush1.bf16.msra.mxu0 %v11765_v4  ;;  %v10067_v21 = vpop.f32.mrb[16].mxu1  ;;  %v11794_v4 = vld [vmem:[%s17084_s1 + $0x12f0] ss:$12 sps:$4 sm:$0xff]  }
 0x324   :  { %7214 = vmatprep.subr.bf16.mxu0 %v11771_v25  ;;  %8526 = vmatprep.mubr.bf16.mxu1 %v16051_v9  ;;  %v10068_v32 = vpop.f32.mrb[17].mxu1  ;;  %v11800_v25 = vld [vmem:[%s17084_s1 + $0x130c] ss:$12 sps:$4 sm:$0xff]  }
 0x325   :  { %7165 = vmatprep.mubr.bf16.mxu0 %v16438_v56  ;;  %10339 = vmatpush3.bf16.msra.mxu1 %v11797_v28  ;;  %v10069_v15 = vadd.f32 %v10068_v32, %v10067_v21  ;;  %v10070_v16 = vpop.f32.mrb[18].mxu1  ;;  %v11780_v56 = vld [vmem:[%s17084_s1 + $0x12ac] ss:$12 sps:$4 sm:$0xff]   ;;  %v11807_v21 = vld [vmem:[%s17084_s1 + $0x133c] ss:$12 sps:$4 sm:$0xff]  }
 0x326   :  { %10340 = vmatprep.subr.bf16.mxu1 %v11921_v39  ;;  %v10071_v8 = vpop.f32.mrb[19].mxu1 }
 0x327   :  { %7215 = vmatpush1.bf16.msra.mxu0 %v11769_v2  ;;  %v16716_v17 = vadd.f32 %v10069_v15, %v16526_v18  ;;  %v10072_v7 = vadd.f32 %v10071_v8, %v10070_v16  ;;  %v11786_v18 = vld [vmem:[%s17084_s1 + $0x12c4] ss:$12 sps:$4 sm:$0xff]  }
 0x328   :  { %7216 = vmatprep.subr.bf16.mxu0 %v11776_v30  ;;  %v11802_v30 = vld [vmem:[%s17084_s1 + $0x1320] ss:$12 sps:$4 sm:$0xff]   ;;  %v11805_v16 = vld [vmem:[%s17084_s1 + $0x1338] ss:$12 sps:$4 sm:$0xff]  }
 0x329   :  { %10341 = vmatpush3.bf16.msra.mxu1 %v11801_v53  ;;  %v16724_v23 = vadd.f32 %v10072_v7, %v16535_v47  ;;  %v11808_v7 = vld [vmem:[%s17084_s1 + $0x1350] ss:$12 sps:$4 sm:$0xff]  }
 0x32a   :  { %7166 = vmatmul.mubr.bf16.gmra.mrb[12].mxu0 %v16468_v50 }
 0x32b   :  { %8527 = vmatmul.mubr.bf16.gmra.mrb[124].mxu1 %v16063_v13  ;;  %7217 = vmatpush1.bf16.msra.mxu0 %v11774_v11  ;;  %v10073_v50 = vpop.f32.mrb[20].mxu1 }
 0x32c   :  { %7218 = vmatprep.subr.bf16.mxu0 %v11780_v56  ;;  %8534 = vmatprep.mubr.bf16.mxu1 %v16149_v3  ;;  %v10074_v27 = vpop.f32.mrb[21].mxu1 }
 0x32d   :  { %7175 = vmatprep.mubr.bf16.mxu0 %v16482_v46  ;;  %v10075_v38 = vadd.f32 %v10074_v27, %v10073_v50  ;;  %v10076_v47 = vpop.f32.mrb[22].mxu1 }
 0x32e   :  { %v10077_v22 = vpop.f32.mrb[23].mxu1 }
 0x32f   :  { %7219 = vmatpush1.bf16.msra.mxu0 %v11778_v54  ;;  %v16742_v46 = vadd.f32 %v10075_v38, %v16556_v61  ;;  %v11811_v38 = vld [vmem:[%s17084_s1 + $0x1368] ss:$12 sps:$4 sm:$0xff]  }
 0x330   :  { %7220 = vmatprep.subr.bf16.mxu0 %v11786_v18  ;;  %v11813_v18 = vld [vmem:[%s17084_s1 + $0x136c] ss:$12 sps:$4 sm:$0xff]  }
 0x332   :  { %7176 = vmatmul.mubr.bf16.gmra.mrb[16].mxu0 %v16509_v58  ;;  %v16756_v58 = vcombine.low %v16284_v5, %v16284_v5  ;;  %v11798_v5 = vld [vmem:[%s17084_s1 + $0x1308] ss:$12 sps:$4 sm:$0xff]  }
 0x333   :  { %8535 = vmatmul.mubr.bf16.gmra.mrb[128].mxu1 %v16161_v62  ;;  %7221 = vmatpush1.bf16.msra.mxu0 %v11784_v45  ;;  %v10095_v61 = vpop.f32.mrb[24].mxu1 }
 0x334   :  { %7222 = vmatprep.subr.bf16.mxu0 %v11790_v19  ;;  %8542 = vmatprep.mubr.bf16.mxu1 %v16739_v37  ;;  %v10096_v43 = vpop.f32.mrb[25].mxu1 }
 0x335   :  { %7185 = vmatprep.mubr.bf16.mxu0 %v16523_v1  ;;  %v10097_v24 = vadd.f32 %v10096_v43, %v10095_v61  ;;  %v10098_v12 = vpop.f32.mrb[26].mxu1 }
 0x336   :  { %v10099_v55 = vpop.f32.mrb[27].mxu1 }
 0x337   :  { %7223 = vmatpush1.bf16.msra.mxu0 %v11788_v63  ;;  %v16765_v1 = vadd.f32 %v10097_v24, %v16577_v52  ;;  %v10100_v28 = vadd.f32 %v10099_v55, %v10098_v12  ;;  %v11804_v52 = vld [vmem:[%s17084_s1 + $0x1324] ss:$12 sps:$4 sm:$0xff]  }
 0x338   :  { %7224 = vmatprep.subr.bf16.mxu0 %v11796_v31 }
 0x339   :  { %v16773_v51 = vadd.f32 %v10100_v28, %v16585_v10 }
 0x33a   :  { %7186 = vmatmul.mubr.bf16.gmra.mrb[20].mxu0 %v16542_v20 }
 0x33b   :  { %8543 = vmatmul.mubr.bf16.gmra.mrb[132].mxu1 %v16756_v58  ;;  %7225 = vmatpush1.bf16.msra.mxu0 %v11794_v4  ;;  %v10101_v20 = vpop.f32.mrb[28].mxu1  ;;  %v17375_v4 = vld [vmem:[#allocation21_spill] sm:$0xff] }
 0x33c   :  { %7226 = vmatprep.subr.bf16.mxu0 %v11800_v25  ;;  %10342 = vmatprep.mubr.msk.bf16.mxu1 %vm11922_vm1, %v11921_v39  ;;  %v10102_v2 = vpop.f32.mrb[29].mxu1 }
 0x33d   :  { %7195 = vmatprep.mubr.bf16.mxu0 %v16553_v29  ;;  %v10103_v10 = vadd.f32 %v10102_v2, %v10101_v20  ;;  %v10104_v53 = vpop.f32.mrb[30].mxu1  ;;  %v17373_v29 = vld [vmem:[#allocation7_spill] sm:$0xff] }
 0x33e   :  { %v10105_v32 = vpop.f32.mrb[31].mxu1 }
 0x33f   :  { %7227 = vmatpush1.bf16.msra.mxu0 %v11798_v5  ;;  %v16788_v11 = vadd.f32 %v10103_v10, %v16602_v59  ;;  %v10106_v15 = vadd.f32 %v10105_v32, %v10104_v53  ;;  %v11810_v59 = vld [vmem:[%s17084_s1 + $0x1354] ss:$12 sps:$4 sm:$0xff]  }
 0x340   :  { %7228 = vmatprep.subr.bf16.mxu0 %v11804_v52 }
 0x341   :  { %v16796_v56 = vadd.f32 %v10106_v15, %v16609_v26 }
 0x342   :  { %7196 = vmatmul.mubr.bf16.gmra.mrb[24].mxu0 %v16568_v49 }
 0x343   :  { %10343 = vmatmul.mubr.bf16.vlgmr.msra.gmra.mrb[136].mxu1 %v17373_v29  ;;  %7229 = vmatpush1.bf16.msra.mxu0 %v11802_v30  ;;  %v10107_v49 = vpop.f32.mrb[32].mxu1 }
 0x344   :  { %7230 = vmatprep.subr.bf16.mxu0 %v11807_v21  ;;  %10346 = vmatprep.mubr.msk.bf16.mxu1 %vm11922_vm1, %v11921_v39  ;;  %v10108_v8 = vpop.f32.mrb[33].mxu1 }
 0x345   :  { %7236 = vmatprep.mubr.bf16.mxu0 %v17370_v36  ;;  %v10109_v54 = vadd.f32 %v10108_v8, %v10107_v49  ;;  %v10110_v26 = vpop.f32.mrb[34].mxu1  ;;  %v17374_v36 = vld [vmem:[#allocation14_spill] sm:$0xff] }
 0x346   :  { %v10111_v50 = vpop.f32.mrb[35].mxu1 }
 0x347   :  { %7231 = vmatpush1.bf16.msra.mxu0 %v11805_v16  ;;  %v16811_v27 = vadd.f32 %v10109_v54, %v16629_v33  ;;  %v10112_v45 = vadd.f32 %v10111_v50, %v10110_v26 }
 0x348   :  { %7232 = vmatprep.subr.bf16.mxu0 %v11810_v59 }
 0x349   :  { %v16818_v47 = vadd.f32 %v10112_v45, %v16638_v48 }
 0x34b   :  { %10347 = vmatmul.mubr.bf16.gmra.mrb[140].mxu1 %v17374_v36  ;;  %7233 = vmatpush1.bf16.msra.mxu0 %v11808_v7  ;;  %v10113_v19 = vpop.f32.mrb[36].mxu1 }
 0x34c   :  { %7234 = vmatprep.subr.bf16.mxu0 %v11813_v18  ;;  %10350 = vmatprep.mubr.msk.bf16.mxu1 %vm11922_vm1, %v11921_v39  ;;  %v10114_v22 = vpop.f32.mrb[37].mxu1 }
 0x34d   :  { %v10115_v33 = vadd.f32 %v10114_v22, %v10113_v19  ;;  %v10116_v63 = vpop.f32.mrb[38].mxu1 }
 0x34e   :  { %v10117_v31 = vpop.f32.mrb[39].mxu1 }
 0x34f   :  { %7235 = vmatpush1.bf16.msra.mxu0 %v11811_v38  ;;  %v16823_v61 = vadd.f32 %v10115_v33, %v16659_v6  ;;  %v10118_v43 = vadd.f32 %v10117_v31, %v10116_v63 }
 0x351   :  { %v16829_v48 = vadd.f32 %v10118_v43, %v16668_v35 }
 0x352   :  { %7237 = vmatmul.mubr.bf16.vlgmr.msra.gmra.mrb[0].mxu0 %v17371_v42  ;;  %v17376_v42 = vld [vmem:[#allocation29_spill] sm:$0xff] }
 0x353   :  { %10351 = vmatmul.mubr.bf16.gmra.mrb[144].mxu1 %v17375_v4  ;;  %7246 = vmatprep.mubr.bf16.mxu0 %v17372_v34  ;;  %v10119_v24 = vpop.f32.mrb[40].mxu1 }
 0x354   :  { %10354 = vmatprep.mubr.msk.bf16.mxu1 %vm11922_vm1, %v11921_v39  ;;  %v10120_v12 = vpop.f32.mrb[41].mxu1 }
 0x355   :  { %v10121_v25 = vadd.f32 %v10120_v12, %v10119_v24  ;;  %v10122_v55 = vpop.f32.mrb[42].mxu1 }
 0x356   :  { %v10123_v28 = vpop.f32.mrb[43].mxu1 }
 0x357   :  { %v16834_v6 = vadd.f32 %v10121_v25, %v16689_v60  ;;  %v10124_v5 = vadd.f32 %v10123_v28, %v10122_v55 }
 0x359   :  { %v16840_v34 = vadd.f32 %v10124_v5, %v16698_v57 }
 0x35a   :  { %7247 = vmatmul.mubr.bf16.gmra.mrb[4].mxu0 %v15732_v44  ;;  %v17377_v44 = vld [vmem:[#allocation37_spill] sm:$0xff] }
 0x35b   :  { %10355 = vmatmul.mubr.bf16.gmra.mrb[148].mxu1 %v17376_v42  ;;  %7256 = vmatprep.mubr.bf16.mxu0 %v15823_v40  ;;  %v10125_v35 = vpop.f32.mrb[44].mxu1 }
 0x35c   :  { %10358 = vmatprep.mubr.msk.bf16.mxu1 %vm11922_vm1, %v11921_v39  ;;  %v10126_v52 = vpop.f32.mrb[45].mxu1 }
 0x35d   :  { %v10127_v20 = vadd.f32 %v10126_v52, %v10125_v35  ;;  %v10128_v2 = vpop.f32.mrb[46].mxu1 }
 0x35e   :  { %v10129_v30 = vpop.f32.mrb[47].mxu1 }
 0x35f   :  { %v16845_v60 = vadd.f32 %v10127_v20, %v16716_v17  ;;  %v10130_v10 = vadd.f32 %v10129_v30, %v10128_v2 }
 0x361   :  { %v16851_v40 = vadd.f32 %v10130_v10, %v16724_v23 }
 0x362   :  { %7257 = vmatmul.mubr.bf16.gmra.mrb[8].mxu0 %v15835_v14  ;;  %v17378_v14 = vld [vmem:[#allocation44_spill] sm:$0xff] }
 0x363   :  { %10359 = vmatmul.mubr.bf16.gmra.mrb[152].mxu1 %v17377_v44  ;;  %7266 = vmatprep.mubr.bf16.mxu0 %v15937_v41  ;;  %v10131_v57 = vpop.f32.mrb[48].mxu1 }
 0x364   :  { %10362 = vmatprep.mubr.msk.bf16.mxu1 %vm11922_vm1, %v11921_v39  ;;  %v10132_v53 = vpop.f32.mrb[49].mxu1 }
 0x365   :  { %v10133_v21 = vadd.f32 %v10132_v53, %v10131_v57  ;;  %v10134_v32 = vpop.f32.mrb[50].mxu1 }
 0x366   :  { %v10135_v15 = vpop.f32.mrb[51].mxu1 }
 0x367   :  { %v16856_v17 = vadd.f32 %v10133_v21, %v16742_v46  ;;  %v17379_v46 = vld [vmem:[#allocation47_spill] sm:$0xff] }
 0x36a   :  { %7267 = vmatmul.mubr.bf16.gmra.mrb[12].mxu0 %v15949_v0 }
 0x36b   :  { %10363 = vmatmul.mubr.bf16.gmra.mrb[156].mxu1 %v17378_v14  ;;  %7276 = vmatprep.mubr.bf16.mxu0 %v16051_v9  ;;  %v10153_v41 = vpop.f32.mrb[52].mxu1 }
 0x36c   :  { %10366 = vmatprep.mubr.msk.bf16.mxu1 %vm11922_vm1, %v11921_v39  ;;  %v10154_v23 = vpop.f32.mrb[53].mxu1 }
 0x36d   :  { %v10155_v29 = vadd.f32 %v10154_v23, %v10153_v41  ;;  %v10156_v16 = vpop.f32.mrb[54].mxu1 }
 0x36e   :  { %v10157_v59 = vpop.f32.mrb[55].mxu1 }
 0x36f   :  { %v8321_v49 = vadd.f32 %v10155_v29, %v16765_v1  ;;  %v10158_v8 = vadd.f32 %v10157_v59, %v10156_v16 }
 0x371   :  { %v8324_v0 = vadd.f32 %v10158_v8, %v16773_v51 }
 0x372   :  { %7277 = vmatmul.mubr.bf16.gmra.mrb[16].mxu0 %v16063_v13 }
 0x373   :  { %10367 = vmatmul.mubr.bf16.gmra.mrb[160].mxu1 %v17379_v46  ;;  %7286 = vmatprep.mubr.bf16.mxu0 %v16149_v3 }
 0x374   :  { %v10159_v9 = vpop.f32.mrb[56].mxu1 }
 0x375   :  { %v10160_v7 = vpop.f32.mrb[57].mxu1 }
 0x376   :  { %v10161_v54 = vadd.f32 %v10160_v7, %v10159_v9  ;;  %v10162_v39 = vpop.f32.mrb[58].mxu1 }
 0x377   :  { %v10163_v26 = vpop.f32.mrb[59].mxu1 }
 0x378   :  { %v8329_v18 = vadd.f32 %v10161_v54, %v16788_v11  ;;  %v10164_v50 = vadd.f32 %v10163_v26, %v10162_v39 }
 0x37a   :  { %7287 = vmatmul.mubr.bf16.gmra.mrb[20].mxu0 %v16161_v62  ;;  %v8332_v13 = vadd.f32 %v10164_v50, %v16796_v56 }
 0x37b   :  { %7296 = vmatprep.mubr.bf16.mxu0 %v16739_v37 }
 0x37d   :  { %v10165_v1 = vpop.f32.mrb[60].mxu1 }
 0x37e   :  { %v10166_v45 = vpop.f32.mrb[61].mxu1 }
 0x37f   :  { %v10167_v36 = vadd.f32 %v10166_v45, %v10165_v1  ;;  %v10168_v3 = vpop.f32.mrb[62].mxu1 }
 0x380   :  { %v10169_v38 = vpop.f32.mrb[63].mxu1 }
 0x381   :  { %v8337_v51 = vadd.f32 %v10167_v36, %v16811_v27  ;;  %v10170_v19 = vadd.f32 %v10169_v38, %v10168_v3 }
 0x382   :  { %7297 = vmatmul.mubr.bf16.gmra.mrb[24].mxu0 %v16756_v58 }
 0x383   :  { %v8340_v22 = vadd.f32 %v10170_v19, %v16818_v47 }
 0x385   :  { %v10171_v11 = vpop.f32.mrb[64].mxu1 }
 0x386   :  { %v10172_v33 = vpop.f32.mrb[65].mxu1 }
 0x387   :  { %v10173_v63 = vadd.f32 %v10172_v33, %v10171_v11  ;;  %v10174_v62 = vpop.f32.mrb[66].mxu1 }
 0x388   :  { %v10175_v31 = vpop.f32.mrb[67].mxu1 }
 0x389   :  { %v8345_v37 = vadd.f32 %v10173_v63, %v16823_v61  ;;  %v10176_v56 = vadd.f32 %v10175_v31, %v10174_v62 }
 0x38b   :  { %v8348_v43 = vadd.f32 %v10176_v56, %v16829_v48 }
 0x38e   :  { %v10177_v4 = vpop.f32.mrb[68].mxu1 }
 0x38f   :  { %v10178_v24 = vpop.f32.mrb[69].mxu1 }
 0x390   :  { %v10179_v12 = vadd.f32 %v10178_v24, %v10177_v4  ;;  %v10180_v25 = vpop.f32.mrb[70].mxu1 }
 0x391   :  { %v10181_v27 = vpop.f32.mrb[71].mxu1 }
 0x392   :  { %v8353_v55 = vadd.f32 %v10179_v12, %v16834_v6  ;;  %v10182_v58 = vadd.f32 %v10181_v27, %v10180_v25 }
 0x394   :  { %v8356_v47 = vadd.f32 %v10182_v58, %v16840_v34 }
 0x396   :  { %v10183_v28 = vpop.f32.mrb[72].mxu1 }
 0x397   :  { %v10184_v5 = vpop.f32.mrb[73].mxu1 }
 0x398   :  { %v10185_v42 = vadd.f32 %v10184_v5, %v10183_v28  ;;  %v10186_v35 = vpop.f32.mrb[74].mxu1 }
 0x399   :  { %v10187_v52 = vpop.f32.mrb[75].mxu1 }
 0x39a   :  { %v8361_v61 = vadd.f32 %v10185_v42, %v16845_v60  ;;  %v10188_v20 = vadd.f32 %v10187_v52, %v10186_v35 }
 0x39c   :  { %v8364_v48 = vadd.f32 %v10188_v20, %v16851_v40 }
 0x39e   :  { %v10189_v2 = vpop.f32.mrb[76].mxu1 }
 0x39f   :  { %v10190_v30 = vpop.f32.mrb[77].mxu1 }
 0x3a0   :  { %v10191_v10 = vadd.f32 %v10190_v30, %v10189_v2  ;;  %v10192_v44 = vpop.f32.mrb[78].mxu1 }
 0x3a1   :  { %v10193_v57 = vpop.f32.mrb[79].mxu1 }
 0x3a2   :  { %v8369_v6 = vadd.f32 %v10191_v10, %v16856_v17 }
 0x3a6   :  { %v10211_v53 = vpop.f32.mrb[80].mxu1 }
 0x3a7   :  { %v10212_v21 = vpop.f32.mrb[81].mxu1 }
 0x3a8   :  { %v10213_v34 = vadd.f32 %v10212_v21, %v10211_v53  ;;  %v10214_v32 = vpop.f32.mrb[82].mxu1 }
 0x3a9   :  { %v10215_v15 = vpop.f32.mrb[83].mxu1 }
 0x3aa   :  { %v8409_v14 = vadd.f32 %v10213_v34, %v8321_v49  ;;  %v10216_v41 = vadd.f32 %v10215_v15, %v10214_v32 }
 0x3ac   :  { %v8412_v23 = vadd.f32 %v10216_v41, %v8324_v0 }
 0x3ae   :  { %v10217_v29 = vpop.f32.mrb[84].mxu1 }
 0x3af   :  { %v10218_v60 = vpop.f32.mrb[85].mxu1 }
 0x3b0   :  { %v10219_v16 = vadd.f32 %v10218_v60, %v10217_v29  ;;  %v10220_v59 = vpop.f32.mrb[86].mxu1 }
 0x3b1   :  { %v10221_v40 = vpop.f32.mrb[87].mxu1 }
 0x3b2   :  { %v8417_v8 = vadd.f32 %v10219_v16, %v8329_v18  ;;  %v10222_v46 = vadd.f32 %v10221_v40, %v10220_v59 }
 0x3b4   :  { %v8420_v9 = vadd.f32 %v10222_v46, %v8332_v13 }
 0x3b6   :  { %v10223_v7 = vpop.f32.mrb[88].mxu1 }
 0x3b7   :  { %v10224_v54 = vpop.f32.mrb[89].mxu1 }
 0x3b8   :  { %v10225_v39 = vadd.f32 %v10224_v54, %v10223_v7  ;;  %v10226_v17 = vpop.f32.mrb[90].mxu1 }
 0x3b9   :  { %v10227_v26 = vpop.f32.mrb[91].mxu1 }
 0x3ba   :  { %v8425_v50 = vadd.f32 %v10225_v39, %v8337_v51  ;;  %v10228_v1 = vadd.f32 %v10227_v26, %v10226_v17 }
 0x3bc   :  { %v8428_v45 = vadd.f32 %v10228_v1, %v8340_v22 }
 0x3be   :  { %v10229_v36 = vpop.f32.mrb[92].mxu1 }
 0x3bf   :  { %v10230_v49 = vpop.f32.mrb[93].mxu1 }
 0x3c0   :  { %v10231_v3 = vadd.f32 %v10230_v49, %v10229_v36  ;;  %v10232_v0 = vpop.f32.mrb[94].mxu1 }
 0x3c1   :  { %v10233_v38 = vpop.f32.mrb[95].mxu1 }
 0x3c2   :  { %v8433_v19 = vadd.f32 %v10231_v3, %v8345_v37  ;;  %v10234_v11 = vadd.f32 %v10233_v38, %v10232_v0 }
 0x3c4   :  { %v8436_v33 = vadd.f32 %v10234_v11, %v8348_v43 }
 0x3c6   :  { %v10235_v63 = vpop.f32.mrb[96].mxu1 }
 0x3c7   :  { %v10236_v18 = vpop.f32.mrb[97].mxu1 }
 0x3c8   :  { %v10237_v62 = vadd.f32 %v10236_v18, %v10235_v63  ;;  %v10238_v13 = vpop.f32.mrb[98].mxu1 }
 0x3c9   :  { %v10239_v31 = vpop.f32.mrb[99].mxu1 }
 0x3ca   :  { %v8441_v56 = vadd.f32 %v10237_v62, %v8353_v55  ;;  %v10240_v4 = vadd.f32 %v10239_v31, %v10238_v13 }
 0x3cc   :  { %v8444_v24 = vadd.f32 %v10240_v4, %v8356_v47 }
 0x3ce   :  { %v10241_v12 = vpop.f32.mrb[100].mxu1 }
 0x3cf   :  { %v10242_v51 = vpop.f32.mrb[101].mxu1 }
 0x3d0   :  { %v10243_v25 = vadd.f32 %v10242_v51, %v10241_v12  ;;  %v10244_v22 = vpop.f32.mrb[102].mxu1 }
 0x3d1   :  { %v10245_v27 = vpop.f32.mrb[103].mxu1 }
 0x3d2   :  { %v8449_v58 = vadd.f32 %v10243_v25, %v8361_v61  ;;  %v10246_v28 = vadd.f32 %v10245_v27, %v10244_v22 }
 0x3d4   :  { %v8452_v5 = vadd.f32 %v10246_v28, %v8364_v48 }
 0x3d6   :  { %v10247_v42 = vpop.f32.mrb[104].mxu1 }
 0x3d7   :  { %v10248_v37 = vpop.f32.mrb[105].mxu1 }
 0x3d8   :  { %v10249_v35 = vadd.f32 %v10248_v37, %v10247_v42  ;;  %v10250_v43 = vpop.f32.mrb[106].mxu1 }
 0x3d9   :  { %v10251_v52 = vpop.f32.mrb[107].mxu1 }
 0x3da   :  { %v8457_v20 = vadd.f32 %v10249_v35, %v8369_v6 }
 0x3de   :  { %v10269_v2 = vpop.f32.mrb[108].mxu1 }
 0x3df   :  { %v10270_v30 = vpop.f32.mrb[109].mxu1 }
 0x3e0   :  { %v10271_v10 = vadd.f32 %v10270_v30, %v10269_v2  ;;  %v10272_v55 = vpop.f32.mrb[110].mxu1  ;;  %v17380_v2 = vld [vmem:[#allocation2_spill] sm:$0xff] }
 0x3e1   :  { %v10273_v44 = vpop.f32.mrb[111].mxu1 }
 0x3e2   :  { %v10274_v47 = vadd.f32 %v10273_v44, %v10272_v55  ;;  %v8497_v57 = vadd.f32 %v10271_v10, %v8409_v14  ;;  %v1720_v55 = vsub.s32 1, %v17380_v2 }
 0x3e4   :  { %v8500_v53 = vadd.f32 %v10274_v47, %v8412_v23 }
 0x3e6   :  { %v10275_v21 = vpop.f32.mrb[112].mxu1 }
 0x3e7   :  { %v10276_v34 = vpop.f32.mrb[113].mxu1 }
 0x3e8   :  { %v10277_v32 = vadd.f32 %v10276_v34, %v10275_v21  ;;  %v10278_v61 = vpop.f32.mrb[114].mxu1  ;;  %v11919_v21 = vld [vmem:[%s17087_s2] sm:$0x7] }
 0x3e9   :  { %v10279_v15 = vpop.f32.mrb[115].mxu1 }
 0x3ea   :  { %v10280_v48 = vadd.f32 %v10279_v15, %v10278_v61  ;;  %v8505_v41 = vadd.f32 %v10277_v32, %v8417_v8  ;;  %v16914_v61 = vrot.slane %v11919_v21, %v1720_v55 }
 0x3ec   :  { %v8508_v29 = vadd.f32 %v10280_v48, %v8420_v9 }
 0x3ee   :  { %v10281_v60 = vpop.f32.mrb[116].mxu1 }
 0x3ef   :  { %v10282_v16 = vpop.f32.mrb[117].mxu1 }
 0x3f0   :  { %v10283_v59 = vadd.f32 %v10282_v16, %v10281_v60  ;;  %v10284_v6 = vpop.f32.mrb[118].mxu1 }
 0x3f1   :  { %v10285_v40 = vpop.f32.mrb[119].mxu1 }
 0x3f2   :  { %v10286_v46 = vadd.f32 %v10285_v40, %v10284_v6  ;;  %v8513_v7 = vadd.f32 %v10283_v59, %v8425_v50  ;;  %v17381_v40 = vld [vmem:[#allocation5_spill] sm:$0xff] }
 0x3f4   :  { %v16882_v54 = vadd.f32 %v10286_v46, %v8428_v45 }
 0x3f6   :  { %v10287_v39 = vpop.f32.mrb[120].mxu1 }
 0x3f7   :  { %v10288_v14 = vpop.f32.mrb[121].mxu1 }
 0x3f8   :  { %v10289_v23 = vadd.f32 %v10288_v14, %v10287_v39  ;;  %v10290_v17 = vpop.f32.mrb[122].mxu1 }
 0x3f9   :  { %v10291_v26 = vpop.f32.mrb[123].mxu1 }
 0x3fa   :  { %v10292_v1 = vadd.f32 %v10291_v26, %v10290_v17  ;;  %v16884_v36 = vadd.f32 %v10289_v23, %v8433_v19  ;;  %v17382_v26 = vld [vmem:[#allocation30_spill] sm:$0xff] }
 0x3fc   :  { %v16886_v49 = vadd.f32 %v10292_v1, %v8436_v33 }
 0x3fe   :  { %v10293_v8 = vpop.f32.mrb[124].mxu1 }
 0x3ff   :  { %v10294_v9 = vpop.f32.mrb[125].mxu1 }
 0x400   :  { %v10295_v3 = vadd.f32 %v10294_v9, %v10293_v8  ;;  %v10296_v0 = vpop.f32.mrb[126].mxu1 }
 0x401   :  { %v10297_v38 = vpop.f32.mrb[127].mxu1 }
 0x402   :  { %v10298_v11 = vadd.f32 %v10297_v38, %v10296_v0  ;;  %v16888_v63 = vadd.f32 %v10295_v3, %v8441_v56 }
 0x404   :  { %v16890_v50 = vadd.f32 %v10298_v11, %v8444_v24 }
 0x406   :  { %v10299_v45 = vpop.f32.mrb[128].mxu1 }
 0x407   :  { %v10300_v18 = vpop.f32.mrb[129].mxu1 }
 0x408   :  { %v10301_v62 = vadd.f32 %v10300_v18, %v10299_v45  ;;  %v10302_v13 = vpop.f32.mrb[130].mxu1  ;;  %v17384_v18 = vld [vmem:[#allocation50_spill] sm:$0xff] }
 0x409   :  { %v10303_v31 = vpop.f32.mrb[131].mxu1 }
 0x40a   :  { %v10304_v4 = vadd.f32 %v10303_v31, %v10302_v13  ;;  %v16892_v19 = vadd.f32 %v10301_v62, %v8449_v58 }
 0x40c   :  { %v16894_v33 = vadd.f32 %v10304_v4, %v8452_v5 }
 0x40e   :  { %v10305_v12 = vpop.f32.mrb[132].mxu1 }
 0x40f   :  { %v10306_v51 = vpop.f32.mrb[133].mxu1 }
 0x410   :  { %v10307_v25 = vadd.f32 %v10306_v51, %v10305_v12  ;;  %v10308_v22 = vpop.f32.mrb[134].mxu1 }
 0x411   :  { %v10309_v27 = vpop.f32.mrb[135].mxu1 }
 0x412   :  { %v16896_v28 = vadd.f32 %v10307_v25, %v8457_v20  ;;  %v1716_v20 = vsub.s32 0, %v17380_v2 }
 0x414   :  { %v16909_v34 = vrot.slane %v11919_v21, %v1716_v20 }
 0x416   :  { %v8584_v56 = vpop.f32.mrb[136].mxu1 }
 0x417   :  { %v8585_v24 = vadd.f32 %v8584_v56, %v8497_v57  ;;  %v10344_v42 = vpop.f32.mrb[137].mxu1 }
 0x418   :  { %v8587_v37 = vpop.f32.mrb[138].mxu1 }
 0x419   :  { %v8640_v35 = vmax.f32 %v8585_v24, 0.0  ;;  %v8588_v43 = vadd.f32 %v8587_v37, %v8500_v53  ;;  %v10345_v52 = vpop.f32.mrb[139].mxu1  ;;  %v17385_v24 = vld [vmem:[#allocation51_spill] sm:$0xff] }
 0x41b   :  { %8679 = vst [vmem:[%s17086_s3 + $0x28] sm:$0xff] %v8640_v35  ;;  %v8643_v58 = vmax.f32 %v8588_v43, 0.0 }
 0x41d   :  { %8682 = vst [vmem:[%s17086_s3 + $0x58] sm:$0xff] %v8643_v58  ;;  %v17386_v58 = vld [vmem:[#allocation52_spill] sm:$0xff] }
 0x41e   :  { %v8592_v5 = vpop.f32.mrb[140].mxu1 }
 0x41f   :  { %v8593_v30 = vadd.f32 %v8592_v5, %v8505_v41  ;;  %v10348_v10 = vpop.f32.mrb[141].mxu1 }
 0x420   :  { %v8595_v44 = vpop.f32.mrb[142].mxu1 }
 0x421   :  { %v8646_v47 = vmax.f32 %v8593_v30, 0.0  ;;  %v8596_v57 = vadd.f32 %v8595_v44, %v8508_v29  ;;  %v10349_v53 = vpop.f32.mrb[143].mxu1 }
 0x423   :  { %8685 = vst [vmem:[%s17086_s3 + $0x88] sm:$0xff] %v8646_v47  ;;  %v8649_v32 = vmax.f32 %v8596_v57, 0.0  ;;  %v17388_v57 = vld [vmem:[#allocation54_spill] sm:$0xff] }
 0x425   :  { %8688 = vst [vmem:[%s17086_s3 + $0xb8] sm:$0xff] %v8649_v32  ;;  %v7238_v15 = vpop.f32.mrb[0].mxu0 }
 0x426   :  { %v10370_v48 = vadd.f32 %v7238_v15, %v16909_v34  ;;  %v8600_v41 = vpop.f32.mrb[144].mxu1  ;;  %v7240_v29 = vpop.f32.mrb[1].mxu0 }
 0x427   :  { %v8601_v60 = vadd.f32 %v8600_v41, %v8513_v7  ;;  %v10372_v16 = vadd.f32 %v7240_v29, %v16914_v61  ;;  %v10352_v59 = vpop.f32.mrb[145].mxu1  ;;  %v7242_v6 = vpop.f32.mrb[2].mxu0  ;;  %v17383_v7 = vld [vmem:[#allocation49_spill] sm:$0xff] }
 0x428   :  { %v10371_v46 = vadd.f32 %v10370_v48, %v17381_v40  ;;  %v10374_v39 = vadd.f32 %v7242_v6, %v16909_v34  ;;  %v8603_v14 = vpop.f32.mrb[146].mxu1  ;;  %v7244_v23 = vpop.f32.mrb[3].mxu0  ;;  %v17389_v6 = vld [vmem:[#allocation55_spill] sm:$0xff] }
 0x429   :  { %v8652_v17 = vmax.f32 %v8601_v60, 0.0  ;;  %v10373_v1 = vadd.f32 %v10372_v16, %v17382_v26  ;;  %v8604_v8 = vadd.f32 %v8603_v14, %v16882_v54  ;;  %v10376_v9 = vadd.f32 %v7244_v23, %v16914_v61  ;;  %v10353_v3 = vpop.f32.mrb[147].mxu1 }
 0x42a   :  { %v8638_v0 = vmax.f32 %v10371_v46, 0.0  ;;  %v10375_v38 = vadd.f32 %v10374_v39, %v17383_v7 }
 0x42b   :  { %8691 = vst [vmem:[%s17086_s3 + $0xe8] sm:$0xff] %v8652_v17  ;;  %v8639_v11 = vmax.f32 %v10373_v1, 0.0  ;;  %v8655_v45 = vmax.f32 %v8604_v8, 0.0  ;;  %v10377_v62 = vadd.f32 %v10376_v9, %v17384_v18  ;;  %v17390_v17 = vld [vmem:[#allocation56_spill] sm:$0xff] }
 0x42c   :  { %8677 = vst [vmem:[%s17086_s3 + $0x18] sm:$0xff] %v8638_v0  ;;  %v8641_v13 = vmax.f32 %v10375_v38, 0.0 }
 0x42d   :  { %8678 = vst [vmem:[%s17086_s3 + $0x20] sm:$0xff] %v8639_v11  ;;  %8694 = vst [vmem:[%s17086_s3 + $0x118] sm:$0xff] %v8655_v45  ;;  %v8642_v54 = vmax.f32 %v10377_v62, 0.0  ;;  %v7248_v31 = vpop.f32.mrb[4].mxu0  ;;  %v17392_v11 = vld [vmem:[#allocation58_spill] sm:$0xff] }
 0x42e   :  { %8680 = vst [vmem:[%s17086_s3 + $0x48] sm:$0xff] %v8641_v13  ;;  %v10378_v4 = vadd.f32 %v7248_v31, %v16909_v34  ;;  %v8608_v12 = vpop.f32.mrb[148].mxu1  ;;  %v7250_v51 = vpop.f32.mrb[5].mxu0 }
 0x42f   :  { %8681 = vst [vmem:[%s17086_s3 + $0x50] sm:$0xff] %v8642_v54  ;;  %v8609_v25 = vadd.f32 %v8608_v12, %v16884_v36  ;;  %v10380_v22 = vadd.f32 %v7250_v51, %v16914_v61  ;;  %v10356_v27 = vpop.f32.mrb[149].mxu1  ;;  %v7252_v56 = vpop.f32.mrb[6].mxu0  ;;  %v17387_v36 = vld [vmem:[#allocation53_spill] sm:$0xff] }
 0x430   :  { %v10379_v42 = vadd.f32 %v10378_v4, %v17385_v24  ;;  %v10382_v37 = vadd.f32 %v7252_v56, %v16909_v34  ;;  %v8611_v35 = vpop.f32.mrb[150].mxu1  ;;  %v7254_v43 = vpop.f32.mrb[7].mxu0 }
 0x431   :  { %v8658_v52 = vmax.f32 %v8609_v25, 0.0  ;;  %v10381_v5 = vadd.f32 %v10380_v22, %v17386_v58  ;;  %v8612_v2 = vadd.f32 %v8611_v35, %v16886_v49  ;;  %v10384_v20 = vadd.f32 %v7254_v43, %v16914_v61  ;;  %v10357_v30 = vpop.f32.mrb[151].mxu1  ;;  %v17393_v22 = vld [vmem:[#allocation59_spill] sm:$0xff]  ;;  %v17394_v35 = vld [vmem:[#allocation60_spill] sm:$0xff] }
 0x432   :  { %v8644_v10 = vmax.f32 %v10379_v42, 0.0  ;;  %v10383_v55 = vadd.f32 %v10382_v37, %v17387_v36  ;;  %v17396_v36 = vld [vmem:[#allocation62_spill] sm:$0xff] }
 0x433   :  { %8697 = vst [vmem:[%s17086_s3 + $0x148] sm:$0xff] %v8658_v52  ;;  %v8645_v44 = vmax.f32 %v10381_v5, 0.0  ;;  %v8661_v47 = vmax.f32 %v8612_v2, 0.0  ;;  %v10385_v53 = vadd.f32 %v10384_v20, %v17388_v57 }
 0x434   :  { %8683 = vst [vmem:[%s17086_s3 + $0x78] sm:$0xff] %v8644_v10  ;;  %v8647_v21 = vmax.f32 %v10383_v55, 0.0 }
 0x435   :  { %8684 = vst [vmem:[%s17086_s3 + $0x80] sm:$0xff] %v8645_v44  ;;  %8700 = vst [vmem:[%s17086_s3 + $0x178] sm:$0xff] %v8661_v47  ;;  %v8648_v49 = vmax.f32 %v10385_v53, 0.0  ;;  %v7258_v32 = vpop.f32.mrb[8].mxu0 }
 0x436   :  { %8686 = vst [vmem:[%s17086_s3 + $0xa8] sm:$0xff] %v8647_v21  ;;  %v10386_v15 = vadd.f32 %v7258_v32, %v16909_v34  ;;  %v8616_v48 = vpop.f32.mrb[152].mxu1  ;;  %v7260_v41 = vpop.f32.mrb[9].mxu0 }
 0x437   :  { %8687 = vst [vmem:[%s17086_s3 + $0xb0] sm:$0xff] %v8648_v49  ;;  %v8617_v29 = vadd.f32 %v8616_v48, %v16888_v63  ;;  %v10388_v60 = vadd.f32 %v7260_v41, %v16914_v61  ;;  %v10360_v16 = vpop.f32.mrb[153].mxu1  ;;  %v7262_v59 = vpop.f32.mrb[10].mxu0  ;;  %v17391_v63 = vld [vmem:[#allocation57_spill] sm:$0xff]  ;;  %v17397_v41 = vld [vmem:[#allocation63_spill] sm:$0xff] }
 0x438   :  { %v10387_v40 = vadd.f32 %v10386_v15, %v17389_v6  ;;  %v10390_v46 = vadd.f32 %v7262_v59, %v16909_v34  ;;  %v8619_v39 = vpop.f32.mrb[154].mxu1  ;;  %v7264_v14 = vpop.f32.mrb[11].mxu0 }
 0x439   :  { %v8664_v23 = vmax.f32 %v8617_v29, 0.0  ;;  %v10389_v26 = vadd.f32 %v10388_v60, %v17390_v17  ;;  %v8620_v1 = vadd.f32 %v8619_v39, %v16890_v50  ;;  %v10392_v8 = vadd.f32 %v7264_v14, %v16914_v61  ;;  %v10361_v9 = vpop.f32.mrb[155].mxu1  ;;  %v17399_v17 = vld [vmem:[#allocation65_spill] sm:$0xff] }
 0x43a   :  { %v8650_v3 = vmax.f32 %v10387_v40, 0.0  ;;  %v10391_v0 = vadd.f32 %v10390_v46, %v17391_v63  ;;  %v17398_v40 = vld [vmem:[#allocation64_spill] sm:$0xff] }
 0x43b   :  { %8703 = vst [vmem:[%s17086_s3 + $0x1a8] sm:$0xff] %v8664_v23  ;;  %v8651_v7 = vmax.f32 %v10389_v26, 0.0  ;;  %v8667_v38 = vmax.f32 %v8620_v1, 0.0  ;;  %v10393_v45 = vadd.f32 %v10392_v8, %v17392_v11  ;;  %v17400_v1 = vld [vmem:[#allocation66_spill] sm:$0xff] }
 0x43c   :  { %8689 = vst [vmem:[%s17086_s3 + $0xd8] sm:$0xff] %v8650_v3  ;;  %v8653_v18 = vmax.f32 %v10391_v0, 0.0 }
 0x43d   :  { %8690 = vst [vmem:[%s17086_s3 + $0xe0] sm:$0xff] %v8651_v7  ;;  %8706 = vst [vmem:[%s17086_s3 + $0x1d8] sm:$0xff] %v8667_v38  ;;  %v8654_v50 = vmax.f32 %v10393_v45, 0.0  ;;  %v7268_v62 = vpop.f32.mrb[12].mxu0  ;;  %v17401_v45 = vld [vmem:[#allocation67_spill] sm:$0xff] }
 0x43e   :  { %8692 = vst [vmem:[%s17086_s3 + $0x108] sm:$0xff] %v8653_v18  ;;  %v10394_v13 = vadd.f32 %v7268_v62, %v16909_v34  ;;  %v8624_v54 = vpop.f32.mrb[156].mxu1  ;;  %v7270_v31 = vpop.f32.mrb[13].mxu0 }
 0x43f   :  { %8693 = vst [vmem:[%s17086_s3 + $0x110] sm:$0xff] %v8654_v50  ;;  %v8625_v4 = vadd.f32 %v8624_v54, %v16892_v19  ;;  %v10396_v12 = vadd.f32 %v7270_v31, %v16914_v61  ;;  %v10364_v51 = vpop.f32.mrb[157].mxu1  ;;  %v7272_v25 = vpop.f32.mrb[14].mxu0  ;;  %v17395_v19 = vld [vmem:[#allocation61_spill] sm:$0xff] }
 0x440   :  { %v10395_v27 = vadd.f32 %v10394_v13, %v17393_v22  ;;  %v10398_v56 = vadd.f32 %v7272_v25, %v16909_v34  ;;  %v8627_v24 = vpop.f32.mrb[158].mxu1  ;;  %v7274_v42 = vpop.f32.mrb[15].mxu0  ;;  %v17402_v13 = vld [vmem:[#allocation68_spill] sm:$0xff]  ;;  %v17404_v22 = vld [vmem:[#allocation70_spill] sm:$0xff] }
 0x441   :  { %v8670_v37 = vmax.f32 %v8625_v4, 0.0  ;;  %v10397_v43 = vadd.f32 %v10396_v12, %v17394_v35  ;;  %v8628_v52 = vadd.f32 %v8627_v24, %v16894_v33  ;;  %v10400_v58 = vadd.f32 %v7274_v42, %v16914_v61  ;;  %v10365_v5 = vpop.f32.mrb[159].mxu1  ;;  %v17403_v12 = vld [vmem:[#allocation69_spill] sm:$0xff] }
 0x442   :  { %v8656_v2 = vmax.f32 %v10395_v27, 0.0  ;;  %v10399_v20 = vadd.f32 %v10398_v56, %v17395_v19  ;;  %v17406_v19 = vld [vmem:[#allocation72_spill] sm:$0xff] }
 0x443   :  { %8709 = vst [vmem:[%s17086_s3 + $0x208] sm:$0xff] %v8670_v37  ;;  %v8657_v30 = vmax.f32 %v10397_v43, 0.0  ;;  %v8673_v10 = vmax.f32 %v8628_v52, 0.0  ;;  %v10401_v55 = vadd.f32 %v10400_v58, %v17396_v36  ;;  %v17405_v58 = vld [vmem:[#allocation71_spill] sm:$0xff] }
 0x444   :  { %8695 = vst [vmem:[%s17086_s3 + $0x138] sm:$0xff] %v8656_v2  ;;  %v8659_v44 = vmax.f32 %v10399_v20, 0.0 }
 0x445   :  { %8696 = vst [vmem:[%s17086_s3 + $0x140] sm:$0xff] %v8657_v30  ;;  %8712 = vst [vmem:[%s17086_s3 + $0x238] sm:$0xff] %v8673_v10  ;;  %v8660_v33 = vmax.f32 %v10401_v55, 0.0  ;;  %v7278_v47 = vpop.f32.mrb[16].mxu0 }
 0x446   :  { %8698 = vst [vmem:[%s17086_s3 + $0x168] sm:$0xff] %v8659_v44  ;;  %v10402_v57 = vadd.f32 %v7278_v47, %v16909_v34  ;;  %v8632_v53 = vpop.f32.mrb[160].mxu1  ;;  %v7280_v21 = vpop.f32.mrb[17].mxu0 }
 0x447   :  { %8699 = vst [vmem:[%s17086_s3 + $0x170] sm:$0xff] %v8660_v33  ;;  %v8633_v49 = vadd.f32 %v8632_v53, %v16896_v28  ;;  %v10404_v32 = vadd.f32 %v7280_v21, %v16914_v61  ;;  %v7282_v15 = vpop.f32.mrb[18].mxu0  ;;  %v10368_v48 = vpop.f32.mrb[161].mxu1 }
 0x448   :  { %v10403_v29 = vadd.f32 %v10402_v57, %v17397_v41  ;;  %v10406_v60 = vadd.f32 %v7282_v15, %v16909_v34  ;;  %v7284_v16 = vpop.f32.mrb[19].mxu0  ;;  %v8635_v59 = vpop.f32.mrb[162].mxu1 }
 0x449   :  { %v8676_v6 = vmax.f32 %v8633_v49, 0.0  ;;  %v10405_v46 = vadd.f32 %v10404_v32, %v17398_v40  ;;  %v10408_v39 = vadd.f32 %v7284_v16, %v16914_v61  ;;  %v10369_v14 = vpop.f32.mrb[163].mxu1 }
 0x44a   :  { %v8662_v23 = vmax.f32 %v10403_v29, 0.0  ;;  %v10407_v26 = vadd.f32 %v10406_v60, %v17399_v17 }
 0x44b   :  { %8715 = vst [vmem:[%s17086_s3 + $0x268] sm:$0xff] %v8676_v6  ;;  %v8663_v28 = vmax.f32 %v10405_v46, 0.0  ;;  %v10409_v8 = vadd.f32 %v10408_v39, %v17400_v1 }
 0x44c   :  { %8701 = vst [vmem:[%s17086_s3 + $0x198] sm:$0xff] %v8662_v23  ;;  %v8665_v9 = vmax.f32 %v10407_v26, 0.0 }
 0x44d   :  { %8702 = vst [vmem:[%s17086_s3 + $0x1a0] sm:$0xff] %v8663_v28  ;;  %v8666_v3 = vmax.f32 %v10409_v8, 0.0  ;;  %v7288_v63 = vpop.f32.mrb[20].mxu0 }
 0x44e   :  { %8704 = vst [vmem:[%s17086_s3 + $0x1c8] sm:$0xff] %v8665_v9  ;;  %v10410_v0 = vadd.f32 %v7288_v63, %v16909_v34  ;;  %v7290_v7 = vpop.f32.mrb[21].mxu0 }
 0x44f   :  { %8705 = vst [vmem:[%s17086_s3 + $0x1d0] sm:$0xff] %v8666_v3  ;;  %v10412_v38 = vadd.f32 %v7290_v7, %v16914_v61  ;;  %v7292_v11 = vpop.f32.mrb[22].mxu0 }
 0x450   :  { %v10411_v18 = vadd.f32 %v10410_v0, %v17401_v45  ;;  %v10414_v50 = vadd.f32 %v7292_v11, %v16909_v34  ;;  %v7294_v62 = vpop.f32.mrb[23].mxu0 }
 0x451   :  { %v10413_v54 = vadd.f32 %v10412_v38, %v17402_v13  ;;  %v10416_v31 = vadd.f32 %v7294_v62, %v16914_v61 }
 0x452   :  { %v8668_v4 = vmax.f32 %v10411_v18, 0.0  ;;  %v10415_v51 = vadd.f32 %v10414_v50, %v17403_v12 }
 0x453   :  { %v8669_v25 = vmax.f32 %v10413_v54, 0.0  ;;  %v10417_v27 = vadd.f32 %v10416_v31, %v17404_v22 }
 0x454   :  { %8707 = vst [vmem:[%s17086_s3 + $0x1f8] sm:$0xff] %v8668_v4  ;;  %v8671_v56 = vmax.f32 %v10415_v51, 0.0 }
 0x455   :  { %8708 = vst [vmem:[%s17086_s3 + $0x200] sm:$0xff] %v8669_v25  ;;  %v8672_v24 = vmax.f32 %v10417_v27, 0.0  ;;  %v7298_v42 = vpop.f32.mrb[24].mxu0 }
 0x456   :  { %8710 = vst [vmem:[%s17086_s3 + $0x228] sm:$0xff] %v8671_v56  ;;  %v10418_v37 = vadd.f32 %v7298_v42, %v16909_v34  ;;  %v7300_v35 = vpop.f32.mrb[25].mxu0 }
 0x457   :  { %8711 = vst [vmem:[%s17086_s3 + $0x230] sm:$0xff] %v8672_v24  ;;  %v10420_v43 = vadd.f32 %v7300_v35, %v16914_v61  ;;  %v7302_v52 = vpop.f32.mrb[26].mxu0 }
 0x458   :  { %v10419_v5 = vadd.f32 %v10418_v37, %v17405_v58  ;;  %v7303_v2 = vpop.f32.mrb[27].mxu0 }
 0x459   :  { %v10421_v20 = vadd.f32 %v10420_v43, %v17406_v19 }
 0x45a   :  { %v8674_v30 = vmax.f32 %v10419_v5, 0.0 }
 0x45b   :  { %v8675_v10 = vmax.f32 %v10421_v20, 0.0 }
 0x45c   :  { %8713 = vst [vmem:[%s17086_s3 + $0x258] sm:$0xff] %v8674_v30 }
 0x45d   :  { %8714 = vst [vmem:[%s17086_s3 + $0x260] sm:$0xff] %v8675_v10 }

</bundles_post_ra>
